<compile_context>
chip_gen: v7x
topology: tpu7x:2x2x1
jax: 0.10.0
libtpu: 0.0.40
codegen_flags: <defaults>
</compile_context>

<pallas_src>
import functools

import jax
import jax.numpy as jnp
from jax.experimental import pallas as pl
from jax.experimental.pallas import tpu as pltpu


def _round_up(x, m):
    return ((x + m - 1) // m) * m


def _lane(x):
    # VMEM lane padding of the minor dimension.
    return _round_up(x, 128)


def _vmem_limit_bytes():
    try:
        cap = int(getattr(pltpu.get_tpu_info(), "vmem_capacity_bytes",
                          64 * 1024 * 1024))
    except Exception:
        cap = 64 * 1024 * 1024          # v7x per-TensorCore size (smallest)
    return min(cap // 2, 40 * 1024 * 1024)


_VMEM_LIMIT = _vmem_limit_bytes()
_TILE_BUDGET = int(_VMEM_LIMIT * 0.55)  # budget for live (double-buffered) tiles
_MAX_TM = 4096


def _split_rows(m, tm_max, min_rows=16):
    """Pick a row-tile size: multiple of 16, >= min_rows, minimal padding."""
    tm_max = max(16, min(int(tm_max), _MAX_TM))
    tm_max = max(tm_max, min_rows)
    if m <= tm_max:
        return _round_up(max(m, min_rows), 16), 1
    nblocks = -(-m // tm_max)
    tm = _round_up(-(-m // nblocks), 16)
    tm = max(tm, _round_up(min_rows, 16))
    nblocks = -(-m // tm)
    return tm, nblocks


# ----------------------------------------------------------------------------
# Pallas kernel 1: full-K, full-N matmul with fused scale/bias (+ReLU) epilogue.
# bf16 operands, f32 MXU accumulation, bf16 output.  1-D grid over M row tiles.
# ----------------------------------------------------------------------------
def _mm_kernel(a_ref, b_ref, sb_ref, o_ref, *, relu):
    y = jnp.dot(a_ref[...], b_ref[...], preferred_element_type=jnp.float32)
    y = y * sb_ref[0:1, :] + sb_ref[1:2, :]
    if relu:
        y = jnp.maximum(y, 0.0)
    o_ref[...] = y.astype(o_ref.dtype)


@functools.partial(jax.jit, static_argnames=("relu",))
def matmul_scale_bias(a, b, scale, bias, *, relu):
    """out = act((a @ b) * scale + bias); a:(M,K), b:(K,N), scale/bias:(N,).

    K and N are full-extent blocks (no padding); the weight slab (<= ~5 MiB bf16
    in this network) is fetched from HBM once.  Only M is tiled, with the tile
    size scaled inversely with K/N under the per-generation VMEM budget.
    """
    m, k = a.shape
    n = b.shape[1]
    per_row = 6 * _lane(k) + 12 * _lane(n)            # A + out + f32 temporaries
    wbytes = 4 * _round_up(k, 16) * _lane(n)          # double-buffered weight slab
    tm, nblocks = _split_rows(m, max(256, (_TILE_BUDGET - wbytes) // per_row))
    mp = tm * nblocks

    ap = a.astype(jnp.bfloat16)
    if mp != m:
        ap = jnp.pad(ap, ((0, mp - m), (0, 0)))
    bp = b.astype(jnp.bfloat16)
    sb = jnp.stack([scale, bias]).astype(jnp.float32)  # packed (2, N)

    out = pl.pallas_call(
        functools.partial(_mm_kernel, relu=relu),
        out_shape=jax.ShapeDtypeStruct((mp, n), jnp.bfloat16),
        grid_spec=pltpu.PrefetchScalarGridSpec(
            num_scalar_prefetch=0,
            grid=(nblocks,),
            in_specs=[
                pl.BlockSpec((tm, k), lambda i: (i, 0)),
                pl.BlockSpec((k, n), lambda i: (0, 0)),     # constant -> one DMA
                pl.BlockSpec((2, n), lambda i: (0, 0)),
            ],
            out_specs=pl.BlockSpec((tm, n), lambda i: (i, 0))),
        compiler_params=pltpu.CompilerParams(
            dimension_semantics=("parallel",),
            vmem_limit_bytes=_VMEM_LIMIT),
        cost_estimate=pl.CostEstimate(
            flops=2 * mp * n * k, transcendentals=0,
            bytes_accessed=2 * (mp * k + k * n + mp * n) + 8 * n),
    )(ap, bp, sb)
    return out[:m] if mp != m else out


# ----------------------------------------------------------------------------
# Pallas kernel 2: direct stride-1 conv (no materialized im2col).
# The padded NHWC input is flattened to rows; tap (dy,dx) == row shift dy*WP+dx.
# Each grid step stages its row block + the next (halo) block in VMEM scratch
# and accumulates the kh*kw shifted GEMMs in f32.
# ----------------------------------------------------------------------------
def _dconv_kernel(xm_ref, xh_ref, w_ref, sb_ref, o_ref, xbuf, *, taps, tm, relu):
    xbuf[0:tm, :] = xm_ref[...]
    xbuf[tm:2 * tm, :] = xh_ref[...]
    acc = jnp.dot(xbuf[taps[0]:taps[0] + tm, :], w_ref[0],
                  preferred_element_type=jnp.float32)
    for t in range(1, len(taps)):
        s = taps[t]
        acc = acc + jnp.dot(xbuf[s:s + tm, :], w_ref[t],
                            preferred_element_type=jnp.float32)
    y = acc * sb_ref[0:1, :] + sb_ref[1:2, :]
    if relu:
        y = jnp.maximum(y, 0.0)
    o_ref[...] = y.astype(o_ref.dtype)


@functools.partial(jax.jit, static_argnames=("padding",))
def direct_conv_bn_relu(x, p, *, padding):
    """Stride-1 kh x kw conv + folded BN + ReLU.  x: NHWC bf16."""
    w = p["w"]
    kh, kw, cin, cout = w.shape
    n, h, wd, _ = x.shape
    ph, pw = padding
    oh = h + 2 * ph - kh + 1
    ow = wd + 2 * pw - kw + 1
    hp = h + 2 * ph                      # == oh + kh - 1
    wp = wd + 2 * pw                     # == ow + kw - 1

    xp = x
    if ph or pw:
        xp = jnp.pad(x, ((0, 0), (ph, ph), (pw, pw), (0, 0)))
    r = n * hp * wp
    s_max = (kh - 1) * wp + (kw - 1)     # largest flat-row shift; needs tm >= s_max

    per_row = 16 * _lane(cin) + 16 * _lane(cout)
    wbytes = 4 * kh * kw * _round_up(cin, 16) * _lane(cout)
    tm, nblocks = _split_rows(r, max(256, (_TILE_BUDGET - wbytes) // per_row),
                              min_rows=s_max)

    x2 = jnp.pad(xp.reshape(r, cin), ((0, (nblocks + 1) * tm - r), (0, 0)))
    wt = w.reshape(kh * kw, cin, cout)                       # tap-major weights
    sb = jnp.stack([p["scale"], p["bias"]]).astype(jnp.float32)
    taps = tuple(dy * wp + dx for dy in range(kh) for dx in range(kw))

    out = pl.pallas_call(
        functools.partial(_dconv_kernel, taps=taps, tm=tm, relu=True),
        out_shape=jax.ShapeDtypeStruct((nblocks * tm, cout), jnp.bfloat16),
        grid_spec=pltpu.PrefetchScalarGridSpec(
            num_scalar_prefetch=0,
            grid=(nblocks,),
            in_specs=[
                pl.BlockSpec((tm, cin), lambda i: (i, 0)),        # main block
                pl.BlockSpec((tm, cin), lambda i: (i + 1, 0)),    # halo block
                pl.BlockSpec((kh * kw, cin, cout), lambda i: (0, 0, 0)),
                pl.BlockSpec((2, cout), lambda i: (0, 0)),
            ],
            out_specs=pl.BlockSpec((tm, cout), lambda i: (i, 0)),
            scratch_shapes=[pltpu.VMEM((2 * tm, cin), jnp.bfloat16)]),
        compiler_params=pltpu.CompilerParams(
            dimension_semantics=("parallel",),
            vmem_limit_bytes=_VMEM_LIMIT),
        cost_estimate=pl.CostEstimate(
            flops=2 * nblocks * tm * kh * kw * cin * cout, transcendentals=0,
            bytes_accessed=2 * (2 * (nblocks + 1) * tm * cin
                                + nblocks * tm * cout + kh * kw * cin * cout)),
    )(x2, x2, wt, sb)
    # Padding / inter-image rows are garbage and are sliced away here.
    return out[:r].reshape(n, hp, wp, cout)[:, :oh, :ow, :]


# ----------------------------------------------------------------------------
# Conv / pooling / linear wrappers (glue is plain JAX, heavy math is Pallas)
# ----------------------------------------------------------------------------
def _im2col(x, kh, kw, sh, sw, ph, pw):
    n, h, wd, c = x.shape
    xp = jnp.pad(x, ((0, 0), (ph, ph), (pw, pw), (0, 0))) if (ph or pw) else x
    oh = (h + 2 * ph - kh) // sh + 1
    ow = (wd + 2 * pw - kw) // sw + 1
    if kh == 1 and kw == 1 and sh == 1 and sw == 1:
        return xp.reshape(n * oh * ow, c), oh, ow
    cols = []
    for dy in range(kh):
        for dx in range(kw):
            cols.append(jax.lax.slice(
                xp, (0, dy, dx, 0),
                (n, dy + (oh - 1) * sh + 1, dx + (ow - 1) * sw + 1, c),
                (1, sh, sw, 1)))
    patches = jnp.concatenate(cols, axis=-1)
    return patches.reshape(n * oh * ow, kh * kw * c), oh, ow


def conv_bn_relu(x, p, stride=(1, 1), padding=(0, 0)):
    """x: NHWC.  p: {'w': (kh,kw,cin,cout) bf16, 'scale','bias': (cout,) f32}."""
    x = x.astype(jnp.bfloat16)
    w = p["w"]
    kh, kw, cin, cout = w.shape
    n, h, wd, _ = x.shape
    oh = (h + 2 * padding[0] - kh) // stride[0] + 1
    ow = (wd + 2 * padding[1] - kw) // stride[1] + 1
    m = n * oh * ow

    if m < 128:
        # Tiny GEMMs (aux tower): plain XLA dot beats a padded pallas_call.
        a, oh, ow = _im2col(x, kh, kw, stride[0], stride[1],
                            padding[0], padding[1])
        y = jnp.dot(a.astype(jnp.float32),
                    w.reshape(kh * kw * cin, cout).astype(jnp.float32),
                    preferred_element_type=jnp.float32)
        y = jnp.maximum(y * p["scale"] + p["bias"], 0.0)
        return y.reshape(n, oh, ow, cout).astype(jnp.bfloat16)

    if kh == 1 and kw == 1 and stride == (1, 1) and padding == (0, 0):
        y = matmul_scale_bias(x.reshape(m, cin), w.reshape(cin, cout),
                              p["scale"], p["bias"], relu=True)
        return y.reshape(n, oh, ow, cout)

    if stride == (1, 1):
        return direct_conv_bn_relu(x, p, padding=padding)

    # Few stride-2 reduction convs: small im2col + Pallas GEMM.
    a, oh, ow = _im2col(x, kh, kw, stride[0], stride[1], padding[0], padding[1])
    y = matmul_scale_bias(a, w.reshape(kh * kw * cin, cout),
                          p["scale"], p["bias"], relu=True)
    return y.reshape(n, oh, ow, cout)


def conv1x1_fused(x, plist):
    """Several 1x1 conv+BN+ReLU branches sharing input x, fused into one GEMM."""
    x = x.astype(jnp.bfloat16)
    n, h, wd, c = x.shape
    a = x.reshape(n * h * wd, c)
    b = jnp.concatenate([p["w"].reshape(c, p["w"].shape[3]) for p in plist], axis=1)
    scale = jnp.concatenate([p["scale"] for p in plist])
    bias = jnp.concatenate([p["bias"] for p in plist])
    y = matmul_scale_bias(a, b, scale, bias, relu=True).reshape(n, h, wd, -1)
    outs, off = [], 0
    for p in plist:
        co = p["w"].shape[3]
        outs.append(y[..., off:off + co])
        off += co
    return outs


def linear(x, p, relu):
    # Tiny (M=2) matmuls: plain XLA dot is better than a padded Pallas call.
    y = jnp.dot(x.astype(jnp.float32), p["w"],
                preferred_element_type=jnp.float32) + p["b"]
    return jnp.maximum(y, 0.0) if relu else y


def max_pool(x, k=3, s=2):
    init = jnp.asarray(-jnp.inf, dtype=x.dtype)
    return jax.lax.reduce_window(x, init, jax.lax.max,
                                 (1, k, k, 1), (1, s, s, 1), "VALID")


def avg_pool(x, k, s, pad):
    # count_include_pad=True (PyTorch F.avg_pool2d default); sum in f32.
    summed = jax.lax.reduce_window(
        x.astype(jnp.float32), 0.0, jax.lax.add, (1, k, k, 1), (1, s, s, 1),
        ((0, 0), (pad, pad), (pad, pad), (0, 0)))
    return (summed / float(k * k)).astype(x.dtype)


# ----------------------------------------------------------------------------
# Deterministic parameter construction (synthetic weights, BN folded)
# ----------------------------------------------------------------------------
class _Gen:
    def __init__(self, key):
        self._k = key

    def normal(self, shape, std):
        self._k, sub = jax.random.split(self._k)
        return jax.random.normal(sub, shape, jnp.float32) * std

    def uniform(self, shape, lo, hi):
        self._k, sub = jax.random.split(self._k)
        return jax.random.uniform(sub, shape, jnp.float32, lo, hi)


def _basic_conv(g, cin, cout, kh, kw):
    w = g.normal((kh, kw, cin, cout), (2.0 / (kh * kw * cin)) ** 0.5)
    gamma = g.uniform((cout,), 0.9, 1.1)
    beta = g.normal((cout,), 0.05)
    mean = g.normal((cout,), 0.05)
    var = g.uniform((cout,), 0.9, 1.1)
    scale = gamma / jnp.sqrt(var + 1e-3)           # BatchNorm2d(eps=0.001) folded
    bias = beta - mean * scale
    return {"w": w.astype(jnp.bfloat16), "scale": scale, "bias": bias}


def _linear(g, fin, fout):
    return {"w": g.normal((fin, fout), 1.0 / fin ** 0.5),
            "b": g.normal((fout,), 0.01)}


def build_params(seed=0):
    g = _Gen(jax.random.PRNGKey(seed))
    P = {}
    P["Conv2d_1a_3x3"] = _basic_conv(g, 3, 32, 3, 3)

    # Fold the transform_input per-channel affine (x_c*alpha_c + beta_c) into
    # Conv2d_1a's weights/bias (exact: Conv2d_1a has no spatial padding).
    p1 = P["Conv2d_1a_3x3"]
    alpha = jnp.array([0.229 / 0.5, 0.224 / 0.5, 0.225 / 0.5], jnp.float32)
    beta = jnp.array([(0.485 - 0.5) / 0.5, (0.456 - 0.5) / 0.5,
                      (0.406 - 0.5) / 0.5], jnp.float32)
    w32 = p1["w"].astype(jnp.float32)
    const = jnp.einsum("hwco,c->o", w32, beta)
    p1["w"] = (w32 * alpha[None, None, :, None]).astype(jnp.bfloat16)
    p1["bias"] = p1["bias"] + p1["scale"] * const

    P["Conv2d_2a_3x3"] = _basic_conv(g, 32, 32, 3, 3)
    P["Conv2d_2b_3x3"] = _basic_conv(g, 32, 64, 3, 3)
    P["Conv2d_3b_1x1"] = _basic_conv(g, 64, 80, 1, 1)
    P["Conv2d_4a_3x3"] = _basic_conv(g, 80, 192, 3, 3)

    def inception_a(cin, pool_feat):
        return {
            "branch1x1": _basic_conv(g, cin, 64, 1, 1),
            "branch5x5_1": _basic_conv(g, cin, 48, 1, 1),
            "branch5x5_2": _basic_conv(g, 48, 64, 5, 5),
            "branch3x3dbl_1": _basic_conv(g, cin, 64, 1, 1),
            "branch3x3dbl_2": _basic_conv(g, 64, 96, 3, 3),
            "branch3x3dbl_3": _basic_conv(g, 96, 96, 3, 3),
            "branch_pool": _basic_conv(g, cin, pool_feat, 1, 1),
        }

    P["Mixed_5b"] = inception_a(192, 32)
    P["Mixed_5c"] = inception_a(256, 64)
    P["Mixed_5d"] = inception_a(288, 64)

    P["Mixed_6a"] = {
        "branch3x3": _basic_conv(g, 288, 384, 3, 3),
        "branch3x3dbl_1": _basic_conv(g, 288, 64, 1, 1),
        "branch3x3dbl_2": _basic_conv(g, 64, 96, 3, 3),
        "branch3x3dbl_3": _basic_conv(g, 96, 96, 3, 3),
    }

    def inception_c(cin, c7):
        return {
            "branch1x1": _basic_conv(g, cin, 192, 1, 1),
            "branch7x7_1": _basic_conv(g, cin, c7, 1, 1),
            "branch7x7_2": _basic_conv(g, c7, c7, 1, 7),
            "branch7x7_3": _basic_conv(g, c7, 192, 7, 1),
            "branch7x7dbl_1": _basic_conv(g, cin, c7, 1, 1),
            "branch7x7dbl_2": _basic_conv(g, c7, c7, 7, 1),
            "branch7x7dbl_3": _basic_conv(g, c7, c7, 1, 7),
            "branch7x7dbl_4": _basic_conv(g, c7, c7, 7, 1),
            "branch7x7dbl_5": _basic_conv(g, c7, 192, 1, 7),
            "branch_pool": _basic_conv(g, cin, 192, 1, 1),
        }

    P["Mixed_6b"] = inception_c(768, 128)
    P["Mixed_6c"] = inception_c(768, 160)
    P["Mixed_6d"] = inception_c(768, 160)
    P["Mixed_6e"] = inception_c(768, 192)

    P["AuxLogits"] = {
        "conv0": _basic_conv(g, 768, 128, 1, 1),
        "conv1": _basic_conv(g, 128, 768, 5, 5),
        "fc": _linear(g, 768, 1000),
    }

    P["Mixed_7a"] = {
        "branch3x3_1": _basic_conv(g, 768, 192, 1, 1),
        "branch3x3_2": _basic_conv(g, 192, 320, 3, 3),
        "branch7x7x3_1": _basic_conv(g, 768, 192, 1, 1),
        "branch7x7x3_2": _basic_conv(g, 192, 192, 1, 7),
        "branch7x7x3_3": _basic_conv(g, 192, 192, 7, 1),
        "branch7x7x3_4": _basic_conv(g, 192, 192, 3, 3),
    }

    def inception_e(cin):
        return {
            "branch1x1": _basic_conv(g, cin, 320, 1, 1),
            "branch3x3_1": _basic_conv(g, cin, 384, 1, 1),
            "branch3x3_2a": _basic_conv(g, 384, 384, 1, 3),
            "branch3x3_2b": _basic_conv(g, 384, 384, 3, 1),
            "branch3x3dbl_1": _basic_conv(g, cin, 448, 1, 1),
            "branch3x3dbl_2": _basic_conv(g, 448, 384, 3, 3),
            "branch3x3dbl_3a": _basic_conv(g, 384, 384, 1, 3),
            "branch3x3dbl_3b": _basic_conv(g, 384, 384, 3, 1),
            "branch_pool": _basic_conv(g, cin, 192, 1, 1),
        }

    P["Mixed_7b"] = inception_e(1280)
    P["Mixed_7c"] = inception_e(2048)

    # StrokeModel's replaced head: Linear(2048,256)-ReLU-Linear(256,256)-ReLU-Linear(256,2)
    P["fc"] = [_linear(g, 2048, 256), _linear(g, 256, 256), _linear(g, 256, 2)]
    return P


# ----------------------------------------------------------------------------
# Inception block forwards (sibling 1x1 branches fused into a single GEMM)
# ----------------------------------------------------------------------------
def _inception_a(x, p):
    b1, b5, bd = conv1x1_fused(
        x, [p["branch1x1"], p["branch5x5_1"], p["branch3x3dbl_1"]])
    b5 = conv_bn_relu(b5, p["branch5x5_2"], padding=(2, 2))
    bd = conv_bn_relu(bd, p["branch3x3dbl_2"], padding=(1, 1))
    bd = conv_bn_relu(bd, p["branch3x3dbl_3"], padding=(1, 1))
    bp = conv_bn_relu(avg_pool(x, 3, 1, 1), p["branch_pool"])
    return jnp.concatenate([b1, b5, bd, bp], axis=-1)


def _inception_b(x, p):
    b3 = conv_bn_relu(x, p["branch3x3"], stride=(2, 2))
    bd = conv_bn_relu(x, p["branch3x3dbl_1"])
    bd = conv_bn_relu(bd, p["branch3x3dbl_2"], padding=(1, 1))
    bd = conv_bn_relu(bd, p["branch3x3dbl_3"], stride=(2, 2))
    bp = max_pool(x, 3, 2)
    return jnp.concatenate([b3, bd, bp], axis=-1)


def _inception_c(x, p):
    b1, b7, bd = conv1x1_fused(
        x, [p["branch1x1"], p["branch7x7_1"], p["branch7x7dbl_1"]])
    b7 = conv_bn_relu(b7, p["branch7x7_2"], padding=(0, 3))
    b7 = conv_bn_relu(b7, p["branch7x7_3"], padding=(3, 0))
    bd = conv_bn_relu(bd, p["branch7x7dbl_2"], padding=(3, 0))
    bd = conv_bn_relu(bd, p["branch7x7dbl_3"], padding=(0, 3))
    bd = conv_bn_relu(bd, p["branch7x7dbl_4"], padding=(3, 0))
    bd = conv_bn_relu(bd, p["branch7x7dbl_5"], padding=(0, 3))
    bp = conv_bn_relu(avg_pool(x, 3, 1, 1), p["branch_pool"])
    return jnp.concatenate([b1, b7, bd, bp], axis=-1)


def _inception_d(x, p):
    b3, b7 = conv1x1_fused(x, [p["branch3x3_1"], p["branch7x7x3_1"]])
    b3 = conv_bn_relu(b3, p["branch3x3_2"], stride=(2, 2))
    b7 = conv_bn_relu(b7, p["branch7x7x3_2"], padding=(0, 3))
    b7 = conv_bn_relu(b7, p["branch7x7x3_3"], padding=(3, 0))
    b7 = conv_bn_relu(b7, p["branch7x7x3_4"], stride=(2, 2))
    bp = max_pool(x, 3, 2)
    return jnp.concatenate([b3, b7, bp], axis=-1)


def _inception_e(x, p):
    b1, b3, bd = conv1x1_fused(
        x, [p["branch1x1"], p["branch3x3_1"], p["branch3x3dbl_1"]])
    b3 = jnp.concatenate([conv_bn_relu(b3, p["branch3x3_2a"], padding=(0, 1)),
                          conv_bn_relu(b3, p["branch3x3_2b"], padding=(1, 0))],
                         axis=-1)
    bd = conv_bn_relu(bd, p["branch3x3dbl_2"], padding=(1, 1))
    bd = jnp.concatenate([conv_bn_relu(bd, p["branch3x3dbl_3a"], padding=(0, 1)),
                          conv_bn_relu(bd, p["branch3x3dbl_3b"], padding=(1, 0))],
                         axis=-1)
    bp = conv_bn_relu(avg_pool(x, 3, 1, 1), p["branch_pool"])
    return jnp.concatenate([b1, b3, bd, bp], axis=-1)


def _aux(x, p):
    x = avg_pool(x, 5, 3, 0)                       # avg_pool2d(5, stride=3)
    x = conv_bn_relu(x, p["conv0"])                # tiny M -> XLA dot path
    x = conv_bn_relu(x, p["conv1"])                # tiny M -> XLA dot path
    x = jnp.mean(x.astype(jnp.float32), axis=(1, 2))   # adaptive_avg_pool2d + flatten
    return linear(x, p["fc"], relu=False)


# ----------------------------------------------------------------------------
# StrokeModel forward
# ----------------------------------------------------------------------------
def stroke_model_forward(params, x_nchw):
    # transform_input affine is folded into Conv2d_1a (see build_params).
    x = jnp.transpose(x_nchw, (0, 2, 3, 1)).astype(jnp.bfloat16)   # NCHW -> NHWC

    x = conv_bn_relu(x, params["Conv2d_1a_3x3"], stride=(2, 2))
    x = conv_bn_relu(x, params["Conv2d_2a_3x3"])
    x = conv_bn_relu(x, params["Conv2d_2b_3x3"], padding=(1, 1))
    x = max_pool(x, 3, 2)
    x = conv_bn_relu(x, params["Conv2d_3b_1x1"])
    x = conv_bn_relu(x, params["Conv2d_4a_3x3"])
    x = max_pool(x, 3, 2)

    x = _inception_a(x, params["Mixed_5b"])
    x = _inception_a(x, params["Mixed_5c"])
    x = _inception_a(x, params["Mixed_5d"])
    x = _inception_b(x, params["Mixed_6a"])
    x = _inception_c(x, params["Mixed_6b"])
    x = _inception_c(x, params["Mixed_6c"])
    x = _inception_c(x, params["Mixed_6d"])
    x = _inception_c(x, params["Mixed_6e"])

    aux_logits = _aux(x, params["AuxLogits"])

    x = _inception_d(x, params["Mixed_7a"])
    x = _inception_e(x, params["Mixed_7b"])
    x = _inception_e(x, params["Mixed_7c"])

    x = jnp.mean(x.astype(jnp.float32), axis=(1, 2))   # AdaptiveAvgPool2d + flatten
    # Dropout(p=0.5): identity (eval semantics)
    h = linear(x, params["fc"][0], relu=True)
    h = linear(h, params["fc"][1], relu=True)
    logits = linear(h, params["fc"][2], relu=False)
    return logits, aux_logits


if __name__ == "__main__":
    params = build_params(seed=0)
    # inception_v3 with the aux branch requires 299x299 input; batch kept small.
    x = jax.random.normal(jax.random.PRNGKey(0), (2, 3, 299, 299), jnp.float32)
    logits, aux_logits = stroke_model_forward(params, x)
    jax.block_until_ready((logits, aux_logits))
    assert logits.shape == (2, 2), logits.shape
    assert aux_logits.shape == (2, 1000), aux_logits.shape
    assert bool(jnp.all(jnp.isfinite(logits))) and bool(jnp.all(jnp.isfinite(aux_logits)))
    print("KERNEL_OK")
</pallas_src>

<mosaic_0001>
module attributes {stable_mosaic.version = 11 : i64} {
  func.func @_mm_kernel(%arg0: i32, %arg1: memref<4048x27xbf16, #tpu.memory_space<vmem>>, %arg2: memref<27x32xbf16, #tpu.memory_space<vmem>>, %arg3: memref<2x32xf32, #tpu.memory_space<vmem>>, %arg4: memref<4048x32xbf16, #tpu.memory_space<vmem>>) attributes {dimension_semantics = [#tpu.dimension_semantics<parallel>], iteration_bounds = array<i64: 11>, scalar_prefetch = 0 : i64, scratch_operands = 0 : i64, tpu.core_type = #tpu.core_type<tc>, window_params = [{transform_indices = @transform_0, window_bounds = array<i64: 4048, 27>}, {pipeline_mode = #tpu.pipeline_mode<synchronous>, transform_indices = @transform_1, window_bounds = array<i64: 27, 32>}, {pipeline_mode = #tpu.pipeline_mode<synchronous>, transform_indices = @transform_2, window_bounds = array<i64: 2, 32>}, {transform_indices = @transform_3, window_bounds = array<i64: 4048, 32>}]} {
    %c0 = arith.constant 0 : index
    %c0_0 = arith.constant 0 : index
    %0 = vector.load %arg1[%c0, %c0_0] : memref<4048x27xbf16, #tpu.memory_space<vmem>>, vector<4048x27xbf16>
    %c0_1 = arith.constant 0 : index
    %c0_2 = arith.constant 0 : index
    %1 = vector.load %arg2[%c0_1, %c0_2] : memref<27x32xbf16, #tpu.memory_space<vmem>>, vector<27x32xbf16>
    %cst = arith.constant dense<0.000000e+00> : vector<4048x32xf32>
    %2 = tpu.matmul %0, %1, %cst {dimension_numbers = #tpu.dot_dimension_numbers<[1], [0], [0], [1], [0, 0, 1, 1], [], []>} : vector<4048x27xbf16>, vector<27x32xbf16>, vector<4048x32xf32> -> vector<4048x32xf32>
    %c0_3 = arith.constant 0 : index
    %c0_4 = arith.constant 0 : index
    %3 = vector.load %arg3[%c0_3, %c0_4] : memref<2x32xf32, #tpu.memory_space<vmem>>, vector<1x32xf32>
    %4 = vector.broadcast %3 : vector<1x32xf32> to vector<4048x32xf32>
    %5 = arith.mulf %2, %4 : vector<4048x32xf32>
    %c1 = arith.constant 1 : index
    %c0_5 = arith.constant 0 : index
    %6 = vector.load %arg3[%c1, %c0_5] : memref<2x32xf32, #tpu.memory_space<vmem>>, vector<1x32xf32>
    %7 = vector.broadcast %6 : vector<1x32xf32> to vector<4048x32xf32>
    %8 = arith.addf %5, %7 : vector<4048x32xf32>
    %cst_6 = arith.constant 0.000000e+00 : f32
    %9 = vector.broadcast %cst_6 : f32 to vector<4048x32xf32>
    %10 = arith.maximumf %8, %9 : vector<4048x32xf32>
    %11 = arith.truncf %10 : vector<4048x32xf32> to vector<4048x32xbf16>
    %c0_7 = arith.constant 0 : index
    %c0_8 = arith.constant 0 : index
    %12 = vector.load %arg4[%c0_7, %c0_8] : memref<4048x32xbf16, #tpu.memory_space<vmem>>, vector<4048x32xbf16>
    tpu.vector_store %arg4[%c0_7, %c0_8], %11 {strides = array<i32>} : memref<4048x32xbf16, #tpu.memory_space<vmem>>, vector<4048x32xbf16>,
    return
  }
  func.func @transform_0(%arg0: i32) -> (i32, i32) {
    %c0_i32 = arith.constant 0 : i32
    %c0_i32_0 = arith.constant 0 : i32
    return %arg0, %c0_i32 : i32, i32
  }
  func.func @transform_1(%arg0: i32) -> (i32, i32) {
    %c0_i32 = arith.constant 0 : i32
    %c0_i32_0 = arith.constant 0 : i32
    %c0_i32_1 = arith.constant 0 : i32
    return %c0_i32, %c0_i32_0 : i32, i32
  }
  func.func @transform_2(%arg0: i32) -> (i32, i32) {
    %c0_i32 = arith.constant 0 : i32
    %c0_i32_0 = arith.constant 0 : i32
    %c0_i32_1 = arith.constant 0 : i32
    return %c0_i32, %c0_i32_0 : i32, i32
  }
  func.func @transform_3(%arg0: i32) -> (i32, i32) {
    %c0_i32 = arith.constant 0 : i32
    %c0_i32_0 = arith.constant 0 : i32
    return %arg0, %c0_i32 : i32, i32
  }
}

</mosaic_0001>

<bundles_post_ra>
// kernel: matmul_scale_bias.1
= control target key start
LH: loop header
LB: loop body
LE: loop exit
PB: predicated region body
PF: predicated region fallthrough
CT: control target
= control target key end

     0   :  { %s12017_s12 = smov 0   ;;  %s15171_s0 = inlined_call_operand.vmem [shape: bf16[44528,27], index: 0, kind: input, shape index: {}]   ;;  %s15172_s1 = inlined_call_operand.vmem [shape: bf16[27,32], index: 1, kind: input, shape index: {}]   ;;  %s15173_s2 = inlined_call_operand.vmem [shape: f32[2,32], index: 2, kind: input, shape index: {}]   ;;  %s15174_s3 = inlined_call_operand.vmem [shape: bf16[44528,32], index: 3, kind: output, shape index: {}]  }
   0x1 LB: > { %s8900_s13 = sadd.s32 4294967295, %s11992_s12   ;;  %p8904_p0 = scmp.ge.s32.totalorder %s11992_s12, 1  ;;  %s11992_s12 = sphi %s12017_s12, %s13_s12  }
   0x2   : > { %p138_p1 = scmp.lt.s32.totalorder %s11992_s12, 12 }
   0x4   : > { %p139_p2 = pnand %p8904_p0, %p138_p1 }
   0x5   : > { %v11717_v0 = vld [vmem:[%s15172_s1] sm:$0xff] (!%p139_p2)   ;;  %v11994_v1 = vmov (!%p139_p2), 0.0   ;;  %v11718_v2 = vld [vmem:[%s15172_s1 + $0x8] sm:$0x3f] (!%p139_p2)   ;;  %vm2721_vm0 = vcmask (!%p139_p2), 1044480   ;;  %vm2722_vm1 = vcmask (!%p139_p2), 1045504  }
   0x6   : > { %142 = sbr.rel (%p139_p2) target bundleno = 1248 (0x4e0), region = 32  ;;  %10686 = vmatprep.subr.bf16.mxu0 (!%p139_p2), %v11994_v1  ;;  %11702 = vmatprep.subr.bf16.mxu1 (!%p139_p2), %v11994_v1  ;;  %v11995_v3 = vmov (!%p139_p2), 65535   ;;  %vm11996_vm2 = vmmov (!%p139_p2), 0   ;;  %vm1961_vm3 = vcmask (!%p139_p2), 220160   ;;  %v12263_v61 = vld [vmem:[%s15173_s2] ss:$0 sm:$0xff] (!%p139_p2) }
   0x7   : > { %10687 = vmatpush3.bf16.msra.mxu0 (!%p139_p2), %v11717_v0  ;;  %11704 = vmatpush3.bf16.msra.mxu1 (!%p139_p2), %v11717_v0  ;;  %s162_s18 = smul.u32 (!%p139_p2), 506, %s8900_s13  ;;  %v2723_v4 = vsel (!%p139_p2), %vm2721_vm0, 4294967295, %v11995_v3  ;;  %v12273_v63 = vld [vmem:[%s15173_s2 + $0x1] ss:$0 sm:$0xff] (!%p139_p2)  ;;  %vm8337_vm4 = vcmask (!%p139_p2), 257024  }
   0x8   : > { %10688 = vmatprep.subr.bf16.mxu0 (!%p139_p2), %v11994_v1  ;;  %10690 = vmatprep.mubr.msk.bf16.mxu0 (!%p139_p2), %vm11996_vm2, %v11994_v1  ;;  %v2724_v5 = vsel (!%p139_p2), %vm2722_vm1, %v2723_v4, 0 }
   0x9   : > { %p163_p3 = scmp.lt.s32.totalorder (!%p139_p2), %s162_s18, 5565  ;;  %11703 = vmatprep.subr.bf16.mxu1 (!%p139_p2), %v11994_v1  ;;  %11198 = vmatprep.mubr.msk.bf16.mxu1 (!%p139_p2), %vm11996_vm2, %v11994_v1  ;;  %v2726_v6 = vand.u32 (!%p139_p2), %v11718_v2, %v2724_v5 }
   0xb   : > { %10689 = vmatpush3.bf16.msra.mxu0 (!%p139_p2), %v2726_v6  ;;  %11705 = vmatpush3.bf16.msra.mxu1 (!%p139_p2), %v2726_v6 }
   0xd   : > { %s15176_s18 = smov (!%p163_p3, %s162_s18), 5565 }
   0xe   : > { %s8905_s19 = sshll.u32 %s15176_s18, 2 }
   0xf   : > { %s12047_s22 = scalar_lea.vmem %s15171_s0, %s8905_s19  ;;  %s12290_s29 = scalar_lea.vmem %s15174_s3, %s8905_s19 }
  0x10   : > { %v11719_v7 = vld [vmem:[%s12047_s22] sm:$0xff]   ;;  %v11720_v8 = vld [vmem:[%s12047_s22 + $0x3f8] sm:$0xff]   ;;  %v11721_v9 = vld [vmem:[%s12047_s22 + $0x8] sm:$0xff]  }
  0x11   : > { %10691 = vmatmul.mubr.msk.bf16.vlgmr.msra.gmra.mrb[0].mxu0 %vm1961_vm3, %v11719_v7  ;;  %11199 = vmatmul.mubr.msk.bf16.vlgmr.msra.gmra.mrb[0].mxu1 %vm1961_vm3, %v11720_v8  ;;  %v11722_v10 = vld [vmem:[%s12047_s22 + $0x400] sm:$0xff]   ;;  %v11723_v11 = vld [vmem:[%s12047_s22 + $0x10] sm:$0xff]   ;;  %v11724_v12 = vld [vmem:[%s12047_s22 + $0x408] sm:$0xff]  }
  0x12   : > { %10694 = vmatprep.mubr.msk.bf16.mxu0 %vm11996_vm2, %v11994_v1  ;;  %11202 = vmatprep.mubr.msk.bf16.mxu1 %vm11996_vm2, %v11994_v1  ;;  %v11725_v13 = vld [vmem:[%s12047_s22 + $0x18] sm:$0xff]   ;;  %v11726_v14 = vld [vmem:[%s12047_s22 + $0x410] sm:$0xff]   ;;  %v11727_v15 = vld [vmem:[%s12047_s22 + $0x20] sm:$0xff]  }
  0x13   : > { %v11728_v16 = vld [vmem:[%s12047_s22 + $0x418] sm:$0xff]   ;;  %v11729_v17 = vld [vmem:[%s12047_s22 + $0x28] sm:$0xff]   ;;  %v11730_v18 = vld [vmem:[%s12047_s22 + $0x420] sm:$0xff]  }
  0x14   : > { %v11731_v19 = vld [vmem:[%s12047_s22 + $0x30] sm:$0xff]   ;;  %v11732_v20 = vld [vmem:[%s12047_s22 + $0x428] sm:$0xff]   ;;  %v11733_v21 = vld [vmem:[%s12047_s22 + $0x38] sm:$0xff]  }
  0x15   : > { %v11734_v22 = vld [vmem:[%s12047_s22 + $0x430] sm:$0xff]   ;;  %v11735_v23 = vld [vmem:[%s12047_s22 + $0x40] sm:$0xff]   ;;  %v11736_v24 = vld [vmem:[%s12047_s22 + $0x438] sm:$0xff]  }
  0x16   : > { %v11737_v25 = vld [vmem:[%s12047_s22 + $0x48] sm:$0xff]   ;;  %v11738_v26 = vld [vmem:[%s12047_s22 + $0x440] sm:$0xff]   ;;  %v11739_v27 = vld [vmem:[%s12047_s22 + $0x50] sm:$0xff]  }
  0x17   : > { %v11740_v28 = vld [vmem:[%s12047_s22 + $0x448] sm:$0xff]   ;;  %v11741_v29 = vld [vmem:[%s12047_s22 + $0x58] sm:$0xff]   ;;  %v11742_v30 = vld [vmem:[%s12047_s22 + $0x450] sm:$0xff]  }
  0x18   : > { %v11743_v31 = vld [vmem:[%s12047_s22 + $0x60] sm:$0xff]   ;;  %v11744_v32 = vld [vmem:[%s12047_s22 + $0x458] sm:$0xff]   ;;  %v11745_v33 = vld [vmem:[%s12047_s22 + $0x68] sm:$0xff]  }
  0x19   : > { %10695 = vmatmul.mubr.msk.bf16.gmra.mrb[4].mxu0 %vm1961_vm3, %v11721_v9  ;;  %11203 = vmatmul.mubr.msk.bf16.gmra.mrb[4].mxu1 %vm1961_vm3, %v11722_v10  ;;  %v11746_v34 = vld [vmem:[%s12047_s22 + $0x460] sm:$0xff]   ;;  %v11747_v35 = vld [vmem:[%s12047_s22 + $0x70] sm:$0xff]   ;;  %v11748_v36 = vld [vmem:[%s12047_s22 + $0x468] sm:$0xff]  }
  0x1a   : > { %10698 = vmatprep.mubr.msk.bf16.mxu0 %vm11996_vm2, %v11994_v1  ;;  %11206 = vmatprep.mubr.msk.bf16.mxu1 %vm11996_vm2, %v11994_v1  ;;  %v11749_v37 = vld [vmem:[%s12047_s22 + $0x78] sm:$0xff]   ;;  %v11750_v38 = vld [vmem:[%s12047_s22 + $0x470] sm:$0xff]   ;;  %v11751_v39 = vld [vmem:[%s12047_s22 + $0x80] sm:$0xff]  }
  0x1b   : > { %v11752_v40 = vld [vmem:[%s12047_s22 + $0x478] sm:$0xff]   ;;  %v11753_v41 = vld [vmem:[%s12047_s22 + $0x88] sm:$0xff]   ;;  %v11754_v42 = vld [vmem:[%s12047_s22 + $0x480] sm:$0xff]  }
  0x1c   : > { %v11755_v43 = vld [vmem:[%s12047_s22 + $0x90] sm:$0xff]   ;;  %v11756_v44 = vld [vmem:[%s12047_s22 + $0x488] sm:$0xff]   ;;  %v11757_v45 = vld [vmem:[%s12047_s22 + $0x98] sm:$0xff]  }
  0x1d   : > { %v11758_v46 = vld [vmem:[%s12047_s22 + $0x490] sm:$0xff]   ;;  %v11759_v47 = vld [vmem:[%s12047_s22 + $0xa0] sm:$0xff]   ;;  %v11760_v48 = vld [vmem:[%s12047_s22 + $0x498] sm:$0xff]  }
  0x1e   : > { %v11761_v49 = vld [vmem:[%s12047_s22 + $0xa8] sm:$0xff]   ;;  %v11762_v50 = vld [vmem:[%s12047_s22 + $0x4a0] sm:$0xff]   ;;  %v11763_v51 = vld [vmem:[%s12047_s22 + $0xb0] sm:$0xff]  }
  0x1f   : > { %v11764_v52 = vld [vmem:[%s12047_s22 + $0x4a8] sm:$0xff]   ;;  %v11765_v53 = vld [vmem:[%s12047_s22 + $0xb8] sm:$0xff]   ;;  %v11766_v54 = vld [vmem:[%s12047_s22 + $0x4b0] sm:$0xff]  }
  0x20   : > { %v11767_v55 = vld [vmem:[%s12047_s22 + $0xc0] sm:$0xff]   ;;  %v11768_v56 = vld [vmem:[%s12047_s22 + $0x4b8] sm:$0xff]   ;;  %v11769_v57 = vld [vmem:[%s12047_s22 + $0xc8] sm:$0xff]  }
  0x21   : > { %10699 = vmatmul.mubr.msk.bf16.gmra.mrb[8].mxu0 %vm1961_vm3, %v11723_v11  ;;  %11207 = vmatmul.mubr.msk.bf16.gmra.mrb[8].mxu1 %vm1961_vm3, %v11724_v12  ;;  %v11770_v58 = vld [vmem:[%s12047_s22 + $0x4c0] sm:$0xff]   ;;  %v11771_v59 = vld [vmem:[%s12047_s22 + $0xd0] sm:$0xff]   ;;  %v11772_v60 = vld [vmem:[%s12047_s22 + $0x4c8] sm:$0xff]  }
  0x22   : > { %10702 = vmatprep.mubr.msk.bf16.mxu0 %vm11996_vm2, %v11994_v1  ;;  %11210 = vmatprep.mubr.msk.bf16.mxu1 %vm11996_vm2, %v11994_v1  ;;  %v11773_v3 = vld [vmem:[%s12047_s22 + $0xd8] sm:$0xff]   ;;  %v11774_v8 = vld [vmem:[%s12047_s22 + $0x4d0] sm:$0xff]  }
  0x29   : > { %10703 = vmatmul.mubr.msk.bf16.gmra.mrb[12].mxu0 %vm1961_vm3, %v11725_v13  ;;  %11211 = vmatmul.mubr.msk.bf16.gmra.mrb[12].mxu1 %vm1961_vm3, %v11726_v14 }
  0x2a   : > { %10706 = vmatprep.mubr.msk.bf16.mxu0 %vm11996_vm2, %v11994_v1  ;;  %11214 = vmatprep.mubr.msk.bf16.mxu1 %vm11996_vm2, %v11994_v1 }
  0x31   : > { %10707 = vmatmul.mubr.msk.bf16.gmra.mrb[16].mxu0 %vm1961_vm3, %v11727_v15  ;;  %11215 = vmatmul.mubr.msk.bf16.gmra.mrb[16].mxu1 %vm1961_vm3, %v11728_v16 }
  0x32   : > { %10710 = vmatprep.mubr.msk.bf16.mxu0 %vm11996_vm2, %v11994_v1  ;;  %11218 = vmatprep.mubr.msk.bf16.mxu1 %vm11996_vm2, %v11994_v1 }
  0x39   : > { %10711 = vmatmul.mubr.msk.bf16.gmra.mrb[20].mxu0 %vm1961_vm3, %v11729_v17  ;;  %11219 = vmatmul.mubr.msk.bf16.gmra.mrb[20].mxu1 %vm1961_vm3, %v11730_v18 }
  0x3a   : > { %10714 = vmatprep.mubr.msk.bf16.mxu0 %vm11996_vm2, %v11994_v1  ;;  %11222 = vmatprep.mubr.msk.bf16.mxu1 %vm11996_vm2, %v11994_v1 }
  0x41   : > { %10715 = vmatmul.mubr.msk.bf16.gmra.mrb[24].mxu0 %vm1961_vm3, %v11731_v19  ;;  %11223 = vmatmul.mubr.msk.bf16.gmra.mrb[24].mxu1 %vm1961_vm3, %v11732_v20 }
  0x42   : > { %10718 = vmatprep.mubr.msk.bf16.mxu0 %vm11996_vm2, %v11994_v1  ;;  %11226 = vmatprep.mubr.msk.bf16.mxu1 %vm11996_vm2, %v11994_v1 }
  0x49   : > { %10719 = vmatmul.mubr.msk.bf16.gmra.mrb[28].mxu0 %vm1961_vm3, %v11733_v21  ;;  %11227 = vmatmul.mubr.msk.bf16.gmra.mrb[28].mxu1 %vm1961_vm3, %v11734_v22 }
  0x4a   : > { %10722 = vmatprep.mubr.msk.bf16.mxu0 %vm11996_vm2, %v11994_v1  ;;  %11230 = vmatprep.mubr.msk.bf16.mxu1 %vm11996_vm2, %v11994_v1 }
  0x51   : > { %10723 = vmatmul.mubr.msk.bf16.gmra.mrb[32].mxu0 %vm1961_vm3, %v11735_v23  ;;  %11231 = vmatmul.mubr.msk.bf16.gmra.mrb[32].mxu1 %vm1961_vm3, %v11736_v24 }
  0x52   : > { %10726 = vmatprep.mubr.msk.bf16.mxu0 %vm11996_vm2, %v11994_v1  ;;  %11234 = vmatprep.mubr.msk.bf16.mxu1 %vm11996_vm2, %v11994_v1 }
  0x59   : > { %10727 = vmatmul.mubr.msk.bf16.gmra.mrb[36].mxu0 %vm1961_vm3, %v11737_v25  ;;  %11235 = vmatmul.mubr.msk.bf16.gmra.mrb[36].mxu1 %vm1961_vm3, %v11738_v26 }
  0x5a   : > { %10730 = vmatprep.mubr.msk.bf16.mxu0 %vm11996_vm2, %v11994_v1  ;;  %11238 = vmatprep.mubr.msk.bf16.mxu1 %vm11996_vm2, %v11994_v1 }
  0x61   : > { %10731 = vmatmul.mubr.msk.bf16.gmra.mrb[40].mxu0 %vm1961_vm3, %v11739_v27  ;;  %11239 = vmatmul.mubr.msk.bf16.gmra.mrb[40].mxu1 %vm1961_vm3, %v11740_v28  ;;  %v11775_v28 = vld [vmem:[%s12047_s22 + $0xe0] sm:$0xff]  }
  0x62   : > { %10734 = vmatprep.mubr.msk.bf16.mxu0 %vm11996_vm2, %v11994_v1  ;;  %11242 = vmatprep.mubr.msk.bf16.mxu1 %vm11996_vm2, %v11994_v1 }
  0x69   : > { %10735 = vmatmul.mubr.msk.bf16.gmra.mrb[44].mxu0 %vm1961_vm3, %v11741_v29  ;;  %11243 = vmatmul.mubr.msk.bf16.gmra.mrb[44].mxu1 %vm1961_vm3, %v11742_v30 }
  0x6a   : > { %10738 = vmatprep.mubr.msk.bf16.mxu0 %vm11996_vm2, %v11994_v1  ;;  %11246 = vmatprep.mubr.msk.bf16.mxu1 %vm11996_vm2, %v11994_v1 }
  0x71   : > { %10739 = vmatmul.mubr.msk.bf16.gmra.mrb[48].mxu0 %vm1961_vm3, %v11743_v31  ;;  %11247 = vmatmul.mubr.msk.bf16.gmra.mrb[48].mxu1 %vm1961_vm3, %v11744_v32 }
  0x72   : > { %10742 = vmatprep.mubr.msk.bf16.mxu0 %vm11996_vm2, %v11994_v1  ;;  %11250 = vmatprep.mubr.msk.bf16.mxu1 %vm11996_vm2, %v11994_v1 }
  0x79   : > { %10743 = vmatmul.mubr.msk.bf16.gmra.mrb[52].mxu0 %vm1961_vm3, %v11745_v33  ;;  %11251 = vmatmul.mubr.msk.bf16.gmra.mrb[52].mxu1 %vm1961_vm3, %v11746_v34  ;;  %v11776_v34 = vld [vmem:[%s12047_s22 + $0x4d8] sm:$0xff]  }
  0x7a   : > { %10746 = vmatprep.mubr.msk.bf16.mxu0 %vm11996_vm2, %v11994_v1  ;;  %11254 = vmatprep.mubr.msk.bf16.mxu1 %vm11996_vm2, %v11994_v1 }
  0x81   : > { %10747 = vmatmul.mubr.msk.bf16.gmra.mrb[56].mxu0 %vm1961_vm3, %v11747_v35  ;;  %11255 = vmatmul.mubr.msk.bf16.gmra.mrb[56].mxu1 %vm1961_vm3, %v11748_v36 }
  0x82   : > { %10750 = vmatprep.mubr.msk.bf16.mxu0 %vm11996_vm2, %v11994_v1  ;;  %11258 = vmatprep.mubr.msk.bf16.mxu1 %vm11996_vm2, %v11994_v1 }
  0x89   : > { %10751 = vmatmul.mubr.msk.bf16.gmra.mrb[60].mxu0 %vm1961_vm3, %v11749_v37  ;;  %11259 = vmatmul.mubr.msk.bf16.gmra.mrb[60].mxu1 %vm1961_vm3, %v11750_v38 }
  0x8a   : > { %10754 = vmatprep.mubr.msk.bf16.mxu0 %vm11996_vm2, %v11994_v1  ;;  %11262 = vmatprep.mubr.msk.bf16.mxu1 %vm11996_vm2, %v11994_v1 }
  0x91   : > { %10755 = vmatmul.mubr.msk.bf16.gmra.mrb[64].mxu0 %vm1961_vm3, %v11751_v39  ;;  %11263 = vmatmul.mubr.msk.bf16.gmra.mrb[64].mxu1 %vm1961_vm3, %v11752_v40 }
  0x92   : > { %10758 = vmatprep.mubr.msk.bf16.mxu0 %vm11996_vm2, %v11994_v1  ;;  %11266 = vmatprep.mubr.msk.bf16.mxu1 %vm11996_vm2, %v11994_v1 }
  0x99   : > { %10759 = vmatmul.mubr.msk.bf16.gmra.mrb[68].mxu0 %vm1961_vm3, %v11753_v41  ;;  %11267 = vmatmul.mubr.msk.bf16.gmra.mrb[68].mxu1 %vm1961_vm3, %v11754_v42 }
  0x9a   : > { %10762 = vmatprep.mubr.msk.bf16.mxu0 %vm11996_vm2, %v11994_v1  ;;  %11270 = vmatprep.mubr.msk.bf16.mxu1 %vm11996_vm2, %v11994_v1 }
  0xa1   : > { %10763 = vmatmul.mubr.msk.bf16.gmra.mrb[72].mxu0 %vm1961_vm3, %v11755_v43  ;;  %11271 = vmatmul.mubr.msk.bf16.gmra.mrb[72].mxu1 %vm1961_vm3, %v11756_v44 }
  0xa2   : > { %10766 = vmatprep.mubr.msk.bf16.mxu0 %vm11996_vm2, %v11994_v1  ;;  %11274 = vmatprep.mubr.msk.bf16.mxu1 %vm11996_vm2, %v11994_v1 }
  0xa9   : > { %10767 = vmatmul.mubr.msk.bf16.gmra.mrb[76].mxu0 %vm1961_vm3, %v11757_v45  ;;  %11275 = vmatmul.mubr.msk.bf16.gmra.mrb[76].mxu1 %vm1961_vm3, %v11758_v46 }
  0xaa   : > { %10770 = vmatprep.mubr.msk.bf16.mxu0 %vm11996_vm2, %v11994_v1  ;;  %11278 = vmatprep.mubr.msk.bf16.mxu1 %vm11996_vm2, %v11994_v1 }
  0xb1   : > { %10771 = vmatmul.mubr.msk.bf16.gmra.mrb[80].mxu0 %vm1961_vm3, %v11759_v47  ;;  %11279 = vmatmul.mubr.msk.bf16.gmra.mrb[80].mxu1 %vm1961_vm3, %v11760_v48 }
  0xb2   : > { %10774 = vmatprep.mubr.msk.bf16.mxu0 %vm11996_vm2, %v11994_v1  ;;  %11282 = vmatprep.mubr.msk.bf16.mxu1 %vm11996_vm2, %v11994_v1 }
  0xb9   : > { %10775 = vmatmul.mubr.msk.bf16.gmra.mrb[84].mxu0 %vm1961_vm3, %v11761_v49  ;;  %11283 = vmatmul.mubr.msk.bf16.gmra.mrb[84].mxu1 %vm1961_vm3, %v11762_v50 }
  0xba   : > { %10778 = vmatprep.mubr.msk.bf16.mxu0 %vm11996_vm2, %v11994_v1  ;;  %11286 = vmatprep.mubr.msk.bf16.mxu1 %vm11996_vm2, %v11994_v1 }
  0xc1   : > { %10779 = vmatmul.mubr.msk.bf16.gmra.mrb[88].mxu0 %vm1961_vm3, %v11763_v51  ;;  %11287 = vmatmul.mubr.msk.bf16.gmra.mrb[88].mxu1 %vm1961_vm3, %v11764_v52 }
  0xc2   : > { %10782 = vmatprep.mubr.msk.bf16.mxu0 %vm11996_vm2, %v11994_v1  ;;  %11290 = vmatprep.mubr.msk.bf16.mxu1 %vm11996_vm2, %v11994_v1 }
  0xc9   : > { %10783 = vmatmul.mubr.msk.bf16.gmra.mrb[92].mxu0 %vm1961_vm3, %v11765_v53  ;;  %11291 = vmatmul.mubr.msk.bf16.gmra.mrb[92].mxu1 %vm1961_vm3, %v11766_v54  ;;  %v11777_v54 = vld [vmem:[%s12047_s22 + $0xe8] sm:$0xff]  }
  0xca   : > { %10786 = vmatprep.mubr.msk.bf16.mxu0 %vm11996_vm2, %v11994_v1  ;;  %11294 = vmatprep.mubr.msk.bf16.mxu1 %vm11996_vm2, %v11994_v1 }
  0xd1   : > { %10787 = vmatmul.mubr.msk.bf16.gmra.mrb[96].mxu0 %vm1961_vm3, %v11767_v55  ;;  %11295 = vmatmul.mubr.msk.bf16.gmra.mrb[96].mxu1 %vm1961_vm3, %v11768_v56 }
  0xd2   : > { %10790 = vmatprep.mubr.msk.bf16.mxu0 %vm11996_vm2, %v11994_v1  ;;  %11298 = vmatprep.mubr.msk.bf16.mxu1 %vm11996_vm2, %v11994_v1 }
  0xd9   : > { %10791 = vmatmul.mubr.msk.bf16.gmra.mrb[100].mxu0 %vm1961_vm3, %v11769_v57  ;;  %11299 = vmatmul.mubr.msk.bf16.gmra.mrb[100].mxu1 %vm1961_vm3, %v11770_v58 }
  0xda   : > { %10794 = vmatprep.mubr.msk.bf16.mxu0 %vm11996_vm2, %v11994_v1  ;;  %11302 = vmatprep.mubr.msk.bf16.mxu1 %vm11996_vm2, %v11994_v1 }
  0xe1   : > { %10795 = vmatmul.mubr.msk.bf16.gmra.mrb[104].mxu0 %vm1961_vm3, %v11771_v59  ;;  %11303 = vmatmul.mubr.msk.bf16.gmra.mrb[104].mxu1 %vm1961_vm3, %v11772_v60  ;;  %v11778_v60 = vld [vmem:[%s12047_s22 + $0x4e0] sm:$0xff]  }
  0xe2   : > { %10798 = vmatprep.mubr.msk.bf16.mxu0 %vm11996_vm2, %v11994_v1  ;;  %11306 = vmatprep.mubr.msk.bf16.mxu1 %vm11996_vm2, %v11994_v1 }
  0xe4   : > { %v2762_v62 = vpop.f32.mrb[0].mxu0  ;;  %v3778_v4 = vpop.f32.mrb[0].mxu1 }
  0xe5   : > { %v4790_v0 = vmul.f32 %v12263_v61, %v2762_v62  ;;  %v10692_v2 = vpop.f32.mrb[1].mxu0  ;;  %v5044_v6 = vmul.f32 %v12263_v61, %v3778_v4  ;;  %v11200_v7 = vpop.f32.mrb[1].mxu1 }
  0xe6   : > { %v2765_v5 = vpop.f32.mrb[2].mxu0  ;;  %v3781_v12 = vpop.f32.mrb[2].mxu1 }
  0xe7   : > { %v5301_v9 = vadd.f32 %v12273_v63, %v4790_v0  ;;  %v4791_v10 = vmul.f32 %v12263_v61, %v2765_v5  ;;  %v10693_v11 = vpop.f32.mrb[3].mxu0  ;;  %v5555_v13 = vadd.f32 %v12273_v63, %v5044_v6  ;;  %v5045_v14 = vmul.f32 %v12263_v61, %v3781_v12  ;;  %v11201_v15 = vpop.f32.mrb[3].mxu1 }
  0xe9   : > { %v5807_v16 = vmax.f32 %v5301_v9, 0.0  ;;  %v5302_v17 = vadd.f32 %v12273_v63, %v4791_v10  ;;  %10799 = vmatmul.mubr.msk.bf16.gmra.mrb[108].mxu0 %vm1961_vm3, %v11773_v3  ;;  %v6061_v18 = vmax.f32 %v5555_v13, 0.0  ;;  %v5556_v19 = vadd.f32 %v12273_v63, %v5045_v14  ;;  %11307 = vmatmul.mubr.msk.bf16.gmra.mrb[108].mxu1 %vm1961_vm3, %v11774_v8 }
  0xea   : > { %10802 = vmatprep.mubr.msk.bf16.mxu0 %vm11996_vm2, %v11994_v1  ;;  %11310 = vmatprep.mubr.msk.bf16.mxu1 %vm11996_vm2, %v11994_v1 }
  0xeb   : > { %v9925_v20 = vpack.c.bf16 %v5807_v16, %v5807_v16  ;;  %v5808_v21 = vmax.f32 %v5302_v17, 0.0  ;;  %v10179_v22 = vpack.c.bf16 %v6061_v18, %v6061_v18  ;;  %v6062_v23 = vmax.f32 %v5556_v19, 0.0  ;;  %v11779_v19 = vld [vmem:[%s12047_s22 + $0xf0] sm:$0xff]  }
  0xec   : > { %v2770_v24 = vpop.f32.mrb[4].mxu0  ;;  %v3786_v29 = vpop.f32.mrb[4].mxu1 }
  0xed   : > { %8338 = vst.msk [vmem:[%s12290_s29] sm:$0xf] %vm8337_vm4, %v9925_v20  ;;  %v9926_v25 = vpack.c.bf16 %v5808_v21, %v5808_v21  ;;  %v4792_v26 = vmul.f32 %v12263_v61, %v2770_v24  ;;  %v10696_v27 = vpop.f32.mrb[5].mxu0  ;;  %8592 = vst.msk [vmem:[%s12290_s29 + $0x3f8] sm:$0xf] %vm8337_vm4, %v10179_v22  ;;  %v10180_v30 = vpack.c.bf16 %v6062_v23, %v6062_v23  ;;  %v11204_v33 = vpop.f32.mrb[5].mxu1 }
  0xee   : > { %v2773_v31 = vpop.f32.mrb[6].mxu0  ;;  %v5046_v32 = vmul.f32 %v12263_v61, %v3786_v29  ;;  %v3789_v38 = vpop.f32.mrb[6].mxu1 }
  0xef   : > { %8339 = vst.msk [vmem:[%s12290_s29 + $0x4] sm:$0xf] %vm8337_vm4, %v9926_v25  ;;  %v5303_v35 = vadd.f32 %v12273_v63, %v4792_v26  ;;  %v4793_v36 = vmul.f32 %v12263_v61, %v2773_v31  ;;  %v10697_v37 = vpop.f32.mrb[7].mxu0  ;;  %8593 = vst.msk [vmem:[%s12290_s29 + $0x3fc] sm:$0xf] %vm8337_vm4, %v10180_v30  ;;  %v5047_v40 = vmul.f32 %v12263_v61, %v3789_v38  ;;  %v11205_v41 = vpop.f32.mrb[7].mxu1 }
  0xf0   : > { %v5557_v39 = vadd.f32 %v12273_v63, %v5046_v32  ;;  %v11780_v25 = vld [vmem:[%s12047_s22 + $0x4e8] sm:$0xff]  }
  0xf1   : > { %v5809_v42 = vmax.f32 %v5303_v35, 0.0  ;;  %v5304_v43 = vadd.f32 %v12273_v63, %v4793_v36  ;;  %10803 = vmatmul.mubr.msk.bf16.gmra.mrb[112].mxu0 %vm1961_vm3, %v11775_v28  ;;  %v5558_v45 = vadd.f32 %v12273_v63, %v5047_v40  ;;  %11311 = vmatmul.mubr.msk.bf16.gmra.mrb[112].mxu1 %vm1961_vm3, %v11776_v34 }
  0xf2   : > { %v6063_v44 = vmax.f32 %v5557_v39, 0.0  ;;  %10806 = vmatprep.mubr.msk.bf16.mxu0 %vm11996_vm2, %v11994_v1  ;;  %11314 = vmatprep.mubr.msk.bf16.mxu1 %vm11996_vm2, %v11994_v1 }
  0xf3   : > { %v9927_v46 = vpack.c.bf16 %v5809_v42, %v5809_v42  ;;  %v5810_v47 = vmax.f32 %v5304_v43, 0.0  ;;  %v6064_v49 = vmax.f32 %v5558_v45, 0.0  ;;  %v11781_v45 = vld [vmem:[%s12047_s22 + $0xf8] sm:$0xff]  }
  0xf4   : > { %v10181_v48 = vpack.c.bf16 %v6063_v44, %v6063_v44  ;;  %v2778_v50 = vpop.f32.mrb[8].mxu0  ;;  %v3794_v55 = vpop.f32.mrb[8].mxu1 }
  0xf5   : > { %8340 = vst.msk [vmem:[%s12290_s29 + $0x8] sm:$0xf] %vm8337_vm4, %v9927_v46  ;;  %v9928_v51 = vpack.c.bf16 %v5810_v47, %v5810_v47  ;;  %v4794_v52 = vmul.f32 %v12263_v61, %v2778_v50  ;;  %v10700_v53 = vpop.f32.mrb[9].mxu0  ;;  %v10182_v56 = vpack.c.bf16 %v6064_v49, %v6064_v49  ;;  %v5048_v58 = vmul.f32 %v12263_v61, %v3794_v55  ;;  %v11208_v59 = vpop.f32.mrb[9].mxu1 }
  0xf6   : > { %8594 = vst.msk [vmem:[%s12290_s29 + $0x400] sm:$0xf] %vm8337_vm4, %v10181_v48  ;;  %v2781_v57 = vpop.f32.mrb[10].mxu0  ;;  %v3797_v3 = vpop.f32.mrb[10].mxu1 }
  0xf7   : > { %8341 = vst.msk [vmem:[%s12290_s29 + $0xc] sm:$0xf] %vm8337_vm4, %v9928_v51  ;;  %v5305_v62 = vadd.f32 %v12273_v63, %v4794_v52  ;;  %v4795_v0 = vmul.f32 %v12263_v61, %v2781_v57  ;;  %v10701_v2 = vpop.f32.mrb[11].mxu0  ;;  %8595 = vst.msk [vmem:[%s12290_s29 + $0x404] sm:$0xf] %vm8337_vm4, %v10182_v56  ;;  %v5559_v4 = vadd.f32 %v12273_v63, %v5048_v58  ;;  %v11209_v6 = vpop.f32.mrb[11].mxu1 }
  0xf8   : > { %v5049_v5 = vmul.f32 %v12263_v61, %v3797_v3  ;;  %v11782_v51 = vld [vmem:[%s12047_s22 + $0x4f0] sm:$0xff]  }
  0xf9   : > { %v5811_v7 = vmax.f32 %v5305_v62, 0.0  ;;  %v5306_v8 = vadd.f32 %v12273_v63, %v4795_v0  ;;  %10807 = vmatmul.mubr.msk.bf16.gmra.mrb[116].mxu0 %vm1961_vm3, %v11777_v54  ;;  %v6065_v9 = vmax.f32 %v5559_v4, 0.0  ;;  %11315 = vmatmul.mubr.msk.bf16.gmra.mrb[116].mxu1 %vm1961_vm3, %v11778_v60 }
  0xfa   : > { %v5560_v10 = vadd.f32 %v12273_v63, %v5049_v5  ;;  %10810 = vmatprep.mubr.msk.bf16.mxu0 %vm11996_vm2, %v11994_v1  ;;  %11318 = vmatprep.mubr.msk.bf16.mxu1 %vm11996_vm2, %v11994_v1 }
  0xfb   : > { %v9929_v11 = vpack.c.bf16 %v5811_v7, %v5811_v7  ;;  %v5812_v12 = vmax.f32 %v5306_v8, 0.0  ;;  %v10183_v13 = vpack.c.bf16 %v6065_v9, %v6065_v9 }
  0xfc   : > { %v6066_v14 = vmax.f32 %v5560_v10, 0.0  ;;  %v2786_v15 = vpop.f32.mrb[12].mxu0  ;;  %v3802_v20 = vpop.f32.mrb[12].mxu1  ;;  %v11783_v10 = vld [vmem:[%s12047_s22 + $0x100] sm:$0xff]  }
  0xfd   : > { %8342 = vst.msk [vmem:[%s12290_s29 + $0x10] sm:$0xf] %vm8337_vm4, %v9929_v11  ;;  %v9930_v16 = vpack.c.bf16 %v5812_v12, %v5812_v12  ;;  %v4796_v17 = vmul.f32 %v12263_v61, %v2786_v15  ;;  %v10704_v18 = vpop.f32.mrb[13].mxu0  ;;  %8596 = vst.msk [vmem:[%s12290_s29 + $0x408] sm:$0xf] %vm8337_vm4, %v10183_v13  ;;  %v5050_v23 = vmul.f32 %v12263_v61, %v3802_v20  ;;  %v11212_v24 = vpop.f32.mrb[13].mxu1 }
  0xfe   : > { %v10184_v21 = vpack.c.bf16 %v6066_v14, %v6066_v14  ;;  %v2789_v22 = vpop.f32.mrb[14].mxu0  ;;  %v3805_v29 = vpop.f32.mrb[14].mxu1 }
  0xff   : > { %8343 = vst.msk [vmem:[%s12290_s29 + $0x14] sm:$0xf] %vm8337_vm4, %v9930_v16  ;;  %v5307_v26 = vadd.f32 %v12273_v63, %v4796_v17  ;;  %v4797_v27 = vmul.f32 %v12263_v61, %v2789_v22  ;;  %v10705_v28 = vpop.f32.mrb[15].mxu0  ;;  %v5561_v30 = vadd.f32 %v12273_v63, %v5050_v23  ;;  %v5051_v31 = vmul.f32 %v12263_v61, %v3805_v29  ;;  %v11213_v32 = vpop.f32.mrb[15].mxu1  ;;  %v11784_v16 = vld [vmem:[%s12047_s22 + $0x4f8] sm:$0xff]  }
 0x100   : > { %8597 = vst.msk [vmem:[%s12290_s29 + $0x40c] sm:$0xf] %vm8337_vm4, %v10184_v21 }
 0x101   : > { %v5813_v33 = vmax.f32 %v5307_v26, 0.0  ;;  %v5308_v34 = vadd.f32 %v12273_v63, %v4797_v27  ;;  %10811 = vmatmul.mubr.msk.bf16.gmra.mrb[120].mxu0 %vm1961_vm3, %v11779_v19  ;;  %v6067_v35 = vmax.f32 %v5561_v30, 0.0  ;;  %v5562_v36 = vadd.f32 %v12273_v63, %v5051_v31  ;;  %11319 = vmatmul.mubr.msk.bf16.gmra.mrb[120].mxu1 %vm1961_vm3, %v11780_v25 }
 0x102   : > { %10814 = vmatprep.mubr.msk.bf16.mxu0 %vm11996_vm2, %v11994_v1  ;;  %11322 = vmatprep.mubr.msk.bf16.mxu1 %vm11996_vm2, %v11994_v1 }
 0x103   : > { %v9931_v37 = vpack.c.bf16 %v5813_v33, %v5813_v33  ;;  %v5814_v38 = vmax.f32 %v5308_v34, 0.0  ;;  %v10185_v39 = vpack.c.bf16 %v6067_v35, %v6067_v35  ;;  %v6068_v40 = vmax.f32 %v5562_v36, 0.0  ;;  %v11785_v36 = vld [vmem:[%s12047_s22 + $0x108] sm:$0xff]  }
 0x104   : > { %v2794_v41 = vpop.f32.mrb[16].mxu0  ;;  %v3810_v46 = vpop.f32.mrb[16].mxu1 }
 0x105   : > { %8344 = vst.msk [vmem:[%s12290_s29 + $0x18] sm:$0xf] %vm8337_vm4, %v9931_v37  ;;  %v9932_v42 = vpack.c.bf16 %v5814_v38, %v5814_v38  ;;  %v4798_v43 = vmul.f32 %v12263_v61, %v2794_v41  ;;  %v10708_v44 = vpop.f32.mrb[17].mxu0  ;;  %8598 = vst.msk [vmem:[%s12290_s29 + $0x410] sm:$0xf] %vm8337_vm4, %v10185_v39  ;;  %v10186_v47 = vpack.c.bf16 %v6068_v40, %v6068_v40  ;;  %v11216_v50 = vpop.f32.mrb[17].mxu1 }
 0x106   : > { %v2797_v48 = vpop.f32.mrb[18].mxu0  ;;  %v5052_v49 = vmul.f32 %v12263_v61, %v3810_v46  ;;  %v3813_v55 = vpop.f32.mrb[18].mxu1 }
 0x107   : > { %8345 = vst.msk [vmem:[%s12290_s29 + $0x1c] sm:$0xf] %vm8337_vm4, %v9932_v42  ;;  %v5309_v52 = vadd.f32 %v12273_v63, %v4798_v43  ;;  %v4799_v53 = vmul.f32 %v12263_v61, %v2797_v48  ;;  %v10709_v54 = vpop.f32.mrb[19].mxu0  ;;  %8599 = vst.msk [vmem:[%s12290_s29 + $0x414] sm:$0xf] %vm8337_vm4, %v10186_v47  ;;  %v5053_v57 = vmul.f32 %v12263_v61, %v3813_v55  ;;  %v11217_v58 = vpop.f32.mrb[19].mxu1 }
 0x108   : > { %v5563_v56 = vadd.f32 %v12273_v63, %v5052_v49  ;;  %v11786_v42 = vld [vmem:[%s12047_s22 + $0x500] sm:$0xff]  }
 0x109   : > { %v5815_v59 = vmax.f32 %v5309_v52, 0.0  ;;  %v5310_v60 = vadd.f32 %v12273_v63, %v4799_v53  ;;  %10815 = vmatmul.mubr.msk.bf16.gmra.mrb[124].mxu0 %vm1961_vm3, %v11781_v45  ;;  %v5564_v0 = vadd.f32 %v12273_v63, %v5053_v57  ;;  %11323 = vmatmul.mubr.msk.bf16.gmra.mrb[124].mxu1 %vm1961_vm3, %v11782_v51 }
 0x10a   : > { %v6069_v62 = vmax.f32 %v5563_v56, 0.0  ;;  %10818 = vmatprep.mubr.msk.bf16.mxu0 %vm11996_vm2, %v11994_v1  ;;  %11326 = vmatprep.mubr.msk.bf16.mxu1 %vm11996_vm2, %v11994_v1 }
 0x10b   : > { %v9933_v2 = vpack.c.bf16 %v5815_v59, %v5815_v59  ;;  %v5816_v3 = vmax.f32 %v5310_v60, 0.0  ;;  %v6070_v5 = vmax.f32 %v5564_v0, 0.0  ;;  %v11787_v0 = vld [vmem:[%s12047_s22 + $0x110] sm:$0xff]  }
 0x10c   : > { %v10187_v4 = vpack.c.bf16 %v6069_v62, %v6069_v62  ;;  %v2802_v6 = vpop.f32.mrb[20].mxu0  ;;  %v3818_v11 = vpop.f32.mrb[20].mxu1 }
 0x10d   : > { %8346 = vst.msk [vmem:[%s12290_s29 + $0x20] sm:$0xf] %vm8337_vm4, %v9933_v2  ;;  %v9934_v7 = vpack.c.bf16 %v5816_v3, %v5816_v3  ;;  %v4800_v8 = vmul.f32 %v12263_v61, %v2802_v6  ;;  %v10712_v9 = vpop.f32.mrb[21].mxu0  ;;  %v10188_v12 = vpack.c.bf16 %v6070_v5, %v6070_v5  ;;  %v5054_v14 = vmul.f32 %v12263_v61, %v3818_v11  ;;  %v11220_v15 = vpop.f32.mrb[21].mxu1 }
 0x10e   : > { %8600 = vst.msk [vmem:[%s12290_s29 + $0x418] sm:$0xf] %vm8337_vm4, %v10187_v4  ;;  %v2805_v13 = vpop.f32.mrb[22].mxu0  ;;  %v3821_v20 = vpop.f32.mrb[22].mxu1 }
 0x10f   : > { %8347 = vst.msk [vmem:[%s12290_s29 + $0x24] sm:$0xf] %vm8337_vm4, %v9934_v7  ;;  %v5311_v17 = vadd.f32 %v12273_v63, %v4800_v8  ;;  %v4801_v18 = vmul.f32 %v12263_v61, %v2805_v13  ;;  %v10713_v19 = vpop.f32.mrb[23].mxu0  ;;  %8601 = vst.msk [vmem:[%s12290_s29 + $0x41c] sm:$0xf] %vm8337_vm4, %v10188_v12  ;;  %v5565_v21 = vadd.f32 %v12273_v63, %v5054_v14  ;;  %v11221_v23 = vpop.f32.mrb[23].mxu1 }
 0x110   : > { %v5055_v22 = vmul.f32 %v12263_v61, %v3821_v20  ;;  %v11788_v7 = vld [vmem:[%s12047_s22 + $0x508] sm:$0xff]  }
 0x111   : > { %v5817_v24 = vmax.f32 %v5311_v17, 0.0  ;;  %v5312_v25 = vadd.f32 %v12273_v63, %v4801_v18  ;;  %10819 = vmatmul.mubr.msk.bf16.gmra.mrb[128].mxu0 %vm1961_vm3, %v11783_v10  ;;  %v6071_v26 = vmax.f32 %v5565_v21, 0.0  ;;  %11327 = vmatmul.mubr.msk.bf16.gmra.mrb[128].mxu1 %vm1961_vm3, %v11784_v16 }
 0x112   : > { %v5566_v27 = vadd.f32 %v12273_v63, %v5055_v22  ;;  %10822 = vmatprep.mubr.msk.bf16.mxu0 %vm11996_vm2, %v11994_v1  ;;  %11330 = vmatprep.mubr.msk.bf16.mxu1 %vm11996_vm2, %v11994_v1 }
 0x113   : > { %v9935_v28 = vpack.c.bf16 %v5817_v24, %v5817_v24  ;;  %v5818_v29 = vmax.f32 %v5312_v25, 0.0  ;;  %v10189_v30 = vpack.c.bf16 %v6071_v26, %v6071_v26 }
 0x114   : > { %v6072_v31 = vmax.f32 %v5566_v27, 0.0  ;;  %v2810_v32 = vpop.f32.mrb[24].mxu0  ;;  %v3826_v37 = vpop.f32.mrb[24].mxu1  ;;  %v11789_v27 = vld [vmem:[%s12047_s22 + $0x118] sm:$0xff]  }
 0x115   : > { %8348 = vst.msk [vmem:[%s12290_s29 + $0x28] sm:$0xf] %vm8337_vm4, %v9935_v28  ;;  %v9936_v33 = vpack.c.bf16 %v5818_v29, %v5818_v29  ;;  %v4802_v34 = vmul.f32 %v12263_v61, %v2810_v32  ;;  %v10716_v35 = vpop.f32.mrb[25].mxu0  ;;  %8602 = vst.msk [vmem:[%s12290_s29 + $0x420] sm:$0xf] %vm8337_vm4, %v10189_v30  ;;  %v5056_v40 = vmul.f32 %v12263_v61, %v3826_v37  ;;  %v11224_v41 = vpop.f32.mrb[25].mxu1 }
 0x116   : > { %v10190_v38 = vpack.c.bf16 %v6072_v31, %v6072_v31  ;;  %v2813_v39 = vpop.f32.mrb[26].mxu0  ;;  %v3829_v46 = vpop.f32.mrb[26].mxu1 }
 0x117   : > { %8349 = vst.msk [vmem:[%s12290_s29 + $0x2c] sm:$0xf] %vm8337_vm4, %v9936_v33  ;;  %v5313_v43 = vadd.f32 %v12273_v63, %v4802_v34  ;;  %v4803_v44 = vmul.f32 %v12263_v61, %v2813_v39  ;;  %v10717_v45 = vpop.f32.mrb[27].mxu0  ;;  %v5567_v47 = vadd.f32 %v12273_v63, %v5056_v40  ;;  %v5057_v48 = vmul.f32 %v12263_v61, %v3829_v46  ;;  %v11225_v49 = vpop.f32.mrb[27].mxu1  ;;  %v11790_v33 = vld [vmem:[%s12047_s22 + $0x510] sm:$0xff]  }
 0x118   : > { %8603 = vst.msk [vmem:[%s12290_s29 + $0x424] sm:$0xf] %vm8337_vm4, %v10190_v38 }
 0x119   : > { %v5819_v50 = vmax.f32 %v5313_v43, 0.0  ;;  %v5314_v51 = vadd.f32 %v12273_v63, %v4803_v44  ;;  %10823 = vmatmul.mubr.msk.bf16.gmra.mrb[132].mxu0 %vm1961_vm3, %v11785_v36  ;;  %v6073_v52 = vmax.f32 %v5567_v47, 0.0  ;;  %v5568_v53 = vadd.f32 %v12273_v63, %v5057_v48  ;;  %11331 = vmatmul.mubr.msk.bf16.gmra.mrb[132].mxu1 %vm1961_vm3, %v11786_v42 }
 0x11a   : > { %10826 = vmatprep.mubr.msk.bf16.mxu0 %vm11996_vm2, %v11994_v1  ;;  %11334 = vmatprep.mubr.msk.bf16.mxu1 %vm11996_vm2, %v11994_v1 }
 0x11b   : > { %v9937_v54 = vpack.c.bf16 %v5819_v50, %v5819_v50  ;;  %v5820_v55 = vmax.f32 %v5314_v51, 0.0  ;;  %v10191_v56 = vpack.c.bf16 %v6073_v52, %v6073_v52  ;;  %v6074_v57 = vmax.f32 %v5568_v53, 0.0  ;;  %v11791_v53 = vld [vmem:[%s12047_s22 + $0x120] sm:$0xff]  }
 0x11c   : > { %v2818_v58 = vpop.f32.mrb[28].mxu0  ;;  %v3834_v2 = vpop.f32.mrb[28].mxu1 }
 0x11d   : > { %8350 = vst.msk [vmem:[%s12290_s29 + $0x30] sm:$0xf] %vm8337_vm4, %v9937_v54  ;;  %v9938_v59 = vpack.c.bf16 %v5820_v55, %v5820_v55  ;;  %v4804_v60 = vmul.f32 %v12263_v61, %v2818_v58  ;;  %v10720_v62 = vpop.f32.mrb[29].mxu0  ;;  %8604 = vst.msk [vmem:[%s12290_s29 + $0x428] sm:$0xf] %vm8337_vm4, %v10191_v56  ;;  %v10192_v3 = vpack.c.bf16 %v6074_v57, %v6074_v57  ;;  %v11228_v6 = vpop.f32.mrb[29].mxu1 }
 0x11e   : > { %v2821_v4 = vpop.f32.mrb[30].mxu0  ;;  %v5058_v5 = vmul.f32 %v12263_v61, %v3834_v2  ;;  %v3837_v11 = vpop.f32.mrb[30].mxu1 }
 0x11f   : > { %8351 = vst.msk [vmem:[%s12290_s29 + $0x34] sm:$0xf] %vm8337_vm4, %v9938_v59  ;;  %v5315_v8 = vadd.f32 %v12273_v63, %v4804_v60  ;;  %v4805_v9 = vmul.f32 %v12263_v61, %v2821_v4  ;;  %v10721_v10 = vpop.f32.mrb[31].mxu0  ;;  %8605 = vst.msk [vmem:[%s12290_s29 + $0x42c] sm:$0xf] %vm8337_vm4, %v10192_v3  ;;  %v5059_v13 = vmul.f32 %v12263_v61, %v3837_v11  ;;  %v11229_v14 = vpop.f32.mrb[31].mxu1 }
 0x120   : > { %v5569_v12 = vadd.f32 %v12273_v63, %v5058_v5  ;;  %v11792_v59 = vld [vmem:[%s12047_s22 + $0x518] sm:$0xff]  }
 0x121   : > { %v5821_v15 = vmax.f32 %v5315_v8, 0.0  ;;  %v5316_v16 = vadd.f32 %v12273_v63, %v4805_v9  ;;  %10827 = vmatmul.mubr.msk.bf16.gmra.mrb[136].mxu0 %vm1961_vm3, %v11787_v0  ;;  %v5570_v18 = vadd.f32 %v12273_v63, %v5059_v13  ;;  %11335 = vmatmul.mubr.msk.bf16.gmra.mrb[136].mxu1 %vm1961_vm3, %v11788_v7 }
 0x122   : > { %v6075_v17 = vmax.f32 %v5569_v12, 0.0  ;;  %10830 = vmatprep.mubr.msk.bf16.mxu0 %vm11996_vm2, %v11994_v1  ;;  %11338 = vmatprep.mubr.msk.bf16.mxu1 %vm11996_vm2, %v11994_v1 }
 0x123   : > { %v9939_v19 = vpack.c.bf16 %v5821_v15, %v5821_v15  ;;  %v5822_v20 = vmax.f32 %v5316_v16, 0.0  ;;  %v6076_v22 = vmax.f32 %v5570_v18, 0.0  ;;  %v11793_v18 = vld [vmem:[%s12047_s22 + $0x128] sm:$0xff]  }
 0x124   : > { %v10193_v21 = vpack.c.bf16 %v6075_v17, %v6075_v17  ;;  %v2826_v23 = vpop.f32.mrb[32].mxu0  ;;  %v3842_v28 = vpop.f32.mrb[32].mxu1 }
 0x125   : > { %8352 = vst.msk [vmem:[%s12290_s29 + $0x38] sm:$0xf] %vm8337_vm4, %v9939_v19  ;;  %v9940_v24 = vpack.c.bf16 %v5822_v20, %v5822_v20  ;;  %v4806_v25 = vmul.f32 %v12263_v61, %v2826_v23  ;;  %v10724_v26 = vpop.f32.mrb[33].mxu0  ;;  %v10194_v29 = vpack.c.bf16 %v6076_v22, %v6076_v22  ;;  %v5060_v31 = vmul.f32 %v12263_v61, %v3842_v28  ;;  %v11232_v32 = vpop.f32.mrb[33].mxu1 }
 0x126   : > { %8606 = vst.msk [vmem:[%s12290_s29 + $0x430] sm:$0xf] %vm8337_vm4, %v10193_v21  ;;  %v2829_v30 = vpop.f32.mrb[34].mxu0  ;;  %v3845_v37 = vpop.f32.mrb[34].mxu1 }
 0x127   : > { %8353 = vst.msk [vmem:[%s12290_s29 + $0x3c] sm:$0xf] %vm8337_vm4, %v9940_v24  ;;  %v5317_v34 = vadd.f32 %v12273_v63, %v4806_v25  ;;  %v4807_v35 = vmul.f32 %v12263_v61, %v2829_v30  ;;  %v10725_v36 = vpop.f32.mrb[35].mxu0  ;;  %8607 = vst.msk [vmem:[%s12290_s29 + $0x434] sm:$0xf] %vm8337_vm4, %v10194_v29  ;;  %v5571_v38 = vadd.f32 %v12273_v63, %v5060_v31  ;;  %v11233_v40 = vpop.f32.mrb[35].mxu1 }
 0x128   : > { %v5061_v39 = vmul.f32 %v12263_v61, %v3845_v37  ;;  %v11794_v24 = vld [vmem:[%s12047_s22 + $0x520] sm:$0xff]  }
 0x129   : > { %v5823_v41 = vmax.f32 %v5317_v34, 0.0  ;;  %v5318_v42 = vadd.f32 %v12273_v63, %v4807_v35  ;;  %10831 = vmatmul.mubr.msk.bf16.gmra.mrb[140].mxu0 %vm1961_vm3, %v11789_v27  ;;  %v6077_v43 = vmax.f32 %v5571_v38, 0.0  ;;  %11339 = vmatmul.mubr.msk.bf16.gmra.mrb[140].mxu1 %vm1961_vm3, %v11790_v33 }
 0x12a   : > { %v5572_v44 = vadd.f32 %v12273_v63, %v5061_v39  ;;  %10834 = vmatprep.mubr.msk.bf16.mxu0 %vm11996_vm2, %v11994_v1  ;;  %11342 = vmatprep.mubr.msk.bf16.mxu1 %vm11996_vm2, %v11994_v1 }
 0x12b   : > { %v9941_v45 = vpack.c.bf16 %v5823_v41, %v5823_v41  ;;  %v5824_v46 = vmax.f32 %v5318_v42, 0.0  ;;  %v10195_v47 = vpack.c.bf16 %v6077_v43, %v6077_v43 }
 0x12c   : > { %v6078_v48 = vmax.f32 %v5572_v44, 0.0  ;;  %v2834_v49 = vpop.f32.mrb[36].mxu0  ;;  %v3850_v54 = vpop.f32.mrb[36].mxu1  ;;  %v11795_v44 = vld [vmem:[%s12047_s22 + $0x130] sm:$0xff]  }
 0x12d   : > { %8354 = vst.msk [vmem:[%s12290_s29 + $0x40] sm:$0xf] %vm8337_vm4, %v9941_v45  ;;  %v9942_v50 = vpack.c.bf16 %v5824_v46, %v5824_v46  ;;  %v4808_v51 = vmul.f32 %v12263_v61, %v2834_v49  ;;  %v10728_v52 = vpop.f32.mrb[37].mxu0  ;;  %8608 = vst.msk [vmem:[%s12290_s29 + $0x438] sm:$0xf] %vm8337_vm4, %v10195_v47  ;;  %v5062_v57 = vmul.f32 %v12263_v61, %v3850_v54  ;;  %v11236_v58 = vpop.f32.mrb[37].mxu1 }
 0x12e   : > { %v10196_v55 = vpack.c.bf16 %v6078_v48, %v6078_v48  ;;  %v2837_v56 = vpop.f32.mrb[38].mxu0  ;;  %v3853_v2 = vpop.f32.mrb[38].mxu1 }
 0x12f   : > { %8355 = vst.msk [vmem:[%s12290_s29 + $0x44] sm:$0xf] %vm8337_vm4, %v9942_v50  ;;  %v5319_v60 = vadd.f32 %v12273_v63, %v4808_v51  ;;  %v4809_v62 = vmul.f32 %v12263_v61, %v2837_v56  ;;  %v10729_v0 = vpop.f32.mrb[39].mxu0  ;;  %v5573_v3 = vadd.f32 %v12273_v63, %v5062_v57  ;;  %v5063_v4 = vmul.f32 %v12263_v61, %v3853_v2  ;;  %v11237_v5 = vpop.f32.mrb[39].mxu1  ;;  %v11796_v50 = vld [vmem:[%s12047_s22 + $0x528] sm:$0xff]  }
 0x130   : > { %8609 = vst.msk [vmem:[%s12290_s29 + $0x43c] sm:$0xf] %vm8337_vm4, %v10196_v55 }
 0x131   : > { %v5825_v6 = vmax.f32 %v5319_v60, 0.0  ;;  %v5320_v7 = vadd.f32 %v12273_v63, %v4809_v62  ;;  %10835 = vmatmul.mubr.msk.bf16.gmra.mrb[144].mxu0 %vm1961_vm3, %v11791_v53  ;;  %v6079_v8 = vmax.f32 %v5573_v3, 0.0  ;;  %v5574_v9 = vadd.f32 %v12273_v63, %v5063_v4  ;;  %11343 = vmatmul.mubr.msk.bf16.gmra.mrb[144].mxu1 %vm1961_vm3, %v11792_v59 }
 0x132   : > { %10838 = vmatprep.mubr.msk.bf16.mxu0 %vm11996_vm2, %v11994_v1  ;;  %11346 = vmatprep.mubr.msk.bf16.mxu1 %vm11996_vm2, %v11994_v1 }
 0x133   : > { %v9943_v10 = vpack.c.bf16 %v5825_v6, %v5825_v6  ;;  %v5826_v11 = vmax.f32 %v5320_v7, 0.0  ;;  %v10197_v12 = vpack.c.bf16 %v6079_v8, %v6079_v8  ;;  %v6080_v13 = vmax.f32 %v5574_v9, 0.0  ;;  %v11797_v9 = vld [vmem:[%s12047_s22 + $0x138] sm:$0xff]  }
 0x134   : > { %v2842_v14 = vpop.f32.mrb[40].mxu0  ;;  %v3858_v19 = vpop.f32.mrb[40].mxu1 }
 0x135   : > { %8356 = vst.msk [vmem:[%s12290_s29 + $0x48] sm:$0xf] %vm8337_vm4, %v9943_v10  ;;  %v9944_v15 = vpack.c.bf16 %v5826_v11, %v5826_v11  ;;  %v4810_v16 = vmul.f32 %v12263_v61, %v2842_v14  ;;  %v10732_v17 = vpop.f32.mrb[41].mxu0  ;;  %8610 = vst.msk [vmem:[%s12290_s29 + $0x440] sm:$0xf] %vm8337_vm4, %v10197_v12  ;;  %v10198_v20 = vpack.c.bf16 %v6080_v13, %v6080_v13  ;;  %v11240_v23 = vpop.f32.mrb[41].mxu1 }
 0x136   : > { %v2845_v21 = vpop.f32.mrb[42].mxu0  ;;  %v5064_v22 = vmul.f32 %v12263_v61, %v3858_v19  ;;  %v3861_v28 = vpop.f32.mrb[42].mxu1 }
 0x137   : > { %8357 = vst.msk [vmem:[%s12290_s29 + $0x4c] sm:$0xf] %vm8337_vm4, %v9944_v15  ;;  %v5321_v25 = vadd.f32 %v12273_v63, %v4810_v16  ;;  %v4811_v26 = vmul.f32 %v12263_v61, %v2845_v21  ;;  %v10733_v27 = vpop.f32.mrb[43].mxu0  ;;  %8611 = vst.msk [vmem:[%s12290_s29 + $0x444] sm:$0xf] %vm8337_vm4, %v10198_v20  ;;  %v5065_v30 = vmul.f32 %v12263_v61, %v3861_v28  ;;  %v11241_v31 = vpop.f32.mrb[43].mxu1 }
 0x138   : > { %v5575_v29 = vadd.f32 %v12273_v63, %v5064_v22  ;;  %v11798_v15 = vld [vmem:[%s12047_s22 + $0x530] sm:$0xff]  }
 0x139   : > { %v5827_v32 = vmax.f32 %v5321_v25, 0.0  ;;  %v5322_v33 = vadd.f32 %v12273_v63, %v4811_v26  ;;  %10839 = vmatmul.mubr.msk.bf16.gmra.mrb[148].mxu0 %vm1961_vm3, %v11793_v18  ;;  %v5576_v35 = vadd.f32 %v12273_v63, %v5065_v30  ;;  %11347 = vmatmul.mubr.msk.bf16.gmra.mrb[148].mxu1 %vm1961_vm3, %v11794_v24 }
 0x13a   : > { %v6081_v34 = vmax.f32 %v5575_v29, 0.0  ;;  %10842 = vmatprep.mubr.msk.bf16.mxu0 %vm11996_vm2, %v11994_v1  ;;  %11350 = vmatprep.mubr.msk.bf16.mxu1 %vm11996_vm2, %v11994_v1 }
 0x13b   : > { %v9945_v36 = vpack.c.bf16 %v5827_v32, %v5827_v32  ;;  %v5828_v37 = vmax.f32 %v5322_v33, 0.0  ;;  %v6082_v39 = vmax.f32 %v5576_v35, 0.0  ;;  %v11799_v35 = vld [vmem:[%s12047_s22 + $0x140] sm:$0xff]  }
 0x13c   : > { %v10199_v38 = vpack.c.bf16 %v6081_v34, %v6081_v34  ;;  %v2850_v40 = vpop.f32.mrb[44].mxu0  ;;  %v3866_v45 = vpop.f32.mrb[44].mxu1 }
 0x13d   : > { %8358 = vst.msk [vmem:[%s12290_s29 + $0x50] sm:$0xf] %vm8337_vm4, %v9945_v36  ;;  %v9946_v41 = vpack.c.bf16 %v5828_v37, %v5828_v37  ;;  %v4812_v42 = vmul.f32 %v12263_v61, %v2850_v40  ;;  %v10736_v43 = vpop.f32.mrb[45].mxu0  ;;  %v10200_v46 = vpack.c.bf16 %v6082_v39, %v6082_v39  ;;  %v5066_v48 = vmul.f32 %v12263_v61, %v3866_v45  ;;  %v11244_v49 = vpop.f32.mrb[45].mxu1 }
 0x13e   : > { %8612 = vst.msk [vmem:[%s12290_s29 + $0x448] sm:$0xf] %vm8337_vm4, %v10199_v38  ;;  %v2853_v47 = vpop.f32.mrb[46].mxu0  ;;  %v3869_v54 = vpop.f32.mrb[46].mxu1 }
 0x13f   : > { %8359 = vst.msk [vmem:[%s12290_s29 + $0x54] sm:$0xf] %vm8337_vm4, %v9946_v41  ;;  %v5323_v51 = vadd.f32 %v12273_v63, %v4812_v42  ;;  %v4813_v52 = vmul.f32 %v12263_v61, %v2853_v47  ;;  %v10737_v53 = vpop.f32.mrb[47].mxu0  ;;  %8613 = vst.msk [vmem:[%s12290_s29 + $0x44c] sm:$0xf] %vm8337_vm4, %v10200_v46  ;;  %v5577_v55 = vadd.f32 %v12273_v63, %v5066_v48  ;;  %v11245_v57 = vpop.f32.mrb[47].mxu1 }
 0x140   : > { %v5067_v56 = vmul.f32 %v12263_v61, %v3869_v54  ;;  %v11800_v41 = vld [vmem:[%s12047_s22 + $0x538] sm:$0xff]  }
 0x141   : > { %v5829_v58 = vmax.f32 %v5323_v51, 0.0  ;;  %v5324_v59 = vadd.f32 %v12273_v63, %v4813_v52  ;;  %10843 = vmatmul.mubr.msk.bf16.gmra.mrb[152].mxu0 %vm1961_vm3, %v11795_v44  ;;  %v6083_v60 = vmax.f32 %v5577_v55, 0.0  ;;  %11351 = vmatmul.mubr.msk.bf16.gmra.mrb[152].mxu1 %vm1961_vm3, %v11796_v50 }
 0x142   : > { %v5578_v62 = vadd.f32 %v12273_v63, %v5067_v56  ;;  %10846 = vmatprep.mubr.msk.bf16.mxu0 %vm11996_vm2, %v11994_v1  ;;  %11354 = vmatprep.mubr.msk.bf16.mxu1 %vm11996_vm2, %v11994_v1 }
 0x143   : > { %v9947_v0 = vpack.c.bf16 %v5829_v58, %v5829_v58  ;;  %v5830_v2 = vmax.f32 %v5324_v59, 0.0  ;;  %v10201_v3 = vpack.c.bf16 %v6083_v60, %v6083_v60 }
 0x144   : > { %v6084_v4 = vmax.f32 %v5578_v62, 0.0  ;;  %v2858_v5 = vpop.f32.mrb[48].mxu0  ;;  %v3874_v10 = vpop.f32.mrb[48].mxu1  ;;  %v11801_v62 = vld [vmem:[%s12047_s22 + $0x148] sm:$0xff]  }
 0x145   : > { %8360 = vst.msk [vmem:[%s12290_s29 + $0x58] sm:$0xf] %vm8337_vm4, %v9947_v0  ;;  %v9948_v6 = vpack.c.bf16 %v5830_v2, %v5830_v2  ;;  %v4814_v7 = vmul.f32 %v12263_v61, %v2858_v5  ;;  %v10740_v8 = vpop.f32.mrb[49].mxu0  ;;  %8614 = vst.msk [vmem:[%s12290_s29 + $0x450] sm:$0xf] %vm8337_vm4, %v10201_v3  ;;  %v5068_v13 = vmul.f32 %v12263_v61, %v3874_v10  ;;  %v11248_v14 = vpop.f32.mrb[49].mxu1 }
 0x146   : > { %v10202_v11 = vpack.c.bf16 %v6084_v4, %v6084_v4  ;;  %v2861_v12 = vpop.f32.mrb[50].mxu0  ;;  %v3877_v19 = vpop.f32.mrb[50].mxu1 }
 0x147   : > { %8361 = vst.msk [vmem:[%s12290_s29 + $0x5c] sm:$0xf] %vm8337_vm4, %v9948_v6  ;;  %v5325_v16 = vadd.f32 %v12273_v63, %v4814_v7  ;;  %v4815_v17 = vmul.f32 %v12263_v61, %v2861_v12  ;;  %v10741_v18 = vpop.f32.mrb[51].mxu0  ;;  %v5579_v20 = vadd.f32 %v12273_v63, %v5068_v13  ;;  %v5069_v21 = vmul.f32 %v12263_v61, %v3877_v19  ;;  %v11249_v22 = vpop.f32.mrb[51].mxu1  ;;  %v11802_v6 = vld [vmem:[%s12047_s22 + $0x540] sm:$0xff]  }
 0x148   : > { %8615 = vst.msk [vmem:[%s12290_s29 + $0x454] sm:$0xf] %vm8337_vm4, %v10202_v11 }
 0x149   : > { %v5831_v23 = vmax.f32 %v5325_v16, 0.0  ;;  %v5326_v24 = vadd.f32 %v12273_v63, %v4815_v17  ;;  %10847 = vmatmul.mubr.msk.bf16.gmra.mrb[156].mxu0 %vm1961_vm3, %v11797_v9  ;;  %v6085_v25 = vmax.f32 %v5579_v20, 0.0  ;;  %v5580_v26 = vadd.f32 %v12273_v63, %v5069_v21  ;;  %11355 = vmatmul.mubr.msk.bf16.gmra.mrb[156].mxu1 %vm1961_vm3, %v11798_v15 }
 0x14a   : > { %10850 = vmatprep.mubr.msk.bf16.mxu0 %vm11996_vm2, %v11994_v1  ;;  %11358 = vmatprep.mubr.msk.bf16.mxu1 %vm11996_vm2, %v11994_v1 }
 0x14b   : > { %v9949_v27 = vpack.c.bf16 %v5831_v23, %v5831_v23  ;;  %v5832_v28 = vmax.f32 %v5326_v24, 0.0  ;;  %v10203_v29 = vpack.c.bf16 %v6085_v25, %v6085_v25  ;;  %v6086_v30 = vmax.f32 %v5580_v26, 0.0  ;;  %v11803_v25 = vld [vmem:[%s12047_s22 + $0x150] sm:$0xff]  }
 0x14c   : > { %v2866_v31 = vpop.f32.mrb[52].mxu0  ;;  %v3882_v36 = vpop.f32.mrb[52].mxu1 }
 0x14d   : > { %8362 = vst.msk [vmem:[%s12290_s29 + $0x60] sm:$0xf] %vm8337_vm4, %v9949_v27  ;;  %v9950_v32 = vpack.c.bf16 %v5832_v28, %v5832_v28  ;;  %v4816_v33 = vmul.f32 %v12263_v61, %v2866_v31  ;;  %v10744_v34 = vpop.f32.mrb[53].mxu0  ;;  %8616 = vst.msk [vmem:[%s12290_s29 + $0x458] sm:$0xf] %vm8337_vm4, %v10203_v29  ;;  %v10204_v37 = vpack.c.bf16 %v6086_v30, %v6086_v30  ;;  %v11252_v40 = vpop.f32.mrb[53].mxu1 }
 0x14e   : > { %v2869_v38 = vpop.f32.mrb[54].mxu0  ;;  %v5070_v39 = vmul.f32 %v12263_v61, %v3882_v36  ;;  %v3885_v45 = vpop.f32.mrb[54].mxu1  ;;  %v11804_v31 = vld [vmem:[%s12047_s22 + $0x548] sm:$0xff]  }
 0x14f   : > { %8363 = vst.msk [vmem:[%s12290_s29 + $0x64] sm:$0xf] %vm8337_vm4, %v9950_v32  ;;  %v5327_v42 = vadd.f32 %v12273_v63, %v4816_v33  ;;  %v4817_v43 = vmul.f32 %v12263_v61, %v2869_v38  ;;  %v10745_v44 = vpop.f32.mrb[55].mxu0  ;;  %8617 = vst.msk [vmem:[%s12290_s29 + $0x45c] sm:$0xf] %vm8337_vm4, %v10204_v37  ;;  %v5071_v47 = vmul.f32 %v12263_v61, %v3885_v45  ;;  %v11253_v48 = vpop.f32.mrb[55].mxu1 }
 0x150   : > { %v5581_v46 = vadd.f32 %v12273_v63, %v5070_v39  ;;  %v12652_v32 = vld [vmem:[%s15173_s2 + $0x1] ss:$0 sm:$0xff] }
 0x151   : > { %v5833_v49 = vmax.f32 %v5327_v42, 0.0  ;;  %v5328_v50 = vadd.f32 %v12273_v63, %v4817_v43  ;;  %10851 = vmatmul.mubr.msk.bf16.gmra.mrb[160].mxu0 %vm1961_vm3, %v11799_v35  ;;  %v5582_v52 = vadd.f32 %v12273_v63, %v5071_v47  ;;  %11359 = vmatmul.mubr.msk.bf16.gmra.mrb[160].mxu1 %vm1961_vm3, %v11800_v41 }
 0x152   : > { %v6087_v51 = vmax.f32 %v5581_v46, 0.0  ;;  %10854 = vmatprep.mubr.msk.bf16.mxu0 %vm11996_vm2, %v11994_v1  ;;  %11362 = vmatprep.mubr.msk.bf16.mxu1 %vm11996_vm2, %v11994_v1 }
 0x153   : > { %v9951_v53 = vpack.c.bf16 %v5833_v49, %v5833_v49  ;;  %v5834_v54 = vmax.f32 %v5328_v50, 0.0  ;;  %v6088_v56 = vmax.f32 %v5582_v52, 0.0  ;;  %v11805_v52 = vld [vmem:[%s12047_s22 + $0x158] sm:$0xff]  }
 0x154   : > { %v10205_v55 = vpack.c.bf16 %v6087_v51, %v6087_v51  ;;  %v2874_v57 = vpop.f32.mrb[56].mxu0  ;;  %v3890_v0 = vpop.f32.mrb[56].mxu1 }
 0x155   : > { %8364 = vst.msk [vmem:[%s12290_s29 + $0x68] sm:$0xf] %vm8337_vm4, %v9951_v53  ;;  %v9952_v58 = vpack.c.bf16 %v5834_v54, %v5834_v54  ;;  %v4818_v59 = vmul.f32 %v12263_v61, %v2874_v57  ;;  %v10748_v60 = vpop.f32.mrb[57].mxu0  ;;  %v10206_v2 = vpack.c.bf16 %v6088_v56, %v6088_v56  ;;  %v5072_v4 = vmul.f32 %v12263_v61, %v3890_v0  ;;  %v11256_v5 = vpop.f32.mrb[57].mxu1 }
 0x156   : > { %8618 = vst.msk [vmem:[%s12290_s29 + $0x460] sm:$0xf] %vm8337_vm4, %v10205_v55  ;;  %v2877_v3 = vpop.f32.mrb[58].mxu0  ;;  %v3893_v10 = vpop.f32.mrb[58].mxu1 }
 0x157   : > { %8365 = vst.msk [vmem:[%s12290_s29 + $0x6c] sm:$0xf] %vm8337_vm4, %v9952_v58  ;;  %v5329_v7 = vadd.f32 %v12273_v63, %v4818_v59  ;;  %v4819_v8 = vmul.f32 %v12263_v61, %v2877_v3  ;;  %v10749_v9 = vpop.f32.mrb[59].mxu0  ;;  %8619 = vst.msk [vmem:[%s12290_s29 + $0x464] sm:$0xf] %vm8337_vm4, %v10206_v2  ;;  %v5583_v11 = vadd.f32 %v12273_v63, %v5072_v4  ;;  %v11257_v13 = vpop.f32.mrb[59].mxu1 }
 0x158   : > { %v5073_v12 = vmul.f32 %v12263_v61, %v3893_v10  ;;  %v11806_v58 = vld [vmem:[%s12047_s22 + $0x550] sm:$0xff]  }
 0x159   : > { %v5835_v14 = vmax.f32 %v5329_v7, 0.0  ;;  %v5330_v15 = vadd.f32 %v12273_v63, %v4819_v8  ;;  %10855 = vmatmul.mubr.msk.bf16.gmra.mrb[164].mxu0 %vm1961_vm3, %v11801_v62  ;;  %v6089_v16 = vmax.f32 %v5583_v11, 0.0  ;;  %11363 = vmatmul.mubr.msk.bf16.gmra.mrb[164].mxu1 %vm1961_vm3, %v11802_v6 }
 0x15a   : > { %v5584_v17 = vadd.f32 %v12273_v63, %v5073_v12  ;;  %10858 = vmatprep.mubr.msk.bf16.mxu0 %vm11996_vm2, %v11994_v1  ;;  %11366 = vmatprep.mubr.msk.bf16.mxu1 %vm11996_vm2, %v11994_v1  ;;  %v12639_v63 = vld [vmem:[%s15173_s2] ss:$0 sm:$0xff] }
 0x15b   : > { %v9953_v18 = vpack.c.bf16 %v5835_v14, %v5835_v14  ;;  %v5836_v19 = vmax.f32 %v5330_v15, 0.0  ;;  %v10207_v61 = vpack.c.bf16 %v6089_v16, %v6089_v16 }
 0x15c   : > { %v6090_v20 = vmax.f32 %v5584_v17, 0.0  ;;  %v2882_v21 = vpop.f32.mrb[60].mxu0  ;;  %v3898_v26 = vpop.f32.mrb[60].mxu1  ;;  %v11807_v17 = vld [vmem:[%s12047_s22 + $0x160] sm:$0xff]  }
 0x15d   : > { %8366 = vst.msk [vmem:[%s12290_s29 + $0x70] sm:$0xf] %vm8337_vm4, %v9953_v18  ;;  %v9954_v22 = vpack.c.bf16 %v5836_v19, %v5836_v19  ;;  %v4820_v23 = vmul.f32 %v12639_v63, %v2882_v21  ;;  %v10752_v24 = vpop.f32.mrb[61].mxu0  ;;  %8620 = vst.msk [vmem:[%s12290_s29 + $0x468] sm:$0xf] %vm8337_vm4, %v10207_v61  ;;  %v5074_v29 = vmul.f32 %v12639_v63, %v3898_v26  ;;  %v11260_v30 = vpop.f32.mrb[61].mxu1 }
 0x15e   : > { %v10208_v27 = vpack.c.bf16 %v6090_v20, %v6090_v20  ;;  %v2885_v28 = vpop.f32.mrb[62].mxu0  ;;  %v3901_v36 = vpop.f32.mrb[62].mxu1 }
 0x15f   : > { %8367 = vst.msk [vmem:[%s12290_s29 + $0x74] sm:$0xf] %vm8337_vm4, %v9954_v22  ;;  %v5331_v33 = vadd.f32 %v12652_v32, %v4820_v23  ;;  %v4821_v34 = vmul.f32 %v12639_v63, %v2885_v28  ;;  %v10753_v35 = vpop.f32.mrb[63].mxu0  ;;  %v5585_v37 = vadd.f32 %v12652_v32, %v5074_v29  ;;  %v5075_v38 = vmul.f32 %v12639_v63, %v3901_v36  ;;  %v11261_v39 = vpop.f32.mrb[63].mxu1  ;;  %v11808_v22 = vld [vmem:[%s12047_s22 + $0x558] sm:$0xff]  }
 0x160   : > { %8621 = vst.msk [vmem:[%s12290_s29 + $0x46c] sm:$0xf] %vm8337_vm4, %v10208_v27 }
 0x161   : > { %v5837_v40 = vmax.f32 %v5331_v33, 0.0  ;;  %v5332_v41 = vadd.f32 %v12652_v32, %v4821_v34  ;;  %10859 = vmatmul.mubr.msk.bf16.gmra.mrb[168].mxu0 %vm1961_vm3, %v11803_v25  ;;  %v6091_v42 = vmax.f32 %v5585_v37, 0.0  ;;  %v5586_v43 = vadd.f32 %v12652_v32, %v5075_v38  ;;  %11367 = vmatmul.mubr.msk.bf16.gmra.mrb[168].mxu1 %vm1961_vm3, %v11804_v31 }
 0x162   : > { %10862 = vmatprep.mubr.msk.bf16.mxu0 %vm11996_vm2, %v11994_v1  ;;  %11370 = vmatprep.mubr.msk.bf16.mxu1 %vm11996_vm2, %v11994_v1 }
 0x163   : > { %v9955_v44 = vpack.c.bf16 %v5837_v40, %v5837_v40  ;;  %v5838_v45 = vmax.f32 %v5332_v41, 0.0  ;;  %v10209_v46 = vpack.c.bf16 %v6091_v42, %v6091_v42  ;;  %v6092_v47 = vmax.f32 %v5586_v43, 0.0  ;;  %v11809_v43 = vld [vmem:[%s12047_s22 + $0x168] sm:$0xff]  }
 0x164   : > { %v2890_v48 = vpop.f32.mrb[64].mxu0  ;;  %v3906_v53 = vpop.f32.mrb[64].mxu1 }
 0x165   : > { %8368 = vst.msk [vmem:[%s12290_s29 + $0x78] sm:$0xf] %vm8337_vm4, %v9955_v44  ;;  %v9956_v49 = vpack.c.bf16 %v5838_v45, %v5838_v45  ;;  %v4822_v50 = vmul.f32 %v12639_v63, %v2890_v48  ;;  %v10756_v51 = vpop.f32.mrb[65].mxu0  ;;  %8622 = vst.msk [vmem:[%s12290_s29 + $0x470] sm:$0xf] %vm8337_vm4, %v10209_v46  ;;  %v10210_v54 = vpack.c.bf16 %v6092_v47, %v6092_v47  ;;  %v11264_v57 = vpop.f32.mrb[65].mxu1 }
 0x166   : > { %v2893_v55 = vpop.f32.mrb[66].mxu0  ;;  %v5076_v56 = vmul.f32 %v12639_v63, %v3906_v53  ;;  %v3909_v0 = vpop.f32.mrb[66].mxu1 }
 0x167   : > { %8369 = vst.msk [vmem:[%s12290_s29 + $0x7c] sm:$0xf] %vm8337_vm4, %v9956_v49  ;;  %v5333_v59 = vadd.f32 %v12652_v32, %v4822_v50  ;;  %v4823_v60 = vmul.f32 %v12639_v63, %v2893_v55  ;;  %v10757_v62 = vpop.f32.mrb[67].mxu0  ;;  %8623 = vst.msk [vmem:[%s12290_s29 + $0x474] sm:$0xf] %vm8337_vm4, %v10210_v54  ;;  %v5077_v3 = vmul.f32 %v12639_v63, %v3909_v0  ;;  %v11265_v4 = vpop.f32.mrb[67].mxu1 }
 0x168   : > { %v5587_v2 = vadd.f32 %v12652_v32, %v5076_v56  ;;  %v11810_v49 = vld [vmem:[%s12047_s22 + $0x560] sm:$0xff]  }
 0x169   : > { %v5839_v5 = vmax.f32 %v5333_v59, 0.0  ;;  %v5334_v6 = vadd.f32 %v12652_v32, %v4823_v60  ;;  %10863 = vmatmul.mubr.msk.bf16.gmra.mrb[172].mxu0 %vm1961_vm3, %v11805_v52  ;;  %v5588_v8 = vadd.f32 %v12652_v32, %v5077_v3  ;;  %11371 = vmatmul.mubr.msk.bf16.gmra.mrb[172].mxu1 %vm1961_vm3, %v11806_v58 }
 0x16a   : > { %v6093_v7 = vmax.f32 %v5587_v2, 0.0  ;;  %10866 = vmatprep.mubr.msk.bf16.mxu0 %vm11996_vm2, %v11994_v1  ;;  %11374 = vmatprep.mubr.msk.bf16.mxu1 %vm11996_vm2, %v11994_v1 }
 0x16b   : > { %v9957_v9 = vpack.c.bf16 %v5839_v5, %v5839_v5  ;;  %v5840_v10 = vmax.f32 %v5334_v6, 0.0  ;;  %v6094_v12 = vmax.f32 %v5588_v8, 0.0  ;;  %v11811_v8 = vld [vmem:[%s12047_s22 + $0x170] sm:$0xff]  }
 0x16c   : > { %v10211_v11 = vpack.c.bf16 %v6093_v7, %v6093_v7  ;;  %v2898_v13 = vpop.f32.mrb[68].mxu0  ;;  %v3914_v18 = vpop.f32.mrb[68].mxu1 }
 0x16d   : > { %8370 = vst.msk [vmem:[%s12290_s29 + $0x80] sm:$0xf] %vm8337_vm4, %v9957_v9  ;;  %v9958_v14 = vpack.c.bf16 %v5840_v10, %v5840_v10  ;;  %v4824_v15 = vmul.f32 %v12639_v63, %v2898_v13  ;;  %v10760_v16 = vpop.f32.mrb[69].mxu0  ;;  %v10212_v19 = vpack.c.bf16 %v6094_v12, %v6094_v12  ;;  %v5078_v20 = vmul.f32 %v12639_v63, %v3914_v18  ;;  %v11268_v21 = vpop.f32.mrb[69].mxu1 }
 0x16e   : > { %8624 = vst.msk [vmem:[%s12290_s29 + $0x478] sm:$0xf] %vm8337_vm4, %v10211_v11  ;;  %v2901_v61 = vpop.f32.mrb[70].mxu0  ;;  %v3917_v26 = vpop.f32.mrb[70].mxu1 }
 0x16f   : > { %8371 = vst.msk [vmem:[%s12290_s29 + $0x84] sm:$0xf] %vm8337_vm4, %v9958_v14  ;;  %v5335_v23 = vadd.f32 %v12652_v32, %v4824_v15  ;;  %v4825_v24 = vmul.f32 %v12639_v63, %v2901_v61  ;;  %v10761_v25 = vpop.f32.mrb[71].mxu0  ;;  %8625 = vst.msk [vmem:[%s12290_s29 + $0x47c] sm:$0xf] %vm8337_vm4, %v10212_v19  ;;  %v5589_v27 = vadd.f32 %v12652_v32, %v5078_v20  ;;  %v11269_v29 = vpop.f32.mrb[71].mxu1 }
 0x170   : > { %v5079_v28 = vmul.f32 %v12639_v63, %v3917_v26  ;;  %v11812_v14 = vld [vmem:[%s12047_s22 + $0x568] sm:$0xff]  }
 0x171   : > { %v5841_v30 = vmax.f32 %v5335_v23, 0.0  ;;  %v5336_v31 = vadd.f32 %v12652_v32, %v4825_v24  ;;  %10867 = vmatmul.mubr.msk.bf16.gmra.mrb[176].mxu0 %vm1961_vm3, %v11807_v17  ;;  %v6095_v33 = vmax.f32 %v5589_v27, 0.0  ;;  %11375 = vmatmul.mubr.msk.bf16.gmra.mrb[176].mxu1 %vm1961_vm3, %v11808_v22 }
 0x172   : > { %v5590_v34 = vadd.f32 %v12652_v32, %v5079_v28  ;;  %10870 = vmatprep.mubr.msk.bf16.mxu0 %vm11996_vm2, %v11994_v1  ;;  %11378 = vmatprep.mubr.msk.bf16.mxu1 %vm11996_vm2, %v11994_v1 }
 0x173   : > { %v9959_v35 = vpack.c.bf16 %v5841_v30, %v5841_v30  ;;  %v5842_v36 = vmax.f32 %v5336_v31, 0.0  ;;  %v10213_v37 = vpack.c.bf16 %v6095_v33, %v6095_v33 }
 0x174   : > { %v6096_v38 = vmax.f32 %v5590_v34, 0.0  ;;  %v2906_v39 = vpop.f32.mrb[72].mxu0  ;;  %v3922_v44 = vpop.f32.mrb[72].mxu1  ;;  %v11813_v34 = vld [vmem:[%s12047_s22 + $0x178] sm:$0xff]  }
 0x175   : > { %8372 = vst.msk [vmem:[%s12290_s29 + $0x88] sm:$0xf] %vm8337_vm4, %v9959_v35  ;;  %v9960_v40 = vpack.c.bf16 %v5842_v36, %v5842_v36  ;;  %v4826_v41 = vmul.f32 %v12639_v63, %v2906_v39  ;;  %v10764_v42 = vpop.f32.mrb[73].mxu0  ;;  %8626 = vst.msk [vmem:[%s12290_s29 + $0x480] sm:$0xf] %vm8337_vm4, %v10213_v37  ;;  %v5080_v47 = vmul.f32 %v12639_v63, %v3922_v44  ;;  %v11272_v48 = vpop.f32.mrb[73].mxu1 }
 0x176   : > { %v10214_v45 = vpack.c.bf16 %v6096_v38, %v6096_v38  ;;  %v2909_v46 = vpop.f32.mrb[74].mxu0  ;;  %v3925_v53 = vpop.f32.mrb[74].mxu1 }
 0x177   : > { %8373 = vst.msk [vmem:[%s12290_s29 + $0x8c] sm:$0xf] %vm8337_vm4, %v9960_v40  ;;  %v5337_v50 = vadd.f32 %v12652_v32, %v4826_v41  ;;  %v4827_v51 = vmul.f32 %v12639_v63, %v2909_v46  ;;  %v10765_v52 = vpop.f32.mrb[75].mxu0  ;;  %v5591_v54 = vadd.f32 %v12652_v32, %v5080_v47  ;;  %v5081_v55 = vmul.f32 %v12639_v63, %v3925_v53  ;;  %v11273_v56 = vpop.f32.mrb[75].mxu1  ;;  %v11814_v40 = vld [vmem:[%s12047_s22 + $0x570] sm:$0xff]  }
 0x178   : > { %8627 = vst.msk [vmem:[%s12290_s29 + $0x484] sm:$0xf] %vm8337_vm4, %v10214_v45 }
 0x179   : > { %v5843_v57 = vmax.f32 %v5337_v50, 0.0  ;;  %v5338_v58 = vadd.f32 %v12652_v32, %v4827_v51  ;;  %10871 = vmatmul.mubr.msk.bf16.gmra.mrb[180].mxu0 %vm1961_vm3, %v11809_v43  ;;  %v6097_v59 = vmax.f32 %v5591_v54, 0.0  ;;  %v5592_v60 = vadd.f32 %v12652_v32, %v5081_v55  ;;  %11379 = vmatmul.mubr.msk.bf16.gmra.mrb[180].mxu1 %vm1961_vm3, %v11810_v49 }
 0x17a   : > { %10874 = vmatprep.mubr.msk.bf16.mxu0 %vm11996_vm2, %v11994_v1  ;;  %11382 = vmatprep.mubr.msk.bf16.mxu1 %vm11996_vm2, %v11994_v1 }
 0x17b   : > { %v9961_v62 = vpack.c.bf16 %v5843_v57, %v5843_v57  ;;  %v5844_v0 = vmax.f32 %v5338_v58, 0.0  ;;  %v10215_v2 = vpack.c.bf16 %v6097_v59, %v6097_v59  ;;  %v6098_v3 = vmax.f32 %v5592_v60, 0.0  ;;  %v11815_v60 = vld [vmem:[%s12047_s22 + $0x180] sm:$0xff]  }
 0x17c   : > { %v2914_v4 = vpop.f32.mrb[76].mxu0  ;;  %v3930_v9 = vpop.f32.mrb[76].mxu1 }
 0x17d   : > { %8374 = vst.msk [vmem:[%s12290_s29 + $0x90] sm:$0xf] %vm8337_vm4, %v9961_v62  ;;  %v9962_v5 = vpack.c.bf16 %v5844_v0, %v5844_v0  ;;  %v4828_v6 = vmul.f32 %v12639_v63, %v2914_v4  ;;  %v10768_v7 = vpop.f32.mrb[77].mxu0  ;;  %8628 = vst.msk [vmem:[%s12290_s29 + $0x488] sm:$0xf] %vm8337_vm4, %v10215_v2  ;;  %v10216_v10 = vpack.c.bf16 %v6098_v3, %v6098_v3  ;;  %v11276_v13 = vpop.f32.mrb[77].mxu1 }
 0x17e   : > { %v2917_v11 = vpop.f32.mrb[78].mxu0  ;;  %v5082_v12 = vmul.f32 %v12639_v63, %v3930_v9  ;;  %v3933_v18 = vpop.f32.mrb[78].mxu1 }
 0x17f   : > { %8375 = vst.msk [vmem:[%s12290_s29 + $0x94] sm:$0xf] %vm8337_vm4, %v9962_v5  ;;  %v5339_v15 = vadd.f32 %v12652_v32, %v4828_v6  ;;  %v4829_v16 = vmul.f32 %v12639_v63, %v2917_v11  ;;  %v10769_v17 = vpop.f32.mrb[79].mxu0  ;;  %8629 = vst.msk [vmem:[%s12290_s29 + $0x48c] sm:$0xf] %vm8337_vm4, %v10216_v10  ;;  %v5083_v61 = vmul.f32 %v12639_v63, %v3933_v18  ;;  %v11277_v20 = vpop.f32.mrb[79].mxu1 }
 0x180   : > { %v5593_v19 = vadd.f32 %v12652_v32, %v5082_v12  ;;  %v11816_v5 = vld [vmem:[%s12047_s22 + $0x578] sm:$0xff]  }
 0x181   : > { %v5845_v21 = vmax.f32 %v5339_v15, 0.0  ;;  %v5340_v22 = vadd.f32 %v12652_v32, %v4829_v16  ;;  %10875 = vmatmul.mubr.msk.bf16.gmra.mrb[184].mxu0 %vm1961_vm3, %v11811_v8  ;;  %v5594_v24 = vadd.f32 %v12652_v32, %v5083_v61  ;;  %11383 = vmatmul.mubr.msk.bf16.gmra.mrb[184].mxu1 %vm1961_vm3, %v11812_v14 }
 0x182   : > { %v6099_v23 = vmax.f32 %v5593_v19, 0.0  ;;  %10878 = vmatprep.mubr.msk.bf16.mxu0 %vm11996_vm2, %v11994_v1  ;;  %11386 = vmatprep.mubr.msk.bf16.mxu1 %vm11996_vm2, %v11994_v1 }
 0x183   : > { %v9963_v25 = vpack.c.bf16 %v5845_v21, %v5845_v21  ;;  %v5846_v26 = vmax.f32 %v5340_v22, 0.0  ;;  %v6100_v28 = vmax.f32 %v5594_v24, 0.0  ;;  %v11817_v24 = vld [vmem:[%s12047_s22 + $0x188] sm:$0xff]  }
 0x184   : > { %v10217_v27 = vpack.c.bf16 %v6099_v23, %v6099_v23  ;;  %v2922_v29 = vpop.f32.mrb[80].mxu0  ;;  %v3938_v35 = vpop.f32.mrb[80].mxu1 }
 0x185   : > { %8376 = vst.msk [vmem:[%s12290_s29 + $0x98] sm:$0xf] %vm8337_vm4, %v9963_v25  ;;  %v9964_v30 = vpack.c.bf16 %v5846_v26, %v5846_v26  ;;  %v4830_v31 = vmul.f32 %v12639_v63, %v2922_v29  ;;  %v10772_v33 = vpop.f32.mrb[81].mxu0  ;;  %v10218_v36 = vpack.c.bf16 %v6100_v28, %v6100_v28  ;;  %v5084_v38 = vmul.f32 %v12639_v63, %v3938_v35  ;;  %v11280_v39 = vpop.f32.mrb[81].mxu1 }
 0x186   : > { %8630 = vst.msk [vmem:[%s12290_s29 + $0x490] sm:$0xf] %vm8337_vm4, %v10217_v27  ;;  %v2925_v37 = vpop.f32.mrb[82].mxu0  ;;  %v3941_v44 = vpop.f32.mrb[82].mxu1 }
 0x187   : > { %8377 = vst.msk [vmem:[%s12290_s29 + $0x9c] sm:$0xf] %vm8337_vm4, %v9964_v30  ;;  %v5341_v41 = vadd.f32 %v12652_v32, %v4830_v31  ;;  %v4831_v42 = vmul.f32 %v12639_v63, %v2925_v37  ;;  %v10773_v43 = vpop.f32.mrb[83].mxu0  ;;  %8631 = vst.msk [vmem:[%s12290_s29 + $0x494] sm:$0xf] %vm8337_vm4, %v10218_v36  ;;  %v5595_v45 = vadd.f32 %v12652_v32, %v5084_v38  ;;  %v11281_v47 = vpop.f32.mrb[83].mxu1 }
 0x188   : > { %v5085_v46 = vmul.f32 %v12639_v63, %v3941_v44  ;;  %v11818_v30 = vld [vmem:[%s12047_s22 + $0x580] sm:$0xff]  }
 0x189   : > { %v5847_v48 = vmax.f32 %v5341_v41, 0.0  ;;  %v5342_v49 = vadd.f32 %v12652_v32, %v4831_v42  ;;  %10879 = vmatmul.mubr.msk.bf16.gmra.mrb[188].mxu0 %vm1961_vm3, %v11813_v34  ;;  %v6101_v50 = vmax.f32 %v5595_v45, 0.0  ;;  %11387 = vmatmul.mubr.msk.bf16.gmra.mrb[188].mxu1 %vm1961_vm3, %v11814_v40 }
 0x18a   : > { %v5596_v51 = vadd.f32 %v12652_v32, %v5085_v46  ;;  %10882 = vmatprep.mubr.msk.bf16.mxu0 %vm11996_vm2, %v11994_v1  ;;  %11390 = vmatprep.mubr.msk.bf16.mxu1 %vm11996_vm2, %v11994_v1 }
 0x18b   : > { %v9965_v52 = vpack.c.bf16 %v5847_v48, %v5847_v48  ;;  %v5848_v53 = vmax.f32 %v5342_v49, 0.0  ;;  %v10219_v54 = vpack.c.bf16 %v6101_v50, %v6101_v50 }
 0x18c   : > { %v6102_v55 = vmax.f32 %v5596_v51, 0.0  ;;  %v2930_v56 = vpop.f32.mrb[84].mxu0  ;;  %v3946_v62 = vpop.f32.mrb[84].mxu1  ;;  %v11819_v51 = vld [vmem:[%s12047_s22 + $0x190] sm:$0xff]  }
 0x18d   : > { %8378 = vst.msk [vmem:[%s12290_s29 + $0xa0] sm:$0xf] %vm8337_vm4, %v9965_v52  ;;  %v9966_v57 = vpack.c.bf16 %v5848_v53, %v5848_v53  ;;  %v4832_v58 = vmul.f32 %v12639_v63, %v2930_v56  ;;  %v10776_v59 = vpop.f32.mrb[85].mxu0  ;;  %8632 = vst.msk [vmem:[%s12290_s29 + $0x498] sm:$0xf] %vm8337_vm4, %v10219_v54  ;;  %v5086_v3 = vmul.f32 %v12639_v63, %v3946_v62  ;;  %v11284_v4 = vpop.f32.mrb[85].mxu1 }
 0x18e   : > { %v10220_v0 = vpack.c.bf16 %v6102_v55, %v6102_v55  ;;  %v2933_v2 = vpop.f32.mrb[86].mxu0  ;;  %v3949_v9 = vpop.f32.mrb[86].mxu1 }
 0x18f   : > { %8379 = vst.msk [vmem:[%s12290_s29 + $0xa4] sm:$0xf] %vm8337_vm4, %v9966_v57  ;;  %v5343_v6 = vadd.f32 %v12652_v32, %v4832_v58  ;;  %v4833_v7 = vmul.f32 %v12639_v63, %v2933_v2  ;;  %v10777_v8 = vpop.f32.mrb[87].mxu0  ;;  %v5597_v10 = vadd.f32 %v12652_v32, %v5086_v3  ;;  %v5087_v11 = vmul.f32 %v12639_v63, %v3949_v9  ;;  %v11285_v12 = vpop.f32.mrb[87].mxu1  ;;  %v11820_v57 = vld [vmem:[%s12047_s22 + $0x588] sm:$0xff]  }
 0x190   : > { %8633 = vst.msk [vmem:[%s12290_s29 + $0x49c] sm:$0xf] %vm8337_vm4, %v10220_v0 }
 0x191   : > { %v5849_v13 = vmax.f32 %v5343_v6, 0.0  ;;  %v5344_v14 = vadd.f32 %v12652_v32, %v4833_v7  ;;  %10883 = vmatmul.mubr.msk.bf16.gmra.mrb[192].mxu0 %vm1961_vm3, %v11815_v60  ;;  %v6103_v15 = vmax.f32 %v5597_v10, 0.0  ;;  %v5598_v16 = vadd.f32 %v12652_v32, %v5087_v11  ;;  %11391 = vmatmul.mubr.msk.bf16.gmra.mrb[192].mxu1 %vm1961_vm3, %v11816_v5 }
 0x192   : > { %10886 = vmatprep.mubr.msk.bf16.mxu0 %vm11996_vm2, %v11994_v1  ;;  %11394 = vmatprep.mubr.msk.bf16.mxu1 %vm11996_vm2, %v11994_v1 }
 0x193   : > { %v9967_v17 = vpack.c.bf16 %v5849_v13, %v5849_v13  ;;  %v5850_v18 = vmax.f32 %v5344_v14, 0.0  ;;  %v10221_v19 = vpack.c.bf16 %v6103_v15, %v6103_v15  ;;  %v6104_v61 = vmax.f32 %v5598_v16, 0.0  ;;  %v11821_v16 = vld [vmem:[%s12047_s22 + $0x198] sm:$0xff]  }
 0x194   : > { %v2938_v20 = vpop.f32.mrb[88].mxu0  ;;  %v3954_v25 = vpop.f32.mrb[88].mxu1 }
 0x195   : > { %8380 = vst.msk [vmem:[%s12290_s29 + $0xa8] sm:$0xf] %vm8337_vm4, %v9967_v17  ;;  %v9968_v21 = vpack.c.bf16 %v5850_v18, %v5850_v18  ;;  %v4834_v22 = vmul.f32 %v12639_v63, %v2938_v20  ;;  %v10780_v23 = vpop.f32.mrb[89].mxu0  ;;  %8634 = vst.msk [vmem:[%s12290_s29 + $0x4a0] sm:$0xf] %vm8337_vm4, %v10221_v19  ;;  %v10222_v26 = vpack.c.bf16 %v6104_v61, %v6104_v61  ;;  %v11288_v29 = vpop.f32.mrb[89].mxu1 }
 0x196   : > { %v2941_v27 = vpop.f32.mrb[90].mxu0  ;;  %v5088_v28 = vmul.f32 %v12639_v63, %v3954_v25  ;;  %v3957_v35 = vpop.f32.mrb[90].mxu1 }
 0x197   : > { %8381 = vst.msk [vmem:[%s12290_s29 + $0xac] sm:$0xf] %vm8337_vm4, %v9968_v21  ;;  %v5345_v31 = vadd.f32 %v12652_v32, %v4834_v22  ;;  %v4835_v33 = vmul.f32 %v12639_v63, %v2941_v27  ;;  %v10781_v34 = vpop.f32.mrb[91].mxu0  ;;  %8635 = vst.msk [vmem:[%s12290_s29 + $0x4a4] sm:$0xf] %vm8337_vm4, %v10222_v26  ;;  %v5089_v37 = vmul.f32 %v12639_v63, %v3957_v35  ;;  %v11289_v38 = vpop.f32.mrb[91].mxu1 }
 0x198   : > { %v5599_v36 = vadd.f32 %v12652_v32, %v5088_v28  ;;  %v11822_v21 = vld [vmem:[%s12047_s22 + $0x590] sm:$0xff]  }
 0x199   : > { %v5851_v39 = vmax.f32 %v5345_v31, 0.0  ;;  %v5346_v40 = vadd.f32 %v12652_v32, %v4835_v33  ;;  %10887 = vmatmul.mubr.msk.bf16.gmra.mrb[196].mxu0 %vm1961_vm3, %v11817_v24  ;;  %v5600_v42 = vadd.f32 %v12652_v32, %v5089_v37  ;;  %11395 = vmatmul.mubr.msk.bf16.gmra.mrb[196].mxu1 %vm1961_vm3, %v11818_v30 }
 0x19a   : > { %v6105_v41 = vmax.f32 %v5599_v36, 0.0  ;;  %10890 = vmatprep.mubr.msk.bf16.mxu0 %vm11996_vm2, %v11994_v1  ;;  %11398 = vmatprep.mubr.msk.bf16.mxu1 %vm11996_vm2, %v11994_v1 }
 0x19b   : > { %v9969_v43 = vpack.c.bf16 %v5851_v39, %v5851_v39  ;;  %v5852_v44 = vmax.f32 %v5346_v40, 0.0  ;;  %v6106_v46 = vmax.f32 %v5600_v42, 0.0  ;;  %v11823_v42 = vld [vmem:[%s12047_s22 + $0x1a0] sm:$0xff]  }
 0x19c   : > { %v10223_v45 = vpack.c.bf16 %v6105_v41, %v6105_v41  ;;  %v2946_v47 = vpop.f32.mrb[92].mxu0  ;;  %v3962_v52 = vpop.f32.mrb[92].mxu1 }
 0x19d   : > { %8382 = vst.msk [vmem:[%s12290_s29 + $0xb0] sm:$0xf] %vm8337_vm4, %v9969_v43  ;;  %v9970_v48 = vpack.c.bf16 %v5852_v44, %v5852_v44  ;;  %v4836_v49 = vmul.f32 %v12639_v63, %v2946_v47  ;;  %v10784_v50 = vpop.f32.mrb[93].mxu0  ;;  %v10224_v53 = vpack.c.bf16 %v6106_v46, %v6106_v46  ;;  %v5090_v55 = vmul.f32 %v12639_v63, %v3962_v52  ;;  %v11292_v56 = vpop.f32.mrb[93].mxu1 }
 0x19e   : > { %8636 = vst.msk [vmem:[%s12290_s29 + $0x4a8] sm:$0xf] %vm8337_vm4, %v10223_v45  ;;  %v2949_v54 = vpop.f32.mrb[94].mxu0  ;;  %v3965_v62 = vpop.f32.mrb[94].mxu1 }
 0x19f   : > { %8383 = vst.msk [vmem:[%s12290_s29 + $0xb4] sm:$0xf] %vm8337_vm4, %v9970_v48  ;;  %v5347_v58 = vadd.f32 %v12652_v32, %v4836_v49  ;;  %v4837_v59 = vmul.f32 %v12639_v63, %v2949_v54  ;;  %v10785_v60 = vpop.f32.mrb[95].mxu0  ;;  %8637 = vst.msk [vmem:[%s12290_s29 + $0x4ac] sm:$0xf] %vm8337_vm4, %v10224_v53  ;;  %v5601_v0 = vadd.f32 %v12652_v32, %v5090_v55  ;;  %v11293_v3 = vpop.f32.mrb[95].mxu1 }
 0x1a0   : > { %v5091_v2 = vmul.f32 %v12639_v63, %v3965_v62  ;;  %v11824_v48 = vld [vmem:[%s12047_s22 + $0x598] sm:$0xff]  }
 0x1a1   : > { %v5853_v4 = vmax.f32 %v5347_v58, 0.0  ;;  %v5348_v5 = vadd.f32 %v12652_v32, %v4837_v59  ;;  %10891 = vmatmul.mubr.msk.bf16.gmra.mrb[200].mxu0 %vm1961_vm3, %v11819_v51  ;;  %v6107_v6 = vmax.f32 %v5601_v0, 0.0  ;;  %11399 = vmatmul.mubr.msk.bf16.gmra.mrb[200].mxu1 %vm1961_vm3, %v11820_v57 }
 0x1a2   : > { %v5602_v7 = vadd.f32 %v12652_v32, %v5091_v2  ;;  %10894 = vmatprep.mubr.msk.bf16.mxu0 %vm11996_vm2, %v11994_v1  ;;  %11402 = vmatprep.mubr.msk.bf16.mxu1 %vm11996_vm2, %v11994_v1 }
 0x1a3   : > { %v9971_v8 = vpack.c.bf16 %v5853_v4, %v5853_v4  ;;  %v5854_v9 = vmax.f32 %v5348_v5, 0.0  ;;  %v10225_v10 = vpack.c.bf16 %v6107_v6, %v6107_v6 }
 0x1a4   : > { %v6108_v11 = vmax.f32 %v5602_v7, 0.0  ;;  %v2954_v12 = vpop.f32.mrb[96].mxu0  ;;  %v3970_v17 = vpop.f32.mrb[96].mxu1  ;;  %v11825_v7 = vld [vmem:[%s12047_s22 + $0x1a8] sm:$0xff]  }
 0x1a5   : > { %8384 = vst.msk [vmem:[%s12290_s29 + $0xb8] sm:$0xf] %vm8337_vm4, %v9971_v8  ;;  %v9972_v13 = vpack.c.bf16 %v5854_v9, %v5854_v9  ;;  %v4838_v14 = vmul.f32 %v12639_v63, %v2954_v12  ;;  %v10788_v15 = vpop.f32.mrb[97].mxu0  ;;  %8638 = vst.msk [vmem:[%s12290_s29 + $0x4b0] sm:$0xf] %vm8337_vm4, %v10225_v10  ;;  %v5092_v61 = vmul.f32 %v12639_v63, %v3970_v17  ;;  %v11296_v20 = vpop.f32.mrb[97].mxu1 }
 0x1a6   : > { %v10226_v18 = vpack.c.bf16 %v6108_v11, %v6108_v11  ;;  %v2957_v19 = vpop.f32.mrb[98].mxu0  ;;  %v3973_v25 = vpop.f32.mrb[98].mxu1 }
 0x1a7   : > { %8385 = vst.msk [vmem:[%s12290_s29 + $0xbc] sm:$0xf] %vm8337_vm4, %v9972_v13  ;;  %v5349_v22 = vadd.f32 %v12652_v32, %v4838_v14  ;;  %v4839_v23 = vmul.f32 %v12639_v63, %v2957_v19  ;;  %v10789_v24 = vpop.f32.mrb[99].mxu0  ;;  %v5603_v26 = vadd.f32 %v12652_v32, %v5092_v61  ;;  %v5093_v27 = vmul.f32 %v12639_v63, %v3973_v25  ;;  %v11297_v28 = vpop.f32.mrb[99].mxu1  ;;  %v11826_v13 = vld [vmem:[%s12047_s22 + $0x5a0] sm:$0xff]  }
 0x1a8   : > { %8639 = vst.msk [vmem:[%s12290_s29 + $0x4b4] sm:$0xf] %vm8337_vm4, %v10226_v18 }
 0x1a9   : > { %v5855_v29 = vmax.f32 %v5349_v22, 0.0  ;;  %v5350_v30 = vadd.f32 %v12652_v32, %v4839_v23  ;;  %10895 = vmatmul.mubr.msk.bf16.gmra.mrb[204].mxu0 %vm1961_vm3, %v11821_v16  ;;  %v6109_v31 = vmax.f32 %v5603_v26, 0.0  ;;  %v5604_v33 = vadd.f32 %v12652_v32, %v5093_v27  ;;  %11403 = vmatmul.mubr.msk.bf16.gmra.mrb[204].mxu1 %vm1961_vm3, %v11822_v21 }
 0x1aa   : > { %10898 = vmatprep.mubr.msk.bf16.mxu0 %vm11996_vm2, %v11994_v1  ;;  %11406 = vmatprep.mubr.msk.bf16.mxu1 %vm11996_vm2, %v11994_v1 }
 0x1ab   : > { %v9973_v34 = vpack.c.bf16 %v5855_v29, %v5855_v29  ;;  %v5856_v35 = vmax.f32 %v5350_v30, 0.0  ;;  %v10227_v36 = vpack.c.bf16 %v6109_v31, %v6109_v31  ;;  %v6110_v37 = vmax.f32 %v5604_v33, 0.0  ;;  %v11827_v33 = vld [vmem:[%s12047_s22 + $0x1b0] sm:$0xff]  }
 0x1ac   : > { %v2962_v38 = vpop.f32.mrb[100].mxu0  ;;  %v3978_v43 = vpop.f32.mrb[100].mxu1 }
 0x1ad   : > { %8386 = vst.msk [vmem:[%s12290_s29 + $0xc0] sm:$0xf] %vm8337_vm4, %v9973_v34  ;;  %v9974_v39 = vpack.c.bf16 %v5856_v35, %v5856_v35  ;;  %v4840_v40 = vmul.f32 %v12639_v63, %v2962_v38  ;;  %v10792_v41 = vpop.f32.mrb[101].mxu0  ;;  %8640 = vst.msk [vmem:[%s12290_s29 + $0x4b8] sm:$0xf] %vm8337_vm4, %v10227_v36  ;;  %v10228_v44 = vpack.c.bf16 %v6110_v37, %v6110_v37  ;;  %v11300_v47 = vpop.f32.mrb[101].mxu1 }
 0x1ae   : > { %v2965_v45 = vpop.f32.mrb[102].mxu0  ;;  %v5094_v46 = vmul.f32 %v12639_v63, %v3978_v43  ;;  %v3981_v52 = vpop.f32.mrb[102].mxu1 }
 0x1af   : > { %8387 = vst.msk [vmem:[%s12290_s29 + $0xc4] sm:$0xf] %vm8337_vm4, %v9974_v39  ;;  %v5351_v49 = vadd.f32 %v12652_v32, %v4840_v40  ;;  %v4841_v50 = vmul.f32 %v12639_v63, %v2965_v45  ;;  %v10793_v51 = vpop.f32.mrb[103].mxu0  ;;  %8641 = vst.msk [vmem:[%s12290_s29 + $0x4bc] sm:$0xf] %vm8337_vm4, %v10228_v44  ;;  %v5095_v54 = vmul.f32 %v12639_v63, %v3981_v52  ;;  %v11301_v55 = vpop.f32.mrb[103].mxu1 }
 0x1b0   : > { %v5605_v53 = vadd.f32 %v12652_v32, %v5094_v46  ;;  %v11828_v39 = vld [vmem:[%s12047_s22 + $0x5a8] sm:$0xff]  }
 0x1b1   : > { %v5857_v56 = vmax.f32 %v5351_v49, 0.0  ;;  %v5352_v57 = vadd.f32 %v12652_v32, %v4841_v50  ;;  %10899 = vmatmul.mubr.msk.bf16.gmra.mrb[208].mxu0 %vm1961_vm3, %v11823_v42  ;;  %v5606_v59 = vadd.f32 %v12652_v32, %v5095_v54  ;;  %11407 = vmatmul.mubr.msk.bf16.gmra.mrb[208].mxu1 %vm1961_vm3, %v11824_v48 }
 0x1b2   : > { %v6111_v58 = vmax.f32 %v5605_v53, 0.0  ;;  %10902 = vmatprep.mubr.msk.bf16.mxu0 %vm11996_vm2, %v11994_v1  ;;  %11410 = vmatprep.mubr.msk.bf16.mxu1 %vm11996_vm2, %v11994_v1 }
 0x1b3   : > { %v9975_v60 = vpack.c.bf16 %v5857_v56, %v5857_v56  ;;  %v5858_v62 = vmax.f32 %v5352_v57, 0.0  ;;  %v6112_v2 = vmax.f32 %v5606_v59, 0.0  ;;  %v11829_v59 = vld [vmem:[%s12047_s22 + $0x1b8] sm:$0xff]  }
 0x1b4   : > { %v10229_v0 = vpack.c.bf16 %v6111_v58, %v6111_v58  ;;  %v2970_v3 = vpop.f32.mrb[104].mxu0  ;;  %v3986_v8 = vpop.f32.mrb[104].mxu1 }
 0x1b5   : > { %8388 = vst.msk [vmem:[%s12290_s29 + $0xc8] sm:$0xf] %vm8337_vm4, %v9975_v60  ;;  %v9976_v4 = vpack.c.bf16 %v5858_v62, %v5858_v62  ;;  %v4842_v5 = vmul.f32 %v12639_v63, %v2970_v3  ;;  %v10796_v6 = vpop.f32.mrb[105].mxu0  ;;  %v10230_v9 = vpack.c.bf16 %v6112_v2, %v6112_v2  ;;  %v5096_v11 = vmul.f32 %v12639_v63, %v3986_v8  ;;  %v11304_v12 = vpop.f32.mrb[105].mxu1 }
 0x1b6   : > { %8642 = vst.msk [vmem:[%s12290_s29 + $0x4c0] sm:$0xf] %vm8337_vm4, %v10229_v0  ;;  %v2973_v10 = vpop.f32.mrb[106].mxu0  ;;  %v3989_v17 = vpop.f32.mrb[106].mxu1 }
 0x1b7   : > { %8389 = vst.msk [vmem:[%s12290_s29 + $0xcc] sm:$0xf] %vm8337_vm4, %v9976_v4  ;;  %v5353_v14 = vadd.f32 %v12652_v32, %v4842_v5  ;;  %v4843_v15 = vmul.f32 %v12639_v63, %v2973_v10  ;;  %v10797_v16 = vpop.f32.mrb[107].mxu0  ;;  %8643 = vst.msk [vmem:[%s12290_s29 + $0x4c4] sm:$0xf] %vm8337_vm4, %v10230_v9  ;;  %v5607_v18 = vadd.f32 %v12652_v32, %v5096_v11  ;;  %v11305_v61 = vpop.f32.mrb[107].mxu1 }
 0x1b8   : > { %v5097_v19 = vmul.f32 %v12639_v63, %v3989_v17  ;;  %v11830_v4 = vld [vmem:[%s12047_s22 + $0x5b0] sm:$0xff]  }
 0x1b9   : > { %v5859_v20 = vmax.f32 %v5353_v14, 0.0  ;;  %v5354_v21 = vadd.f32 %v12652_v32, %v4843_v15  ;;  %10903 = vmatmul.mubr.msk.bf16.gmra.mrb[212].mxu0 %vm1961_vm3, %v11825_v7  ;;  %v6113_v22 = vmax.f32 %v5607_v18, 0.0  ;;  %11411 = vmatmul.mubr.msk.bf16.gmra.mrb[212].mxu1 %vm1961_vm3, %v11826_v13 }
 0x1ba   : > { %v5608_v23 = vadd.f32 %v12652_v32, %v5097_v19  ;;  %10906 = vmatprep.mubr.msk.bf16.mxu0 %vm11996_vm2, %v11994_v1  ;;  %11414 = vmatprep.mubr.msk.bf16.mxu1 %vm11996_vm2, %v11994_v1 }
 0x1bb   : > { %v9977_v24 = vpack.c.bf16 %v5859_v20, %v5859_v20  ;;  %v5860_v25 = vmax.f32 %v5354_v21, 0.0  ;;  %v10231_v26 = vpack.c.bf16 %v6113_v22, %v6113_v22 }
 0x1bc   : > { %v6114_v27 = vmax.f32 %v5608_v23, 0.0  ;;  %v2978_v28 = vpop.f32.mrb[108].mxu0  ;;  %v3994_v34 = vpop.f32.mrb[108].mxu1  ;;  %v11831_v23 = vld [vmem:[%s12047_s22 + $0x1c0] sm:$0xff]  }
 0x1bd   : > { %8390 = vst.msk [vmem:[%s12290_s29 + $0xd0] sm:$0xf] %vm8337_vm4, %v9977_v24  ;;  %v9978_v29 = vpack.c.bf16 %v5860_v25, %v5860_v25  ;;  %v4844_v30 = vmul.f32 %v12639_v63, %v2978_v28  ;;  %v10800_v31 = vpop.f32.mrb[109].mxu0  ;;  %8644 = vst.msk [vmem:[%s12290_s29 + $0x4c8] sm:$0xf] %vm8337_vm4, %v10231_v26  ;;  %v5098_v37 = vmul.f32 %v12639_v63, %v3994_v34  ;;  %v11308_v38 = vpop.f32.mrb[109].mxu1 }
 0x1be   : > { %v10232_v35 = vpack.c.bf16 %v6114_v27, %v6114_v27  ;;  %v2981_v36 = vpop.f32.mrb[110].mxu0  ;;  %v3997_v43 = vpop.f32.mrb[110].mxu1 }
 0x1bf   : > { %8391 = vst.msk [vmem:[%s12290_s29 + $0xd4] sm:$0xf] %vm8337_vm4, %v9978_v29  ;;  %v5355_v40 = vadd.f32 %v12652_v32, %v4844_v30  ;;  %v4845_v41 = vmul.f32 %v12639_v63, %v2981_v36  ;;  %v10801_v42 = vpop.f32.mrb[111].mxu0  ;;  %v5609_v44 = vadd.f32 %v12652_v32, %v5098_v37  ;;  %v5099_v45 = vmul.f32 %v12639_v63, %v3997_v43  ;;  %v11309_v46 = vpop.f32.mrb[111].mxu1  ;;  %v11832_v29 = vld [vmem:[%s12047_s22 + $0x5b8] sm:$0xff]  }
 0x1c0   : > { %8645 = vst.msk [vmem:[%s12290_s29 + $0x4cc] sm:$0xf] %vm8337_vm4, %v10232_v35 }
 0x1c1   : > { %v5861_v47 = vmax.f32 %v5355_v40, 0.0  ;;  %v5356_v48 = vadd.f32 %v12652_v32, %v4845_v41  ;;  %10907 = vmatmul.mubr.msk.bf16.gmra.mrb[216].mxu0 %vm1961_vm3, %v11827_v33  ;;  %v6115_v49 = vmax.f32 %v5609_v44, 0.0  ;;  %v5610_v50 = vadd.f32 %v12652_v32, %v5099_v45  ;;  %11415 = vmatmul.mubr.msk.bf16.gmra.mrb[216].mxu1 %vm1961_vm3, %v11828_v39 }
 0x1c2   : > { %10910 = vmatprep.mubr.msk.bf16.mxu0 %vm11996_vm2, %v11994_v1  ;;  %11418 = vmatprep.mubr.msk.bf16.mxu1 %vm11996_vm2, %v11994_v1 }
 0x1c3   : > { %v9979_v51 = vpack.c.bf16 %v5861_v47, %v5861_v47  ;;  %v5862_v52 = vmax.f32 %v5356_v48, 0.0  ;;  %v10233_v53 = vpack.c.bf16 %v6115_v49, %v6115_v49  ;;  %v6116_v54 = vmax.f32 %v5610_v50, 0.0  ;;  %v11833_v50 = vld [vmem:[%s12047_s22 + $0x1c8] sm:$0xff]  }
 0x1c4   : > { %v2986_v55 = vpop.f32.mrb[112].mxu0  ;;  %v4002_v60 = vpop.f32.mrb[112].mxu1 }
 0x1c5   : > { %8392 = vst.msk [vmem:[%s12290_s29 + $0xd8] sm:$0xf] %vm8337_vm4, %v9979_v51  ;;  %v9980_v56 = vpack.c.bf16 %v5862_v52, %v5862_v52  ;;  %v4846_v57 = vmul.f32 %v12639_v63, %v2986_v55  ;;  %v10804_v58 = vpop.f32.mrb[113].mxu0  ;;  %8646 = vst.msk [vmem:[%s12290_s29 + $0x4d0] sm:$0xf] %vm8337_vm4, %v10233_v53  ;;  %v10234_v62 = vpack.c.bf16 %v6116_v54, %v6116_v54  ;;  %v11312_v3 = vpop.f32.mrb[113].mxu1 }
 0x1c6   : > { %v2989_v0 = vpop.f32.mrb[114].mxu0  ;;  %v5100_v2 = vmul.f32 %v12639_v63, %v4002_v60  ;;  %v4005_v8 = vpop.f32.mrb[114].mxu1  ;;  %v13013_v54 = vld [vmem:[%s15173_s2] ss:$0 sm:$0xff] }
 0x1c7   : > { %8393 = vst.msk [vmem:[%s12290_s29 + $0xdc] sm:$0xf] %vm8337_vm4, %v9980_v56  ;;  %v5357_v5 = vadd.f32 %v12652_v32, %v4846_v57  ;;  %v4847_v6 = vmul.f32 %v12639_v63, %v2989_v0  ;;  %v10805_v7 = vpop.f32.mrb[115].mxu0  ;;  %8647 = vst.msk [vmem:[%s12290_s29 + $0x4d4] sm:$0xf] %vm8337_vm4, %v10234_v62  ;;  %v5101_v10 = vmul.f32 %v12639_v63, %v4005_v8  ;;  %v11313_v11 = vpop.f32.mrb[115].mxu1 }
 0x1c8   : > { %v5611_v9 = vadd.f32 %v12652_v32, %v5100_v2  ;;  %v11834_v57 = vld [vmem:[%s12047_s22 + $0x5c0] sm:$0xff]  }
 0x1c9   : > { %v5863_v12 = vmax.f32 %v5357_v5, 0.0  ;;  %v5358_v13 = vadd.f32 %v12652_v32, %v4847_v6  ;;  %10911 = vmatmul.mubr.msk.bf16.gmra.mrb[220].mxu0 %vm1961_vm3, %v11829_v59  ;;  %v5612_v15 = vadd.f32 %v12652_v32, %v5101_v10  ;;  %11419 = vmatmul.mubr.msk.bf16.gmra.mrb[220].mxu1 %vm1961_vm3, %v11830_v4  ;;  %v13026_v62 = vld [vmem:[%s15173_s2 + $0x1] ss:$0 sm:$0xff] }
 0x1ca   : > { %v6117_v14 = vmax.f32 %v5611_v9, 0.0  ;;  %10914 = vmatprep.mubr.msk.bf16.mxu0 %vm11996_vm2, %v11994_v1  ;;  %11422 = vmatprep.mubr.msk.bf16.mxu1 %vm11996_vm2, %v11994_v1 }
 0x1cb   : > { %v9981_v16 = vpack.c.bf16 %v5863_v12, %v5863_v12  ;;  %v5864_v17 = vmax.f32 %v5358_v13, 0.0  ;;  %v6118_v19 = vmax.f32 %v5612_v15, 0.0  ;;  %v11835_v15 = vld [vmem:[%s12047_s22 + $0x1d0] sm:$0xff]  }
 0x1cc   : > { %v10235_v18 = vpack.c.bf16 %v6117_v14, %v6117_v14  ;;  %v2994_v61 = vpop.f32.mrb[116].mxu0  ;;  %v4010_v24 = vpop.f32.mrb[116].mxu1 }
 0x1cd   : > { %8394 = vst.msk [vmem:[%s12290_s29 + $0xe0] sm:$0xf] %vm8337_vm4, %v9981_v16  ;;  %v9982_v20 = vpack.c.bf16 %v5864_v17, %v5864_v17  ;;  %v4848_v21 = vmul.f32 %v12639_v63, %v2994_v61  ;;  %v10808_v22 = vpop.f32.mrb[117].mxu0  ;;  %v10236_v25 = vpack.c.bf16 %v6118_v19, %v6118_v19  ;;  %v5102_v27 = vmul.f32 %v12639_v63, %v4010_v24  ;;  %v11316_v28 = vpop.f32.mrb[117].mxu1 }
 0x1ce   : > { %8648 = vst.msk [vmem:[%s12290_s29 + $0x4d8] sm:$0xf] %vm8337_vm4, %v10235_v18  ;;  %v2997_v26 = vpop.f32.mrb[118].mxu0  ;;  %v4013_v34 = vpop.f32.mrb[118].mxu1 }
 0x1cf   : > { %8395 = vst.msk [vmem:[%s12290_s29 + $0xe4] sm:$0xf] %vm8337_vm4, %v9982_v20  ;;  %v5359_v30 = vadd.f32 %v12652_v32, %v4848_v21  ;;  %v4849_v31 = vmul.f32 %v12639_v63, %v2997_v26  ;;  %v10809_v33 = vpop.f32.mrb[119].mxu0  ;;  %8649 = vst.msk [vmem:[%s12290_s29 + $0x4dc] sm:$0xf] %vm8337_vm4, %v10236_v25  ;;  %v5613_v35 = vadd.f32 %v12652_v32, %v5102_v27  ;;  %v11317_v37 = vpop.f32.mrb[119].mxu1 }
 0x1d0   : > { %v5103_v36 = vmul.f32 %v12639_v63, %v4013_v34  ;;  %v11836_v20 = vld [vmem:[%s12047_s22 + $0x5c8] sm:$0xff]  }
 0x1d1   : > { %v5865_v38 = vmax.f32 %v5359_v30, 0.0  ;;  %v5360_v39 = vadd.f32 %v12652_v32, %v4849_v31  ;;  %10915 = vmatmul.mubr.msk.bf16.gmra.mrb[224].mxu0 %vm1961_vm3, %v11831_v23  ;;  %v6119_v40 = vmax.f32 %v5613_v35, 0.0  ;;  %11423 = vmatmul.mubr.msk.bf16.gmra.mrb[224].mxu1 %vm1961_vm3, %v11832_v29 }
 0x1d2   : > { %v5614_v41 = vadd.f32 %v12652_v32, %v5103_v36  ;;  %10918 = vmatprep.mubr.msk.bf16.mxu0 %vm11996_vm2, %v11994_v1  ;;  %11426 = vmatprep.mubr.msk.bf16.mxu1 %vm11996_vm2, %v11994_v1 }
 0x1d3   : > { %v9983_v42 = vpack.c.bf16 %v5865_v38, %v5865_v38  ;;  %v5866_v43 = vmax.f32 %v5360_v39, 0.0  ;;  %v10237_v44 = vpack.c.bf16 %v6119_v40, %v6119_v40 }
 0x1d4   : > { %v6120_v45 = vmax.f32 %v5614_v41, 0.0  ;;  %v3002_v46 = vpop.f32.mrb[120].mxu0  ;;  %v4018_v51 = vpop.f32.mrb[120].mxu1  ;;  %v11837_v41 = vld [vmem:[%s12047_s22 + $0x1d8] sm:$0xff]  }
 0x1d5   : > { %8396 = vst.msk [vmem:[%s12290_s29 + $0xe8] sm:$0xf] %vm8337_vm4, %v9983_v42  ;;  %v9984_v47 = vpack.c.bf16 %v5866_v43, %v5866_v43  ;;  %v4850_v48 = vmul.f32 %v12639_v63, %v3002_v46  ;;  %v10812_v49 = vpop.f32.mrb[121].mxu0  ;;  %8650 = vst.msk [vmem:[%s12290_s29 + $0x4e0] sm:$0xf] %vm8337_vm4, %v10237_v44  ;;  %v5104_v55 = vmul.f32 %v13013_v54, %v4018_v51  ;;  %v11320_v56 = vpop.f32.mrb[121].mxu1 }
 0x1d6   : > { %v10238_v52 = vpack.c.bf16 %v6120_v45, %v6120_v45  ;;  %v3005_v53 = vpop.f32.mrb[122].mxu0  ;;  %v4021_v60 = vpop.f32.mrb[122].mxu1 }
 0x1d7   : > { %8397 = vst.msk [vmem:[%s12290_s29 + $0xec] sm:$0xf] %vm8337_vm4, %v9984_v47  ;;  %v5361_v63 = vadd.f32 %v12652_v32, %v4850_v48  ;;  %v4851_v58 = vmul.f32 %v13013_v54, %v3005_v53  ;;  %v10813_v59 = vpop.f32.mrb[123].mxu0  ;;  %v5615_v0 = vadd.f32 %v13026_v62, %v5104_v55  ;;  %v5105_v2 = vmul.f32 %v13013_v54, %v4021_v60  ;;  %v11321_v3 = vpop.f32.mrb[123].mxu1  ;;  %v11838_v47 = vld [vmem:[%s12047_s22 + $0x5d0] sm:$0xff]  }
 0x1d8   : > { %8651 = vst.msk [vmem:[%s12290_s29 + $0x4e4] sm:$0xf] %vm8337_vm4, %v10238_v52 }
 0x1d9   : > { %v5867_v4 = vmax.f32 %v5361_v63, 0.0  ;;  %v5362_v32 = vadd.f32 %v13026_v62, %v4851_v58  ;;  %10919 = vmatmul.mubr.msk.bf16.gmra.mrb[228].mxu0 %vm1961_vm3, %v11833_v50  ;;  %v6121_v5 = vmax.f32 %v5615_v0, 0.0  ;;  %v5616_v6 = vadd.f32 %v13026_v62, %v5105_v2  ;;  %11427 = vmatmul.mubr.msk.bf16.gmra.mrb[228].mxu1 %vm1961_vm3, %v11834_v57 }
 0x1da   : > { %10922 = vmatprep.mubr.msk.bf16.mxu0 %vm11996_vm2, %v11994_v1  ;;  %11430 = vmatprep.mubr.msk.bf16.mxu1 %vm11996_vm2, %v11994_v1 }
 0x1db   : > { %v9985_v7 = vpack.c.bf16 %v5867_v4, %v5867_v4  ;;  %v5868_v8 = vmax.f32 %v5362_v32, 0.0  ;;  %v10239_v9 = vpack.c.bf16 %v6121_v5, %v6121_v5  ;;  %v6122_v10 = vmax.f32 %v5616_v6, 0.0  ;;  %v11839_v6 = vld [vmem:[%s12047_s22 + $0x1e0] sm:$0xff]  }
 0x1dc   : > { %v3010_v11 = vpop.f32.mrb[124].mxu0  ;;  %v4026_v16 = vpop.f32.mrb[124].mxu1 }
 0x1dd   : > { %8398 = vst.msk [vmem:[%s12290_s29 + $0xf0] sm:$0xf] %vm8337_vm4, %v9985_v7  ;;  %v9986_v12 = vpack.c.bf16 %v5868_v8, %v5868_v8  ;;  %v4852_v13 = vmul.f32 %v13013_v54, %v3010_v11  ;;  %v10816_v14 = vpop.f32.mrb[125].mxu0  ;;  %8652 = vst.msk [vmem:[%s12290_s29 + $0x4e8] sm:$0xf] %vm8337_vm4, %v10239_v9  ;;  %v10240_v17 = vpack.c.bf16 %v6122_v10, %v6122_v10  ;;  %v11324_v61 = vpop.f32.mrb[125].mxu1 }
 0x1de   : > { %v3013_v18 = vpop.f32.mrb[126].mxu0  ;;  %v5106_v19 = vmul.f32 %v13013_v54, %v4026_v16  ;;  %v4029_v24 = vpop.f32.mrb[126].mxu1 }
 0x1df   : > { %8399 = vst.msk [vmem:[%s12290_s29 + $0xf4] sm:$0xf] %vm8337_vm4, %v9986_v12  ;;  %v5363_v21 = vadd.f32 %v13026_v62, %v4852_v13  ;;  %v4853_v22 = vmul.f32 %v13013_v54, %v3013_v18  ;;  %v10817_v23 = vpop.f32.mrb[127].mxu0  ;;  %8653 = vst.msk [vmem:[%s12290_s29 + $0x4ec] sm:$0xf] %vm8337_vm4, %v10240_v17  ;;  %v5107_v26 = vmul.f32 %v13013_v54, %v4029_v24  ;;  %v11325_v27 = vpop.f32.mrb[127].mxu1 }
 0x1e0   : > { %v5617_v25 = vadd.f32 %v13026_v62, %v5106_v19  ;;  %v11840_v12 = vld [vmem:[%s12047_s22 + $0x5d8] sm:$0xff]  }
 0x1e1   : > { %v5869_v28 = vmax.f32 %v5363_v21, 0.0  ;;  %v5364_v29 = vadd.f32 %v13026_v62, %v4853_v22  ;;  %10923 = vmatmul.mubr.msk.bf16.gmra.mrb[232].mxu0 %vm1961_vm3, %v11835_v15  ;;  %v5618_v31 = vadd.f32 %v13026_v62, %v5107_v26  ;;  %11431 = vmatmul.mubr.msk.bf16.gmra.mrb[232].mxu1 %vm1961_vm3, %v11836_v20 }
 0x1e2   : > { %v6123_v30 = vmax.f32 %v5617_v25, 0.0  ;;  %10926 = vmatprep.mubr.msk.bf16.mxu0 %vm11996_vm2, %v11994_v1  ;;  %11434 = vmatprep.mubr.msk.bf16.mxu1 %vm11996_vm2, %v11994_v1 }
 0x1e3   : > { %v9987_v33 = vpack.c.bf16 %v5869_v28, %v5869_v28  ;;  %v5870_v34 = vmax.f32 %v5364_v29, 0.0  ;;  %v6124_v36 = vmax.f32 %v5618_v31, 0.0  ;;  %v11841_v31 = vld [vmem:[%s12047_s22 + $0x1e8] sm:$0xff]  }
 0x1e4   : > { %v10241_v35 = vpack.c.bf16 %v6123_v30, %v6123_v30  ;;  %v3018_v37 = vpop.f32.mrb[128].mxu0  ;;  %v4034_v42 = vpop.f32.mrb[128].mxu1 }
 0x1e5   : > { %8400 = vst.msk [vmem:[%s12290_s29 + $0xf8] sm:$0xf] %vm8337_vm4, %v9987_v33  ;;  %v9988_v38 = vpack.c.bf16 %v5870_v34, %v5870_v34  ;;  %v4854_v39 = vmul.f32 %v13013_v54, %v3018_v37  ;;  %v10820_v40 = vpop.f32.mrb[129].mxu0  ;;  %v10242_v43 = vpack.c.bf16 %v6124_v36, %v6124_v36  ;;  %v5108_v45 = vmul.f32 %v13013_v54, %v4034_v42  ;;  %v11328_v46 = vpop.f32.mrb[129].mxu1 }
 0x1e6   : > { %8654 = vst.msk [vmem:[%s12290_s29 + $0x4f0] sm:$0xf] %vm8337_vm4, %v10241_v35  ;;  %v3021_v44 = vpop.f32.mrb[130].mxu0  ;;  %v4037_v51 = vpop.f32.mrb[130].mxu1 }
 0x1e7   : > { %8401 = vst.msk [vmem:[%s12290_s29 + $0xfc] sm:$0xf] %vm8337_vm4, %v9988_v38  ;;  %v5365_v48 = vadd.f32 %v13026_v62, %v4854_v39  ;;  %v4855_v49 = vmul.f32 %v13013_v54, %v3021_v44  ;;  %v10821_v50 = vpop.f32.mrb[131].mxu0  ;;  %8655 = vst.msk [vmem:[%s12290_s29 + $0x4f4] sm:$0xf] %vm8337_vm4, %v10242_v43  ;;  %v5619_v52 = vadd.f32 %v13026_v62, %v5108_v45  ;;  %v11329_v55 = vpop.f32.mrb[131].mxu1 }
 0x1e8   : > { %v5109_v53 = vmul.f32 %v13013_v54, %v4037_v51  ;;  %v11842_v38 = vld [vmem:[%s12047_s22 + $0x5e0] sm:$0xff]  }
 0x1e9   : > { %v5871_v56 = vmax.f32 %v5365_v48, 0.0  ;;  %v5366_v57 = vadd.f32 %v13026_v62, %v4855_v49  ;;  %10927 = vmatmul.mubr.msk.bf16.gmra.mrb[236].mxu0 %vm1961_vm3, %v11837_v41  ;;  %v6125_v63 = vmax.f32 %v5619_v52, 0.0  ;;  %11435 = vmatmul.mubr.msk.bf16.gmra.mrb[236].mxu1 %vm1961_vm3, %v11838_v47 }
 0x1ea   : > { %v5620_v58 = vadd.f32 %v13026_v62, %v5109_v53  ;;  %10930 = vmatprep.mubr.msk.bf16.mxu0 %vm11996_vm2, %v11994_v1  ;;  %11438 = vmatprep.mubr.msk.bf16.mxu1 %vm11996_vm2, %v11994_v1 }
 0x1eb   : > { %v9989_v59 = vpack.c.bf16 %v5871_v56, %v5871_v56  ;;  %v5872_v60 = vmax.f32 %v5366_v57, 0.0  ;;  %v10243_v0 = vpack.c.bf16 %v6125_v63, %v6125_v63 }
 0x1ec   : > { %v6126_v2 = vmax.f32 %v5620_v58, 0.0  ;;  %v3026_v3 = vpop.f32.mrb[132].mxu0  ;;  %v4042_v7 = vpop.f32.mrb[132].mxu1  ;;  %v11843_v58 = vld [vmem:[%s12047_s22 + $0x1f0] sm:$0xff]  }
 0x1ed   : > { %8402 = vst.msk [vmem:[%s12290_s29 + $0x100] sm:$0xf] %vm8337_vm4, %v9989_v59  ;;  %v9990_v4 = vpack.c.bf16 %v5872_v60, %v5872_v60  ;;  %v4856_v32 = vmul.f32 %v13013_v54, %v3026_v3  ;;  %v10824_v5 = vpop.f32.mrb[133].mxu0  ;;  %8656 = vst.msk [vmem:[%s12290_s29 + $0x4f8] sm:$0xf] %vm8337_vm4, %v10243_v0  ;;  %v5110_v10 = vmul.f32 %v13013_v54, %v4042_v7  ;;  %v11332_v11 = vpop.f32.mrb[133].mxu1 }
 0x1ee   : > { %v10244_v8 = vpack.c.bf16 %v6126_v2, %v6126_v2  ;;  %v3029_v9 = vpop.f32.mrb[134].mxu0  ;;  %v4045_v16 = vpop.f32.mrb[134].mxu1 }
 0x1ef   : > { %8403 = vst.msk [vmem:[%s12290_s29 + $0x104] sm:$0xf] %vm8337_vm4, %v9990_v4  ;;  %v5367_v13 = vadd.f32 %v13026_v62, %v4856_v32  ;;  %v4857_v14 = vmul.f32 %v13013_v54, %v3029_v9  ;;  %v10825_v15 = vpop.f32.mrb[135].mxu0  ;;  %v5621_v17 = vadd.f32 %v13026_v62, %v5110_v10  ;;  %v5111_v18 = vmul.f32 %v13013_v54, %v4045_v16  ;;  %v11333_v19 = vpop.f32.mrb[135].mxu1  ;;  %v11844_v4 = vld [vmem:[%s12047_s22 + $0x5e8] sm:$0xff]  }
 0x1f0   : > { %8657 = vst.msk [vmem:[%s12290_s29 + $0x4fc] sm:$0xf] %vm8337_vm4, %v10244_v8 }
 0x1f1   : > { %v5873_v61 = vmax.f32 %v5367_v13, 0.0  ;;  %v5368_v20 = vadd.f32 %v13026_v62, %v4857_v14  ;;  %10931 = vmatmul.mubr.msk.bf16.gmra.mrb[240].mxu0 %vm1961_vm3, %v11839_v6  ;;  %v6127_v21 = vmax.f32 %v5621_v17, 0.0  ;;  %v5622_v22 = vadd.f32 %v13026_v62, %v5111_v18  ;;  %11439 = vmatmul.mubr.msk.bf16.gmra.mrb[240].mxu1 %vm1961_vm3, %v11840_v12 }
 0x1f2   : > { %10934 = vmatprep.mubr.msk.bf16.mxu0 %vm11996_vm2, %v11994_v1  ;;  %11442 = vmatprep.mubr.msk.bf16.mxu1 %vm11996_vm2, %v11994_v1 }
 0x1f3   : > { %v9991_v23 = vpack.c.bf16 %v5873_v61, %v5873_v61  ;;  %v5874_v24 = vmax.f32 %v5368_v20, 0.0  ;;  %v10245_v25 = vpack.c.bf16 %v6127_v21, %v6127_v21  ;;  %v6128_v26 = vmax.f32 %v5622_v22, 0.0  ;;  %v11845_v22 = vld [vmem:[%s12047_s22 + $0x1f8] sm:$0xff]  }
 0x1f4   : > { %v3034_v27 = vpop.f32.mrb[136].mxu0  ;;  %v4050_v33 = vpop.f32.mrb[136].mxu1 }
 0x1f5   : > { %8404 = vst.msk [vmem:[%s12290_s29 + $0x108] sm:$0xf] %vm8337_vm4, %v9991_v23  ;;  %v9992_v28 = vpack.c.bf16 %v5874_v24, %v5874_v24  ;;  %v4858_v29 = vmul.f32 %v13013_v54, %v3034_v27  ;;  %v10828_v30 = vpop.f32.mrb[137].mxu0  ;;  %8658 = vst.msk [vmem:[%s12290_s29 + $0x500] sm:$0xf] %vm8337_vm4, %v10245_v25  ;;  %v10246_v34 = vpack.c.bf16 %v6128_v26, %v6128_v26  ;;  %v11336_v37 = vpop.f32.mrb[137].mxu1 }
 0x1f6   : > { %v3037_v35 = vpop.f32.mrb[138].mxu0  ;;  %v5112_v36 = vmul.f32 %v13013_v54, %v4050_v33  ;;  %v4053_v42 = vpop.f32.mrb[138].mxu1 }
 0x1f7   : > { %8405 = vst.msk [vmem:[%s12290_s29 + $0x10c] sm:$0xf] %vm8337_vm4, %v9992_v28  ;;  %v5369_v39 = vadd.f32 %v13026_v62, %v4858_v29  ;;  %v4859_v40 = vmul.f32 %v13013_v54, %v3037_v35  ;;  %v10829_v41 = vpop.f32.mrb[139].mxu0  ;;  %8659 = vst.msk [vmem:[%s12290_s29 + $0x504] sm:$0xf] %vm8337_vm4, %v10246_v34  ;;  %v5113_v44 = vmul.f32 %v13013_v54, %v4053_v42  ;;  %v11337_v45 = vpop.f32.mrb[139].mxu1 }
 0x1f8   : > { %v5623_v43 = vadd.f32 %v13026_v62, %v5112_v36  ;;  %v11846_v28 = vld [vmem:[%s12047_s22 + $0x5f0] sm:$0xff]  }
 0x1f9   : > { %v5875_v46 = vmax.f32 %v5369_v39, 0.0  ;;  %v5370_v47 = vadd.f32 %v13026_v62, %v4859_v40  ;;  %10935 = vmatmul.mubr.msk.bf16.gmra.mrb[244].mxu0 %vm1961_vm3, %v11841_v31  ;;  %v5624_v49 = vadd.f32 %v13026_v62, %v5113_v44  ;;  %11443 = vmatmul.mubr.msk.bf16.gmra.mrb[244].mxu1 %vm1961_vm3, %v11842_v38 }
 0x1fa   : > { %v6129_v48 = vmax.f32 %v5623_v43, 0.0  ;;  %10938 = vmatprep.mubr.msk.bf16.mxu0 %vm11996_vm2, %v11994_v1  ;;  %11446 = vmatprep.mubr.msk.bf16.mxu1 %vm11996_vm2, %v11994_v1 }
 0x1fb   : > { %v9993_v50 = vpack.c.bf16 %v5875_v46, %v5875_v46  ;;  %v5876_v51 = vmax.f32 %v5370_v47, 0.0  ;;  %v6130_v53 = vmax.f32 %v5624_v49, 0.0  ;;  %v11847_v49 = vld [vmem:[%s12047_s22 + $0x200] sm:$0xff]  }
 0x1fc   : > { %v10247_v52 = vpack.c.bf16 %v6129_v48, %v6129_v48  ;;  %v3042_v55 = vpop.f32.mrb[140].mxu0  ;;  %v4058_v59 = vpop.f32.mrb[140].mxu1 }
 0x1fd   : > { %8406 = vst.msk [vmem:[%s12290_s29 + $0x110] sm:$0xf] %vm8337_vm4, %v9993_v50  ;;  %v9994_v56 = vpack.c.bf16 %v5876_v51, %v5876_v51  ;;  %v4860_v57 = vmul.f32 %v13013_v54, %v3042_v55  ;;  %v10832_v63 = vpop.f32.mrb[141].mxu0  ;;  %v10248_v60 = vpack.c.bf16 %v6130_v53, %v6130_v53  ;;  %v5114_v2 = vmul.f32 %v13013_v54, %v4058_v59  ;;  %v11340_v3 = vpop.f32.mrb[141].mxu1 }
 0x1fe   : > { %8660 = vst.msk [vmem:[%s12290_s29 + $0x508] sm:$0xf] %vm8337_vm4, %v10247_v52  ;;  %v3045_v0 = vpop.f32.mrb[142].mxu0  ;;  %v4061_v7 = vpop.f32.mrb[142].mxu1 }
 0x1ff   : > { %8407 = vst.msk [vmem:[%s12290_s29 + $0x114] sm:$0xf] %vm8337_vm4, %v9994_v56  ;;  %v5371_v32 = vadd.f32 %v13026_v62, %v4860_v57  ;;  %v4861_v5 = vmul.f32 %v13013_v54, %v3045_v0  ;;  %v10833_v6 = vpop.f32.mrb[143].mxu0  ;;  %8661 = vst.msk [vmem:[%s12290_s29 + $0x50c] sm:$0xf] %vm8337_vm4, %v10248_v60  ;;  %v5625_v8 = vadd.f32 %v13026_v62, %v5114_v2  ;;  %v11341_v10 = vpop.f32.mrb[143].mxu1 }
 0x200   : > { %v5115_v9 = vmul.f32 %v13013_v54, %v4061_v7  ;;  %v11848_v56 = vld [vmem:[%s12047_s22 + $0x5f8] sm:$0xff]  }
 0x201   : > { %v5877_v11 = vmax.f32 %v5371_v32, 0.0  ;;  %v5372_v12 = vadd.f32 %v13026_v62, %v4861_v5  ;;  %10939 = vmatmul.mubr.msk.bf16.gmra.mrb[248].mxu0 %vm1961_vm3, %v11843_v58  ;;  %v6131_v13 = vmax.f32 %v5625_v8, 0.0  ;;  %11447 = vmatmul.mubr.msk.bf16.gmra.mrb[248].mxu1 %vm1961_vm3, %v11844_v4 }
 0x202   : > { %v5626_v14 = vadd.f32 %v13026_v62, %v5115_v9  ;;  %10942 = vmatprep.mubr.msk.bf16.mxu0 %vm11996_vm2, %v11994_v1  ;;  %11450 = vmatprep.mubr.msk.bf16.mxu1 %vm11996_vm2, %v11994_v1 }
 0x203   : > { %v9995_v15 = vpack.c.bf16 %v5877_v11, %v5877_v11  ;;  %v5878_v16 = vmax.f32 %v5372_v12, 0.0  ;;  %v10249_v17 = vpack.c.bf16 %v6131_v13, %v6131_v13 }
 0x204   : > { %v6132_v18 = vmax.f32 %v5626_v14, 0.0  ;;  %v3050_v19 = vpop.f32.mrb[144].mxu0  ;;  %v4066_v23 = vpop.f32.mrb[144].mxu1  ;;  %v11849_v14 = vld [vmem:[%s12047_s22 + $0x208] sm:$0xff]  }
 0x205   : > { %8408 = vst.msk [vmem:[%s12290_s29 + $0x118] sm:$0xf] %vm8337_vm4, %v9995_v15  ;;  %v9996_v61 = vpack.c.bf16 %v5878_v16, %v5878_v16  ;;  %v4862_v20 = vmul.f32 %v13013_v54, %v3050_v19  ;;  %v10836_v21 = vpop.f32.mrb[145].mxu0  ;;  %8662 = vst.msk [vmem:[%s12290_s29 + $0x510] sm:$0xf] %vm8337_vm4, %v10249_v17  ;;  %v5116_v26 = vmul.f32 %v13013_v54, %v4066_v23  ;;  %v11344_v27 = vpop.f32.mrb[145].mxu1 }
 0x206   : > { %v10250_v24 = vpack.c.bf16 %v6132_v18, %v6132_v18  ;;  %v3053_v25 = vpop.f32.mrb[146].mxu0  ;;  %v4069_v33 = vpop.f32.mrb[146].mxu1 }
 0x207   : > { %8409 = vst.msk [vmem:[%s12290_s29 + $0x11c] sm:$0xf] %vm8337_vm4, %v9996_v61  ;;  %v5373_v29 = vadd.f32 %v13026_v62, %v4862_v20  ;;  %v4863_v30 = vmul.f32 %v13013_v54, %v3053_v25  ;;  %v10837_v31 = vpop.f32.mrb[147].mxu0  ;;  %v5627_v34 = vadd.f32 %v13026_v62, %v5116_v26  ;;  %v5117_v35 = vmul.f32 %v13013_v54, %v4069_v33  ;;  %v11345_v36 = vpop.f32.mrb[147].mxu1  ;;  %v11850_v61 = vld [vmem:[%s12047_s22 + $0x600] sm:$0xff]  }
 0x208   : > { %8663 = vst.msk [vmem:[%s12290_s29 + $0x514] sm:$0xf] %vm8337_vm4, %v10250_v24 }
 0x209   : > { %v5879_v37 = vmax.f32 %v5373_v29, 0.0  ;;  %v5374_v38 = vadd.f32 %v13026_v62, %v4863_v30  ;;  %10943 = vmatmul.mubr.msk.bf16.gmra.mrb[252].mxu0 %vm1961_vm3, %v11845_v22  ;;  %v6133_v39 = vmax.f32 %v5627_v34, 0.0  ;;  %v5628_v40 = vadd.f32 %v13026_v62, %v5117_v35  ;;  %11451 = vmatmul.mubr.msk.bf16.gmra.mrb[252].mxu1 %vm1961_vm3, %v11846_v28 }
 0x20a   : > { %10946 = vmatprep.mubr.msk.bf16.mxu0 %vm11996_vm2, %v11994_v1  ;;  %11454 = vmatprep.mubr.msk.bf16.mxu1 %vm11996_vm2, %v11994_v1 }
 0x20b   : > { %v9997_v41 = vpack.c.bf16 %v5879_v37, %v5879_v37  ;;  %v5880_v42 = vmax.f32 %v5374_v38, 0.0  ;;  %v10251_v43 = vpack.c.bf16 %v6133_v39, %v6133_v39  ;;  %v6134_v44 = vmax.f32 %v5628_v40, 0.0  ;;  %v11851_v40 = vld [vmem:[%s12047_s22 + $0x210] sm:$0xff]  }
 0x20c   : > { %v3058_v45 = vpop.f32.mrb[148].mxu0  ;;  %v4074_v50 = vpop.f32.mrb[148].mxu1 }
 0x20d   : > { %8410 = vst.msk [vmem:[%s12290_s29 + $0x120] sm:$0xf] %vm8337_vm4, %v9997_v41  ;;  %v9998_v46 = vpack.c.bf16 %v5880_v42, %v5880_v42  ;;  %v4864_v47 = vmul.f32 %v13013_v54, %v3058_v45  ;;  %v10840_v48 = vpop.f32.mrb[149].mxu0  ;;  %8664 = vst.msk [vmem:[%s12290_s29 + $0x518] sm:$0xf] %vm8337_vm4, %v10251_v43  ;;  %v10252_v51 = vpack.c.bf16 %v6134_v44, %v6134_v44  ;;  %v11348_v55 = vpop.f32.mrb[149].mxu1 }
 0x20e   : > { %v3061_v52 = vpop.f32.mrb[150].mxu0  ;;  %v5118_v53 = vmul.f32 %v13013_v54, %v4074_v50  ;;  %v4077_v59 = vpop.f32.mrb[150].mxu1 }
 0x20f   : > { %8411 = vst.msk [vmem:[%s12290_s29 + $0x124] sm:$0xf] %vm8337_vm4, %v9998_v46  ;;  %v5375_v57 = vadd.f32 %v13026_v62, %v4864_v47  ;;  %v4865_v63 = vmul.f32 %v13013_v54, %v3061_v52  ;;  %v10841_v58 = vpop.f32.mrb[151].mxu0  ;;  %8665 = vst.msk [vmem:[%s12290_s29 + $0x51c] sm:$0xf] %vm8337_vm4, %v10252_v51  ;;  %v5119_v0 = vmul.f32 %v13013_v54, %v4077_v59  ;;  %v11349_v2 = vpop.f32.mrb[151].mxu1 }
 0x210   : > { %v5629_v60 = vadd.f32 %v13026_v62, %v5118_v53  ;;  %v11852_v46 = vld [vmem:[%s12047_s22 + $0x608] sm:$0xff]  }
 0x211   : > { %v5881_v3 = vmax.f32 %v5375_v57, 0.0  ;;  %v5376_v4 = vadd.f32 %v13026_v62, %v4865_v63  ;;  %10947 = vmatmul.mubr.msk.bf16.gmra.mrb[0].mxu0 %vm1961_vm3, %v11847_v49  ;;  %v5630_v5 = vadd.f32 %v13026_v62, %v5119_v0  ;;  %11455 = vmatmul.mubr.msk.bf16.gmra.mrb[0].mxu1 %vm1961_vm3, %v11848_v56 }
 0x212   : > { %v6135_v32 = vmax.f32 %v5629_v60, 0.0  ;;  %10950 = vmatprep.mubr.msk.bf16.mxu0 %vm11996_vm2, %v11994_v1  ;;  %11458 = vmatprep.mubr.msk.bf16.mxu1 %vm11996_vm2, %v11994_v1 }
 0x213   : > { %v9999_v6 = vpack.c.bf16 %v5881_v3, %v5881_v3  ;;  %v5882_v7 = vmax.f32 %v5376_v4, 0.0  ;;  %v6136_v9 = vmax.f32 %v5630_v5, 0.0  ;;  %v11853_v5 = vld [vmem:[%s12047_s22 + $0x218] sm:$0xff]  }
 0x214   : > { %v10253_v8 = vpack.c.bf16 %v6135_v32, %v6135_v32  ;;  %v3066_v10 = vpop.f32.mrb[152].mxu0  ;;  %v4082_v15 = vpop.f32.mrb[152].mxu1 }
 0x215   : > { %8412 = vst.msk [vmem:[%s12290_s29 + $0x128] sm:$0xf] %vm8337_vm4, %v9999_v6  ;;  %v10000_v11 = vpack.c.bf16 %v5882_v7, %v5882_v7  ;;  %v4866_v12 = vmul.f32 %v13013_v54, %v3066_v10  ;;  %v10844_v13 = vpop.f32.mrb[153].mxu0  ;;  %v10254_v16 = vpack.c.bf16 %v6136_v9, %v6136_v9  ;;  %v5120_v18 = vmul.f32 %v13013_v54, %v4082_v15  ;;  %v11352_v19 = vpop.f32.mrb[153].mxu1 }
 0x216   : > { %8666 = vst.msk [vmem:[%s12290_s29 + $0x520] sm:$0xf] %vm8337_vm4, %v10253_v8  ;;  %v3069_v17 = vpop.f32.mrb[154].mxu0  ;;  %v4085_v23 = vpop.f32.mrb[154].mxu1 }
 0x217   : > { %8413 = vst.msk [vmem:[%s12290_s29 + $0x12c] sm:$0xf] %vm8337_vm4, %v10000_v11  ;;  %v5377_v20 = vadd.f32 %v13026_v62, %v4866_v12  ;;  %v4867_v21 = vmul.f32 %v13013_v54, %v3069_v17  ;;  %v10845_v22 = vpop.f32.mrb[155].mxu0  ;;  %8667 = vst.msk [vmem:[%s12290_s29 + $0x524] sm:$0xf] %vm8337_vm4, %v10254_v16  ;;  %v5631_v24 = vadd.f32 %v13026_v62, %v5120_v18  ;;  %v11353_v26 = vpop.f32.mrb[155].mxu1 }
 0x218   : > { %v5121_v25 = vmul.f32 %v13013_v54, %v4085_v23  ;;  %v11854_v11 = vld [vmem:[%s12047_s22 + $0x610] sm:$0xff]  }
 0x219   : > { %v5883_v27 = vmax.f32 %v5377_v20, 0.0  ;;  %v5378_v28 = vadd.f32 %v13026_v62, %v4867_v21  ;;  %10951 = vmatmul.mubr.msk.bf16.gmra.mrb[4].mxu0 %vm1961_vm3, %v11849_v14  ;;  %v6137_v29 = vmax.f32 %v5631_v24, 0.0  ;;  %11459 = vmatmul.mubr.msk.bf16.gmra.mrb[4].mxu1 %vm1961_vm3, %v11850_v61 }
 0x21a   : > { %v5632_v30 = vadd.f32 %v13026_v62, %v5121_v25  ;;  %10954 = vmatprep.mubr.msk.bf16.mxu0 %vm11996_vm2, %v11994_v1  ;;  %11462 = vmatprep.mubr.msk.bf16.mxu1 %vm11996_vm2, %v11994_v1 }
 0x21b   : > { %v10001_v31 = vpack.c.bf16 %v5883_v27, %v5883_v27  ;;  %v5884_v33 = vmax.f32 %v5378_v28, 0.0  ;;  %v10255_v34 = vpack.c.bf16 %v6137_v29, %v6137_v29 }
 0x21c   : > { %v6138_v35 = vmax.f32 %v5632_v30, 0.0  ;;  %v3074_v36 = vpop.f32.mrb[156].mxu0  ;;  %v4090_v41 = vpop.f32.mrb[156].mxu1  ;;  %v11855_v30 = vld [vmem:[%s12047_s22 + $0x220] sm:$0xff]  }
 0x21d   : > { %8414 = vst.msk [vmem:[%s12290_s29 + $0x130] sm:$0xf] %vm8337_vm4, %v10001_v31  ;;  %v10002_v37 = vpack.c.bf16 %v5884_v33, %v5884_v33  ;;  %v4868_v38 = vmul.f32 %v13013_v54, %v3074_v36  ;;  %v10848_v39 = vpop.f32.mrb[157].mxu0  ;;  %8668 = vst.msk [vmem:[%s12290_s29 + $0x528] sm:$0xf] %vm8337_vm4, %v10255_v34  ;;  %v5122_v44 = vmul.f32 %v13013_v54, %v4090_v41  ;;  %v11356_v45 = vpop.f32.mrb[157].mxu1 }
 0x21e   : > { %v10256_v42 = vpack.c.bf16 %v6138_v35, %v6138_v35  ;;  %v3077_v43 = vpop.f32.mrb[158].mxu0  ;;  %v4093_v50 = vpop.f32.mrb[158].mxu1 }
 0x21f   : > { %8415 = vst.msk [vmem:[%s12290_s29 + $0x134] sm:$0xf] %vm8337_vm4, %v10002_v37  ;;  %v5379_v47 = vadd.f32 %v13026_v62, %v4868_v38  ;;  %v4869_v48 = vmul.f32 %v13013_v54, %v3077_v43  ;;  %v10849_v49 = vpop.f32.mrb[159].mxu0  ;;  %v5633_v51 = vadd.f32 %v13026_v62, %v5122_v44  ;;  %v5123_v52 = vmul.f32 %v13013_v54, %v4093_v50  ;;  %v11357_v53 = vpop.f32.mrb[159].mxu1  ;;  %v11856_v37 = vld [vmem:[%s12047_s22 + $0x618] sm:$0xff]  }
 0x220   : > { %8669 = vst.msk [vmem:[%s12290_s29 + $0x52c] sm:$0xf] %vm8337_vm4, %v10256_v42 }
 0x221   : > { %v5885_v55 = vmax.f32 %v5379_v47, 0.0  ;;  %v5380_v56 = vadd.f32 %v13026_v62, %v4869_v48  ;;  %10955 = vmatmul.mubr.msk.bf16.gmra.mrb[8].mxu0 %vm1961_vm3, %v11851_v40  ;;  %v6139_v57 = vmax.f32 %v5633_v51, 0.0  ;;  %v5634_v63 = vadd.f32 %v13026_v62, %v5123_v52  ;;  %11463 = vmatmul.mubr.msk.bf16.gmra.mrb[8].mxu1 %vm1961_vm3, %v11852_v46 }
 0x222   : > { %10958 = vmatprep.mubr.msk.bf16.mxu0 %vm11996_vm2, %v11994_v1  ;;  %11466 = vmatprep.mubr.msk.bf16.mxu1 %vm11996_vm2, %v11994_v1 }
 0x223   : > { %v10003_v58 = vpack.c.bf16 %v5885_v55, %v5885_v55  ;;  %v5886_v59 = vmax.f32 %v5380_v56, 0.0  ;;  %v10257_v60 = vpack.c.bf16 %v6139_v57, %v6139_v57  ;;  %v6140_v0 = vmax.f32 %v5634_v63, 0.0  ;;  %v11857_v63 = vld [vmem:[%s12047_s22 + $0x228] sm:$0xff]  }
 0x224   : > { %v3082_v2 = vpop.f32.mrb[160].mxu0  ;;  %v4098_v6 = vpop.f32.mrb[160].mxu1 }
 0x225   : > { %8416 = vst.msk [vmem:[%s12290_s29 + $0x138] sm:$0xf] %vm8337_vm4, %v10003_v58  ;;  %v10004_v3 = vpack.c.bf16 %v5886_v59, %v5886_v59  ;;  %v4870_v4 = vmul.f32 %v13013_v54, %v3082_v2  ;;  %v10852_v32 = vpop.f32.mrb[161].mxu0  ;;  %8670 = vst.msk [vmem:[%s12290_s29 + $0x530] sm:$0xf] %vm8337_vm4, %v10257_v60  ;;  %v10258_v7 = vpack.c.bf16 %v6140_v0, %v6140_v0  ;;  %v11360_v10 = vpop.f32.mrb[161].mxu1 }
 0x226   : > { %v3085_v8 = vpop.f32.mrb[162].mxu0  ;;  %v5124_v9 = vmul.f32 %v13013_v54, %v4098_v6  ;;  %v4101_v15 = vpop.f32.mrb[162].mxu1 }
 0x227   : > { %8417 = vst.msk [vmem:[%s12290_s29 + $0x13c] sm:$0xf] %vm8337_vm4, %v10004_v3  ;;  %v5381_v12 = vadd.f32 %v13026_v62, %v4870_v4  ;;  %v4871_v13 = vmul.f32 %v13013_v54, %v3085_v8  ;;  %v10853_v14 = vpop.f32.mrb[163].mxu0  ;;  %8671 = vst.msk [vmem:[%s12290_s29 + $0x534] sm:$0xf] %vm8337_vm4, %v10258_v7  ;;  %v5125_v17 = vmul.f32 %v13013_v54, %v4101_v15  ;;  %v11361_v18 = vpop.f32.mrb[163].mxu1 }
 0x228   : > { %v5635_v16 = vadd.f32 %v13026_v62, %v5124_v9  ;;  %v11858_v3 = vld [vmem:[%s12047_s22 + $0x620] sm:$0xff]  }
 0x229   : > { %v5887_v19 = vmax.f32 %v5381_v12, 0.0  ;;  %v5382_v61 = vadd.f32 %v13026_v62, %v4871_v13  ;;  %10959 = vmatmul.mubr.msk.bf16.gmra.mrb[12].mxu0 %vm1961_vm3, %v11853_v5  ;;  %v5636_v21 = vadd.f32 %v13026_v62, %v5125_v17  ;;  %11467 = vmatmul.mubr.msk.bf16.gmra.mrb[12].mxu1 %vm1961_vm3, %v11854_v11 }
 0x22a   : > { %v6141_v20 = vmax.f32 %v5635_v16, 0.0  ;;  %10962 = vmatprep.mubr.msk.bf16.mxu0 %vm11996_vm2, %v11994_v1  ;;  %11470 = vmatprep.mubr.msk.bf16.mxu1 %vm11996_vm2, %v11994_v1 }
 0x22b   : > { %v10005_v22 = vpack.c.bf16 %v5887_v19, %v5887_v19  ;;  %v5888_v23 = vmax.f32 %v5382_v61, 0.0  ;;  %v6142_v25 = vmax.f32 %v5636_v21, 0.0  ;;  %v11859_v21 = vld [vmem:[%s12047_s22 + $0x230] sm:$0xff]  }
 0x22c   : > { %v10259_v24 = vpack.c.bf16 %v6141_v20, %v6141_v20  ;;  %v3090_v26 = vpop.f32.mrb[164].mxu0  ;;  %v4106_v31 = vpop.f32.mrb[164].mxu1 }
 0x22d   : > { %8418 = vst.msk [vmem:[%s12290_s29 + $0x140] sm:$0xf] %vm8337_vm4, %v10005_v22  ;;  %v10006_v27 = vpack.c.bf16 %v5888_v23, %v5888_v23  ;;  %v4872_v28 = vmul.f32 %v13013_v54, %v3090_v26  ;;  %v10856_v29 = vpop.f32.mrb[165].mxu0  ;;  %v10260_v33 = vpack.c.bf16 %v6142_v25, %v6142_v25  ;;  %v5126_v35 = vmul.f32 %v13013_v54, %v4106_v31  ;;  %v11364_v36 = vpop.f32.mrb[165].mxu1 }
 0x22e   : > { %8672 = vst.msk [vmem:[%s12290_s29 + $0x538] sm:$0xf] %vm8337_vm4, %v10259_v24  ;;  %v3093_v34 = vpop.f32.mrb[166].mxu0  ;;  %v4109_v41 = vpop.f32.mrb[166].mxu1 }
 0x22f   : > { %8419 = vst.msk [vmem:[%s12290_s29 + $0x144] sm:$0xf] %vm8337_vm4, %v10006_v27  ;;  %v5383_v38 = vadd.f32 %v13026_v62, %v4872_v28  ;;  %v4873_v39 = vmul.f32 %v13013_v54, %v3093_v34  ;;  %v10857_v40 = vpop.f32.mrb[167].mxu0  ;;  %8673 = vst.msk [vmem:[%s12290_s29 + $0x53c] sm:$0xf] %vm8337_vm4, %v10260_v33  ;;  %v5637_v42 = vadd.f32 %v13026_v62, %v5126_v35  ;;  %v11365_v44 = vpop.f32.mrb[167].mxu1 }
 0x230   : > { %v5127_v43 = vmul.f32 %v13013_v54, %v4109_v41  ;;  %v11860_v27 = vld [vmem:[%s12047_s22 + $0x628] sm:$0xff]  }
 0x231   : > { %v5889_v45 = vmax.f32 %v5383_v38, 0.0  ;;  %v5384_v46 = vadd.f32 %v13026_v62, %v4873_v39  ;;  %10963 = vmatmul.mubr.msk.bf16.gmra.mrb[16].mxu0 %vm1961_vm3, %v11855_v30  ;;  %v6143_v47 = vmax.f32 %v5637_v42, 0.0  ;;  %11471 = vmatmul.mubr.msk.bf16.gmra.mrb[16].mxu1 %vm1961_vm3, %v11856_v37 }
 0x232   : > { %v5638_v48 = vadd.f32 %v13026_v62, %v5127_v43  ;;  %10966 = vmatprep.mubr.msk.bf16.mxu0 %vm11996_vm2, %v11994_v1  ;;  %11474 = vmatprep.mubr.msk.bf16.mxu1 %vm11996_vm2, %v11994_v1 }
 0x233   : > { %v10007_v49 = vpack.c.bf16 %v5889_v45, %v5889_v45  ;;  %v5890_v50 = vmax.f32 %v5384_v46, 0.0  ;;  %v10261_v51 = vpack.c.bf16 %v6143_v47, %v6143_v47 }
 0x234   : > { %v6144_v52 = vmax.f32 %v5638_v48, 0.0  ;;  %v3098_v53 = vpop.f32.mrb[168].mxu0  ;;  %v4114_v58 = vpop.f32.mrb[168].mxu1  ;;  %v11861_v48 = vld [vmem:[%s12047_s22 + $0x238] sm:$0xff]  }
 0x235   : > { %8420 = vst.msk [vmem:[%s12290_s29 + $0x148] sm:$0xf] %vm8337_vm4, %v10007_v49  ;;  %v10008_v55 = vpack.c.bf16 %v5890_v50, %v5890_v50  ;;  %v4874_v56 = vmul.f32 %v13013_v54, %v3098_v53  ;;  %v10860_v57 = vpop.f32.mrb[169].mxu0  ;;  %8674 = vst.msk [vmem:[%s12290_s29 + $0x540] sm:$0xf] %vm8337_vm4, %v10261_v51  ;;  %v5128_v0 = vmul.f32 %v13013_v54, %v4114_v58  ;;  %v11368_v2 = vpop.f32.mrb[169].mxu1 }
 0x236   : > { %v10262_v59 = vpack.c.bf16 %v6144_v52, %v6144_v52  ;;  %v3101_v60 = vpop.f32.mrb[170].mxu0  ;;  %v4117_v6 = vpop.f32.mrb[170].mxu1 }
 0x237   : > { %8421 = vst.msk [vmem:[%s12290_s29 + $0x14c] sm:$0xf] %vm8337_vm4, %v10008_v55  ;;  %v5385_v4 = vadd.f32 %v13026_v62, %v4874_v56  ;;  %v4875_v32 = vmul.f32 %v13013_v54, %v3101_v60  ;;  %v10861_v5 = vpop.f32.mrb[171].mxu0  ;;  %v5639_v7 = vadd.f32 %v13026_v62, %v5128_v0  ;;  %v5129_v8 = vmul.f32 %v13013_v54, %v4117_v6  ;;  %v11369_v9 = vpop.f32.mrb[171].mxu1  ;;  %v11862_v55 = vld [vmem:[%s12047_s22 + $0x630] sm:$0xff]  }
 0x238   : > { %8675 = vst.msk [vmem:[%s12290_s29 + $0x544] sm:$0xf] %vm8337_vm4, %v10262_v59 }
 0x239   : > { %v5891_v10 = vmax.f32 %v5385_v4, 0.0  ;;  %v5386_v11 = vadd.f32 %v13026_v62, %v4875_v32  ;;  %10967 = vmatmul.mubr.msk.bf16.gmra.mrb[20].mxu0 %vm1961_vm3, %v11857_v63  ;;  %v6145_v12 = vmax.f32 %v5639_v7, 0.0  ;;  %v5640_v13 = vadd.f32 %v13026_v62, %v5129_v8  ;;  %11475 = vmatmul.mubr.msk.bf16.gmra.mrb[20].mxu1 %vm1961_vm3, %v11858_v3 }
 0x23a   : > { %10970 = vmatprep.mubr.msk.bf16.mxu0 %vm11996_vm2, %v11994_v1  ;;  %11478 = vmatprep.mubr.msk.bf16.mxu1 %vm11996_vm2, %v11994_v1 }
 0x23b   : > { %v10009_v14 = vpack.c.bf16 %v5891_v10, %v5891_v10  ;;  %v5892_v15 = vmax.f32 %v5386_v11, 0.0  ;;  %v10263_v16 = vpack.c.bf16 %v6145_v12, %v6145_v12  ;;  %v6146_v17 = vmax.f32 %v5640_v13, 0.0  ;;  %v11863_v13 = vld [vmem:[%s12047_s22 + $0x240] sm:$0xff]  }
 0x23c   : > { %v3106_v18 = vpop.f32.mrb[172].mxu0  ;;  %v4122_v22 = vpop.f32.mrb[172].mxu1 }
 0x23d   : > { %8422 = vst.msk [vmem:[%s12290_s29 + $0x150] sm:$0xf] %vm8337_vm4, %v10009_v14  ;;  %v10010_v19 = vpack.c.bf16 %v5892_v15, %v5892_v15  ;;  %v4876_v61 = vmul.f32 %v13013_v54, %v3106_v18  ;;  %v10864_v20 = vpop.f32.mrb[173].mxu0  ;;  %8676 = vst.msk [vmem:[%s12290_s29 + $0x548] sm:$0xf] %vm8337_vm4, %v10263_v16  ;;  %v10264_v23 = vpack.c.bf16 %v6146_v17, %v6146_v17  ;;  %v11372_v26 = vpop.f32.mrb[173].mxu1 }
 0x23e   : > { %v3109_v24 = vpop.f32.mrb[174].mxu0  ;;  %v5130_v25 = vmul.f32 %v13013_v54, %v4122_v22  ;;  %v4125_v31 = vpop.f32.mrb[174].mxu1  ;;  %v13388_v20 = vld [vmem:[%s15173_s2] ss:$0 sm:$0xff] }
 0x23f   : > { %8423 = vst.msk [vmem:[%s12290_s29 + $0x154] sm:$0xf] %vm8337_vm4, %v10010_v19  ;;  %v5387_v28 = vadd.f32 %v13026_v62, %v4876_v61  ;;  %v4877_v29 = vmul.f32 %v13013_v54, %v3109_v24  ;;  %v10865_v30 = vpop.f32.mrb[175].mxu0  ;;  %8677 = vst.msk [vmem:[%s12290_s29 + $0x54c] sm:$0xf] %vm8337_vm4, %v10264_v23  ;;  %v5131_v34 = vmul.f32 %v13013_v54, %v4125_v31  ;;  %v11373_v35 = vpop.f32.mrb[175].mxu1 }
 0x240   : > { %v5641_v33 = vadd.f32 %v13026_v62, %v5130_v25  ;;  %v11864_v19 = vld [vmem:[%s12047_s22 + $0x638] sm:$0xff]  }
 0x241   : > { %v5893_v36 = vmax.f32 %v5387_v28, 0.0  ;;  %v5388_v37 = vadd.f32 %v13026_v62, %v4877_v29  ;;  %10971 = vmatmul.mubr.msk.bf16.gmra.mrb[24].mxu0 %vm1961_vm3, %v11859_v21  ;;  %v5642_v39 = vadd.f32 %v13026_v62, %v5131_v34  ;;  %11479 = vmatmul.mubr.msk.bf16.gmra.mrb[24].mxu1 %vm1961_vm3, %v11860_v27  ;;  %v13398_v27 = vld [vmem:[%s15173_s2 + $0x1] ss:$0 sm:$0xff] }
 0x242   : > { %v6147_v38 = vmax.f32 %v5641_v33, 0.0  ;;  %10974 = vmatprep.mubr.msk.bf16.mxu0 %vm11996_vm2, %v11994_v1  ;;  %11482 = vmatprep.mubr.msk.bf16.mxu1 %vm11996_vm2, %v11994_v1 }
 0x243   : > { %v10011_v40 = vpack.c.bf16 %v5893_v36, %v5893_v36  ;;  %v5894_v41 = vmax.f32 %v5388_v37, 0.0  ;;  %v6148_v43 = vmax.f32 %v5642_v39, 0.0  ;;  %v11865_v39 = vld [vmem:[%s12047_s22 + $0x248] sm:$0xff]  }
 0x244   : > { %v10265_v42 = vpack.c.bf16 %v6147_v38, %v6147_v38  ;;  %v3114_v44 = vpop.f32.mrb[176].mxu0  ;;  %v4130_v49 = vpop.f32.mrb[176].mxu1 }
 0x245   : > { %8424 = vst.msk [vmem:[%s12290_s29 + $0x158] sm:$0xf] %vm8337_vm4, %v10011_v40  ;;  %v10012_v45 = vpack.c.bf16 %v5894_v41, %v5894_v41  ;;  %v4878_v46 = vmul.f32 %v13013_v54, %v3114_v44  ;;  %v10868_v47 = vpop.f32.mrb[177].mxu0  ;;  %v10266_v50 = vpack.c.bf16 %v6148_v43, %v6148_v43  ;;  %v5132_v52 = vmul.f32 %v13013_v54, %v4130_v49  ;;  %v11376_v53 = vpop.f32.mrb[177].mxu1 }
 0x246   : > { %8678 = vst.msk [vmem:[%s12290_s29 + $0x550] sm:$0xf] %vm8337_vm4, %v10265_v42  ;;  %v3117_v51 = vpop.f32.mrb[178].mxu0  ;;  %v4133_v58 = vpop.f32.mrb[178].mxu1 }
 0x247   : > { %8425 = vst.msk [vmem:[%s12290_s29 + $0x15c] sm:$0xf] %vm8337_vm4, %v10012_v45  ;;  %v5389_v56 = vadd.f32 %v13026_v62, %v4878_v46  ;;  %v4879_v57 = vmul.f32 %v13013_v54, %v3117_v51  ;;  %v10869_v63 = vpop.f32.mrb[179].mxu0  ;;  %8679 = vst.msk [vmem:[%s12290_s29 + $0x554] sm:$0xf] %vm8337_vm4, %v10266_v50  ;;  %v5643_v59 = vadd.f32 %v13026_v62, %v5132_v52  ;;  %v11377_v0 = vpop.f32.mrb[179].mxu1 }
 0x248   : > { %v5133_v60 = vmul.f32 %v13013_v54, %v4133_v58  ;;  %v11866_v45 = vld [vmem:[%s12047_s22 + $0x640] sm:$0xff]  }
 0x249   : > { %v5895_v2 = vmax.f32 %v5389_v56, 0.0  ;;  %v5390_v3 = vadd.f32 %v13026_v62, %v4879_v57  ;;  %10975 = vmatmul.mubr.msk.bf16.gmra.mrb[28].mxu0 %vm1961_vm3, %v11861_v48  ;;  %v6149_v4 = vmax.f32 %v5643_v59, 0.0  ;;  %11483 = vmatmul.mubr.msk.bf16.gmra.mrb[28].mxu1 %vm1961_vm3, %v11862_v55 }
 0x24a   : > { %v5644_v32 = vadd.f32 %v13026_v62, %v5133_v60  ;;  %10978 = vmatprep.mubr.msk.bf16.mxu0 %vm11996_vm2, %v11994_v1  ;;  %11486 = vmatprep.mubr.msk.bf16.mxu1 %vm11996_vm2, %v11994_v1 }
 0x24b   : > { %v10013_v5 = vpack.c.bf16 %v5895_v2, %v5895_v2  ;;  %v5896_v6 = vmax.f32 %v5390_v3, 0.0  ;;  %v10267_v7 = vpack.c.bf16 %v6149_v4, %v6149_v4 }
 0x24c   : > { %v6150_v8 = vmax.f32 %v5644_v32, 0.0  ;;  %v3122_v9 = vpop.f32.mrb[180].mxu0  ;;  %v4138_v14 = vpop.f32.mrb[180].mxu1  ;;  %v11867_v32 = vld [vmem:[%s12047_s22 + $0x250] sm:$0xff]  }
 0x24d   : > { %8426 = vst.msk [vmem:[%s12290_s29 + $0x160] sm:$0xf] %vm8337_vm4, %v10013_v5  ;;  %v10014_v10 = vpack.c.bf16 %v5896_v6, %v5896_v6  ;;  %v4880_v11 = vmul.f32 %v13013_v54, %v3122_v9  ;;  %v10872_v12 = vpop.f32.mrb[181].mxu0  ;;  %8680 = vst.msk [vmem:[%s12290_s29 + $0x558] sm:$0xf] %vm8337_vm4, %v10267_v7  ;;  %v5134_v17 = vmul.f32 %v13013_v54, %v4138_v14  ;;  %v11380_v18 = vpop.f32.mrb[181].mxu1 }
 0x24e   : > { %v10268_v15 = vpack.c.bf16 %v6150_v8, %v6150_v8  ;;  %v3125_v16 = vpop.f32.mrb[182].mxu0  ;;  %v4141_v23 = vpop.f32.mrb[182].mxu1 }
 0x24f   : > { %8427 = vst.msk [vmem:[%s12290_s29 + $0x164] sm:$0xf] %vm8337_vm4, %v10014_v10  ;;  %v5391_v61 = vadd.f32 %v13026_v62, %v4880_v11  ;;  %v4881_v21 = vmul.f32 %v13388_v20, %v3125_v16  ;;  %v10873_v22 = vpop.f32.mrb[183].mxu0  ;;  %v5645_v24 = vadd.f32 %v13026_v62, %v5134_v17  ;;  %v5135_v54 = vmul.f32 %v13388_v20, %v4141_v23  ;;  %v11381_v25 = vpop.f32.mrb[183].mxu1  ;;  %v11868_v10 = vld [vmem:[%s12047_s22 + $0x648] sm:$0xff]  }
 0x250   : > { %8681 = vst.msk [vmem:[%s12290_s29 + $0x55c] sm:$0xf] %vm8337_vm4, %v10268_v15 }
 0x251   : > { %v5897_v26 = vmax.f32 %v5391_v61, 0.0  ;;  %v5392_v28 = vadd.f32 %v13398_v27, %v4881_v21  ;;  %10979 = vmatmul.mubr.msk.bf16.gmra.mrb[32].mxu0 %vm1961_vm3, %v11863_v13  ;;  %v6151_v29 = vmax.f32 %v5645_v24, 0.0  ;;  %v5646_v30 = vadd.f32 %v13398_v27, %v5135_v54  ;;  %11487 = vmatmul.mubr.msk.bf16.gmra.mrb[32].mxu1 %vm1961_vm3, %v11864_v19 }
 0x252   : > { %10982 = vmatprep.mubr.msk.bf16.mxu0 %vm11996_vm2, %v11994_v1  ;;  %11490 = vmatprep.mubr.msk.bf16.mxu1 %vm11996_vm2, %v11994_v1 }
 0x253   : > { %v10015_v62 = vpack.c.bf16 %v5897_v26, %v5897_v26  ;;  %v5898_v31 = vmax.f32 %v5392_v28, 0.0  ;;  %v10269_v33 = vpack.c.bf16 %v6151_v29, %v6151_v29  ;;  %v6152_v34 = vmax.f32 %v5646_v30, 0.0  ;;  %v11869_v30 = vld [vmem:[%s12047_s22 + $0x258] sm:$0xff]  }
 0x254   : > { %v3130_v35 = vpop.f32.mrb[184].mxu0  ;;  %v4146_v40 = vpop.f32.mrb[184].mxu1 }
 0x255   : > { %8428 = vst.msk [vmem:[%s12290_s29 + $0x168] sm:$0xf] %vm8337_vm4, %v10015_v62  ;;  %v10016_v36 = vpack.c.bf16 %v5898_v31, %v5898_v31  ;;  %v4882_v37 = vmul.f32 %v13388_v20, %v3130_v35  ;;  %v10876_v38 = vpop.f32.mrb[185].mxu0  ;;  %8682 = vst.msk [vmem:[%s12290_s29 + $0x560] sm:$0xf] %vm8337_vm4, %v10269_v33  ;;  %v10270_v41 = vpack.c.bf16 %v6152_v34, %v6152_v34  ;;  %v11384_v44 = vpop.f32.mrb[185].mxu1 }
 0x256   : > { %v3133_v42 = vpop.f32.mrb[186].mxu0  ;;  %v5136_v43 = vmul.f32 %v13388_v20, %v4146_v40  ;;  %v4149_v49 = vpop.f32.mrb[186].mxu1 }
 0x257   : > { %8429 = vst.msk [vmem:[%s12290_s29 + $0x16c] sm:$0xf] %vm8337_vm4, %v10016_v36  ;;  %v5393_v46 = vadd.f32 %v13398_v27, %v4882_v37  ;;  %v4883_v47 = vmul.f32 %v13388_v20, %v3133_v42  ;;  %v10877_v48 = vpop.f32.mrb[187].mxu0  ;;  %8683 = vst.msk [vmem:[%s12290_s29 + $0x564] sm:$0xf] %vm8337_vm4, %v10270_v41  ;;  %v5137_v51 = vmul.f32 %v13388_v20, %v4149_v49  ;;  %v11385_v52 = vpop.f32.mrb[187].mxu1 }
 0x258   : > { %v5647_v50 = vadd.f32 %v13398_v27, %v5136_v43  ;;  %v11870_v36 = vld [vmem:[%s12047_s22 + $0x650] sm:$0xff]  }
 0x259   : > { %v5899_v53 = vmax.f32 %v5393_v46, 0.0  ;;  %v5394_v55 = vadd.f32 %v13398_v27, %v4883_v47  ;;  %10983 = vmatmul.mubr.msk.bf16.gmra.mrb[36].mxu0 %vm1961_vm3, %v11865_v39  ;;  %v5648_v57 = vadd.f32 %v13398_v27, %v5137_v51  ;;  %11491 = vmatmul.mubr.msk.bf16.gmra.mrb[36].mxu1 %vm1961_vm3, %v11866_v45 }
 0x25a   : > { %v6153_v56 = vmax.f32 %v5647_v50, 0.0  ;;  %10986 = vmatprep.mubr.msk.bf16.mxu0 %vm11996_vm2, %v11994_v1  ;;  %11494 = vmatprep.mubr.msk.bf16.mxu1 %vm11996_vm2, %v11994_v1 }
 0x25b   : > { %v10017_v63 = vpack.c.bf16 %v5899_v53, %v5899_v53  ;;  %v5900_v58 = vmax.f32 %v5394_v55, 0.0  ;;  %v6154_v60 = vmax.f32 %v5648_v57, 0.0  ;;  %v11871_v57 = vld [vmem:[%s12047_s22 + $0x260] sm:$0xff]  }
 0x25c   : > { %v10271_v59 = vpack.c.bf16 %v6153_v56, %v6153_v56  ;;  %v3138_v0 = vpop.f32.mrb[188].mxu0  ;;  %v4154_v5 = vpop.f32.mrb[188].mxu1 }
 0x25d   : > { %8430 = vst.msk [vmem:[%s12290_s29 + $0x170] sm:$0xf] %vm8337_vm4, %v10017_v63  ;;  %v10018_v2 = vpack.c.bf16 %v5900_v58, %v5900_v58  ;;  %v4884_v3 = vmul.f32 %v13388_v20, %v3138_v0  ;;  %v10880_v4 = vpop.f32.mrb[189].mxu0  ;;  %v10272_v6 = vpack.c.bf16 %v6154_v60, %v6154_v60  ;;  %v5138_v8 = vmul.f32 %v13388_v20, %v4154_v5  ;;  %v11388_v9 = vpop.f32.mrb[189].mxu1 }
 0x25e   : > { %8684 = vst.msk [vmem:[%s12290_s29 + $0x568] sm:$0xf] %vm8337_vm4, %v10271_v59  ;;  %v3141_v7 = vpop.f32.mrb[190].mxu0  ;;  %v4157_v14 = vpop.f32.mrb[190].mxu1 }
 0x25f   : > { %8431 = vst.msk [vmem:[%s12290_s29 + $0x174] sm:$0xf] %vm8337_vm4, %v10018_v2  ;;  %v5395_v11 = vadd.f32 %v13398_v27, %v4884_v3  ;;  %v4885_v12 = vmul.f32 %v13388_v20, %v3141_v7  ;;  %v10881_v13 = vpop.f32.mrb[191].mxu0  ;;  %8685 = vst.msk [vmem:[%s12290_s29 + $0x56c] sm:$0xf] %vm8337_vm4, %v10272_v6  ;;  %v5649_v15 = vadd.f32 %v13398_v27, %v5138_v8  ;;  %v11389_v17 = vpop.f32.mrb[191].mxu1 }
 0x260   : > { %v5139_v16 = vmul.f32 %v13388_v20, %v4157_v14  ;;  %v11872_v2 = vld [vmem:[%s12047_s22 + $0x658] sm:$0xff]  }
 0x261   : > { %v5901_v18 = vmax.f32 %v5395_v11, 0.0  ;;  %v5396_v19 = vadd.f32 %v13398_v27, %v4885_v12  ;;  %10987 = vmatmul.mubr.msk.bf16.gmra.mrb[40].mxu0 %vm1961_vm3, %v11867_v32  ;;  %v6155_v61 = vmax.f32 %v5649_v15, 0.0  ;;  %11495 = vmatmul.mubr.msk.bf16.gmra.mrb[40].mxu1 %vm1961_vm3, %v11868_v10 }
 0x262   : > { %v5650_v21 = vadd.f32 %v13398_v27, %v5139_v16  ;;  %10990 = vmatprep.mubr.msk.bf16.mxu0 %vm11996_vm2, %v11994_v1  ;;  %11498 = vmatprep.mubr.msk.bf16.mxu1 %vm11996_vm2, %v11994_v1 }
 0x263   : > { %v10019_v22 = vpack.c.bf16 %v5901_v18, %v5901_v18  ;;  %v5902_v23 = vmax.f32 %v5396_v19, 0.0  ;;  %v10273_v24 = vpack.c.bf16 %v6155_v61, %v6155_v61 }
 0x264   : > { %v6156_v54 = vmax.f32 %v5650_v21, 0.0  ;;  %v3146_v25 = vpop.f32.mrb[192].mxu0  ;;  %v4162_v62 = vpop.f32.mrb[192].mxu1  ;;  %v11873_v21 = vld [vmem:[%s12047_s22 + $0x268] sm:$0xff]  }
 0x265   : > { %8432 = vst.msk [vmem:[%s12290_s29 + $0x178] sm:$0xf] %vm8337_vm4, %v10019_v22  ;;  %v10020_v26 = vpack.c.bf16 %v5902_v23, %v5902_v23  ;;  %v4886_v28 = vmul.f32 %v13388_v20, %v3146_v25  ;;  %v10884_v29 = vpop.f32.mrb[193].mxu0  ;;  %8686 = vst.msk [vmem:[%s12290_s29 + $0x570] sm:$0xf] %vm8337_vm4, %v10273_v24  ;;  %v5140_v34 = vmul.f32 %v13388_v20, %v4162_v62  ;;  %v11392_v35 = vpop.f32.mrb[193].mxu1 }
 0x266   : > { %v10274_v31 = vpack.c.bf16 %v6156_v54, %v6156_v54  ;;  %v3149_v33 = vpop.f32.mrb[194].mxu0  ;;  %v4165_v40 = vpop.f32.mrb[194].mxu1 }
 0x267   : > { %8433 = vst.msk [vmem:[%s12290_s29 + $0x17c] sm:$0xf] %vm8337_vm4, %v10020_v26  ;;  %v5397_v37 = vadd.f32 %v13398_v27, %v4886_v28  ;;  %v4887_v38 = vmul.f32 %v13388_v20, %v3149_v33  ;;  %v10885_v39 = vpop.f32.mrb[195].mxu0  ;;  %v5651_v41 = vadd.f32 %v13398_v27, %v5140_v34  ;;  %v5141_v42 = vmul.f32 %v13388_v20, %v4165_v40  ;;  %v11393_v43 = vpop.f32.mrb[195].mxu1  ;;  %v11874_v26 = vld [vmem:[%s12047_s22 + $0x660] sm:$0xff]  }
 0x268   : > { %8687 = vst.msk [vmem:[%s12290_s29 + $0x574] sm:$0xf] %vm8337_vm4, %v10274_v31 }
 0x269   : > { %v5903_v44 = vmax.f32 %v5397_v37, 0.0  ;;  %v5398_v45 = vadd.f32 %v13398_v27, %v4887_v38  ;;  %10991 = vmatmul.mubr.msk.bf16.gmra.mrb[44].mxu0 %vm1961_vm3, %v11869_v30  ;;  %v6157_v46 = vmax.f32 %v5651_v41, 0.0  ;;  %v5652_v47 = vadd.f32 %v13398_v27, %v5141_v42  ;;  %11499 = vmatmul.mubr.msk.bf16.gmra.mrb[44].mxu1 %vm1961_vm3, %v11870_v36 }
 0x26a   : > { %10994 = vmatprep.mubr.msk.bf16.mxu0 %vm11996_vm2, %v11994_v1  ;;  %11502 = vmatprep.mubr.msk.bf16.mxu1 %vm11996_vm2, %v11994_v1 }
 0x26b   : > { %v10021_v48 = vpack.c.bf16 %v5903_v44, %v5903_v44  ;;  %v5904_v49 = vmax.f32 %v5398_v45, 0.0  ;;  %v10275_v50 = vpack.c.bf16 %v6157_v46, %v6157_v46  ;;  %v6158_v51 = vmax.f32 %v5652_v47, 0.0  ;;  %v11875_v47 = vld [vmem:[%s12047_s22 + $0x270] sm:$0xff]  }
 0x26c   : > { %v3154_v52 = vpop.f32.mrb[196].mxu0  ;;  %v4170_v63 = vpop.f32.mrb[196].mxu1 }
 0x26d   : > { %8434 = vst.msk [vmem:[%s12290_s29 + $0x180] sm:$0xf] %vm8337_vm4, %v10021_v48  ;;  %v10022_v53 = vpack.c.bf16 %v5904_v49, %v5904_v49  ;;  %v4888_v55 = vmul.f32 %v13388_v20, %v3154_v52  ;;  %v10888_v56 = vpop.f32.mrb[197].mxu0  ;;  %8688 = vst.msk [vmem:[%s12290_s29 + $0x578] sm:$0xf] %vm8337_vm4, %v10275_v50  ;;  %v10276_v58 = vpack.c.bf16 %v6158_v51, %v6158_v51  ;;  %v11396_v0 = vpop.f32.mrb[197].mxu1 }
 0x26e   : > { %v3157_v59 = vpop.f32.mrb[198].mxu0  ;;  %v5142_v60 = vmul.f32 %v13388_v20, %v4170_v63  ;;  %v4173_v5 = vpop.f32.mrb[198].mxu1 }
 0x26f   : > { %8435 = vst.msk [vmem:[%s12290_s29 + $0x184] sm:$0xf] %vm8337_vm4, %v10022_v53  ;;  %v5399_v3 = vadd.f32 %v13398_v27, %v4888_v55  ;;  %v4889_v4 = vmul.f32 %v13388_v20, %v3157_v59  ;;  %v10889_v32 = vpop.f32.mrb[199].mxu0  ;;  %8689 = vst.msk [vmem:[%s12290_s29 + $0x57c] sm:$0xf] %vm8337_vm4, %v10276_v58  ;;  %v5143_v7 = vmul.f32 %v13388_v20, %v4173_v5  ;;  %v11397_v8 = vpop.f32.mrb[199].mxu1 }
 0x270   : > { %v5653_v6 = vadd.f32 %v13398_v27, %v5142_v60  ;;  %v11876_v53 = vld [vmem:[%s12047_s22 + $0x668] sm:$0xff]  }
 0x271   : > { %v5905_v9 = vmax.f32 %v5399_v3, 0.0  ;;  %v5400_v10 = vadd.f32 %v13398_v27, %v4889_v4  ;;  %10995 = vmatmul.mubr.msk.bf16.gmra.mrb[48].mxu0 %vm1961_vm3, %v11871_v57  ;;  %v5654_v12 = vadd.f32 %v13398_v27, %v5143_v7  ;;  %11503 = vmatmul.mubr.msk.bf16.gmra.mrb[48].mxu1 %vm1961_vm3, %v11872_v2 }
 0x272   : > { %v6159_v11 = vmax.f32 %v5653_v6, 0.0  ;;  %10998 = vmatprep.mubr.msk.bf16.mxu0 %vm11996_vm2, %v11994_v1  ;;  %11506 = vmatprep.mubr.msk.bf16.mxu1 %vm11996_vm2, %v11994_v1 }
 0x273   : > { %v10023_v13 = vpack.c.bf16 %v5905_v9, %v5905_v9  ;;  %v5906_v14 = vmax.f32 %v5400_v10, 0.0  ;;  %v6160_v16 = vmax.f32 %v5654_v12, 0.0  ;;  %v11877_v12 = vld [vmem:[%s12047_s22 + $0x278] sm:$0xff]  }
 0x274   : > { %v10277_v15 = vpack.c.bf16 %v6159_v11, %v6159_v11  ;;  %v3162_v17 = vpop.f32.mrb[200].mxu0  ;;  %v4178_v22 = vpop.f32.mrb[200].mxu1 }
 0x275   : > { %8436 = vst.msk [vmem:[%s12290_s29 + $0x188] sm:$0xf] %vm8337_vm4, %v10023_v13  ;;  %v10024_v18 = vpack.c.bf16 %v5906_v14, %v5906_v14  ;;  %v4890_v19 = vmul.f32 %v13388_v20, %v3162_v17  ;;  %v10892_v61 = vpop.f32.mrb[201].mxu0  ;;  %v10278_v23 = vpack.c.bf16 %v6160_v16, %v6160_v16  ;;  %v5144_v54 = vmul.f32 %v13388_v20, %v4178_v22  ;;  %v11400_v25 = vpop.f32.mrb[201].mxu1 }
 0x276   : > { %8690 = vst.msk [vmem:[%s12290_s29 + $0x580] sm:$0xf] %vm8337_vm4, %v10277_v15  ;;  %v3165_v24 = vpop.f32.mrb[202].mxu0  ;;  %v4181_v62 = vpop.f32.mrb[202].mxu1 }
 0x277   : > { %8437 = vst.msk [vmem:[%s12290_s29 + $0x18c] sm:$0xf] %vm8337_vm4, %v10024_v18  ;;  %v5401_v28 = vadd.f32 %v13398_v27, %v4890_v19  ;;  %v4891_v29 = vmul.f32 %v13388_v20, %v3165_v24  ;;  %v10893_v30 = vpop.f32.mrb[203].mxu0  ;;  %8691 = vst.msk [vmem:[%s12290_s29 + $0x584] sm:$0xf] %vm8337_vm4, %v10278_v23  ;;  %v5655_v31 = vadd.f32 %v13398_v27, %v5144_v54  ;;  %v11401_v34 = vpop.f32.mrb[203].mxu1 }
 0x278   : > { %v5145_v33 = vmul.f32 %v13388_v20, %v4181_v62  ;;  %v11878_v18 = vld [vmem:[%s12047_s22 + $0x670] sm:$0xff]  }
 0x279   : > { %v5907_v35 = vmax.f32 %v5401_v28, 0.0  ;;  %v5402_v36 = vadd.f32 %v13398_v27, %v4891_v29  ;;  %10999 = vmatmul.mubr.msk.bf16.gmra.mrb[52].mxu0 %vm1961_vm3, %v11873_v21  ;;  %v6161_v37 = vmax.f32 %v5655_v31, 0.0  ;;  %11507 = vmatmul.mubr.msk.bf16.gmra.mrb[52].mxu1 %vm1961_vm3, %v11874_v26 }
 0x27a   : > { %v5656_v38 = vadd.f32 %v13398_v27, %v5145_v33  ;;  %11002 = vmatprep.mubr.msk.bf16.mxu0 %vm11996_vm2, %v11994_v1  ;;  %11510 = vmatprep.mubr.msk.bf16.mxu1 %vm11996_vm2, %v11994_v1 }
 0x27b   : > { %v10025_v39 = vpack.c.bf16 %v5907_v35, %v5907_v35  ;;  %v5908_v40 = vmax.f32 %v5402_v36, 0.0  ;;  %v10279_v41 = vpack.c.bf16 %v6161_v37, %v6161_v37 }
 0x27c   : > { %v6162_v42 = vmax.f32 %v5656_v38, 0.0  ;;  %v3170_v43 = vpop.f32.mrb[204].mxu0  ;;  %v4186_v48 = vpop.f32.mrb[204].mxu1  ;;  %v11879_v38 = vld [vmem:[%s12047_s22 + $0x280] sm:$0xff]  }
 0x27d   : > { %8438 = vst.msk [vmem:[%s12290_s29 + $0x190] sm:$0xf] %vm8337_vm4, %v10025_v39  ;;  %v10026_v44 = vpack.c.bf16 %v5908_v40, %v5908_v40  ;;  %v4892_v45 = vmul.f32 %v13388_v20, %v3170_v43  ;;  %v10896_v46 = vpop.f32.mrb[205].mxu0  ;;  %8692 = vst.msk [vmem:[%s12290_s29 + $0x588] sm:$0xf] %vm8337_vm4, %v10279_v41  ;;  %v5146_v51 = vmul.f32 %v13388_v20, %v4186_v48  ;;  %v11404_v52 = vpop.f32.mrb[205].mxu1 }
 0x27e   : > { %v10280_v49 = vpack.c.bf16 %v6162_v42, %v6162_v42  ;;  %v3173_v50 = vpop.f32.mrb[206].mxu0  ;;  %v4189_v63 = vpop.f32.mrb[206].mxu1 }
 0x27f   : > { %8439 = vst.msk [vmem:[%s12290_s29 + $0x194] sm:$0xf] %vm8337_vm4, %v10026_v44  ;;  %v5403_v55 = vadd.f32 %v13398_v27, %v4892_v45  ;;  %v4893_v56 = vmul.f32 %v13388_v20, %v3173_v50  ;;  %v10897_v57 = vpop.f32.mrb[207].mxu0  ;;  %v5657_v58 = vadd.f32 %v13398_v27, %v5146_v51  ;;  %v5147_v59 = vmul.f32 %v13388_v20, %v4189_v63  ;;  %v11405_v60 = vpop.f32.mrb[207].mxu1  ;;  %v11880_v44 = vld [vmem:[%s12047_s22 + $0x678] sm:$0xff]  }
 0x280   : > { %8693 = vst.msk [vmem:[%s12290_s29 + $0x58c] sm:$0xf] %vm8337_vm4, %v10280_v49 }
 0x281   : > { %v5909_v0 = vmax.f32 %v5403_v55, 0.0  ;;  %v5404_v2 = vadd.f32 %v13398_v27, %v4893_v56  ;;  %11003 = vmatmul.mubr.msk.bf16.gmra.mrb[56].mxu0 %vm1961_vm3, %v11875_v47  ;;  %v6163_v3 = vmax.f32 %v5657_v58, 0.0  ;;  %v5658_v4 = vadd.f32 %v13398_v27, %v5147_v59  ;;  %11511 = vmatmul.mubr.msk.bf16.gmra.mrb[56].mxu1 %vm1961_vm3, %v11876_v53 }
 0x282   : > { %11006 = vmatprep.mubr.msk.bf16.mxu0 %vm11996_vm2, %v11994_v1  ;;  %11514 = vmatprep.mubr.msk.bf16.mxu1 %vm11996_vm2, %v11994_v1 }
 0x283   : > { %v10027_v32 = vpack.c.bf16 %v5909_v0, %v5909_v0  ;;  %v5910_v5 = vmax.f32 %v5404_v2, 0.0  ;;  %v10281_v6 = vpack.c.bf16 %v6163_v3, %v6163_v3  ;;  %v6164_v7 = vmax.f32 %v5658_v4, 0.0  ;;  %v11881_v4 = vld [vmem:[%s12047_s22 + $0x288] sm:$0xff]  }
 0x284   : > { %v3178_v8 = vpop.f32.mrb[208].mxu0  ;;  %v4194_v13 = vpop.f32.mrb[208].mxu1 }
 0x285   : > { %8440 = vst.msk [vmem:[%s12290_s29 + $0x198] sm:$0xf] %vm8337_vm4, %v10027_v32  ;;  %v10028_v9 = vpack.c.bf16 %v5910_v5, %v5910_v5  ;;  %v4894_v10 = vmul.f32 %v13388_v20, %v3178_v8  ;;  %v10900_v11 = vpop.f32.mrb[209].mxu0  ;;  %8694 = vst.msk [vmem:[%s12290_s29 + $0x590] sm:$0xf] %vm8337_vm4, %v10281_v6  ;;  %v10282_v14 = vpack.c.bf16 %v6164_v7, %v6164_v7  ;;  %v11408_v17 = vpop.f32.mrb[209].mxu1 }
 0x286   : > { %v3181_v15 = vpop.f32.mrb[210].mxu0  ;;  %v5148_v16 = vmul.f32 %v13388_v20, %v4194_v13  ;;  %v4197_v22 = vpop.f32.mrb[210].mxu1 }
 0x287   : > { %8441 = vst.msk [vmem:[%s12290_s29 + $0x19c] sm:$0xf] %vm8337_vm4, %v10028_v9  ;;  %v5405_v19 = vadd.f32 %v13398_v27, %v4894_v10  ;;  %v4895_v61 = vmul.f32 %v13388_v20, %v3181_v15  ;;  %v10901_v21 = vpop.f32.mrb[211].mxu0  ;;  %8695 = vst.msk [vmem:[%s12290_s29 + $0x594] sm:$0xf] %vm8337_vm4, %v10282_v14  ;;  %v5149_v24 = vmul.f32 %v13388_v20, %v4197_v22  ;;  %v11409_v54 = vpop.f32.mrb[211].mxu1 }
 0x288   : > { %v5659_v23 = vadd.f32 %v13398_v27, %v5148_v16  ;;  %v11882_v9 = vld [vmem:[%s12047_s22 + $0x680] sm:$0xff]  }
 0x289   : > { %v5911_v25 = vmax.f32 %v5405_v19, 0.0  ;;  %v5406_v26 = vadd.f32 %v13398_v27, %v4895_v61  ;;  %11007 = vmatmul.mubr.msk.bf16.gmra.mrb[60].mxu0 %vm1961_vm3, %v11877_v12  ;;  %v5660_v29 = vadd.f32 %v13398_v27, %v5149_v24  ;;  %11515 = vmatmul.mubr.msk.bf16.gmra.mrb[60].mxu1 %vm1961_vm3, %v11878_v18 }
 0x28a   : > { %v6165_v28 = vmax.f32 %v5659_v23, 0.0  ;;  %11010 = vmatprep.mubr.msk.bf16.mxu0 %vm11996_vm2, %v11994_v1  ;;  %11518 = vmatprep.mubr.msk.bf16.mxu1 %vm11996_vm2, %v11994_v1 }
 0x28b   : > { %v10029_v30 = vpack.c.bf16 %v5911_v25, %v5911_v25  ;;  %v5912_v62 = vmax.f32 %v5406_v26, 0.0  ;;  %v6166_v33 = vmax.f32 %v5660_v29, 0.0  ;;  %v11883_v29 = vld [vmem:[%s12047_s22 + $0x290] sm:$0xff]  }
 0x28c   : > { %v10283_v31 = vpack.c.bf16 %v6165_v28, %v6165_v28  ;;  %v3186_v34 = vpop.f32.mrb[212].mxu0  ;;  %v4202_v39 = vpop.f32.mrb[212].mxu1 }
 0x28d   : > { %8442 = vst.msk [vmem:[%s12290_s29 + $0x1a0] sm:$0xf] %vm8337_vm4, %v10029_v30  ;;  %v10030_v35 = vpack.c.bf16 %v5912_v62, %v5912_v62  ;;  %v4896_v36 = vmul.f32 %v13388_v20, %v3186_v34  ;;  %v10904_v37 = vpop.f32.mrb[213].mxu0  ;;  %v10284_v40 = vpack.c.bf16 %v6166_v33, %v6166_v33  ;;  %v5150_v42 = vmul.f32 %v13388_v20, %v4202_v39  ;;  %v11412_v43 = vpop.f32.mrb[213].mxu1 }
 0x28e   : > { %8696 = vst.msk [vmem:[%s12290_s29 + $0x598] sm:$0xf] %vm8337_vm4, %v10283_v31  ;;  %v3189_v41 = vpop.f32.mrb[214].mxu0  ;;  %v4205_v48 = vpop.f32.mrb[214].mxu1 }
 0x28f   : > { %8443 = vst.msk [vmem:[%s12290_s29 + $0x1a4] sm:$0xf] %vm8337_vm4, %v10030_v35  ;;  %v5407_v45 = vadd.f32 %v13398_v27, %v4896_v36  ;;  %v4897_v46 = vmul.f32 %v13388_v20, %v3189_v41  ;;  %v10905_v47 = vpop.f32.mrb[215].mxu0  ;;  %8697 = vst.msk [vmem:[%s12290_s29 + $0x59c] sm:$0xf] %vm8337_vm4, %v10284_v40  ;;  %v5661_v49 = vadd.f32 %v13398_v27, %v5150_v42  ;;  %v11413_v51 = vpop.f32.mrb[215].mxu1 }
 0x290   : > { %v5151_v50 = vmul.f32 %v13388_v20, %v4205_v48  ;;  %v11884_v35 = vld [vmem:[%s12047_s22 + $0x688] sm:$0xff]  }
 0x291   : > { %v5913_v52 = vmax.f32 %v5407_v45, 0.0  ;;  %v5408_v53 = vadd.f32 %v13398_v27, %v4897_v46  ;;  %11011 = vmatmul.mubr.msk.bf16.gmra.mrb[64].mxu0 %vm1961_vm3, %v11879_v38  ;;  %v6167_v55 = vmax.f32 %v5661_v49, 0.0  ;;  %11519 = vmatmul.mubr.msk.bf16.gmra.mrb[64].mxu1 %vm1961_vm3, %v11880_v44 }
 0x292   : > { %v5662_v56 = vadd.f32 %v13398_v27, %v5151_v50  ;;  %11014 = vmatprep.mubr.msk.bf16.mxu0 %vm11996_vm2, %v11994_v1  ;;  %11522 = vmatprep.mubr.msk.bf16.mxu1 %vm11996_vm2, %v11994_v1 }
 0x293   : > { %v10031_v57 = vpack.c.bf16 %v5913_v52, %v5913_v52  ;;  %v5914_v63 = vmax.f32 %v5408_v53, 0.0  ;;  %v10285_v58 = vpack.c.bf16 %v6167_v55, %v6167_v55 }
 0x294   : > { %v6168_v59 = vmax.f32 %v5662_v56, 0.0  ;;  %v3194_v60 = vpop.f32.mrb[216].mxu0  ;;  %v4210_v32 = vpop.f32.mrb[216].mxu1  ;;  %v11885_v56 = vld [vmem:[%s12047_s22 + $0x298] sm:$0xff]  }
 0x295   : > { %8444 = vst.msk [vmem:[%s12290_s29 + $0x1a8] sm:$0xf] %vm8337_vm4, %v10031_v57  ;;  %v10032_v0 = vpack.c.bf16 %v5914_v63, %v5914_v63  ;;  %v4898_v2 = vmul.f32 %v13388_v20, %v3194_v60  ;;  %v10908_v3 = vpop.f32.mrb[217].mxu0  ;;  %8698 = vst.msk [vmem:[%s12290_s29 + $0x5a0] sm:$0xf] %vm8337_vm4, %v10285_v58  ;;  %v5152_v7 = vmul.f32 %v13388_v20, %v4210_v32  ;;  %v11416_v8 = vpop.f32.mrb[217].mxu1 }
 0x296   : > { %v10286_v5 = vpack.c.bf16 %v6168_v59, %v6168_v59  ;;  %v3197_v6 = vpop.f32.mrb[218].mxu0  ;;  %v4213_v13 = vpop.f32.mrb[218].mxu1 }
 0x297   : > { %8445 = vst.msk [vmem:[%s12290_s29 + $0x1ac] sm:$0xf] %vm8337_vm4, %v10032_v0  ;;  %v5409_v10 = vadd.f32 %v13398_v27, %v4898_v2  ;;  %v4899_v11 = vmul.f32 %v13388_v20, %v3197_v6  ;;  %v10909_v12 = vpop.f32.mrb[219].mxu0  ;;  %v5663_v14 = vadd.f32 %v13398_v27, %v5152_v7  ;;  %v5153_v15 = vmul.f32 %v13388_v20, %v4213_v13  ;;  %v11417_v16 = vpop.f32.mrb[219].mxu1  ;;  %v11886_v0 = vld [vmem:[%s12047_s22 + $0x690] sm:$0xff]  }
 0x298   : > { %8699 = vst.msk [vmem:[%s12290_s29 + $0x5a4] sm:$0xf] %vm8337_vm4, %v10286_v5 }
 0x299   : > { %v5915_v17 = vmax.f32 %v5409_v10, 0.0  ;;  %v5410_v18 = vadd.f32 %v13398_v27, %v4899_v11  ;;  %11015 = vmatmul.mubr.msk.bf16.gmra.mrb[68].mxu0 %vm1961_vm3, %v11881_v4  ;;  %v6169_v19 = vmax.f32 %v5663_v14, 0.0  ;;  %v5664_v61 = vadd.f32 %v13398_v27, %v5153_v15  ;;  %11523 = vmatmul.mubr.msk.bf16.gmra.mrb[68].mxu1 %vm1961_vm3, %v11882_v9 }
 0x29a   : > { %11018 = vmatprep.mubr.msk.bf16.mxu0 %vm11996_vm2, %v11994_v1  ;;  %11526 = vmatprep.mubr.msk.bf16.mxu1 %vm11996_vm2, %v11994_v1 }
 0x29b   : > { %v10033_v21 = vpack.c.bf16 %v5915_v17, %v5915_v17  ;;  %v5916_v22 = vmax.f32 %v5410_v18, 0.0  ;;  %v10287_v23 = vpack.c.bf16 %v6169_v19, %v6169_v19  ;;  %v6170_v24 = vmax.f32 %v5664_v61, 0.0  ;;  %v11887_v61 = vld [vmem:[%s12047_s22 + $0x2a0] sm:$0xff]  }
 0x29c   : > { %v3202_v54 = vpop.f32.mrb[220].mxu0  ;;  %v4218_v30 = vpop.f32.mrb[220].mxu1 }
 0x29d   : > { %8446 = vst.msk [vmem:[%s12290_s29 + $0x1b0] sm:$0xf] %vm8337_vm4, %v10033_v21  ;;  %v10034_v25 = vpack.c.bf16 %v5916_v22, %v5916_v22  ;;  %v4900_v26 = vmul.f32 %v13388_v20, %v3202_v54  ;;  %v10912_v28 = vpop.f32.mrb[221].mxu0  ;;  %8700 = vst.msk [vmem:[%s12290_s29 + $0x5a8] sm:$0xf] %vm8337_vm4, %v10287_v23  ;;  %v10288_v62 = vpack.c.bf16 %v6170_v24, %v6170_v24  ;;  %v11420_v34 = vpop.f32.mrb[221].mxu1 }
 0x29e   : > { %v3205_v31 = vpop.f32.mrb[222].mxu0  ;;  %v5154_v33 = vmul.f32 %v13388_v20, %v4218_v30  ;;  %v4221_v39 = vpop.f32.mrb[222].mxu1 }
 0x29f   : > { %8447 = vst.msk [vmem:[%s12290_s29 + $0x1b4] sm:$0xf] %vm8337_vm4, %v10034_v25  ;;  %v5411_v36 = vadd.f32 %v13398_v27, %v4900_v26  ;;  %v4901_v37 = vmul.f32 %v13388_v20, %v3205_v31  ;;  %v10913_v38 = vpop.f32.mrb[223].mxu0  ;;  %8701 = vst.msk [vmem:[%s12290_s29 + $0x5ac] sm:$0xf] %vm8337_vm4, %v10288_v62  ;;  %v5155_v41 = vmul.f32 %v13388_v20, %v4221_v39  ;;  %v11421_v42 = vpop.f32.mrb[223].mxu1 }
 0x2a0   : > { %v5665_v40 = vadd.f32 %v13398_v27, %v5154_v33  ;;  %v11888_v25 = vld [vmem:[%s12047_s22 + $0x698] sm:$0xff]  }
 0x2a1   : > { %v5917_v43 = vmax.f32 %v5411_v36, 0.0  ;;  %v5412_v44 = vadd.f32 %v13398_v27, %v4901_v37  ;;  %11019 = vmatmul.mubr.msk.bf16.gmra.mrb[72].mxu0 %vm1961_vm3, %v11883_v29  ;;  %v5666_v46 = vadd.f32 %v13398_v27, %v5155_v41  ;;  %11527 = vmatmul.mubr.msk.bf16.gmra.mrb[72].mxu1 %vm1961_vm3, %v11884_v35 }
 0x2a2   : > { %v6171_v45 = vmax.f32 %v5665_v40, 0.0  ;;  %11022 = vmatprep.mubr.msk.bf16.mxu0 %vm11996_vm2, %v11994_v1  ;;  %11530 = vmatprep.mubr.msk.bf16.mxu1 %vm11996_vm2, %v11994_v1 }
 0x2a3   : > { %v10035_v47 = vpack.c.bf16 %v5917_v43, %v5917_v43  ;;  %v5918_v48 = vmax.f32 %v5412_v44, 0.0  ;;  %v6172_v50 = vmax.f32 %v5666_v46, 0.0  ;;  %v11889_v46 = vld [vmem:[%s12047_s22 + $0x2a8] sm:$0xff]  }
 0x2a4   : > { %v10289_v49 = vpack.c.bf16 %v6171_v45, %v6171_v45  ;;  %v3210_v51 = vpop.f32.mrb[224].mxu0  ;;  %v4226_v57 = vpop.f32.mrb[224].mxu1 }
 0x2a5   : > { %8448 = vst.msk [vmem:[%s12290_s29 + $0x1b8] sm:$0xf] %vm8337_vm4, %v10035_v47  ;;  %v10036_v52 = vpack.c.bf16 %v5918_v48, %v5918_v48  ;;  %v4902_v53 = vmul.f32 %v13388_v20, %v3210_v51  ;;  %v10916_v55 = vpop.f32.mrb[225].mxu0  ;;  %v10290_v63 = vpack.c.bf16 %v6172_v50, %v6172_v50  ;;  %v5156_v59 = vmul.f32 %v13388_v20, %v4226_v57  ;;  %v11424_v60 = vpop.f32.mrb[225].mxu1 }
 0x2a6   : > { %8702 = vst.msk [vmem:[%s12290_s29 + $0x5b0] sm:$0xf] %vm8337_vm4, %v10289_v49  ;;  %v3213_v58 = vpop.f32.mrb[226].mxu0  ;;  %v4229_v32 = vpop.f32.mrb[226].mxu1 }
 0x2a7   : > { %8449 = vst.msk [vmem:[%s12290_s29 + $0x1bc] sm:$0xf] %vm8337_vm4, %v10036_v52  ;;  %v5413_v2 = vadd.f32 %v13398_v27, %v4902_v53  ;;  %v4903_v3 = vmul.f32 %v13388_v20, %v3213_v58  ;;  %v10917_v4 = vpop.f32.mrb[227].mxu0  ;;  %8703 = vst.msk [vmem:[%s12290_s29 + $0x5b4] sm:$0xf] %vm8337_vm4, %v10290_v63  ;;  %v5667_v5 = vadd.f32 %v13398_v27, %v5156_v59  ;;  %v11425_v7 = vpop.f32.mrb[227].mxu1 }
 0x2a8   : > { %v5157_v6 = vmul.f32 %v13388_v20, %v4229_v32  ;;  %v11890_v52 = vld [vmem:[%s12047_s22 + $0x6a0] sm:$0xff]  }
 0x2a9   : > { %v5919_v8 = vmax.f32 %v5413_v2, 0.0  ;;  %v5414_v9 = vadd.f32 %v13398_v27, %v4903_v3  ;;  %11023 = vmatmul.mubr.msk.bf16.gmra.mrb[76].mxu0 %vm1961_vm3, %v11885_v56  ;;  %v6173_v10 = vmax.f32 %v5667_v5, 0.0  ;;  %11531 = vmatmul.mubr.msk.bf16.gmra.mrb[76].mxu1 %vm1961_vm3, %v11886_v0 }
 0x2aa   : > { %v5668_v11 = vadd.f32 %v13398_v27, %v5157_v6  ;;  %11026 = vmatprep.mubr.msk.bf16.mxu0 %vm11996_vm2, %v11994_v1  ;;  %11534 = vmatprep.mubr.msk.bf16.mxu1 %vm11996_vm2, %v11994_v1 }
 0x2ab   : > { %v10037_v12 = vpack.c.bf16 %v5919_v8, %v5919_v8  ;;  %v5920_v13 = vmax.f32 %v5414_v9, 0.0  ;;  %v10291_v14 = vpack.c.bf16 %v6173_v10, %v6173_v10 }
 0x2ac   : > { %v6174_v15 = vmax.f32 %v5668_v11, 0.0  ;;  %v3218_v16 = vpop.f32.mrb[228].mxu0  ;;  %v4234_v21 = vpop.f32.mrb[228].mxu1  ;;  %v11891_v11 = vld [vmem:[%s12047_s22 + $0x2b0] sm:$0xff]  }
 0x2ad   : > { %8450 = vst.msk [vmem:[%s12290_s29 + $0x1c0] sm:$0xf] %vm8337_vm4, %v10037_v12  ;;  %v10038_v17 = vpack.c.bf16 %v5920_v13, %v5920_v13  ;;  %v4904_v18 = vmul.f32 %v13388_v20, %v3218_v16  ;;  %v10920_v19 = vpop.f32.mrb[229].mxu0  ;;  %8704 = vst.msk [vmem:[%s12290_s29 + $0x5b8] sm:$0xf] %vm8337_vm4, %v10291_v14  ;;  %v5158_v24 = vmul.f32 %v13388_v20, %v4234_v21  ;;  %v11428_v54 = vpop.f32.mrb[229].mxu1 }
 0x2ae   : > { %v10292_v22 = vpack.c.bf16 %v6174_v15, %v6174_v15  ;;  %v3221_v23 = vpop.f32.mrb[230].mxu0  ;;  %v4237_v30 = vpop.f32.mrb[230].mxu1 }
 0x2af   : > { %8451 = vst.msk [vmem:[%s12290_s29 + $0x1c4] sm:$0xf] %vm8337_vm4, %v10038_v17  ;;  %v5415_v26 = vadd.f32 %v13398_v27, %v4904_v18  ;;  %v4905_v28 = vmul.f32 %v13388_v20, %v3221_v23  ;;  %v10921_v29 = vpop.f32.mrb[231].mxu0  ;;  %v5669_v62 = vadd.f32 %v13398_v27, %v5158_v24  ;;  %v5159_v31 = vmul.f32 %v13388_v20, %v4237_v30  ;;  %v11429_v33 = vpop.f32.mrb[231].mxu1  ;;  %v11892_v17 = vld [vmem:[%s12047_s22 + $0x6a8] sm:$0xff]  }
 0x2b0   : > { %8705 = vst.msk [vmem:[%s12290_s29 + $0x5bc] sm:$0xf] %vm8337_vm4, %v10292_v22 }
 0x2b1   : > { %v5921_v34 = vmax.f32 %v5415_v26, 0.0  ;;  %v5416_v35 = vadd.f32 %v13398_v27, %v4905_v28  ;;  %11027 = vmatmul.mubr.msk.bf16.gmra.mrb[80].mxu0 %vm1961_vm3, %v11887_v61  ;;  %v6175_v36 = vmax.f32 %v5669_v62, 0.0  ;;  %v5670_v37 = vadd.f32 %v13398_v27, %v5159_v31  ;;  %11535 = vmatmul.mubr.msk.bf16.gmra.mrb[80].mxu1 %vm1961_vm3, %v11888_v25 }
 0x2b2   : > { %11030 = vmatprep.mubr.msk.bf16.mxu0 %vm11996_vm2, %v11994_v1  ;;  %11538 = vmatprep.mubr.msk.bf16.mxu1 %vm11996_vm2, %v11994_v1 }
 0x2b3   : > { %v10039_v38 = vpack.c.bf16 %v5921_v34, %v5921_v34  ;;  %v5922_v39 = vmax.f32 %v5416_v35, 0.0  ;;  %v10293_v40 = vpack.c.bf16 %v6175_v36, %v6175_v36  ;;  %v6176_v41 = vmax.f32 %v5670_v37, 0.0  ;;  %v11893_v37 = vld [vmem:[%s12047_s22 + $0x2b8] sm:$0xff]  }
 0x2b4   : > { %v3226_v42 = vpop.f32.mrb[232].mxu0  ;;  %v4242_v47 = vpop.f32.mrb[232].mxu1 }
 0x2b5   : > { %8452 = vst.msk [vmem:[%s12290_s29 + $0x1c8] sm:$0xf] %vm8337_vm4, %v10039_v38  ;;  %v10040_v43 = vpack.c.bf16 %v5922_v39, %v5922_v39  ;;  %v4906_v44 = vmul.f32 %v13388_v20, %v3226_v42  ;;  %v10924_v45 = vpop.f32.mrb[233].mxu0  ;;  %8706 = vst.msk [vmem:[%s12290_s29 + $0x5c0] sm:$0xf] %vm8337_vm4, %v10293_v40  ;;  %v10294_v48 = vpack.c.bf16 %v6176_v41, %v6176_v41  ;;  %v11432_v51 = vpop.f32.mrb[233].mxu1 }
 0x2b6   : > { %v3229_v49 = vpop.f32.mrb[234].mxu0  ;;  %v5160_v50 = vmul.f32 %v13388_v20, %v4242_v47  ;;  %v4245_v57 = vpop.f32.mrb[234].mxu1 }
 0x2b7   : > { %8453 = vst.msk [vmem:[%s12290_s29 + $0x1cc] sm:$0xf] %vm8337_vm4, %v10040_v43  ;;  %v5417_v53 = vadd.f32 %v13398_v27, %v4906_v44  ;;  %v4907_v55 = vmul.f32 %v13388_v20, %v3229_v49  ;;  %v10925_v56 = vpop.f32.mrb[235].mxu0  ;;  %8707 = vst.msk [vmem:[%s12290_s29 + $0x5c4] sm:$0xf] %vm8337_vm4, %v10294_v48  ;;  %v5161_v58 = vmul.f32 %v13388_v20, %v4245_v57  ;;  %v11433_v59 = vpop.f32.mrb[235].mxu1 }
 0x2b8   : > { %v5671_v63 = vadd.f32 %v13398_v27, %v5160_v50  ;;  %v11894_v43 = vld [vmem:[%s12047_s22 + $0x6b0] sm:$0xff]   ;;  %v13762_v49 = vld [vmem:[%s15173_s2] ss:$0 sm:$0xff] }
 0x2b9   : > { %v5923_v60 = vmax.f32 %v5417_v53, 0.0  ;;  %v5418_v0 = vadd.f32 %v13398_v27, %v4907_v55  ;;  %11031 = vmatmul.mubr.msk.bf16.gmra.mrb[84].mxu0 %vm1961_vm3, %v11889_v46  ;;  %v5672_v3 = vadd.f32 %v13398_v27, %v5161_v58  ;;  %11539 = vmatmul.mubr.msk.bf16.gmra.mrb[84].mxu1 %vm1961_vm3, %v11890_v52  ;;  %v13770_v55 = vld [vmem:[%s15173_s2 + $0x1] ss:$0 sm:$0xff] }
 0x2ba   : > { %v6177_v2 = vmax.f32 %v5671_v63, 0.0  ;;  %11034 = vmatprep.mubr.msk.bf16.mxu0 %vm11996_vm2, %v11994_v1  ;;  %11542 = vmatprep.mubr.msk.bf16.mxu1 %vm11996_vm2, %v11994_v1 }
 0x2bb   : > { %v10041_v4 = vpack.c.bf16 %v5923_v60, %v5923_v60  ;;  %v5924_v32 = vmax.f32 %v5418_v0, 0.0  ;;  %v6178_v6 = vmax.f32 %v5672_v3, 0.0  ;;  %v11895_v3 = vld [vmem:[%s12047_s22 + $0x2c0] sm:$0xff]  }
 0x2bc   : > { %v10295_v5 = vpack.c.bf16 %v6177_v2, %v6177_v2  ;;  %v3234_v7 = vpop.f32.mrb[236].mxu0  ;;  %v4250_v12 = vpop.f32.mrb[236].mxu1 }
 0x2bd   : > { %8454 = vst.msk [vmem:[%s12290_s29 + $0x1d0] sm:$0xf] %vm8337_vm4, %v10041_v4  ;;  %v10042_v8 = vpack.c.bf16 %v5924_v32, %v5924_v32  ;;  %v4908_v9 = vmul.f32 %v13388_v20, %v3234_v7  ;;  %v10928_v10 = vpop.f32.mrb[237].mxu0  ;;  %v10296_v13 = vpack.c.bf16 %v6178_v6, %v6178_v6  ;;  %v5162_v15 = vmul.f32 %v13388_v20, %v4250_v12  ;;  %v11436_v16 = vpop.f32.mrb[237].mxu1 }
 0x2be   : > { %8708 = vst.msk [vmem:[%s12290_s29 + $0x5c8] sm:$0xf] %vm8337_vm4, %v10295_v5  ;;  %v3237_v14 = vpop.f32.mrb[238].mxu0  ;;  %v4253_v21 = vpop.f32.mrb[238].mxu1 }
 0x2bf   : > { %8455 = vst.msk [vmem:[%s12290_s29 + $0x1d4] sm:$0xf] %vm8337_vm4, %v10042_v8  ;;  %v5419_v18 = vadd.f32 %v13398_v27, %v4908_v9  ;;  %v4909_v19 = vmul.f32 %v13388_v20, %v3237_v14  ;;  %v10929_v61 = vpop.f32.mrb[239].mxu0  ;;  %8709 = vst.msk [vmem:[%s12290_s29 + $0x5cc] sm:$0xf] %vm8337_vm4, %v10296_v13  ;;  %v5673_v22 = vadd.f32 %v13398_v27, %v5162_v15  ;;  %v11437_v24 = vpop.f32.mrb[239].mxu1 }
 0x2c0   : > { %v5163_v23 = vmul.f32 %v13388_v20, %v4253_v21  ;;  %v11896_v8 = vld [vmem:[%s12047_s22 + $0x6b8] sm:$0xff]  }
 0x2c1   : > { %v5925_v54 = vmax.f32 %v5419_v18, 0.0  ;;  %v5420_v25 = vadd.f32 %v13398_v27, %v4909_v19  ;;  %11035 = vmatmul.mubr.msk.bf16.gmra.mrb[88].mxu0 %vm1961_vm3, %v11891_v11  ;;  %v6179_v26 = vmax.f32 %v5673_v22, 0.0  ;;  %11543 = vmatmul.mubr.msk.bf16.gmra.mrb[88].mxu1 %vm1961_vm3, %v11892_v17 }
 0x2c2   : > { %v5674_v28 = vadd.f32 %v13398_v27, %v5163_v23  ;;  %11038 = vmatprep.mubr.msk.bf16.mxu0 %vm11996_vm2, %v11994_v1  ;;  %11546 = vmatprep.mubr.msk.bf16.mxu1 %vm11996_vm2, %v11994_v1 }
 0x2c3   : > { %v10043_v29 = vpack.c.bf16 %v5925_v54, %v5925_v54  ;;  %v5926_v30 = vmax.f32 %v5420_v25, 0.0  ;;  %v10297_v62 = vpack.c.bf16 %v6179_v26, %v6179_v26 }
 0x2c4   : > { %v6180_v31 = vmax.f32 %v5674_v28, 0.0  ;;  %v3242_v33 = vpop.f32.mrb[240].mxu0  ;;  %v4258_v38 = vpop.f32.mrb[240].mxu1  ;;  %v11897_v28 = vld [vmem:[%s12047_s22 + $0x2c8] sm:$0xff]  }
 0x2c5   : > { %8456 = vst.msk [vmem:[%s12290_s29 + $0x1d8] sm:$0xf] %vm8337_vm4, %v10043_v29  ;;  %v10044_v34 = vpack.c.bf16 %v5926_v30, %v5926_v30  ;;  %v4910_v35 = vmul.f32 %v13388_v20, %v3242_v33  ;;  %v10932_v36 = vpop.f32.mrb[241].mxu0  ;;  %8710 = vst.msk [vmem:[%s12290_s29 + $0x5d0] sm:$0xf] %vm8337_vm4, %v10297_v62  ;;  %v5164_v41 = vmul.f32 %v13388_v20, %v4258_v38  ;;  %v11440_v42 = vpop.f32.mrb[241].mxu1 }
 0x2c6   : > { %v10298_v39 = vpack.c.bf16 %v6180_v31, %v6180_v31  ;;  %v3245_v40 = vpop.f32.mrb[242].mxu0  ;;  %v4261_v47 = vpop.f32.mrb[242].mxu1 }
 0x2c7   : > { %8457 = vst.msk [vmem:[%s12290_s29 + $0x1dc] sm:$0xf] %vm8337_vm4, %v10044_v34  ;;  %v5421_v44 = vadd.f32 %v13398_v27, %v4910_v35  ;;  %v4911_v45 = vmul.f32 %v13388_v20, %v3245_v40  ;;  %v10933_v46 = vpop.f32.mrb[243].mxu0  ;;  %v5675_v48 = vadd.f32 %v13398_v27, %v5164_v41  ;;  %v5165_v50 = vmul.f32 %v13762_v49, %v4261_v47  ;;  %v11441_v51 = vpop.f32.mrb[243].mxu1  ;;  %v11898_v34 = vld [vmem:[%s12047_s22 + $0x6c0] sm:$0xff]  }
 0x2c8   : > { %8711 = vst.msk [vmem:[%s12290_s29 + $0x5d4] sm:$0xf] %vm8337_vm4, %v10298_v39 }
 0x2c9   : > { %v5927_v52 = vmax.f32 %v5421_v44, 0.0  ;;  %v5422_v53 = vadd.f32 %v13398_v27, %v4911_v45  ;;  %11039 = vmatmul.mubr.msk.bf16.gmra.mrb[92].mxu0 %vm1961_vm3, %v11893_v37  ;;  %v6181_v20 = vmax.f32 %v5675_v48, 0.0  ;;  %v5676_v56 = vadd.f32 %v13770_v55, %v5165_v50  ;;  %11547 = vmatmul.mubr.msk.bf16.gmra.mrb[92].mxu1 %vm1961_vm3, %v11894_v43 }
 0x2ca   : > { %11042 = vmatprep.mubr.msk.bf16.mxu0 %vm11996_vm2, %v11994_v1  ;;  %11550 = vmatprep.mubr.msk.bf16.mxu1 %vm11996_vm2, %v11994_v1 }
 0x2cb   : > { %v10045_v57 = vpack.c.bf16 %v5927_v52, %v5927_v52  ;;  %v5928_v63 = vmax.f32 %v5422_v53, 0.0  ;;  %v10299_v27 = vpack.c.bf16 %v6181_v20, %v6181_v20  ;;  %v6182_v58 = vmax.f32 %v5676_v56, 0.0  ;;  %v11899_v56 = vld [vmem:[%s12047_s22 + $0x2d0] sm:$0xff]  }
 0x2cc   : > { %v3250_v59 = vpop.f32.mrb[244].mxu0  ;;  %v4266_v4 = vpop.f32.mrb[244].mxu1 }
 0x2cd   : > { %8458 = vst.msk [vmem:[%s12290_s29 + $0x1e0] sm:$0xf] %vm8337_vm4, %v10045_v57  ;;  %v10046_v60 = vpack.c.bf16 %v5928_v63, %v5928_v63  ;;  %v4912_v0 = vmul.f32 %v13762_v49, %v3250_v59  ;;  %v10936_v2 = vpop.f32.mrb[245].mxu0  ;;  %8712 = vst.msk [vmem:[%s12290_s29 + $0x5d8] sm:$0xf] %vm8337_vm4, %v10299_v27  ;;  %v10300_v32 = vpack.c.bf16 %v6182_v58, %v6182_v58  ;;  %v11444_v7 = vpop.f32.mrb[245].mxu1 }
 0x2ce   : > { %v3253_v5 = vpop.f32.mrb[246].mxu0  ;;  %v5166_v6 = vmul.f32 %v13762_v49, %v4266_v4  ;;  %v4269_v12 = vpop.f32.mrb[246].mxu1 }
 0x2cf   : > { %8459 = vst.msk [vmem:[%s12290_s29 + $0x1e4] sm:$0xf] %vm8337_vm4, %v10046_v60  ;;  %v5423_v9 = vadd.f32 %v13770_v55, %v4912_v0  ;;  %v4913_v10 = vmul.f32 %v13762_v49, %v3253_v5  ;;  %v10937_v11 = vpop.f32.mrb[247].mxu0  ;;  %8713 = vst.msk [vmem:[%s12290_s29 + $0x5dc] sm:$0xf] %vm8337_vm4, %v10300_v32  ;;  %v5167_v14 = vmul.f32 %v13762_v49, %v4269_v12  ;;  %v11445_v15 = vpop.f32.mrb[247].mxu1 }
 0x2d0   : > { %v5677_v13 = vadd.f32 %v13770_v55, %v5166_v6  ;;  %v11900_v60 = vld [vmem:[%s12047_s22 + $0x6c8] sm:$0xff]  }
 0x2d1   : > { %v5929_v16 = vmax.f32 %v5423_v9, 0.0  ;;  %v5424_v17 = vadd.f32 %v13770_v55, %v4913_v10  ;;  %11043 = vmatmul.mubr.msk.bf16.gmra.mrb[96].mxu0 %vm1961_vm3, %v11895_v3  ;;  %v5678_v19 = vadd.f32 %v13770_v55, %v5167_v14  ;;  %11551 = vmatmul.mubr.msk.bf16.gmra.mrb[96].mxu1 %vm1961_vm3, %v11896_v8 }
 0x2d2   : > { %v6183_v18 = vmax.f32 %v5677_v13, 0.0  ;;  %11046 = vmatprep.mubr.msk.bf16.mxu0 %vm11996_vm2, %v11994_v1  ;;  %11554 = vmatprep.mubr.msk.bf16.mxu1 %vm11996_vm2, %v11994_v1 }
 0x2d3   : > { %v10047_v61 = vpack.c.bf16 %v5929_v16, %v5929_v16  ;;  %v5930_v21 = vmax.f32 %v5424_v17, 0.0  ;;  %v6184_v23 = vmax.f32 %v5678_v19, 0.0  ;;  %v11901_v19 = vld [vmem:[%s12047_s22 + $0x2d8] sm:$0xff]  }
 0x2d4   : > { %v10301_v22 = vpack.c.bf16 %v6183_v18, %v6183_v18  ;;  %v3258_v24 = vpop.f32.mrb[248].mxu0  ;;  %v4274_v29 = vpop.f32.mrb[248].mxu1 }
 0x2d5   : > { %8460 = vst.msk [vmem:[%s12290_s29 + $0x1e8] sm:$0xf] %vm8337_vm4, %v10047_v61  ;;  %v10048_v54 = vpack.c.bf16 %v5930_v21, %v5930_v21  ;;  %v4914_v25 = vmul.f32 %v13762_v49, %v3258_v24  ;;  %v10940_v26 = vpop.f32.mrb[249].mxu0  ;;  %v10302_v30 = vpack.c.bf16 %v6184_v23, %v6184_v23  ;;  %v5168_v31 = vmul.f32 %v13762_v49, %v4274_v29  ;;  %v11448_v33 = vpop.f32.mrb[249].mxu1 }
 0x2d6   : > { %8714 = vst.msk [vmem:[%s12290_s29 + $0x5e0] sm:$0xf] %vm8337_vm4, %v10301_v22  ;;  %v3261_v62 = vpop.f32.mrb[250].mxu0  ;;  %v4277_v38 = vpop.f32.mrb[250].mxu1 }
 0x2d7   : > { %8461 = vst.msk [vmem:[%s12290_s29 + $0x1ec] sm:$0xf] %vm8337_vm4, %v10048_v54  ;;  %v5425_v35 = vadd.f32 %v13770_v55, %v4914_v25  ;;  %v4915_v36 = vmul.f32 %v13762_v49, %v3261_v62  ;;  %v10941_v37 = vpop.f32.mrb[251].mxu0  ;;  %8715 = vst.msk [vmem:[%s12290_s29 + $0x5e4] sm:$0xf] %vm8337_vm4, %v10302_v30  ;;  %v5679_v39 = vadd.f32 %v13770_v55, %v5168_v31  ;;  %v11449_v41 = vpop.f32.mrb[251].mxu1 }
 0x2d8   : > { %v5169_v40 = vmul.f32 %v13762_v49, %v4277_v38  ;;  %v11902_v54 = vld [vmem:[%s12047_s22 + $0x6d0] sm:$0xff]  }
 0x2d9   : > { %v5931_v42 = vmax.f32 %v5425_v35, 0.0  ;;  %v5426_v43 = vadd.f32 %v13770_v55, %v4915_v36  ;;  %11047 = vmatmul.mubr.msk.bf16.gmra.mrb[100].mxu0 %vm1961_vm3, %v11897_v28  ;;  %v6185_v44 = vmax.f32 %v5679_v39, 0.0  ;;  %11555 = vmatmul.mubr.msk.bf16.gmra.mrb[100].mxu1 %vm1961_vm3, %v11898_v34 }
 0x2da   : > { %v5680_v45 = vadd.f32 %v13770_v55, %v5169_v40  ;;  %11050 = vmatprep.mubr.msk.bf16.mxu0 %vm11996_vm2, %v11994_v1  ;;  %11558 = vmatprep.mubr.msk.bf16.mxu1 %vm11996_vm2, %v11994_v1 }
 0x2db   : > { %v10049_v46 = vpack.c.bf16 %v5931_v42, %v5931_v42  ;;  %v5932_v47 = vmax.f32 %v5426_v43, 0.0  ;;  %v10303_v48 = vpack.c.bf16 %v6185_v44, %v6185_v44 }
 0x2dc   : > { %v6186_v50 = vmax.f32 %v5680_v45, 0.0  ;;  %v3266_v51 = vpop.f32.mrb[252].mxu0  ;;  %v4282_v57 = vpop.f32.mrb[252].mxu1  ;;  %v11903_v45 = vld [vmem:[%s12047_s22 + $0x2e0] sm:$0xff]  }
 0x2dd   : > { %8462 = vst.msk [vmem:[%s12290_s29 + $0x1f0] sm:$0xf] %vm8337_vm4, %v10049_v46  ;;  %v10050_v52 = vpack.c.bf16 %v5932_v47, %v5932_v47  ;;  %v4916_v53 = vmul.f32 %v13762_v49, %v3266_v51  ;;  %v10944_v20 = vpop.f32.mrb[253].mxu0  ;;  %8716 = vst.msk [vmem:[%s12290_s29 + $0x5e8] sm:$0xf] %vm8337_vm4, %v10303_v48  ;;  %v5170_v58 = vmul.f32 %v13762_v49, %v4282_v57  ;;  %v11452_v59 = vpop.f32.mrb[253].mxu1 }
 0x2de   : > { %v10304_v63 = vpack.c.bf16 %v6186_v50, %v6186_v50  ;;  %v3269_v27 = vpop.f32.mrb[254].mxu0  ;;  %v4285_v4 = vpop.f32.mrb[254].mxu1 }
 0x2df   : > { %8463 = vst.msk [vmem:[%s12290_s29 + $0x1f4] sm:$0xf] %vm8337_vm4, %v10050_v52  ;;  %v5427_v0 = vadd.f32 %v13770_v55, %v4916_v53  ;;  %v4917_v2 = vmul.f32 %v13762_v49, %v3269_v27  ;;  %v10945_v3 = vpop.f32.mrb[255].mxu0  ;;  %v5681_v32 = vadd.f32 %v13770_v55, %v5170_v58  ;;  %v5171_v5 = vmul.f32 %v13762_v49, %v4285_v4  ;;  %v11453_v6 = vpop.f32.mrb[255].mxu1  ;;  %v11904_v52 = vld [vmem:[%s12047_s22 + $0x6d8] sm:$0xff]  }
 0x2e0   : > { %8717 = vst.msk [vmem:[%s12290_s29 + $0x5ec] sm:$0xf] %vm8337_vm4, %v10304_v63 }
 0x2e1   : > { %v5933_v7 = vmax.f32 %v5427_v0, 0.0  ;;  %v5428_v8 = vadd.f32 %v13770_v55, %v4917_v2  ;;  %11051 = vmatmul.mubr.msk.bf16.gmra.mrb[104].mxu0 %vm1961_vm3, %v11899_v56  ;;  %v6187_v9 = vmax.f32 %v5681_v32, 0.0  ;;  %v5682_v10 = vadd.f32 %v13770_v55, %v5171_v5  ;;  %11559 = vmatmul.mubr.msk.bf16.gmra.mrb[104].mxu1 %vm1961_vm3, %v11900_v60 }
 0x2e2   : > { %11054 = vmatprep.mubr.msk.bf16.mxu0 %vm11996_vm2, %v11994_v1  ;;  %11562 = vmatprep.mubr.msk.bf16.mxu1 %vm11996_vm2, %v11994_v1 }
 0x2e3   : > { %v10051_v11 = vpack.c.bf16 %v5933_v7, %v5933_v7  ;;  %v5934_v12 = vmax.f32 %v5428_v8, 0.0  ;;  %v10305_v13 = vpack.c.bf16 %v6187_v9, %v6187_v9  ;;  %v6188_v14 = vmax.f32 %v5682_v10, 0.0  ;;  %v11905_v10 = vld [vmem:[%s12047_s22 + $0x2e8] sm:$0xff]  }
 0x2e4   : > { %v3274_v15 = vpop.f32.mrb[0].mxu0  ;;  %v4290_v61 = vpop.f32.mrb[0].mxu1 }
 0x2e5   : > { %8464 = vst.msk [vmem:[%s12290_s29 + $0x1f8] sm:$0xf] %vm8337_vm4, %v10051_v11  ;;  %v10052_v16 = vpack.c.bf16 %v5934_v12, %v5934_v12  ;;  %v4918_v17 = vmul.f32 %v13762_v49, %v3274_v15  ;;  %v10948_v18 = vpop.f32.mrb[1].mxu0  ;;  %8718 = vst.msk [vmem:[%s12290_s29 + $0x5f0] sm:$0xf] %vm8337_vm4, %v10305_v13  ;;  %v10306_v21 = vpack.c.bf16 %v6188_v14, %v6188_v14  ;;  %v11456_v24 = vpop.f32.mrb[1].mxu1 }
 0x2e6   : > { %v3277_v22 = vpop.f32.mrb[2].mxu0  ;;  %v5172_v23 = vmul.f32 %v13762_v49, %v4290_v61  ;;  %v4293_v29 = vpop.f32.mrb[2].mxu1 }
 0x2e7   : > { %8465 = vst.msk [vmem:[%s12290_s29 + $0x1fc] sm:$0xf] %vm8337_vm4, %v10052_v16  ;;  %v5429_v25 = vadd.f32 %v13770_v55, %v4918_v17  ;;  %v4919_v26 = vmul.f32 %v13762_v49, %v3277_v22  ;;  %v10949_v28 = vpop.f32.mrb[3].mxu0  ;;  %8719 = vst.msk [vmem:[%s12290_s29 + $0x5f4] sm:$0xf] %vm8337_vm4, %v10306_v21  ;;  %v5173_v62 = vmul.f32 %v13762_v49, %v4293_v29  ;;  %v11457_v31 = vpop.f32.mrb[3].mxu1 }
 0x2e8   : > { %v5683_v30 = vadd.f32 %v13770_v55, %v5172_v23  ;;  %v11906_v16 = vld [vmem:[%s12047_s22 + $0x6e0] sm:$0xff]  }
 0x2e9   : > { %v5935_v33 = vmax.f32 %v5429_v25, 0.0  ;;  %v5430_v34 = vadd.f32 %v13770_v55, %v4919_v26  ;;  %11055 = vmatmul.mubr.msk.bf16.gmra.mrb[108].mxu0 %vm1961_vm3, %v11901_v19  ;;  %v5684_v36 = vadd.f32 %v13770_v55, %v5173_v62  ;;  %11563 = vmatmul.mubr.msk.bf16.gmra.mrb[108].mxu1 %vm1961_vm3, %v11902_v54 }
 0x2ea   : > { %v6189_v35 = vmax.f32 %v5683_v30, 0.0  ;;  %11058 = vmatprep.mubr.msk.bf16.mxu0 %vm11996_vm2, %v11994_v1  ;;  %11566 = vmatprep.mubr.msk.bf16.mxu1 %vm11996_vm2, %v11994_v1 }
 0x2eb   : > { %v10053_v37 = vpack.c.bf16 %v5935_v33, %v5935_v33  ;;  %v5936_v38 = vmax.f32 %v5430_v34, 0.0  ;;  %v6190_v40 = vmax.f32 %v5684_v36, 0.0  ;;  %v11907_v36 = vld [vmem:[%s12047_s22 + $0x2f0] sm:$0xff]  }
 0x2ec   : > { %v10307_v39 = vpack.c.bf16 %v6189_v35, %v6189_v35  ;;  %v3282_v41 = vpop.f32.mrb[4].mxu0  ;;  %v4298_v46 = vpop.f32.mrb[4].mxu1 }
 0x2ed   : > { %8466 = vst.msk [vmem:[%s12290_s29 + $0x200] sm:$0xf] %vm8337_vm4, %v10053_v37  ;;  %v10054_v42 = vpack.c.bf16 %v5936_v38, %v5936_v38  ;;  %v4920_v43 = vmul.f32 %v13762_v49, %v3282_v41  ;;  %v10952_v44 = vpop.f32.mrb[5].mxu0  ;;  %v10308_v47 = vpack.c.bf16 %v6190_v40, %v6190_v40  ;;  %v5174_v50 = vmul.f32 %v13762_v49, %v4298_v46  ;;  %v11460_v51 = vpop.f32.mrb[5].mxu1 }
 0x2ee   : > { %8720 = vst.msk [vmem:[%s12290_s29 + $0x5f8] sm:$0xf] %vm8337_vm4, %v10307_v39  ;;  %v3285_v48 = vpop.f32.mrb[6].mxu0  ;;  %v4301_v57 = vpop.f32.mrb[6].mxu1 }
 0x2ef   : > { %8467 = vst.msk [vmem:[%s12290_s29 + $0x204] sm:$0xf] %vm8337_vm4, %v10054_v42  ;;  %v5431_v53 = vadd.f32 %v13770_v55, %v4920_v43  ;;  %v4921_v20 = vmul.f32 %v13762_v49, %v3285_v48  ;;  %v10953_v56 = vpop.f32.mrb[7].mxu0  ;;  %8721 = vst.msk [vmem:[%s12290_s29 + $0x5fc] sm:$0xf] %vm8337_vm4, %v10308_v47  ;;  %v5685_v63 = vadd.f32 %v13770_v55, %v5174_v50  ;;  %v11461_v58 = vpop.f32.mrb[7].mxu1 }
 0x2f0   : > { %v5175_v27 = vmul.f32 %v13762_v49, %v4301_v57  ;;  %v11908_v42 = vld [vmem:[%s12047_s22 + $0x6e8] sm:$0xff]  }
 0x2f1   : > { %v5937_v59 = vmax.f32 %v5431_v53, 0.0  ;;  %v5432_v60 = vadd.f32 %v13770_v55, %v4921_v20  ;;  %11059 = vmatmul.mubr.msk.bf16.gmra.mrb[112].mxu0 %vm1961_vm3, %v11903_v45  ;;  %v6191_v0 = vmax.f32 %v5685_v63, 0.0  ;;  %11567 = vmatmul.mubr.msk.bf16.gmra.mrb[112].mxu1 %vm1961_vm3, %v11904_v52 }
 0x2f2   : > { %v5686_v2 = vadd.f32 %v13770_v55, %v5175_v27  ;;  %11062 = vmatprep.mubr.msk.bf16.mxu0 %vm11996_vm2, %v11994_v1  ;;  %11570 = vmatprep.mubr.msk.bf16.mxu1 %vm11996_vm2, %v11994_v1 }
 0x2f3   : > { %v10055_v3 = vpack.c.bf16 %v5937_v59, %v5937_v59  ;;  %v5938_v4 = vmax.f32 %v5432_v60, 0.0  ;;  %v10309_v32 = vpack.c.bf16 %v6191_v0, %v6191_v0 }
 0x2f4   : > { %v6192_v5 = vmax.f32 %v5686_v2, 0.0  ;;  %v3290_v6 = vpop.f32.mrb[8].mxu0  ;;  %v4306_v11 = vpop.f32.mrb[8].mxu1  ;;  %v11909_v2 = vld [vmem:[%s12047_s22 + $0x2f8] sm:$0xff]  }
 0x2f5   : > { %8468 = vst.msk [vmem:[%s12290_s29 + $0x208] sm:$0xf] %vm8337_vm4, %v10055_v3  ;;  %v10056_v7 = vpack.c.bf16 %v5938_v4, %v5938_v4  ;;  %v4922_v8 = vmul.f32 %v13762_v49, %v3290_v6  ;;  %v10956_v9 = vpop.f32.mrb[9].mxu0  ;;  %8722 = vst.msk [vmem:[%s12290_s29 + $0x600] sm:$0xf] %vm8337_vm4, %v10309_v32  ;;  %v5176_v14 = vmul.f32 %v13762_v49, %v4306_v11  ;;  %v11464_v15 = vpop.f32.mrb[9].mxu1 }
 0x2f6   : > { %v10310_v12 = vpack.c.bf16 %v6192_v5, %v6192_v5  ;;  %v3293_v13 = vpop.f32.mrb[10].mxu0  ;;  %v4309_v61 = vpop.f32.mrb[10].mxu1 }
 0x2f7   : > { %8469 = vst.msk [vmem:[%s12290_s29 + $0x20c] sm:$0xf] %vm8337_vm4, %v10056_v7  ;;  %v5433_v17 = vadd.f32 %v13770_v55, %v4922_v8  ;;  %v4923_v18 = vmul.f32 %v13762_v49, %v3293_v13  ;;  %v10957_v19 = vpop.f32.mrb[11].mxu0  ;;  %v5687_v21 = vadd.f32 %v13770_v55, %v5176_v14  ;;  %v5177_v22 = vmul.f32 %v13762_v49, %v4309_v61  ;;  %v11465_v23 = vpop.f32.mrb[11].mxu1  ;;  %v11910_v7 = vld [vmem:[%s12047_s22 + $0x6f0] sm:$0xff]  }
 0x2f8   : > { %8723 = vst.msk [vmem:[%s12290_s29 + $0x604] sm:$0xf] %vm8337_vm4, %v10310_v12 }
 0x2f9   : > { %v5939_v24 = vmax.f32 %v5433_v17, 0.0  ;;  %v5434_v54 = vadd.f32 %v13770_v55, %v4923_v18  ;;  %11063 = vmatmul.mubr.msk.bf16.gmra.mrb[116].mxu0 %vm1961_vm3, %v11905_v10  ;;  %v6193_v25 = vmax.f32 %v5687_v21, 0.0  ;;  %v5688_v26 = vadd.f32 %v13770_v55, %v5177_v22  ;;  %11571 = vmatmul.mubr.msk.bf16.gmra.mrb[116].mxu1 %vm1961_vm3, %v11906_v16 }
 0x2fa   : > { %11066 = vmatprep.mubr.msk.bf16.mxu0 %vm11996_vm2, %v11994_v1  ;;  %11574 = vmatprep.mubr.msk.bf16.mxu1 %vm11996_vm2, %v11994_v1 }
 0x2fb   : > { %v10057_v28 = vpack.c.bf16 %v5939_v24, %v5939_v24  ;;  %v5940_v29 = vmax.f32 %v5434_v54, 0.0  ;;  %v10311_v30 = vpack.c.bf16 %v6193_v25, %v6193_v25  ;;  %v6194_v62 = vmax.f32 %v5688_v26, 0.0  ;;  %v11911_v26 = vld [vmem:[%s12047_s22 + $0x300] sm:$0xff]  }
 0x2fc   : > { %v3298_v31 = vpop.f32.mrb[12].mxu0  ;;  %v4314_v37 = vpop.f32.mrb[12].mxu1 }
 0x2fd   : > { %8470 = vst.msk [vmem:[%s12290_s29 + $0x210] sm:$0xf] %vm8337_vm4, %v10057_v28  ;;  %v10058_v33 = vpack.c.bf16 %v5940_v29, %v5940_v29  ;;  %v4924_v34 = vmul.f32 %v13762_v49, %v3298_v31  ;;  %v10960_v35 = vpop.f32.mrb[13].mxu0  ;;  %8724 = vst.msk [vmem:[%s12290_s29 + $0x608] sm:$0xf] %vm8337_vm4, %v10311_v30  ;;  %v10312_v38 = vpack.c.bf16 %v6194_v62, %v6194_v62  ;;  %v11468_v41 = vpop.f32.mrb[13].mxu1 }
 0x2fe   : > { %v3301_v39 = vpop.f32.mrb[14].mxu0  ;;  %v5178_v40 = vmul.f32 %v13762_v49, %v4314_v37  ;;  %v4317_v46 = vpop.f32.mrb[14].mxu1 }
 0x2ff   : > { %8471 = vst.msk [vmem:[%s12290_s29 + $0x214] sm:$0xf] %vm8337_vm4, %v10058_v33  ;;  %v5435_v43 = vadd.f32 %v13770_v55, %v4924_v34  ;;  %v4925_v44 = vmul.f32 %v13762_v49, %v3301_v39  ;;  %v10961_v45 = vpop.f32.mrb[15].mxu0  ;;  %8725 = vst.msk [vmem:[%s12290_s29 + $0x60c] sm:$0xf] %vm8337_vm4, %v10312_v38  ;;  %v5179_v48 = vmul.f32 %v13762_v49, %v4317_v46  ;;  %v11469_v50 = vpop.f32.mrb[15].mxu1 }
 0x300   : > { %v5689_v47 = vadd.f32 %v13770_v55, %v5178_v40  ;;  %v11912_v33 = vld [vmem:[%s12047_s22 + $0x6f8] sm:$0xff]  }
 0x301   : > { %v5941_v51 = vmax.f32 %v5435_v43, 0.0  ;;  %v5436_v52 = vadd.f32 %v13770_v55, %v4925_v44  ;;  %11067 = vmatmul.mubr.msk.bf16.gmra.mrb[120].mxu0 %vm1961_vm3, %v11907_v36  ;;  %v5690_v20 = vadd.f32 %v13770_v55, %v5179_v48  ;;  %11575 = vmatmul.mubr.msk.bf16.gmra.mrb[120].mxu1 %vm1961_vm3, %v11908_v42 }
 0x302   : > { %v6195_v53 = vmax.f32 %v5689_v47, 0.0  ;;  %11070 = vmatprep.mubr.msk.bf16.mxu0 %vm11996_vm2, %v11994_v1  ;;  %11578 = vmatprep.mubr.msk.bf16.mxu1 %vm11996_vm2, %v11994_v1 }
 0x303   : > { %v10059_v56 = vpack.c.bf16 %v5941_v51, %v5941_v51  ;;  %v5942_v57 = vmax.f32 %v5436_v52, 0.0  ;;  %v6196_v27 = vmax.f32 %v5690_v20, 0.0  ;;  %v11913_v20 = vld [vmem:[%s12047_s22 + $0x308] sm:$0xff]  }
 0x304   : > { %v10313_v63 = vpack.c.bf16 %v6195_v53, %v6195_v53  ;;  %v3306_v58 = vpop.f32.mrb[16].mxu0  ;;  %v4322_v3 = vpop.f32.mrb[16].mxu1 }
 0x305   : > { %8472 = vst.msk [vmem:[%s12290_s29 + $0x218] sm:$0xf] %vm8337_vm4, %v10059_v56  ;;  %v10060_v59 = vpack.c.bf16 %v5942_v57, %v5942_v57  ;;  %v4926_v60 = vmul.f32 %v13762_v49, %v3306_v58  ;;  %v10964_v0 = vpop.f32.mrb[17].mxu0  ;;  %v10314_v4 = vpack.c.bf16 %v6196_v27, %v6196_v27  ;;  %v5180_v5 = vmul.f32 %v13762_v49, %v4322_v3  ;;  %v11472_v6 = vpop.f32.mrb[17].mxu1 }
 0x306   : > { %8726 = vst.msk [vmem:[%s12290_s29 + $0x610] sm:$0xf] %vm8337_vm4, %v10313_v63  ;;  %v3309_v32 = vpop.f32.mrb[18].mxu0  ;;  %v4325_v11 = vpop.f32.mrb[18].mxu1 }
 0x307   : > { %8473 = vst.msk [vmem:[%s12290_s29 + $0x21c] sm:$0xf] %vm8337_vm4, %v10060_v59  ;;  %v5437_v8 = vadd.f32 %v13770_v55, %v4926_v60  ;;  %v4927_v9 = vmul.f32 %v13762_v49, %v3309_v32  ;;  %v10965_v10 = vpop.f32.mrb[19].mxu0  ;;  %8727 = vst.msk [vmem:[%s12290_s29 + $0x614] sm:$0xf] %vm8337_vm4, %v10314_v4  ;;  %v5691_v12 = vadd.f32 %v13770_v55, %v5180_v5  ;;  %v11473_v14 = vpop.f32.mrb[19].mxu1 }
 0x308   : > { %v5181_v13 = vmul.f32 %v13762_v49, %v4325_v11  ;;  %v11914_v59 = vld [vmem:[%s12047_s22 + $0x700] sm:$0xff]  }
 0x309   : > { %v5943_v15 = vmax.f32 %v5437_v8, 0.0  ;;  %v5438_v16 = vadd.f32 %v13770_v55, %v4927_v9  ;;  %11071 = vmatmul.mubr.msk.bf16.gmra.mrb[124].mxu0 %vm1961_vm3, %v11909_v2  ;;  %v6197_v17 = vmax.f32 %v5691_v12, 0.0  ;;  %11579 = vmatmul.mubr.msk.bf16.gmra.mrb[124].mxu1 %vm1961_vm3, %v11910_v7 }
 0x30a   : > { %v5692_v18 = vadd.f32 %v13770_v55, %v5181_v13  ;;  %11074 = vmatprep.mubr.msk.bf16.mxu0 %vm11996_vm2, %v11994_v1  ;;  %11582 = vmatprep.mubr.msk.bf16.mxu1 %vm11996_vm2, %v11994_v1 }
 0x30b   : > { %v10061_v19 = vpack.c.bf16 %v5943_v15, %v5943_v15  ;;  %v5944_v61 = vmax.f32 %v5438_v16, 0.0  ;;  %v10315_v21 = vpack.c.bf16 %v6197_v17, %v6197_v17 }
 0x30c   : > { %v6198_v22 = vmax.f32 %v5692_v18, 0.0  ;;  %v3314_v23 = vpop.f32.mrb[20].mxu0  ;;  %v4330_v28 = vpop.f32.mrb[20].mxu1  ;;  %v11915_v18 = vld [vmem:[%s12047_s22 + $0x310] sm:$0xff]  }
 0x30d   : > { %8474 = vst.msk [vmem:[%s12290_s29 + $0x220] sm:$0xf] %vm8337_vm4, %v10061_v19  ;;  %v10062_v24 = vpack.c.bf16 %v5944_v61, %v5944_v61  ;;  %v4928_v54 = vmul.f32 %v13762_v49, %v3314_v23  ;;  %v10968_v25 = vpop.f32.mrb[21].mxu0  ;;  %8728 = vst.msk [vmem:[%s12290_s29 + $0x618] sm:$0xf] %vm8337_vm4, %v10315_v21  ;;  %v5182_v62 = vmul.f32 %v13762_v49, %v4330_v28  ;;  %v11476_v31 = vpop.f32.mrb[21].mxu1 }
 0x30e   : > { %v10316_v29 = vpack.c.bf16 %v6198_v22, %v6198_v22  ;;  %v3317_v30 = vpop.f32.mrb[22].mxu0  ;;  %v4333_v37 = vpop.f32.mrb[22].mxu1 }
 0x30f   : > { %8475 = vst.msk [vmem:[%s12290_s29 + $0x224] sm:$0xf] %vm8337_vm4, %v10062_v24  ;;  %v5439_v34 = vadd.f32 %v13770_v55, %v4928_v54  ;;  %v4929_v35 = vmul.f32 %v13762_v49, %v3317_v30  ;;  %v10969_v36 = vpop.f32.mrb[23].mxu0  ;;  %v5693_v38 = vadd.f32 %v13770_v55, %v5182_v62  ;;  %v5183_v39 = vmul.f32 %v13762_v49, %v4333_v37  ;;  %v11477_v40 = vpop.f32.mrb[23].mxu1  ;;  %v11916_v24 = vld [vmem:[%s12047_s22 + $0x708] sm:$0xff]  }
 0x310   : > { %8729 = vst.msk [vmem:[%s12290_s29 + $0x61c] sm:$0xf] %vm8337_vm4, %v10316_v29 }
 0x311   : > { %v5945_v41 = vmax.f32 %v5439_v34, 0.0  ;;  %v5440_v42 = vadd.f32 %v13770_v55, %v4929_v35  ;;  %11075 = vmatmul.mubr.msk.bf16.gmra.mrb[128].mxu0 %vm1961_vm3, %v11911_v26  ;;  %v6199_v43 = vmax.f32 %v5693_v38, 0.0  ;;  %v5694_v44 = vadd.f32 %v13770_v55, %v5183_v39  ;;  %11583 = vmatmul.mubr.msk.bf16.gmra.mrb[128].mxu1 %vm1961_vm3, %v11912_v33 }
 0x312   : > { %11078 = vmatprep.mubr.msk.bf16.mxu0 %vm11996_vm2, %v11994_v1  ;;  %11586 = vmatprep.mubr.msk.bf16.mxu1 %vm11996_vm2, %v11994_v1 }
 0x313   : > { %v10063_v45 = vpack.c.bf16 %v5945_v41, %v5945_v41  ;;  %v5946_v46 = vmax.f32 %v5440_v42, 0.0  ;;  %v10317_v47 = vpack.c.bf16 %v6199_v43, %v6199_v43  ;;  %v6200_v48 = vmax.f32 %v5694_v44, 0.0  ;;  %v11917_v44 = vld [vmem:[%s12047_s22 + $0x318] sm:$0xff]  }
 0x314   : > { %v3322_v50 = vpop.f32.mrb[24].mxu0  ;;  %v4338_v56 = vpop.f32.mrb[24].mxu1 }
 0x315   : > { %8476 = vst.msk [vmem:[%s12290_s29 + $0x228] sm:$0xf] %vm8337_vm4, %v10063_v45  ;;  %v10064_v51 = vpack.c.bf16 %v5946_v46, %v5946_v46  ;;  %v4930_v52 = vmul.f32 %v13762_v49, %v3322_v50  ;;  %v10972_v53 = vpop.f32.mrb[25].mxu0  ;;  %8730 = vst.msk [vmem:[%s12290_s29 + $0x620] sm:$0xf] %vm8337_vm4, %v10317_v47  ;;  %v10318_v57 = vpack.c.bf16 %v6200_v48, %v6200_v48  ;;  %v11480_v58 = vpop.f32.mrb[25].mxu1 }
 0x316   : > { %v3325_v63 = vpop.f32.mrb[26].mxu0  ;;  %v5184_v27 = vmul.f32 %v13762_v49, %v4338_v56  ;;  %v4341_v3 = vpop.f32.mrb[26].mxu1 }
 0x317   : > { %8477 = vst.msk [vmem:[%s12290_s29 + $0x22c] sm:$0xf] %vm8337_vm4, %v10064_v51  ;;  %v5441_v60 = vadd.f32 %v13770_v55, %v4930_v52  ;;  %v4931_v0 = vmul.f32 %v13762_v49, %v3325_v63  ;;  %v10973_v2 = vpop.f32.mrb[27].mxu0  ;;  %8731 = vst.msk [vmem:[%s12290_s29 + $0x624] sm:$0xf] %vm8337_vm4, %v10318_v57  ;;  %v5185_v32 = vmul.f32 %v13762_v49, %v4341_v3  ;;  %v11481_v5 = vpop.f32.mrb[27].mxu1 }
 0x318   : > { %v5695_v4 = vadd.f32 %v13770_v55, %v5184_v27  ;;  %v11918_v51 = vld [vmem:[%s12047_s22 + $0x710] sm:$0xff]  }
 0x319   : > { %v5947_v6 = vmax.f32 %v5441_v60, 0.0  ;;  %v5442_v7 = vadd.f32 %v13770_v55, %v4931_v0  ;;  %11079 = vmatmul.mubr.msk.bf16.gmra.mrb[132].mxu0 %vm1961_vm3, %v11913_v20  ;;  %v5696_v9 = vadd.f32 %v13770_v55, %v5185_v32  ;;  %11587 = vmatmul.mubr.msk.bf16.gmra.mrb[132].mxu1 %vm1961_vm3, %v11914_v59 }
 0x31a   : > { %v6201_v8 = vmax.f32 %v5695_v4, 0.0  ;;  %11082 = vmatprep.mubr.msk.bf16.mxu0 %vm11996_vm2, %v11994_v1  ;;  %11590 = vmatprep.mubr.msk.bf16.mxu1 %vm11996_vm2, %v11994_v1 }
 0x31b   : > { %v10065_v10 = vpack.c.bf16 %v5947_v6, %v5947_v6  ;;  %v5948_v11 = vmax.f32 %v5442_v7, 0.0  ;;  %v6202_v13 = vmax.f32 %v5696_v9, 0.0  ;;  %v11919_v9 = vld [vmem:[%s12047_s22 + $0x320] sm:$0xff]  }
 0x31c   : > { %v10319_v12 = vpack.c.bf16 %v6201_v8, %v6201_v8  ;;  %v3330_v14 = vpop.f32.mrb[28].mxu0  ;;  %v4346_v19 = vpop.f32.mrb[28].mxu1 }
 0x31d   : > { %8478 = vst.msk [vmem:[%s12290_s29 + $0x230] sm:$0xf] %vm8337_vm4, %v10065_v10  ;;  %v10066_v15 = vpack.c.bf16 %v5948_v11, %v5948_v11  ;;  %v4932_v16 = vmul.f32 %v13762_v49, %v3330_v14  ;;  %v10976_v17 = vpop.f32.mrb[29].mxu0  ;;  %v10320_v61 = vpack.c.bf16 %v6202_v13, %v6202_v13  ;;  %v5186_v22 = vmul.f32 %v13762_v49, %v4346_v19  ;;  %v11484_v23 = vpop.f32.mrb[29].mxu1 }
 0x31e   : > { %8732 = vst.msk [vmem:[%s12290_s29 + $0x628] sm:$0xf] %vm8337_vm4, %v10319_v12  ;;  %v3333_v21 = vpop.f32.mrb[30].mxu0  ;;  %v4349_v28 = vpop.f32.mrb[30].mxu1 }
 0x31f   : > { %8479 = vst.msk [vmem:[%s12290_s29 + $0x234] sm:$0xf] %vm8337_vm4, %v10066_v15  ;;  %v5443_v54 = vadd.f32 %v13770_v55, %v4932_v16  ;;  %v4933_v25 = vmul.f32 %v13762_v49, %v3333_v21  ;;  %v10977_v26 = vpop.f32.mrb[31].mxu0  ;;  %8733 = vst.msk [vmem:[%s12290_s29 + $0x62c] sm:$0xf] %vm8337_vm4, %v10320_v61  ;;  %v5697_v29 = vadd.f32 %v13770_v55, %v5186_v22  ;;  %v11485_v62 = vpop.f32.mrb[31].mxu1 }
 0x320   : > { %v5187_v30 = vmul.f32 %v13762_v49, %v4349_v28  ;;  %v11920_v15 = vld [vmem:[%s12047_s22 + $0x718] sm:$0xff]  }
 0x321   : > { %v5949_v31 = vmax.f32 %v5443_v54, 0.0  ;;  %v5444_v33 = vadd.f32 %v13770_v55, %v4933_v25  ;;  %11083 = vmatmul.mubr.msk.bf16.gmra.mrb[136].mxu0 %vm1961_vm3, %v11915_v18  ;;  %v6203_v34 = vmax.f32 %v5697_v29, 0.0  ;;  %11591 = vmatmul.mubr.msk.bf16.gmra.mrb[136].mxu1 %vm1961_vm3, %v11916_v24 }
 0x322   : > { %v5698_v35 = vadd.f32 %v13770_v55, %v5187_v30  ;;  %11086 = vmatprep.mubr.msk.bf16.mxu0 %vm11996_vm2, %v11994_v1  ;;  %11594 = vmatprep.mubr.msk.bf16.mxu1 %vm11996_vm2, %v11994_v1 }
 0x323   : > { %v10067_v36 = vpack.c.bf16 %v5949_v31, %v5949_v31  ;;  %v5950_v37 = vmax.f32 %v5444_v33, 0.0  ;;  %v10321_v38 = vpack.c.bf16 %v6203_v34, %v6203_v34 }
 0x324   : > { %v6204_v39 = vmax.f32 %v5698_v35, 0.0  ;;  %v3338_v40 = vpop.f32.mrb[32].mxu0  ;;  %v4354_v45 = vpop.f32.mrb[32].mxu1  ;;  %v11921_v35 = vld [vmem:[%s12047_s22 + $0x328] sm:$0xff]  }
 0x325   : > { %8480 = vst.msk [vmem:[%s12290_s29 + $0x238] sm:$0xf] %vm8337_vm4, %v10067_v36  ;;  %v10068_v41 = vpack.c.bf16 %v5950_v37, %v5950_v37  ;;  %v4934_v42 = vmul.f32 %v13762_v49, %v3338_v40  ;;  %v10980_v43 = vpop.f32.mrb[33].mxu0  ;;  %8734 = vst.msk [vmem:[%s12290_s29 + $0x630] sm:$0xf] %vm8337_vm4, %v10321_v38  ;;  %v5188_v48 = vmul.f32 %v13762_v49, %v4354_v45  ;;  %v11488_v50 = vpop.f32.mrb[33].mxu1 }
 0x326   : > { %v10322_v46 = vpack.c.bf16 %v6204_v39, %v6204_v39  ;;  %v3341_v47 = vpop.f32.mrb[34].mxu0  ;;  %v4357_v56 = vpop.f32.mrb[34].mxu1 }
 0x327   : > { %8481 = vst.msk [vmem:[%s12290_s29 + $0x23c] sm:$0xf] %vm8337_vm4, %v10068_v41  ;;  %v5445_v52 = vadd.f32 %v13770_v55, %v4934_v42  ;;  %v4935_v53 = vmul.f32 %v13762_v49, %v3341_v47  ;;  %v10981_v20 = vpop.f32.mrb[35].mxu0  ;;  %v5699_v57 = vadd.f32 %v13770_v55, %v5188_v48  ;;  %v5189_v63 = vmul.f32 %v13762_v49, %v4357_v56  ;;  %v11489_v27 = vpop.f32.mrb[35].mxu1  ;;  %v11922_v41 = vld [vmem:[%s12047_s22 + $0x720] sm:$0xff]  }
 0x328   : > { %8735 = vst.msk [vmem:[%s12290_s29 + $0x634] sm:$0xf] %vm8337_vm4, %v10322_v46 }
 0x329   : > { %v5951_v58 = vmax.f32 %v5445_v52, 0.0  ;;  %v5446_v59 = vadd.f32 %v13770_v55, %v4935_v53  ;;  %11087 = vmatmul.mubr.msk.bf16.gmra.mrb[140].mxu0 %vm1961_vm3, %v11917_v44  ;;  %v6205_v60 = vmax.f32 %v5699_v57, 0.0  ;;  %v5700_v0 = vadd.f32 %v13770_v55, %v5189_v63  ;;  %11595 = vmatmul.mubr.msk.bf16.gmra.mrb[140].mxu1 %vm1961_vm3, %v11918_v51 }
 0x32a   : > { %11090 = vmatprep.mubr.msk.bf16.mxu0 %vm11996_vm2, %v11994_v1  ;;  %11598 = vmatprep.mubr.msk.bf16.mxu1 %vm11996_vm2, %v11994_v1 }
 0x32b   : > { %v10069_v2 = vpack.c.bf16 %v5951_v58, %v5951_v58  ;;  %v5952_v3 = vmax.f32 %v5446_v59, 0.0  ;;  %v10323_v4 = vpack.c.bf16 %v6205_v60, %v6205_v60  ;;  %v6206_v32 = vmax.f32 %v5700_v0, 0.0  ;;  %v11923_v0 = vld [vmem:[%s12047_s22 + $0x330] sm:$0xff]  }
 0x32c   : > { %v3346_v5 = vpop.f32.mrb[36].mxu0  ;;  %v4362_v10 = vpop.f32.mrb[36].mxu1 }
 0x32d   : > { %8482 = vst.msk [vmem:[%s12290_s29 + $0x240] sm:$0xf] %vm8337_vm4, %v10069_v2  ;;  %v10070_v6 = vpack.c.bf16 %v5952_v3, %v5952_v3  ;;  %v4936_v7 = vmul.f32 %v13762_v49, %v3346_v5  ;;  %v10984_v8 = vpop.f32.mrb[37].mxu0  ;;  %8736 = vst.msk [vmem:[%s12290_s29 + $0x638] sm:$0xf] %vm8337_vm4, %v10323_v4  ;;  %v10324_v11 = vpack.c.bf16 %v6206_v32, %v6206_v32  ;;  %v11492_v14 = vpop.f32.mrb[37].mxu1 }
 0x32e   : > { %v3349_v12 = vpop.f32.mrb[38].mxu0  ;;  %v5190_v13 = vmul.f32 %v13762_v49, %v4362_v10  ;;  %v4365_v19 = vpop.f32.mrb[38].mxu1 }
 0x32f   : > { %8483 = vst.msk [vmem:[%s12290_s29 + $0x244] sm:$0xf] %vm8337_vm4, %v10070_v6  ;;  %v5447_v16 = vadd.f32 %v13770_v55, %v4936_v7  ;;  %v4937_v17 = vmul.f32 %v13762_v49, %v3349_v12  ;;  %v10985_v18 = vpop.f32.mrb[39].mxu0  ;;  %8737 = vst.msk [vmem:[%s12290_s29 + $0x63c] sm:$0xf] %vm8337_vm4, %v10324_v11  ;;  %v5191_v21 = vmul.f32 %v13762_v49, %v4365_v19  ;;  %v11493_v22 = vpop.f32.mrb[39].mxu1 }
 0x330   : > { %v5701_v61 = vadd.f32 %v13770_v55, %v5190_v13  ;;  %v11924_v6 = vld [vmem:[%s12047_s22 + $0x728] sm:$0xff]  }
 0x331   : > { %v5953_v23 = vmax.f32 %v5447_v16, 0.0  ;;  %v5448_v24 = vadd.f32 %v13770_v55, %v4937_v17  ;;  %11091 = vmatmul.mubr.msk.bf16.gmra.mrb[144].mxu0 %vm1961_vm3, %v11919_v9  ;;  %v5702_v25 = vadd.f32 %v13770_v55, %v5191_v21  ;;  %11599 = vmatmul.mubr.msk.bf16.gmra.mrb[144].mxu1 %vm1961_vm3, %v11920_v15 }
 0x332   : > { %v6207_v54 = vmax.f32 %v5701_v61, 0.0  ;;  %11094 = vmatprep.mubr.msk.bf16.mxu0 %vm11996_vm2, %v11994_v1  ;;  %11602 = vmatprep.mubr.msk.bf16.mxu1 %vm11996_vm2, %v11994_v1 }
 0x333   : > { %v10071_v26 = vpack.c.bf16 %v5953_v23, %v5953_v23  ;;  %v5954_v28 = vmax.f32 %v5448_v24, 0.0  ;;  %v6208_v30 = vmax.f32 %v5702_v25, 0.0 }
 0x334   : > { %v10325_v29 = vpack.c.bf16 %v6207_v54, %v6207_v54  ;;  %v3354_v62 = vpop.f32.mrb[40].mxu0  ;;  %v4370_v36 = vpop.f32.mrb[40].mxu1  ;;  %v11925_v54 = vld [vmem:[%s12047_s22 + $0x338] sm:$0xff]  }
 0x335   : > { %8484 = vst.msk [vmem:[%s12290_s29 + $0x248] sm:$0xf] %vm8337_vm4, %v10071_v26  ;;  %v10072_v31 = vpack.c.bf16 %v5954_v28, %v5954_v28  ;;  %v4938_v33 = vmul.f32 %v13762_v49, %v3354_v62  ;;  %v10988_v34 = vpop.f32.mrb[41].mxu0  ;;  %v10326_v37 = vpack.c.bf16 %v6208_v30, %v6208_v30  ;;  %v5192_v39 = vmul.f32 %v13762_v49, %v4370_v36  ;;  %v11496_v40 = vpop.f32.mrb[41].mxu1  ;;  %v11926_v62 = vld [vmem:[%s12047_s22 + $0x730] sm:$0xff]  }
 0x336   : > { %8738 = vst.msk [vmem:[%s12290_s29 + $0x640] sm:$0xf] %vm8337_vm4, %v10325_v29  ;;  %v3357_v38 = vpop.f32.mrb[42].mxu0  ;;  %v4373_v45 = vpop.f32.mrb[42].mxu1 }
 0x337   : > { %8485 = vst.msk [vmem:[%s12290_s29 + $0x24c] sm:$0xf] %vm8337_vm4, %v10072_v31  ;;  %v5449_v42 = vadd.f32 %v13770_v55, %v4938_v33  ;;  %v4939_v43 = vmul.f32 %v13762_v49, %v3357_v38  ;;  %v10989_v44 = vpop.f32.mrb[43].mxu0  ;;  %8739 = vst.msk [vmem:[%s12290_s29 + $0x644] sm:$0xf] %vm8337_vm4, %v10326_v37  ;;  %v5703_v46 = vadd.f32 %v13770_v55, %v5192_v39  ;;  %v11497_v48 = vpop.f32.mrb[43].mxu1 }
 0x338   : > { %v5193_v47 = vmul.f32 %v13762_v49, %v4373_v45  ;;  %v14156_v31 = vld [vmem:[%s15173_s2 + $0x1] ss:$0 sm:$0xff] }
 0x339   : > { %v5955_v50 = vmax.f32 %v5449_v42, 0.0  ;;  %v5450_v51 = vadd.f32 %v13770_v55, %v4939_v43  ;;  %11095 = vmatmul.mubr.msk.bf16.gmra.mrb[148].mxu0 %vm1961_vm3, %v11921_v35  ;;  %v6209_v52 = vmax.f32 %v5703_v46, 0.0  ;;  %11603 = vmatmul.mubr.msk.bf16.gmra.mrb[148].mxu1 %vm1961_vm3, %v11922_v41 }
 0x33a   : > { %v5704_v53 = vadd.f32 %v13770_v55, %v5193_v47  ;;  %11098 = vmatprep.mubr.msk.bf16.mxu0 %vm11996_vm2, %v11994_v1  ;;  %11606 = vmatprep.mubr.msk.bf16.mxu1 %vm11996_vm2, %v11994_v1 }
 0x33b   : > { %v10073_v20 = vpack.c.bf16 %v5955_v50, %v5955_v50  ;;  %v5956_v56 = vmax.f32 %v5450_v51, 0.0  ;;  %v10327_v57 = vpack.c.bf16 %v6209_v52, %v6209_v52 }
 0x33c   : > { %v6210_v63 = vmax.f32 %v5704_v53, 0.0  ;;  %v3362_v27 = vpop.f32.mrb[44].mxu0  ;;  %v4378_v2 = vpop.f32.mrb[44].mxu1  ;;  %v11927_v53 = vld [vmem:[%s12047_s22 + $0x340] sm:$0xff]  }
 0x33d   : > { %8486 = vst.msk [vmem:[%s12290_s29 + $0x250] sm:$0xf] %vm8337_vm4, %v10073_v20  ;;  %v10074_v58 = vpack.c.bf16 %v5956_v56, %v5956_v56  ;;  %v4940_v59 = vmul.f32 %v13762_v49, %v3362_v27  ;;  %v10992_v60 = vpop.f32.mrb[45].mxu0  ;;  %8740 = vst.msk [vmem:[%s12290_s29 + $0x648] sm:$0xf] %vm8337_vm4, %v10327_v57  ;;  %v5194_v32 = vmul.f32 %v13762_v49, %v4378_v2  ;;  %v11500_v5 = vpop.f32.mrb[45].mxu1 }
 0x33e   : > { %v10328_v3 = vpack.c.bf16 %v6210_v63, %v6210_v63  ;;  %v3365_v4 = vpop.f32.mrb[46].mxu0  ;;  %v4381_v10 = vpop.f32.mrb[46].mxu1 }
 0x33f   : > { %8487 = vst.msk [vmem:[%s12290_s29 + $0x254] sm:$0xf] %vm8337_vm4, %v10074_v58  ;;  %v5451_v7 = vadd.f32 %v13770_v55, %v4940_v59  ;;  %v4941_v8 = vmul.f32 %v13762_v49, %v3365_v4  ;;  %v10993_v9 = vpop.f32.mrb[47].mxu0  ;;  %v5705_v11 = vadd.f32 %v13770_v55, %v5194_v32  ;;  %v5195_v12 = vmul.f32 %v13762_v49, %v4381_v10  ;;  %v11501_v13 = vpop.f32.mrb[47].mxu1  ;;  %v11928_v58 = vld [vmem:[%s12047_s22 + $0x738] sm:$0xff]  }
 0x340   : > { %8741 = vst.msk [vmem:[%s12290_s29 + $0x64c] sm:$0xf] %vm8337_vm4, %v10328_v3 }
 0x341   : > { %v5957_v14 = vmax.f32 %v5451_v7, 0.0  ;;  %v5452_v15 = vadd.f32 %v13770_v55, %v4941_v8  ;;  %11099 = vmatmul.mubr.msk.bf16.gmra.mrb[152].mxu0 %vm1961_vm3, %v11923_v0  ;;  %v6211_v16 = vmax.f32 %v5705_v11, 0.0  ;;  %v5706_v17 = vadd.f32 %v13770_v55, %v5195_v12  ;;  %11607 = vmatmul.mubr.msk.bf16.gmra.mrb[152].mxu1 %vm1961_vm3, %v11924_v6  ;;  %v14143_v55 = vld [vmem:[%s15173_s2] ss:$0 sm:$0xff] }
 0x342   : > { %11102 = vmatprep.mubr.msk.bf16.mxu0 %vm11996_vm2, %v11994_v1  ;;  %11610 = vmatprep.mubr.msk.bf16.mxu1 %vm11996_vm2, %v11994_v1 }
 0x343   : > { %v10075_v18 = vpack.c.bf16 %v5957_v14, %v5957_v14  ;;  %v5958_v19 = vmax.f32 %v5452_v15, 0.0  ;;  %v10329_v49 = vpack.c.bf16 %v6211_v16, %v6211_v16  ;;  %v6212_v61 = vmax.f32 %v5706_v17, 0.0  ;;  %v11929_v17 = vld [vmem:[%s12047_s22 + $0x348] sm:$0xff]  }
 0x344   : > { %v3370_v21 = vpop.f32.mrb[48].mxu0  ;;  %v4386_v25 = vpop.f32.mrb[48].mxu1 }
 0x345   : > { %8488 = vst.msk [vmem:[%s12290_s29 + $0x258] sm:$0xf] %vm8337_vm4, %v10075_v18  ;;  %v10076_v22 = vpack.c.bf16 %v5958_v19, %v5958_v19  ;;  %v4942_v23 = vmul.f32 %v14143_v55, %v3370_v21  ;;  %v10996_v24 = vpop.f32.mrb[49].mxu0  ;;  %8742 = vst.msk [vmem:[%s12290_s29 + $0x650] sm:$0xf] %vm8337_vm4, %v10329_v49  ;;  %v10330_v26 = vpack.c.bf16 %v6212_v61, %v6212_v61  ;;  %v11504_v30 = vpop.f32.mrb[49].mxu1 }
 0x346   : > { %v3373_v28 = vpop.f32.mrb[50].mxu0  ;;  %v5196_v29 = vmul.f32 %v14143_v55, %v4386_v25  ;;  %v4389_v36 = vpop.f32.mrb[50].mxu1 }
 0x347   : > { %8489 = vst.msk [vmem:[%s12290_s29 + $0x25c] sm:$0xf] %vm8337_vm4, %v10076_v22  ;;  %v5453_v33 = vadd.f32 %v14156_v31, %v4942_v23  ;;  %v4943_v34 = vmul.f32 %v14143_v55, %v3373_v28  ;;  %v10997_v35 = vpop.f32.mrb[51].mxu0  ;;  %8743 = vst.msk [vmem:[%s12290_s29 + $0x654] sm:$0xf] %vm8337_vm4, %v10330_v26  ;;  %v5197_v38 = vmul.f32 %v14143_v55, %v4389_v36  ;;  %v11505_v39 = vpop.f32.mrb[51].mxu1 }
 0x348   : > { %v5707_v37 = vadd.f32 %v14156_v31, %v5196_v29  ;;  %v11930_v22 = vld [vmem:[%s12047_s22 + $0x740] sm:$0xff]  }
 0x349   : > { %v5959_v40 = vmax.f32 %v5453_v33, 0.0  ;;  %v5454_v41 = vadd.f32 %v14156_v31, %v4943_v34  ;;  %11103 = vmatmul.mubr.msk.bf16.gmra.mrb[156].mxu0 %vm1961_vm3, %v11925_v54  ;;  %v5708_v43 = vadd.f32 %v14156_v31, %v5197_v38  ;;  %11611 = vmatmul.mubr.msk.bf16.gmra.mrb[156].mxu1 %vm1961_vm3, %v11926_v62 }
 0x34a   : > { %v6213_v42 = vmax.f32 %v5707_v37, 0.0  ;;  %11106 = vmatprep.mubr.msk.bf16.mxu0 %vm11996_vm2, %v11994_v1  ;;  %11614 = vmatprep.mubr.msk.bf16.mxu1 %vm11996_vm2, %v11994_v1 }
 0x34b   : > { %v10077_v44 = vpack.c.bf16 %v5959_v40, %v5959_v40  ;;  %v5960_v45 = vmax.f32 %v5454_v41, 0.0  ;;  %v6214_v47 = vmax.f32 %v5708_v43, 0.0  ;;  %v11931_v43 = vld [vmem:[%s12047_s22 + $0x350] sm:$0xff]  }
 0x34c   : > { %v10331_v46 = vpack.c.bf16 %v6213_v42, %v6213_v42  ;;  %v3378_v48 = vpop.f32.mrb[52].mxu0  ;;  %v4394_v20 = vpop.f32.mrb[52].mxu1 }
 0x34d   : > { %8490 = vst.msk [vmem:[%s12290_s29 + $0x260] sm:$0xf] %vm8337_vm4, %v10077_v44  ;;  %v10078_v50 = vpack.c.bf16 %v5960_v45, %v5960_v45  ;;  %v4944_v51 = vmul.f32 %v14143_v55, %v3378_v48  ;;  %v11000_v52 = vpop.f32.mrb[53].mxu0  ;;  %v10332_v56 = vpack.c.bf16 %v6214_v47, %v6214_v47  ;;  %v5198_v63 = vmul.f32 %v14143_v55, %v4394_v20  ;;  %v11508_v27 = vpop.f32.mrb[53].mxu1 }
 0x34e   : > { %8744 = vst.msk [vmem:[%s12290_s29 + $0x658] sm:$0xf] %vm8337_vm4, %v10331_v46  ;;  %v3381_v57 = vpop.f32.mrb[54].mxu0  ;;  %v4397_v2 = vpop.f32.mrb[54].mxu1 }
 0x34f   : > { %8491 = vst.msk [vmem:[%s12290_s29 + $0x264] sm:$0xf] %vm8337_vm4, %v10078_v50  ;;  %v5455_v59 = vadd.f32 %v14156_v31, %v4944_v51  ;;  %v4945_v60 = vmul.f32 %v14143_v55, %v3381_v57  ;;  %v11001_v0 = vpop.f32.mrb[55].mxu0  ;;  %8745 = vst.msk [vmem:[%s12290_s29 + $0x65c] sm:$0xf] %vm8337_vm4, %v10332_v56  ;;  %v5709_v3 = vadd.f32 %v14156_v31, %v5198_v63  ;;  %v11509_v32 = vpop.f32.mrb[55].mxu1 }
 0x350   : > { %v5199_v4 = vmul.f32 %v14143_v55, %v4397_v2  ;;  %v11932_v50 = vld [vmem:[%s12047_s22 + $0x748] sm:$0xff]  }
 0x351   : > { %v5961_v5 = vmax.f32 %v5455_v59, 0.0  ;;  %v5456_v6 = vadd.f32 %v14156_v31, %v4945_v60  ;;  %11107 = vmatmul.mubr.msk.bf16.gmra.mrb[160].mxu0 %vm1961_vm3, %v11927_v53  ;;  %v6215_v7 = vmax.f32 %v5709_v3, 0.0  ;;  %11615 = vmatmul.mubr.msk.bf16.gmra.mrb[160].mxu1 %vm1961_vm3, %v11928_v58 }
 0x352   : > { %v5710_v8 = vadd.f32 %v14156_v31, %v5199_v4  ;;  %11110 = vmatprep.mubr.msk.bf16.mxu0 %vm11996_vm2, %v11994_v1  ;;  %11618 = vmatprep.mubr.msk.bf16.mxu1 %vm11996_vm2, %v11994_v1 }
 0x353   : > { %v10079_v9 = vpack.c.bf16 %v5961_v5, %v5961_v5  ;;  %v5962_v10 = vmax.f32 %v5456_v6, 0.0  ;;  %v10333_v11 = vpack.c.bf16 %v6215_v7, %v6215_v7 }
 0x354   : > { %v6216_v12 = vmax.f32 %v5710_v8, 0.0  ;;  %v3386_v13 = vpop.f32.mrb[56].mxu0  ;;  %v4402_v18 = vpop.f32.mrb[56].mxu1  ;;  %v11933_v8 = vld [vmem:[%s12047_s22 + $0x358] sm:$0xff]  }
 0x355   : > { %8492 = vst.msk [vmem:[%s12290_s29 + $0x268] sm:$0xf] %vm8337_vm4, %v10079_v9  ;;  %v10080_v14 = vpack.c.bf16 %v5962_v10, %v5962_v10  ;;  %v4946_v15 = vmul.f32 %v14143_v55, %v3386_v13  ;;  %v11004_v16 = vpop.f32.mrb[57].mxu0  ;;  %8746 = vst.msk [vmem:[%s12290_s29 + $0x660] sm:$0xf] %vm8337_vm4, %v10333_v11  ;;  %v5200_v61 = vmul.f32 %v14143_v55, %v4402_v18  ;;  %v11512_v21 = vpop.f32.mrb[57].mxu1 }
 0x356   : > { %v10334_v19 = vpack.c.bf16 %v6216_v12, %v6216_v12  ;;  %v3389_v49 = vpop.f32.mrb[58].mxu0  ;;  %v4405_v25 = vpop.f32.mrb[58].mxu1 }
 0x357   : > { %8493 = vst.msk [vmem:[%s12290_s29 + $0x26c] sm:$0xf] %vm8337_vm4, %v10080_v14  ;;  %v5457_v23 = vadd.f32 %v14156_v31, %v4946_v15  ;;  %v4947_v24 = vmul.f32 %v14143_v55, %v3389_v49  ;;  %v11005_v54 = vpop.f32.mrb[59].mxu0  ;;  %v5711_v26 = vadd.f32 %v14156_v31, %v5200_v61  ;;  %v5201_v28 = vmul.f32 %v14143_v55, %v4405_v25  ;;  %v11513_v29 = vpop.f32.mrb[59].mxu1  ;;  %v11934_v14 = vld [vmem:[%s12047_s22 + $0x750] sm:$0xff]  }
 0x358   : > { %8747 = vst.msk [vmem:[%s12290_s29 + $0x664] sm:$0xf] %vm8337_vm4, %v10334_v19 }
 0x359   : > { %v5963_v30 = vmax.f32 %v5457_v23, 0.0  ;;  %v5458_v62 = vadd.f32 %v14156_v31, %v4947_v24  ;;  %11111 = vmatmul.mubr.msk.bf16.gmra.mrb[164].mxu0 %vm1961_vm3, %v11929_v17  ;;  %v6217_v33 = vmax.f32 %v5711_v26, 0.0  ;;  %v5712_v34 = vadd.f32 %v14156_v31, %v5201_v28  ;;  %11619 = vmatmul.mubr.msk.bf16.gmra.mrb[164].mxu1 %vm1961_vm3, %v11930_v22 }
 0x35a   : > { %11114 = vmatprep.mubr.msk.bf16.mxu0 %vm11996_vm2, %v11994_v1  ;;  %11622 = vmatprep.mubr.msk.bf16.mxu1 %vm11996_vm2, %v11994_v1 }
 0x35b   : > { %v10081_v35 = vpack.c.bf16 %v5963_v30, %v5963_v30  ;;  %v5964_v36 = vmax.f32 %v5458_v62, 0.0  ;;  %v10335_v37 = vpack.c.bf16 %v6217_v33, %v6217_v33  ;;  %v6218_v38 = vmax.f32 %v5712_v34, 0.0  ;;  %v11935_v34 = vld [vmem:[%s12047_s22 + $0x360] sm:$0xff]  }
 0x35c   : > { %v3394_v39 = vpop.f32.mrb[60].mxu0  ;;  %v4410_v44 = vpop.f32.mrb[60].mxu1 }
 0x35d   : > { %8494 = vst.msk [vmem:[%s12290_s29 + $0x270] sm:$0xf] %vm8337_vm4, %v10081_v35  ;;  %v10082_v40 = vpack.c.bf16 %v5964_v36, %v5964_v36  ;;  %v4948_v41 = vmul.f32 %v14143_v55, %v3394_v39  ;;  %v11008_v42 = vpop.f32.mrb[61].mxu0  ;;  %8748 = vst.msk [vmem:[%s12290_s29 + $0x668] sm:$0xf] %vm8337_vm4, %v10335_v37  ;;  %v10336_v45 = vpack.c.bf16 %v6218_v38, %v6218_v38  ;;  %v11516_v48 = vpop.f32.mrb[61].mxu1 }
 0x35e   : > { %v3397_v46 = vpop.f32.mrb[62].mxu0  ;;  %v5202_v47 = vmul.f32 %v14143_v55, %v4410_v44  ;;  %v4413_v20 = vpop.f32.mrb[62].mxu1 }
 0x35f   : > { %8495 = vst.msk [vmem:[%s12290_s29 + $0x274] sm:$0xf] %vm8337_vm4, %v10082_v40  ;;  %v5459_v51 = vadd.f32 %v14156_v31, %v4948_v41  ;;  %v4949_v52 = vmul.f32 %v14143_v55, %v3397_v46  ;;  %v11009_v53 = vpop.f32.mrb[63].mxu0  ;;  %8749 = vst.msk [vmem:[%s12290_s29 + $0x66c] sm:$0xf] %vm8337_vm4, %v10336_v45  ;;  %v5203_v57 = vmul.f32 %v14143_v55, %v4413_v20  ;;  %v11517_v63 = vpop.f32.mrb[63].mxu1 }
 0x360   : > { %v5713_v56 = vadd.f32 %v14156_v31, %v5202_v47  ;;  %v11936_v40 = vld [vmem:[%s12047_s22 + $0x758] sm:$0xff]  }
 0x361   : > { %v5965_v27 = vmax.f32 %v5459_v51, 0.0  ;;  %v5460_v58 = vadd.f32 %v14156_v31, %v4949_v52  ;;  %11115 = vmatmul.mubr.msk.bf16.gmra.mrb[168].mxu0 %vm1961_vm3, %v11931_v43  ;;  %v5714_v60 = vadd.f32 %v14156_v31, %v5203_v57  ;;  %11623 = vmatmul.mubr.msk.bf16.gmra.mrb[168].mxu1 %vm1961_vm3, %v11932_v50 }
 0x362   : > { %v6219_v59 = vmax.f32 %v5713_v56, 0.0  ;;  %11118 = vmatprep.mubr.msk.bf16.mxu0 %vm11996_vm2, %v11994_v1  ;;  %11626 = vmatprep.mubr.msk.bf16.mxu1 %vm11996_vm2, %v11994_v1 }
 0x363   : > { %v10083_v0 = vpack.c.bf16 %v5965_v27, %v5965_v27  ;;  %v5966_v2 = vmax.f32 %v5460_v58, 0.0  ;;  %v6220_v4 = vmax.f32 %v5714_v60, 0.0  ;;  %v11937_v60 = vld [vmem:[%s12047_s22 + $0x368] sm:$0xff]  }
 0x364   : > { %v10337_v3 = vpack.c.bf16 %v6219_v59, %v6219_v59  ;;  %v3402_v32 = vpop.f32.mrb[64].mxu0  ;;  %v4418_v9 = vpop.f32.mrb[64].mxu1 }
 0x365   : > { %8496 = vst.msk [vmem:[%s12290_s29 + $0x278] sm:$0xf] %vm8337_vm4, %v10083_v0  ;;  %v10084_v5 = vpack.c.bf16 %v5966_v2, %v5966_v2  ;;  %v4950_v6 = vmul.f32 %v14143_v55, %v3402_v32  ;;  %v11012_v7 = vpop.f32.mrb[65].mxu0  ;;  %v10338_v10 = vpack.c.bf16 %v6220_v4, %v6220_v4  ;;  %v5204_v12 = vmul.f32 %v14143_v55, %v4418_v9  ;;  %v11520_v13 = vpop.f32.mrb[65].mxu1 }
 0x366   : > { %8750 = vst.msk [vmem:[%s12290_s29 + $0x670] sm:$0xf] %vm8337_vm4, %v10337_v3  ;;  %v3405_v11 = vpop.f32.mrb[66].mxu0  ;;  %v4421_v18 = vpop.f32.mrb[66].mxu1 }
 0x367   : > { %8497 = vst.msk [vmem:[%s12290_s29 + $0x27c] sm:$0xf] %vm8337_vm4, %v10084_v5  ;;  %v5461_v15 = vadd.f32 %v14156_v31, %v4950_v6  ;;  %v4951_v16 = vmul.f32 %v14143_v55, %v3405_v11  ;;  %v11013_v17 = vpop.f32.mrb[67].mxu0  ;;  %8751 = vst.msk [vmem:[%s12290_s29 + $0x674] sm:$0xf] %vm8337_vm4, %v10338_v10  ;;  %v5715_v19 = vadd.f32 %v14156_v31, %v5204_v12  ;;  %v11521_v61 = vpop.f32.mrb[67].mxu1 }
 0x368   : > { %v5205_v49 = vmul.f32 %v14143_v55, %v4421_v18  ;;  %v11938_v5 = vld [vmem:[%s12047_s22 + $0x760] sm:$0xff]  }
 0x369   : > { %v5967_v21 = vmax.f32 %v5461_v15, 0.0  ;;  %v5462_v22 = vadd.f32 %v14156_v31, %v4951_v16  ;;  %11119 = vmatmul.mubr.msk.bf16.gmra.mrb[172].mxu0 %vm1961_vm3, %v11933_v8  ;;  %v6221_v23 = vmax.f32 %v5715_v19, 0.0  ;;  %11627 = vmatmul.mubr.msk.bf16.gmra.mrb[172].mxu1 %vm1961_vm3, %v11934_v14 }
 0x36a   : > { %v5716_v24 = vadd.f32 %v14156_v31, %v5205_v49  ;;  %11122 = vmatprep.mubr.msk.bf16.mxu0 %vm11996_vm2, %v11994_v1  ;;  %11630 = vmatprep.mubr.msk.bf16.mxu1 %vm11996_vm2, %v11994_v1 }
 0x36b   : > { %v10085_v54 = vpack.c.bf16 %v5967_v21, %v5967_v21  ;;  %v5968_v25 = vmax.f32 %v5462_v22, 0.0  ;;  %v10339_v26 = vpack.c.bf16 %v6221_v23, %v6221_v23 }
 0x36c   : > { %v6222_v28 = vmax.f32 %v5716_v24, 0.0  ;;  %v3410_v29 = vpop.f32.mrb[68].mxu0  ;;  %v4426_v35 = vpop.f32.mrb[68].mxu1  ;;  %v11939_v24 = vld [vmem:[%s12047_s22 + $0x370] sm:$0xff]  }
 0x36d   : > { %8498 = vst.msk [vmem:[%s12290_s29 + $0x280] sm:$0xf] %vm8337_vm4, %v10085_v54  ;;  %v10086_v30 = vpack.c.bf16 %v5968_v25, %v5968_v25  ;;  %v4952_v62 = vmul.f32 %v14143_v55, %v3410_v29  ;;  %v11016_v33 = vpop.f32.mrb[69].mxu0  ;;  %8752 = vst.msk [vmem:[%s12290_s29 + $0x678] sm:$0xf] %vm8337_vm4, %v10339_v26  ;;  %v5206_v38 = vmul.f32 %v14143_v55, %v4426_v35  ;;  %v11524_v39 = vpop.f32.mrb[69].mxu1 }
 0x36e   : > { %v10340_v36 = vpack.c.bf16 %v6222_v28, %v6222_v28  ;;  %v3413_v37 = vpop.f32.mrb[70].mxu0  ;;  %v4429_v44 = vpop.f32.mrb[70].mxu1 }
 0x36f   : > { %8499 = vst.msk [vmem:[%s12290_s29 + $0x284] sm:$0xf] %vm8337_vm4, %v10086_v30  ;;  %v5463_v41 = vadd.f32 %v14156_v31, %v4952_v62  ;;  %v4953_v42 = vmul.f32 %v14143_v55, %v3413_v37  ;;  %v11017_v43 = vpop.f32.mrb[71].mxu0  ;;  %v5717_v45 = vadd.f32 %v14156_v31, %v5206_v38  ;;  %v5207_v46 = vmul.f32 %v14143_v55, %v4429_v44  ;;  %v11525_v47 = vpop.f32.mrb[71].mxu1  ;;  %v11940_v30 = vld [vmem:[%s12047_s22 + $0x768] sm:$0xff]  }
 0x370   : > { %8753 = vst.msk [vmem:[%s12290_s29 + $0x67c] sm:$0xf] %vm8337_vm4, %v10340_v36 }
 0x371   : > { %v5969_v48 = vmax.f32 %v5463_v41, 0.0  ;;  %v5464_v50 = vadd.f32 %v14156_v31, %v4953_v42  ;;  %11123 = vmatmul.mubr.msk.bf16.gmra.mrb[176].mxu0 %vm1961_vm3, %v11935_v34  ;;  %v6223_v51 = vmax.f32 %v5717_v45, 0.0  ;;  %v5718_v52 = vadd.f32 %v14156_v31, %v5207_v46  ;;  %11631 = vmatmul.mubr.msk.bf16.gmra.mrb[176].mxu1 %vm1961_vm3, %v11936_v40 }
 0x372   : > { %11126 = vmatprep.mubr.msk.bf16.mxu0 %vm11996_vm2, %v11994_v1  ;;  %11634 = vmatprep.mubr.msk.bf16.mxu1 %vm11996_vm2, %v11994_v1 }
 0x373   : > { %v10087_v53 = vpack.c.bf16 %v5969_v48, %v5969_v48  ;;  %v5970_v20 = vmax.f32 %v5464_v50, 0.0  ;;  %v10341_v56 = vpack.c.bf16 %v6223_v51, %v6223_v51  ;;  %v6224_v57 = vmax.f32 %v5718_v52, 0.0  ;;  %v11941_v52 = vld [vmem:[%s12047_s22 + $0x378] sm:$0xff]  }
 0x374   : > { %v3418_v63 = vpop.f32.mrb[72].mxu0  ;;  %v4434_v0 = vpop.f32.mrb[72].mxu1 }
 0x375   : > { %8500 = vst.msk [vmem:[%s12290_s29 + $0x288] sm:$0xf] %vm8337_vm4, %v10087_v53  ;;  %v10088_v27 = vpack.c.bf16 %v5970_v20, %v5970_v20  ;;  %v4954_v58 = vmul.f32 %v14143_v55, %v3418_v63  ;;  %v11020_v59 = vpop.f32.mrb[73].mxu0  ;;  %8754 = vst.msk [vmem:[%s12290_s29 + $0x680] sm:$0xf] %vm8337_vm4, %v10341_v56  ;;  %v10342_v2 = vpack.c.bf16 %v6224_v57, %v6224_v57  ;;  %v11528_v32 = vpop.f32.mrb[73].mxu1 }
 0x376   : > { %v3421_v3 = vpop.f32.mrb[74].mxu0  ;;  %v5208_v4 = vmul.f32 %v14143_v55, %v4434_v0  ;;  %v4437_v9 = vpop.f32.mrb[74].mxu1 }
 0x377   : > { %8501 = vst.msk [vmem:[%s12290_s29 + $0x28c] sm:$0xf] %vm8337_vm4, %v10088_v27  ;;  %v5465_v6 = vadd.f32 %v14156_v31, %v4954_v58  ;;  %v4955_v7 = vmul.f32 %v14143_v55, %v3421_v3  ;;  %v11021_v8 = vpop.f32.mrb[75].mxu0  ;;  %8755 = vst.msk [vmem:[%s12290_s29 + $0x684] sm:$0xf] %vm8337_vm4, %v10342_v2  ;;  %v5209_v11 = vmul.f32 %v14143_v55, %v4437_v9  ;;  %v11529_v12 = vpop.f32.mrb[75].mxu1 }
 0x378   : > { %v5719_v10 = vadd.f32 %v14156_v31, %v5208_v4  ;;  %v11942_v27 = vld [vmem:[%s12047_s22 + $0x770] sm:$0xff]  }
 0x379   : > { %v5971_v13 = vmax.f32 %v5465_v6, 0.0  ;;  %v5466_v14 = vadd.f32 %v14156_v31, %v4955_v7  ;;  %11127 = vmatmul.mubr.msk.bf16.gmra.mrb[180].mxu0 %vm1961_vm3, %v11937_v60  ;;  %v5720_v16 = vadd.f32 %v14156_v31, %v5209_v11  ;;  %11635 = vmatmul.mubr.msk.bf16.gmra.mrb[180].mxu1 %vm1961_vm3, %v11938_v5 }
 0x37a   : > { %v6225_v15 = vmax.f32 %v5719_v10, 0.0  ;;  %11130 = vmatprep.mubr.msk.bf16.mxu0 %vm11996_vm2, %v11994_v1  ;;  %11638 = vmatprep.mubr.msk.bf16.mxu1 %vm11996_vm2, %v11994_v1 }
 0x37b   : > { %v10089_v17 = vpack.c.bf16 %v5971_v13, %v5971_v13  ;;  %v5972_v18 = vmax.f32 %v5466_v14, 0.0  ;;  %v6226_v49 = vmax.f32 %v5720_v16, 0.0  ;;  %v11943_v16 = vld [vmem:[%s12047_s22 + $0x380] sm:$0xff]  }
 0x37c   : > { %v10343_v19 = vpack.c.bf16 %v6225_v15, %v6225_v15  ;;  %v3426_v61 = vpop.f32.mrb[76].mxu0  ;;  %v4442_v54 = vpop.f32.mrb[76].mxu1 }
 0x37d   : > { %8502 = vst.msk [vmem:[%s12290_s29 + $0x290] sm:$0xf] %vm8337_vm4, %v10089_v17  ;;  %v10090_v21 = vpack.c.bf16 %v5972_v18, %v5972_v18  ;;  %v4956_v22 = vmul.f32 %v14143_v55, %v3426_v61  ;;  %v11024_v23 = vpop.f32.mrb[77].mxu0  ;;  %v10344_v25 = vpack.c.bf16 %v6226_v49, %v6226_v49  ;;  %v5210_v28 = vmul.f32 %v14143_v55, %v4442_v54  ;;  %v11532_v29 = vpop.f32.mrb[77].mxu1 }
 0x37e   : > { %8756 = vst.msk [vmem:[%s12290_s29 + $0x688] sm:$0xf] %vm8337_vm4, %v10343_v19  ;;  %v3429_v26 = vpop.f32.mrb[78].mxu0  ;;  %v4445_v35 = vpop.f32.mrb[78].mxu1 }
 0x37f   : > { %8503 = vst.msk [vmem:[%s12290_s29 + $0x294] sm:$0xf] %vm8337_vm4, %v10090_v21  ;;  %v5467_v62 = vadd.f32 %v14156_v31, %v4956_v22  ;;  %v4957_v33 = vmul.f32 %v14143_v55, %v3429_v26  ;;  %v11025_v34 = vpop.f32.mrb[79].mxu0  ;;  %8757 = vst.msk [vmem:[%s12290_s29 + $0x68c] sm:$0xf] %vm8337_vm4, %v10344_v25  ;;  %v5721_v36 = vadd.f32 %v14156_v31, %v5210_v28  ;;  %v11533_v38 = vpop.f32.mrb[79].mxu1 }
 0x380   : > { %v5211_v37 = vmul.f32 %v14143_v55, %v4445_v35  ;;  %v11944_v21 = vld [vmem:[%s12047_s22 + $0x778] sm:$0xff]  }
 0x381   : > { %v5973_v39 = vmax.f32 %v5467_v62, 0.0  ;;  %v5468_v40 = vadd.f32 %v14156_v31, %v4957_v33  ;;  %11131 = vmatmul.mubr.msk.bf16.gmra.mrb[184].mxu0 %vm1961_vm3, %v11939_v24  ;;  %v6227_v41 = vmax.f32 %v5721_v36, 0.0  ;;  %11639 = vmatmul.mubr.msk.bf16.gmra.mrb[184].mxu1 %vm1961_vm3, %v11940_v30 }
 0x382   : > { %v5722_v42 = vadd.f32 %v14156_v31, %v5211_v37  ;;  %11134 = vmatprep.mubr.msk.bf16.mxu0 %vm11996_vm2, %v11994_v1  ;;  %11642 = vmatprep.mubr.msk.bf16.mxu1 %vm11996_vm2, %v11994_v1 }
 0x383   : > { %v10091_v43 = vpack.c.bf16 %v5973_v39, %v5973_v39  ;;  %v5974_v44 = vmax.f32 %v5468_v40, 0.0  ;;  %v10345_v45 = vpack.c.bf16 %v6227_v41, %v6227_v41 }
 0x384   : > { %v6228_v46 = vmax.f32 %v5722_v42, 0.0  ;;  %v3434_v47 = vpop.f32.mrb[80].mxu0  ;;  %v4450_v53 = vpop.f32.mrb[80].mxu1  ;;  %v11945_v42 = vld [vmem:[%s12047_s22 + $0x388] sm:$0xff]  }
 0x385   : > { %8504 = vst.msk [vmem:[%s12290_s29 + $0x298] sm:$0xf] %vm8337_vm4, %v10091_v43  ;;  %v10092_v48 = vpack.c.bf16 %v5974_v44, %v5974_v44  ;;  %v4958_v50 = vmul.f32 %v14143_v55, %v3434_v47  ;;  %v11028_v51 = vpop.f32.mrb[81].mxu0  ;;  %8758 = vst.msk [vmem:[%s12290_s29 + $0x690] sm:$0xf] %vm8337_vm4, %v10345_v45  ;;  %v5212_v57 = vmul.f32 %v14143_v55, %v4450_v53  ;;  %v11536_v63 = vpop.f32.mrb[81].mxu1 }
 0x386   : > { %v10346_v20 = vpack.c.bf16 %v6228_v46, %v6228_v46  ;;  %v3437_v56 = vpop.f32.mrb[82].mxu0  ;;  %v4453_v0 = vpop.f32.mrb[82].mxu1 }
 0x387   : > { %8505 = vst.msk [vmem:[%s12290_s29 + $0x29c] sm:$0xf] %vm8337_vm4, %v10092_v48  ;;  %v5469_v58 = vadd.f32 %v14156_v31, %v4958_v50  ;;  %v4959_v59 = vmul.f32 %v14143_v55, %v3437_v56  ;;  %v11029_v60 = vpop.f32.mrb[83].mxu0  ;;  %v5723_v2 = vadd.f32 %v14156_v31, %v5212_v57  ;;  %v5213_v3 = vmul.f32 %v14143_v55, %v4453_v0  ;;  %v11537_v4 = vpop.f32.mrb[83].mxu1  ;;  %v11946_v48 = vld [vmem:[%s12047_s22 + $0x780] sm:$0xff]  }
 0x388   : > { %8759 = vst.msk [vmem:[%s12290_s29 + $0x694] sm:$0xf] %vm8337_vm4, %v10346_v20 }
 0x389   : > { %v5975_v32 = vmax.f32 %v5469_v58, 0.0  ;;  %v5470_v5 = vadd.f32 %v14156_v31, %v4959_v59  ;;  %11135 = vmatmul.mubr.msk.bf16.gmra.mrb[188].mxu0 %vm1961_vm3, %v11941_v52  ;;  %v6229_v6 = vmax.f32 %v5723_v2, 0.0  ;;  %v5724_v7 = vadd.f32 %v14156_v31, %v5213_v3  ;;  %11643 = vmatmul.mubr.msk.bf16.gmra.mrb[188].mxu1 %vm1961_vm3, %v11942_v27 }
 0x38a   : > { %11138 = vmatprep.mubr.msk.bf16.mxu0 %vm11996_vm2, %v11994_v1  ;;  %11646 = vmatprep.mubr.msk.bf16.mxu1 %vm11996_vm2, %v11994_v1 }
 0x38b   : > { %v10093_v8 = vpack.c.bf16 %v5975_v32, %v5975_v32  ;;  %v5976_v9 = vmax.f32 %v5470_v5, 0.0  ;;  %v10347_v10 = vpack.c.bf16 %v6229_v6, %v6229_v6  ;;  %v6230_v11 = vmax.f32 %v5724_v7, 0.0  ;;  %v11947_v7 = vld [vmem:[%s12047_s22 + $0x390] sm:$0xff]  }
 0x38c   : > { %v3442_v12 = vpop.f32.mrb[84].mxu0  ;;  %v4458_v17 = vpop.f32.mrb[84].mxu1 }
 0x38d   : > { %8506 = vst.msk [vmem:[%s12290_s29 + $0x2a0] sm:$0xf] %vm8337_vm4, %v10093_v8  ;;  %v10094_v13 = vpack.c.bf16 %v5976_v9, %v5976_v9  ;;  %v4960_v14 = vmul.f32 %v14143_v55, %v3442_v12  ;;  %v11032_v15 = vpop.f32.mrb[85].mxu0  ;;  %8760 = vst.msk [vmem:[%s12290_s29 + $0x698] sm:$0xf] %vm8337_vm4, %v10347_v10  ;;  %v10348_v18 = vpack.c.bf16 %v6230_v11, %v6230_v11  ;;  %v11540_v61 = vpop.f32.mrb[85].mxu1 }
 0x38e   : > { %v3445_v19 = vpop.f32.mrb[86].mxu0  ;;  %v5214_v49 = vmul.f32 %v14143_v55, %v4458_v17  ;;  %v4461_v54 = vpop.f32.mrb[86].mxu1 }
 0x38f   : > { %8507 = vst.msk [vmem:[%s12290_s29 + $0x2a4] sm:$0xf] %vm8337_vm4, %v10094_v13  ;;  %v5471_v22 = vadd.f32 %v14156_v31, %v4960_v14  ;;  %v4961_v23 = vmul.f32 %v14143_v55, %v3445_v19  ;;  %v11033_v24 = vpop.f32.mrb[87].mxu0  ;;  %8761 = vst.msk [vmem:[%s12290_s29 + $0x69c] sm:$0xf] %vm8337_vm4, %v10348_v18  ;;  %v5215_v26 = vmul.f32 %v14143_v55, %v4461_v54  ;;  %v11541_v28 = vpop.f32.mrb[87].mxu1 }
 0x390   : > { %v5725_v25 = vadd.f32 %v14156_v31, %v5214_v49  ;;  %v11948_v13 = vld [vmem:[%s12047_s22 + $0x788] sm:$0xff]  }
 0x391   : > { %v5977_v29 = vmax.f32 %v5471_v22, 0.0  ;;  %v5472_v30 = vadd.f32 %v14156_v31, %v4961_v23  ;;  %11139 = vmatmul.mubr.msk.bf16.gmra.mrb[192].mxu0 %vm1961_vm3, %v11943_v16  ;;  %v5726_v33 = vadd.f32 %v14156_v31, %v5215_v26  ;;  %11647 = vmatmul.mubr.msk.bf16.gmra.mrb[192].mxu1 %vm1961_vm3, %v11944_v21 }
 0x392   : > { %v6231_v62 = vmax.f32 %v5725_v25, 0.0  ;;  %11142 = vmatprep.mubr.msk.bf16.mxu0 %vm11996_vm2, %v11994_v1  ;;  %11650 = vmatprep.mubr.msk.bf16.mxu1 %vm11996_vm2, %v11994_v1 }
 0x393   : > { %v10095_v34 = vpack.c.bf16 %v5977_v29, %v5977_v29  ;;  %v5978_v35 = vmax.f32 %v5472_v30, 0.0  ;;  %v6232_v37 = vmax.f32 %v5726_v33, 0.0  ;;  %v11949_v33 = vld [vmem:[%s12047_s22 + $0x398] sm:$0xff]  }
 0x394   : > { %v10349_v36 = vpack.c.bf16 %v6231_v62, %v6231_v62  ;;  %v3450_v38 = vpop.f32.mrb[88].mxu0  ;;  %v4466_v43 = vpop.f32.mrb[88].mxu1 }
 0x395   : > { %8508 = vst.msk [vmem:[%s12290_s29 + $0x2a8] sm:$0xf] %vm8337_vm4, %v10095_v34  ;;  %v10096_v39 = vpack.c.bf16 %v5978_v35, %v5978_v35  ;;  %v4962_v40 = vmul.f32 %v14143_v55, %v3450_v38  ;;  %v11036_v41 = vpop.f32.mrb[89].mxu0  ;;  %v10350_v44 = vpack.c.bf16 %v6232_v37, %v6232_v37  ;;  %v5216_v46 = vmul.f32 %v14143_v55, %v4466_v43  ;;  %v11544_v47 = vpop.f32.mrb[89].mxu1 }
 0x396   : > { %8762 = vst.msk [vmem:[%s12290_s29 + $0x6a0] sm:$0xf] %vm8337_vm4, %v10349_v36  ;;  %v3453_v45 = vpop.f32.mrb[90].mxu0  ;;  %v4469_v53 = vpop.f32.mrb[90].mxu1 }
 0x397   : > { %8509 = vst.msk [vmem:[%s12290_s29 + $0x2ac] sm:$0xf] %vm8337_vm4, %v10096_v39  ;;  %v5473_v50 = vadd.f32 %v14156_v31, %v4962_v40  ;;  %v4963_v51 = vmul.f32 %v14143_v55, %v3453_v45  ;;  %v11037_v52 = vpop.f32.mrb[91].mxu0  ;;  %8763 = vst.msk [vmem:[%s12290_s29 + $0x6a4] sm:$0xf] %vm8337_vm4, %v10350_v44  ;;  %v5727_v20 = vadd.f32 %v14156_v31, %v5216_v46  ;;  %v11545_v57 = vpop.f32.mrb[91].mxu1 }
 0x398   : > { %v5217_v56 = vmul.f32 %v14143_v55, %v4469_v53  ;;  %v11950_v39 = vld [vmem:[%s12047_s22 + $0x790] sm:$0xff]  }
 0x399   : > { %v5979_v63 = vmax.f32 %v5473_v50, 0.0  ;;  %v5474_v27 = vadd.f32 %v14156_v31, %v4963_v51  ;;  %11143 = vmatmul.mubr.msk.bf16.gmra.mrb[196].mxu0 %vm1961_vm3, %v11945_v42  ;;  %v6233_v58 = vmax.f32 %v5727_v20, 0.0  ;;  %11651 = vmatmul.mubr.msk.bf16.gmra.mrb[196].mxu1 %vm1961_vm3, %v11946_v48 }
 0x39a   : > { %v5728_v59 = vadd.f32 %v14156_v31, %v5217_v56  ;;  %11146 = vmatprep.mubr.msk.bf16.mxu0 %vm11996_vm2, %v11994_v1  ;;  %11654 = vmatprep.mubr.msk.bf16.mxu1 %vm11996_vm2, %v11994_v1 }
 0x39b   : > { %v10097_v60 = vpack.c.bf16 %v5979_v63, %v5979_v63  ;;  %v5980_v0 = vmax.f32 %v5474_v27, 0.0  ;;  %v10351_v2 = vpack.c.bf16 %v6233_v58, %v6233_v58 }
 0x39c   : > { %v6234_v3 = vmax.f32 %v5728_v59, 0.0  ;;  %v3458_v4 = vpop.f32.mrb[92].mxu0  ;;  %v4474_v8 = vpop.f32.mrb[92].mxu1  ;;  %v11951_v59 = vld [vmem:[%s12047_s22 + $0x3a0] sm:$0xff]  }
 0x39d   : > { %8510 = vst.msk [vmem:[%s12290_s29 + $0x2b0] sm:$0xf] %vm8337_vm4, %v10097_v60  ;;  %v10098_v32 = vpack.c.bf16 %v5980_v0, %v5980_v0  ;;  %v4964_v5 = vmul.f32 %v14143_v55, %v3458_v4  ;;  %v11040_v6 = vpop.f32.mrb[93].mxu0  ;;  %8764 = vst.msk [vmem:[%s12290_s29 + $0x6a8] sm:$0xf] %vm8337_vm4, %v10351_v2  ;;  %v5218_v11 = vmul.f32 %v14143_v55, %v4474_v8  ;;  %v11548_v12 = vpop.f32.mrb[93].mxu1 }
 0x39e   : > { %v10352_v9 = vpack.c.bf16 %v6234_v3, %v6234_v3  ;;  %v3461_v10 = vpop.f32.mrb[94].mxu0  ;;  %v4477_v17 = vpop.f32.mrb[94].mxu1 }
 0x39f   : > { %8511 = vst.msk [vmem:[%s12290_s29 + $0x2b4] sm:$0xf] %vm8337_vm4, %v10098_v32  ;;  %v5475_v14 = vadd.f32 %v14156_v31, %v4964_v5  ;;  %v4965_v15 = vmul.f32 %v14143_v55, %v3461_v10  ;;  %v11041_v16 = vpop.f32.mrb[95].mxu0  ;;  %v5729_v18 = vadd.f32 %v14156_v31, %v5218_v11  ;;  %v5219_v19 = vmul.f32 %v14143_v55, %v4477_v17  ;;  %v11549_v49 = vpop.f32.mrb[95].mxu1  ;;  %v11952_v32 = vld [vmem:[%s12047_s22 + $0x798] sm:$0xff]  }
 0x3a0   : > { %8765 = vst.msk [vmem:[%s12290_s29 + $0x6ac] sm:$0xf] %vm8337_vm4, %v10352_v9 }
 0x3a1   : > { %v5981_v61 = vmax.f32 %v5475_v14, 0.0  ;;  %v5476_v21 = vadd.f32 %v14156_v31, %v4965_v15  ;;  %11147 = vmatmul.mubr.msk.bf16.gmra.mrb[200].mxu0 %vm1961_vm3, %v11947_v7  ;;  %v6235_v22 = vmax.f32 %v5729_v18, 0.0  ;;  %v5730_v23 = vadd.f32 %v14156_v31, %v5219_v19  ;;  %11655 = vmatmul.mubr.msk.bf16.gmra.mrb[200].mxu1 %vm1961_vm3, %v11948_v13 }
 0x3a2   : > { %11150 = vmatprep.mubr.msk.bf16.mxu0 %vm11996_vm2, %v11994_v1  ;;  %11658 = vmatprep.mubr.msk.bf16.mxu1 %vm11996_vm2, %v11994_v1 }
 0x3a3   : > { %v10099_v24 = vpack.c.bf16 %v5981_v61, %v5981_v61  ;;  %v5982_v54 = vmax.f32 %v5476_v21, 0.0  ;;  %v10353_v25 = vpack.c.bf16 %v6235_v22, %v6235_v22  ;;  %v6236_v26 = vmax.f32 %v5730_v23, 0.0  ;;  %v11953_v23 = vld [vmem:[%s12047_s22 + $0x3a8] sm:$0xff]  }
 0x3a4   : > { %v3466_v28 = vpop.f32.mrb[96].mxu0  ;;  %v4482_v34 = vpop.f32.mrb[96].mxu1 }
 0x3a5   : > { %8512 = vst.msk [vmem:[%s12290_s29 + $0x2b8] sm:$0xf] %vm8337_vm4, %v10099_v24  ;;  %v10100_v29 = vpack.c.bf16 %v5982_v54, %v5982_v54  ;;  %v4966_v30 = vmul.f32 %v14143_v55, %v3466_v28  ;;  %v11044_v62 = vpop.f32.mrb[97].mxu0  ;;  %8766 = vst.msk [vmem:[%s12290_s29 + $0x6b0] sm:$0xf] %vm8337_vm4, %v10353_v25  ;;  %v10354_v35 = vpack.c.bf16 %v6236_v26, %v6236_v26  ;;  %v11552_v38 = vpop.f32.mrb[97].mxu1 }
 0x3a6   : > { %v3469_v36 = vpop.f32.mrb[98].mxu0  ;;  %v5220_v37 = vmul.f32 %v14143_v55, %v4482_v34  ;;  %v4485_v43 = vpop.f32.mrb[98].mxu1 }
 0x3a7   : > { %8513 = vst.msk [vmem:[%s12290_s29 + $0x2bc] sm:$0xf] %vm8337_vm4, %v10100_v29  ;;  %v5477_v40 = vadd.f32 %v14156_v31, %v4966_v30  ;;  %v4967_v41 = vmul.f32 %v14143_v55, %v3469_v36  ;;  %v11045_v42 = vpop.f32.mrb[99].mxu0  ;;  %8767 = vst.msk [vmem:[%s12290_s29 + $0x6b4] sm:$0xf] %vm8337_vm4, %v10354_v35  ;;  %v5221_v45 = vmul.f32 %v14143_v55, %v4485_v43  ;;  %v11553_v46 = vpop.f32.mrb[99].mxu1 }
 0x3a8   : > { %v5731_v44 = vadd.f32 %v14156_v31, %v5220_v37  ;;  %v11954_v29 = vld [vmem:[%s12047_s22 + $0x7a0] sm:$0xff]  }
 0x3a9   : > { %v5983_v47 = vmax.f32 %v5477_v40, 0.0  ;;  %v5478_v48 = vadd.f32 %v14156_v31, %v4967_v41  ;;  %11151 = vmatmul.mubr.msk.bf16.gmra.mrb[204].mxu0 %vm1961_vm3, %v11949_v33  ;;  %v5732_v51 = vadd.f32 %v14156_v31, %v5221_v45  ;;  %11659 = vmatmul.mubr.msk.bf16.gmra.mrb[204].mxu1 %vm1961_vm3, %v11950_v39 }
 0x3aa   : > { %v6237_v50 = vmax.f32 %v5731_v44, 0.0  ;;  %11154 = vmatprep.mubr.msk.bf16.mxu0 %vm11996_vm2, %v11994_v1  ;;  %11662 = vmatprep.mubr.msk.bf16.mxu1 %vm11996_vm2, %v11994_v1 }
 0x3ab   : > { %v10101_v52 = vpack.c.bf16 %v5983_v47, %v5983_v47  ;;  %v5984_v53 = vmax.f32 %v5478_v48, 0.0  ;;  %v6238_v56 = vmax.f32 %v5732_v51, 0.0  ;;  %v11955_v51 = vld [vmem:[%s12047_s22 + $0x3b0] sm:$0xff]  }
 0x3ac   : > { %v10355_v20 = vpack.c.bf16 %v6237_v50, %v6237_v50  ;;  %v3474_v57 = vpop.f32.mrb[100].mxu0  ;;  %v4490_v60 = vpop.f32.mrb[100].mxu1 }
 0x3ad   : > { %8514 = vst.msk [vmem:[%s12290_s29 + $0x2c0] sm:$0xf] %vm8337_vm4, %v10101_v52  ;;  %v10102_v63 = vpack.c.bf16 %v5984_v53, %v5984_v53  ;;  %v4968_v27 = vmul.f32 %v14143_v55, %v3474_v57  ;;  %v11048_v58 = vpop.f32.mrb[101].mxu0  ;;  %v10356_v0 = vpack.c.bf16 %v6238_v56, %v6238_v56  ;;  %v5222_v3 = vmul.f32 %v14143_v55, %v4490_v60  ;;  %v11556_v4 = vpop.f32.mrb[101].mxu1  ;;  %v14517_v56 = vld [vmem:[%s15173_s2] ss:$0 sm:$0xff] }
 0x3ae   : > { %8768 = vst.msk [vmem:[%s12290_s29 + $0x6b8] sm:$0xf] %vm8337_vm4, %v10355_v20  ;;  %v3477_v2 = vpop.f32.mrb[102].mxu0  ;;  %v4493_v8 = vpop.f32.mrb[102].mxu1 }
 0x3af   : > { %8515 = vst.msk [vmem:[%s12290_s29 + $0x2c4] sm:$0xf] %vm8337_vm4, %v10102_v63  ;;  %v5479_v5 = vadd.f32 %v14156_v31, %v4968_v27  ;;  %v4969_v6 = vmul.f32 %v14143_v55, %v3477_v2  ;;  %v11049_v7 = vpop.f32.mrb[103].mxu0  ;;  %8769 = vst.msk [vmem:[%s12290_s29 + $0x6bc] sm:$0xf] %vm8337_vm4, %v10356_v0  ;;  %v5733_v9 = vadd.f32 %v14156_v31, %v5222_v3  ;;  %v11557_v11 = vpop.f32.mrb[103].mxu1 }
 0x3b0   : > { %v5223_v10 = vmul.f32 %v14143_v55, %v4493_v8  ;;  %v11956_v27 = vld [vmem:[%s12047_s22 + $0x7a8] sm:$0xff]   ;;  %v14530_v0 = vld [vmem:[%s15173_s2 + $0x1] ss:$0 sm:$0xff] }
 0x3b1   : > { %v5985_v12 = vmax.f32 %v5479_v5, 0.0  ;;  %v5480_v13 = vadd.f32 %v14156_v31, %v4969_v6  ;;  %11155 = vmatmul.mubr.msk.bf16.gmra.mrb[208].mxu0 %vm1961_vm3, %v11951_v59  ;;  %v6239_v14 = vmax.f32 %v5733_v9, 0.0  ;;  %11663 = vmatmul.mubr.msk.bf16.gmra.mrb[208].mxu1 %vm1961_vm3, %v11952_v32 }
 0x3b2   : > { %v5734_v15 = vadd.f32 %v14156_v31, %v5223_v10  ;;  %11158 = vmatprep.mubr.msk.bf16.mxu0 %vm11996_vm2, %v11994_v1  ;;  %11666 = vmatprep.mubr.msk.bf16.mxu1 %vm11996_vm2, %v11994_v1 }
 0x3b3   : > { %v10103_v16 = vpack.c.bf16 %v5985_v12, %v5985_v12  ;;  %v5986_v17 = vmax.f32 %v5480_v13, 0.0  ;;  %v10357_v18 = vpack.c.bf16 %v6239_v14, %v6239_v14 }
 0x3b4   : > { %v6240_v19 = vmax.f32 %v5734_v15, 0.0  ;;  %v3482_v49 = vpop.f32.mrb[104].mxu0  ;;  %v4498_v24 = vpop.f32.mrb[104].mxu1  ;;  %v11957_v15 = vld [vmem:[%s12047_s22 + $0x3b8] sm:$0xff]  }
 0x3b5   : > { %8516 = vst.msk [vmem:[%s12290_s29 + $0x2c8] sm:$0xf] %vm8337_vm4, %v10103_v16  ;;  %v10104_v61 = vpack.c.bf16 %v5986_v17, %v5986_v17  ;;  %v4970_v21 = vmul.f32 %v14143_v55, %v3482_v49  ;;  %v11052_v22 = vpop.f32.mrb[105].mxu0  ;;  %8770 = vst.msk [vmem:[%s12290_s29 + $0x6c0] sm:$0xf] %vm8337_vm4, %v10357_v18  ;;  %v5224_v26 = vmul.f32 %v14143_v55, %v4498_v24  ;;  %v11560_v28 = vpop.f32.mrb[105].mxu1 }
 0x3b6   : > { %v10358_v54 = vpack.c.bf16 %v6240_v19, %v6240_v19  ;;  %v3485_v25 = vpop.f32.mrb[106].mxu0  ;;  %v4501_v34 = vpop.f32.mrb[106].mxu1 }
 0x3b7   : > { %8517 = vst.msk [vmem:[%s12290_s29 + $0x2cc] sm:$0xf] %vm8337_vm4, %v10104_v61  ;;  %v5481_v30 = vadd.f32 %v14156_v31, %v4970_v21  ;;  %v4971_v62 = vmul.f32 %v14143_v55, %v3485_v25  ;;  %v11053_v33 = vpop.f32.mrb[107].mxu0  ;;  %v5735_v35 = vadd.f32 %v14156_v31, %v5224_v26  ;;  %v5225_v36 = vmul.f32 %v14143_v55, %v4501_v34  ;;  %v11561_v37 = vpop.f32.mrb[107].mxu1  ;;  %v11958_v61 = vld [vmem:[%s12047_s22 + $0x7b0] sm:$0xff]  }
 0x3b8   : > { %8771 = vst.msk [vmem:[%s12290_s29 + $0x6c4] sm:$0xf] %vm8337_vm4, %v10358_v54 }
 0x3b9   : > { %v5987_v38 = vmax.f32 %v5481_v30, 0.0  ;;  %v5482_v39 = vadd.f32 %v14156_v31, %v4971_v62  ;;  %11159 = vmatmul.mubr.msk.bf16.gmra.mrb[212].mxu0 %vm1961_vm3, %v11953_v23  ;;  %v6241_v40 = vmax.f32 %v5735_v35, 0.0  ;;  %v5736_v41 = vadd.f32 %v14156_v31, %v5225_v36  ;;  %11667 = vmatmul.mubr.msk.bf16.gmra.mrb[212].mxu1 %vm1961_vm3, %v11954_v29 }
 0x3ba   : > { %11162 = vmatprep.mubr.msk.bf16.mxu0 %vm11996_vm2, %v11994_v1  ;;  %11670 = vmatprep.mubr.msk.bf16.mxu1 %vm11996_vm2, %v11994_v1 }
 0x3bb   : > { %v10105_v42 = vpack.c.bf16 %v5987_v38, %v5987_v38  ;;  %v5988_v43 = vmax.f32 %v5482_v39, 0.0  ;;  %v10359_v44 = vpack.c.bf16 %v6241_v40, %v6241_v40  ;;  %v6242_v45 = vmax.f32 %v5736_v41, 0.0  ;;  %v11959_v41 = vld [vmem:[%s12047_s22 + $0x3c0] sm:$0xff]  }
 0x3bc   : > { %v3490_v46 = vpop.f32.mrb[108].mxu0  ;;  %v4506_v52 = vpop.f32.mrb[108].mxu1 }
 0x3bd   : > { %8518 = vst.msk [vmem:[%s12290_s29 + $0x2d0] sm:$0xf] %vm8337_vm4, %v10105_v42  ;;  %v10106_v47 = vpack.c.bf16 %v5988_v43, %v5988_v43  ;;  %v4972_v48 = vmul.f32 %v14143_v55, %v3490_v46  ;;  %v11056_v50 = vpop.f32.mrb[109].mxu0  ;;  %8772 = vst.msk [vmem:[%s12290_s29 + $0x6c8] sm:$0xf] %vm8337_vm4, %v10359_v44  ;;  %v10360_v53 = vpack.c.bf16 %v6242_v45, %v6242_v45  ;;  %v11564_v63 = vpop.f32.mrb[109].mxu1 }
 0x3be   : > { %v3493_v20 = vpop.f32.mrb[110].mxu0  ;;  %v5226_v57 = vmul.f32 %v14517_v56, %v4506_v52  ;;  %v4509_v60 = vpop.f32.mrb[110].mxu1 }
 0x3bf   : > { %8519 = vst.msk [vmem:[%s12290_s29 + $0x2d4] sm:$0xf] %vm8337_vm4, %v10106_v47  ;;  %v5483_v55 = vadd.f32 %v14156_v31, %v4972_v48  ;;  %v4973_v58 = vmul.f32 %v14517_v56, %v3493_v20  ;;  %v11057_v59 = vpop.f32.mrb[111].mxu0  ;;  %8773 = vst.msk [vmem:[%s12290_s29 + $0x6cc] sm:$0xf] %vm8337_vm4, %v10360_v53  ;;  %v5227_v3 = vmul.f32 %v14517_v56, %v4509_v60  ;;  %v11565_v4 = vpop.f32.mrb[111].mxu1 }
 0x3c0   : > { %v5737_v2 = vadd.f32 %v14530_v0, %v5226_v57  ;;  %v11960_v47 = vld [vmem:[%s12047_s22 + $0x7b8] sm:$0xff]  }
 0x3c1   : > { %v5989_v32 = vmax.f32 %v5483_v55, 0.0  ;;  %v5484_v31 = vadd.f32 %v14530_v0, %v4973_v58  ;;  %11163 = vmatmul.mubr.msk.bf16.gmra.mrb[216].mxu0 %vm1961_vm3, %v11955_v51  ;;  %v5738_v6 = vadd.f32 %v14530_v0, %v5227_v3  ;;  %11671 = vmatmul.mubr.msk.bf16.gmra.mrb[216].mxu1 %vm1961_vm3, %v11956_v27 }
 0x3c2   : > { %v6243_v5 = vmax.f32 %v5737_v2, 0.0  ;;  %11166 = vmatprep.mubr.msk.bf16.mxu0 %vm11996_vm2, %v11994_v1  ;;  %11674 = vmatprep.mubr.msk.bf16.mxu1 %vm11996_vm2, %v11994_v1 }
 0x3c3   : > { %v10107_v7 = vpack.c.bf16 %v5989_v32, %v5989_v32  ;;  %v5990_v8 = vmax.f32 %v5484_v31, 0.0  ;;  %v6244_v10 = vmax.f32 %v5738_v6, 0.0  ;;  %v11961_v6 = vld [vmem:[%s12047_s22 + $0x3c8] sm:$0xff]  }
 0x3c4   : > { %v10361_v9 = vpack.c.bf16 %v6243_v5, %v6243_v5  ;;  %v3498_v11 = vpop.f32.mrb[112].mxu0  ;;  %v4514_v16 = vpop.f32.mrb[112].mxu1 }
 0x3c5   : > { %8520 = vst.msk [vmem:[%s12290_s29 + $0x2d8] sm:$0xf] %vm8337_vm4, %v10107_v7  ;;  %v10108_v12 = vpack.c.bf16 %v5990_v8, %v5990_v8  ;;  %v4974_v13 = vmul.f32 %v14517_v56, %v3498_v11  ;;  %v11060_v14 = vpop.f32.mrb[113].mxu0  ;;  %v10362_v17 = vpack.c.bf16 %v6244_v10, %v6244_v10  ;;  %v5228_v19 = vmul.f32 %v14517_v56, %v4514_v16  ;;  %v11568_v49 = vpop.f32.mrb[113].mxu1 }
 0x3c6   : > { %8774 = vst.msk [vmem:[%s12290_s29 + $0x6d0] sm:$0xf] %vm8337_vm4, %v10361_v9  ;;  %v3501_v18 = vpop.f32.mrb[114].mxu0  ;;  %v4517_v24 = vpop.f32.mrb[114].mxu1 }
 0x3c7   : > { %8521 = vst.msk [vmem:[%s12290_s29 + $0x2dc] sm:$0xf] %vm8337_vm4, %v10108_v12  ;;  %v5485_v21 = vadd.f32 %v14530_v0, %v4974_v13  ;;  %v4975_v22 = vmul.f32 %v14517_v56, %v3501_v18  ;;  %v11061_v23 = vpop.f32.mrb[115].mxu0  ;;  %8775 = vst.msk [vmem:[%s12290_s29 + $0x6d4] sm:$0xf] %vm8337_vm4, %v10362_v17  ;;  %v5739_v54 = vadd.f32 %v14530_v0, %v5228_v19  ;;  %v11569_v26 = vpop.f32.mrb[115].mxu1 }
 0x3c8   : > { %v5229_v25 = vmul.f32 %v14517_v56, %v4517_v24  ;;  %v11962_v12 = vld [vmem:[%s12047_s22 + $0x7c0] sm:$0xff]  }
 0x3c9   : > { %v5991_v28 = vmax.f32 %v5485_v21, 0.0  ;;  %v5486_v29 = vadd.f32 %v14530_v0, %v4975_v22  ;;  %11167 = vmatmul.mubr.msk.bf16.gmra.mrb[220].mxu0 %vm1961_vm3, %v11957_v15  ;;  %v6245_v30 = vmax.f32 %v5739_v54, 0.0  ;;  %11675 = vmatmul.mubr.msk.bf16.gmra.mrb[220].mxu1 %vm1961_vm3, %v11958_v61 }
 0x3ca   : > { %v5740_v62 = vadd.f32 %v14530_v0, %v5229_v25  ;;  %11170 = vmatprep.mubr.msk.bf16.mxu0 %vm11996_vm2, %v11994_v1  ;;  %11678 = vmatprep.mubr.msk.bf16.mxu1 %vm11996_vm2, %v11994_v1 }
 0x3cb   : > { %v10109_v33 = vpack.c.bf16 %v5991_v28, %v5991_v28  ;;  %v5992_v34 = vmax.f32 %v5486_v29, 0.0  ;;  %v10363_v35 = vpack.c.bf16 %v6245_v30, %v6245_v30 }
 0x3cc   : > { %v6246_v36 = vmax.f32 %v5740_v62, 0.0  ;;  %v3506_v37 = vpop.f32.mrb[116].mxu0  ;;  %v4522_v42 = vpop.f32.mrb[116].mxu1  ;;  %v11963_v62 = vld [vmem:[%s12047_s22 + $0x3d0] sm:$0xff]  }
 0x3cd   : > { %8522 = vst.msk [vmem:[%s12290_s29 + $0x2e0] sm:$0xf] %vm8337_vm4, %v10109_v33  ;;  %v10110_v38 = vpack.c.bf16 %v5992_v34, %v5992_v34  ;;  %v4976_v39 = vmul.f32 %v14517_v56, %v3506_v37  ;;  %v11064_v40 = vpop.f32.mrb[117].mxu0  ;;  %8776 = vst.msk [vmem:[%s12290_s29 + $0x6d8] sm:$0xf] %vm8337_vm4, %v10363_v35  ;;  %v5230_v45 = vmul.f32 %v14517_v56, %v4522_v42  ;;  %v11572_v46 = vpop.f32.mrb[117].mxu1 }
 0x3ce   : > { %v10364_v43 = vpack.c.bf16 %v6246_v36, %v6246_v36  ;;  %v3509_v44 = vpop.f32.mrb[118].mxu0  ;;  %v4525_v52 = vpop.f32.mrb[118].mxu1 }
 0x3cf   : > { %8523 = vst.msk [vmem:[%s12290_s29 + $0x2e4] sm:$0xf] %vm8337_vm4, %v10110_v38  ;;  %v5487_v48 = vadd.f32 %v14530_v0, %v4976_v39  ;;  %v4977_v50 = vmul.f32 %v14517_v56, %v3509_v44  ;;  %v11065_v51 = vpop.f32.mrb[119].mxu0  ;;  %v5741_v53 = vadd.f32 %v14530_v0, %v5230_v45  ;;  %v5231_v20 = vmul.f32 %v14517_v56, %v4525_v52  ;;  %v11573_v57 = vpop.f32.mrb[119].mxu1  ;;  %v11964_v38 = vld [vmem:[%s12047_s22 + $0x7c8] sm:$0xff]  }
 0x3d0   : > { %8777 = vst.msk [vmem:[%s12290_s29 + $0x6dc] sm:$0xf] %vm8337_vm4, %v10364_v43 }
 0x3d1   : > { %v5993_v63 = vmax.f32 %v5487_v48, 0.0  ;;  %v5488_v27 = vadd.f32 %v14530_v0, %v4977_v50  ;;  %11171 = vmatmul.mubr.msk.bf16.gmra.mrb[224].mxu0 %vm1961_vm3, %v11959_v41  ;;  %v6247_v55 = vmax.f32 %v5741_v53, 0.0  ;;  %v5742_v58 = vadd.f32 %v14530_v0, %v5231_v20  ;;  %11679 = vmatmul.mubr.msk.bf16.gmra.mrb[224].mxu1 %vm1961_vm3, %v11960_v47 }
 0x3d2   : > { %11174 = vmatprep.mubr.msk.bf16.mxu0 %vm11996_vm2, %v11994_v1  ;;  %11682 = vmatprep.mubr.msk.bf16.mxu1 %vm11996_vm2, %v11994_v1 }
 0x3d3   : > { %v10111_v59 = vpack.c.bf16 %v5993_v63, %v5993_v63  ;;  %v5994_v60 = vmax.f32 %v5488_v27, 0.0  ;;  %v10365_v2 = vpack.c.bf16 %v6247_v55, %v6247_v55  ;;  %v6248_v3 = vmax.f32 %v5742_v58, 0.0  ;;  %v11965_v58 = vld [vmem:[%s12047_s22 + $0x3d8] sm:$0xff]  }
 0x3d4   : > { %v3514_v4 = vpop.f32.mrb[120].mxu0  ;;  %v4530_v7 = vpop.f32.mrb[120].mxu1 }
 0x3d5   : > { %8524 = vst.msk [vmem:[%s12290_s29 + $0x2e8] sm:$0xf] %vm8337_vm4, %v10111_v59  ;;  %v10112_v32 = vpack.c.bf16 %v5994_v60, %v5994_v60  ;;  %v4978_v31 = vmul.f32 %v14517_v56, %v3514_v4  ;;  %v11068_v5 = vpop.f32.mrb[121].mxu0  ;;  %8778 = vst.msk [vmem:[%s12290_s29 + $0x6e0] sm:$0xf] %vm8337_vm4, %v10365_v2  ;;  %v10366_v8 = vpack.c.bf16 %v6248_v3, %v6248_v3  ;;  %v11576_v11 = vpop.f32.mrb[121].mxu1 }
 0x3d6   : > { %v3517_v9 = vpop.f32.mrb[122].mxu0  ;;  %v5232_v10 = vmul.f32 %v14517_v56, %v4530_v7  ;;  %v4533_v16 = vpop.f32.mrb[122].mxu1 }
 0x3d7   : > { %8525 = vst.msk [vmem:[%s12290_s29 + $0x2ec] sm:$0xf] %vm8337_vm4, %v10112_v32  ;;  %v5489_v13 = vadd.f32 %v14530_v0, %v4978_v31  ;;  %v4979_v14 = vmul.f32 %v14517_v56, %v3517_v9  ;;  %v11069_v15 = vpop.f32.mrb[123].mxu0  ;;  %8779 = vst.msk [vmem:[%s12290_s29 + $0x6e4] sm:$0xf] %vm8337_vm4, %v10366_v8  ;;  %v5233_v18 = vmul.f32 %v14517_v56, %v4533_v16  ;;  %v11577_v19 = vpop.f32.mrb[123].mxu1 }
 0x3d8   : > { %v5743_v17 = vadd.f32 %v14530_v0, %v5232_v10  ;;  %v11966_v32 = vld [vmem:[%s12047_s22 + $0x7d0] sm:$0xff]  }
 0x3d9   : > { %v5995_v49 = vmax.f32 %v5489_v13, 0.0  ;;  %v5490_v61 = vadd.f32 %v14530_v0, %v4979_v14  ;;  %11175 = vmatmul.mubr.msk.bf16.gmra.mrb[228].mxu0 %vm1961_vm3, %v11961_v6  ;;  %v5744_v22 = vadd.f32 %v14530_v0, %v5233_v18  ;;  %11683 = vmatmul.mubr.msk.bf16.gmra.mrb[228].mxu1 %vm1961_vm3, %v11962_v12 }
 0x3da   : > { %v6249_v21 = vmax.f32 %v5743_v17, 0.0  ;;  %11178 = vmatprep.mubr.msk.bf16.mxu0 %vm11996_vm2, %v11994_v1  ;;  %11686 = vmatprep.mubr.msk.bf16.mxu1 %vm11996_vm2, %v11994_v1 }
 0x3db   : > { %v10113_v23 = vpack.c.bf16 %v5995_v49, %v5995_v49  ;;  %v5996_v24 = vmax.f32 %v5490_v61, 0.0  ;;  %v6250_v25 = vmax.f32 %v5744_v22, 0.0  ;;  %v11967_v22 = vld [vmem:[%s12047_s22 + $0x3e0] sm:$0xff]  }
 0x3dc   : > { %v10367_v54 = vpack.c.bf16 %v6249_v21, %v6249_v21  ;;  %v3522_v26 = vpop.f32.mrb[124].mxu0  ;;  %v4538_v33 = vpop.f32.mrb[124].mxu1 }
 0x3dd   : > { %8526 = vst.msk [vmem:[%s12290_s29 + $0x2f0] sm:$0xf] %vm8337_vm4, %v10113_v23  ;;  %v10114_v28 = vpack.c.bf16 %v5996_v24, %v5996_v24  ;;  %v4980_v29 = vmul.f32 %v14517_v56, %v3522_v26  ;;  %v11072_v30 = vpop.f32.mrb[125].mxu0  ;;  %v10368_v34 = vpack.c.bf16 %v6250_v25, %v6250_v25  ;;  %v5234_v36 = vmul.f32 %v14517_v56, %v4538_v33  ;;  %v11580_v37 = vpop.f32.mrb[125].mxu1 }
 0x3de   : > { %8780 = vst.msk [vmem:[%s12290_s29 + $0x6e8] sm:$0xf] %vm8337_vm4, %v10367_v54  ;;  %v3525_v35 = vpop.f32.mrb[126].mxu0  ;;  %v4541_v42 = vpop.f32.mrb[126].mxu1 }
 0x3df   : > { %8527 = vst.msk [vmem:[%s12290_s29 + $0x2f4] sm:$0xf] %vm8337_vm4, %v10114_v28  ;;  %v5491_v39 = vadd.f32 %v14530_v0, %v4980_v29  ;;  %v4981_v40 = vmul.f32 %v14517_v56, %v3525_v35  ;;  %v11073_v41 = vpop.f32.mrb[127].mxu0  ;;  %8781 = vst.msk [vmem:[%s12290_s29 + $0x6ec] sm:$0xf] %vm8337_vm4, %v10368_v34  ;;  %v5745_v43 = vadd.f32 %v14530_v0, %v5234_v36  ;;  %v11581_v45 = vpop.f32.mrb[127].mxu1 }
 0x3e0   : > { %v5235_v44 = vmul.f32 %v14517_v56, %v4541_v42  ;;  %v11968_v28 = vld [vmem:[%s12047_s22 + $0x7d8] sm:$0xff]  }
 0x3e1   : > { %v5997_v46 = vmax.f32 %v5491_v39, 0.0  ;;  %v5492_v47 = vadd.f32 %v14530_v0, %v4981_v40  ;;  %11179 = vmatmul.mubr.msk.bf16.gmra.mrb[232].mxu0 %vm1961_vm3, %v11963_v62  ;;  %v6251_v48 = vmax.f32 %v5745_v43, 0.0  ;;  %11687 = vmatmul.mubr.msk.bf16.gmra.mrb[232].mxu1 %vm1961_vm3, %v11964_v38 }
 0x3e2   : > { %v5746_v50 = vadd.f32 %v14530_v0, %v5235_v44  ;;  %11182 = vmatprep.mubr.msk.bf16.mxu0 %vm11996_vm2, %v11994_v1  ;;  %11690 = vmatprep.mubr.msk.bf16.mxu1 %vm11996_vm2, %v11994_v1 }
 0x3e3   : > { %v10115_v51 = vpack.c.bf16 %v5997_v46, %v5997_v46  ;;  %v5998_v52 = vmax.f32 %v5492_v47, 0.0  ;;  %v10369_v53 = vpack.c.bf16 %v6251_v48, %v6251_v48 }
 0x3e4   : > { %v6252_v20 = vmax.f32 %v5746_v50, 0.0  ;;  %v3530_v57 = vpop.f32.mrb[128].mxu0  ;;  %v4546_v59 = vpop.f32.mrb[128].mxu1  ;;  %v11969_v50 = vld [vmem:[%s12047_s22 + $0x3e8] sm:$0xff]  }
 0x3e5   : > { %8528 = vst.msk [vmem:[%s12290_s29 + $0x2f8] sm:$0xf] %vm8337_vm4, %v10115_v51  ;;  %v10116_v63 = vpack.c.bf16 %v5998_v52, %v5998_v52  ;;  %v4982_v27 = vmul.f32 %v14517_v56, %v3530_v57  ;;  %v11076_v55 = vpop.f32.mrb[129].mxu0  ;;  %8782 = vst.msk [vmem:[%s12290_s29 + $0x6f0] sm:$0xf] %vm8337_vm4, %v10369_v53  ;;  %v5236_v3 = vmul.f32 %v14517_v56, %v4546_v59  ;;  %v11584_v4 = vpop.f32.mrb[129].mxu1 }
 0x3e6   : > { %v10370_v60 = vpack.c.bf16 %v6252_v20, %v6252_v20  ;;  %v3533_v2 = vpop.f32.mrb[130].mxu0  ;;  %v4549_v7 = vpop.f32.mrb[130].mxu1 }
 0x3e7   : > { %8529 = vst.msk [vmem:[%s12290_s29 + $0x2fc] sm:$0xf] %vm8337_vm4, %v10116_v63  ;;  %v5493_v31 = vadd.f32 %v14530_v0, %v4982_v27  ;;  %v4983_v5 = vmul.f32 %v14517_v56, %v3533_v2  ;;  %v11077_v6 = vpop.f32.mrb[131].mxu0  ;;  %v5747_v8 = vadd.f32 %v14530_v0, %v5236_v3  ;;  %v5237_v9 = vmul.f32 %v14517_v56, %v4549_v7  ;;  %v11585_v10 = vpop.f32.mrb[131].mxu1  ;;  %v11970_v63 = vld [vmem:[%s12047_s22 + $0x7e0] sm:$0xff]  }
 0x3e8   : > { %8783 = vst.msk [vmem:[%s12290_s29 + $0x6f4] sm:$0xf] %vm8337_vm4, %v10370_v60 }
 0x3e9   : > { %v5999_v11 = vmax.f32 %v5493_v31, 0.0  ;;  %v5494_v12 = vadd.f32 %v14530_v0, %v4983_v5  ;;  %11183 = vmatmul.mubr.msk.bf16.gmra.mrb[236].mxu0 %vm1961_vm3, %v11965_v58  ;;  %v6253_v13 = vmax.f32 %v5747_v8, 0.0  ;;  %v5748_v14 = vadd.f32 %v14530_v0, %v5237_v9  ;;  %11691 = vmatmul.mubr.msk.bf16.gmra.mrb[236].mxu1 %vm1961_vm3, %v11966_v32 }
 0x3ea   : > { %11186 = vmatprep.mubr.msk.bf16.mxu0 %vm11996_vm2, %v11994_v1  ;;  %11694 = vmatprep.mubr.msk.bf16.mxu1 %vm11996_vm2, %v11994_v1 }
 0x3eb   : > { %v10117_v15 = vpack.c.bf16 %v5999_v11, %v5999_v11  ;;  %v6000_v16 = vmax.f32 %v5494_v12, 0.0  ;;  %v10371_v17 = vpack.c.bf16 %v6253_v13, %v6253_v13  ;;  %v6254_v18 = vmax.f32 %v5748_v14, 0.0  ;;  %v11971_v14 = vld [vmem:[%s12047_s22 + $0x3f0] sm:$0xff]  }
 0x3ec   : > { %v3538_v19 = vpop.f32.mrb[132].mxu0  ;;  %v4554_v23 = vpop.f32.mrb[132].mxu1 }
 0x3ed   : > { %8530 = vst.msk [vmem:[%s12290_s29 + $0x300] sm:$0xf] %vm8337_vm4, %v10117_v15  ;;  %v10118_v49 = vpack.c.bf16 %v6000_v16, %v6000_v16  ;;  %v4984_v61 = vmul.f32 %v14517_v56, %v3538_v19  ;;  %v11080_v21 = vpop.f32.mrb[133].mxu0  ;;  %8784 = vst.msk [vmem:[%s12290_s29 + $0x6f8] sm:$0xf] %vm8337_vm4, %v10371_v17  ;;  %v10372_v24 = vpack.c.bf16 %v6254_v18, %v6254_v18  ;;  %v11588_v26 = vpop.f32.mrb[133].mxu1 }
 0x3ee   : > { %v3541_v54 = vpop.f32.mrb[134].mxu0  ;;  %v5238_v25 = vmul.f32 %v14517_v56, %v4554_v23  ;;  %v4557_v33 = vpop.f32.mrb[134].mxu1 }
 0x3ef   : > { %8531 = vst.msk [vmem:[%s12290_s29 + $0x304] sm:$0xf] %vm8337_vm4, %v10118_v49  ;;  %v5495_v29 = vadd.f32 %v14530_v0, %v4984_v61  ;;  %v4985_v30 = vmul.f32 %v14517_v56, %v3541_v54  ;;  %v11081_v62 = vpop.f32.mrb[135].mxu0  ;;  %8785 = vst.msk [vmem:[%s12290_s29 + $0x6fc] sm:$0xf] %vm8337_vm4, %v10372_v24  ;;  %v5239_v35 = vmul.f32 %v14517_v56, %v4557_v33  ;;  %v11589_v36 = vpop.f32.mrb[135].mxu1 }
 0x3f0   : > { %v5749_v34 = vadd.f32 %v14530_v0, %v5238_v25 }
 0x3f1   : > { %v6001_v37 = vmax.f32 %v5495_v29, 0.0  ;;  %v5496_v38 = vadd.f32 %v14530_v0, %v4985_v30  ;;  %11187 = vmatmul.mubr.msk.bf16.gmra.mrb[240].mxu0 %vm1961_vm3, %v11967_v22  ;;  %v5750_v40 = vadd.f32 %v14530_v0, %v5239_v35  ;;  %11695 = vmatmul.mubr.msk.bf16.gmra.mrb[240].mxu1 %vm1961_vm3, %v11968_v28 }
 0x3f2   : > { %v6255_v39 = vmax.f32 %v5749_v34, 0.0  ;;  %11190 = vmatprep.mubr.msk.bf16.mxu0 %vm11996_vm2, %v11994_v1  ;;  %11698 = vmatprep.mubr.msk.bf16.mxu1 %vm11996_vm2, %v11994_v1 }
 0x3f3   : > { %v10119_v41 = vpack.c.bf16 %v6001_v37, %v6001_v37  ;;  %v6002_v42 = vmax.f32 %v5496_v38, 0.0  ;;  %v6256_v44 = vmax.f32 %v5750_v40, 0.0 }
 0x3f4   : > { %v10373_v43 = vpack.c.bf16 %v6255_v39, %v6255_v39  ;;  %v3546_v45 = vpop.f32.mrb[136].mxu0  ;;  %v4562_v51 = vpop.f32.mrb[136].mxu1 }
 0x3f5   : > { %8532 = vst.msk [vmem:[%s12290_s29 + $0x308] sm:$0xf] %vm8337_vm4, %v10119_v41  ;;  %v10120_v46 = vpack.c.bf16 %v6002_v42, %v6002_v42  ;;  %v4986_v47 = vmul.f32 %v14517_v56, %v3546_v45  ;;  %v11084_v48 = vpop.f32.mrb[137].mxu0  ;;  %v10374_v52 = vpack.c.bf16 %v6256_v44, %v6256_v44  ;;  %v5240_v20 = vmul.f32 %v14517_v56, %v4562_v51  ;;  %v11592_v57 = vpop.f32.mrb[137].mxu1 }
 0x3f6   : > { %8786 = vst.msk [vmem:[%s12290_s29 + $0x700] sm:$0xf] %vm8337_vm4, %v10373_v43  ;;  %v3549_v53 = vpop.f32.mrb[138].mxu0  ;;  %v4565_v59 = vpop.f32.mrb[138].mxu1 }
 0x3f7   : > { %8533 = vst.msk [vmem:[%s12290_s29 + $0x30c] sm:$0xf] %vm8337_vm4, %v10120_v46  ;;  %v5497_v27 = vadd.f32 %v14530_v0, %v4986_v47  ;;  %v4987_v55 = vmul.f32 %v14517_v56, %v3549_v53  ;;  %v11085_v58 = vpop.f32.mrb[139].mxu0  ;;  %8787 = vst.msk [vmem:[%s12290_s29 + $0x704] sm:$0xf] %vm8337_vm4, %v10374_v52  ;;  %v5751_v60 = vadd.f32 %v14530_v0, %v5240_v20  ;;  %v11593_v3 = vpop.f32.mrb[139].mxu1 }
 0x3f8   : > { %v5241_v2 = vmul.f32 %v14517_v56, %v4565_v59 }
 0x3f9   : > { %v6003_v4 = vmax.f32 %v5497_v27, 0.0  ;;  %v5498_v32 = vadd.f32 %v14530_v0, %v4987_v55  ;;  %11191 = vmatmul.mubr.msk.bf16.gmra.mrb[244].mxu0 %vm1961_vm3, %v11969_v50  ;;  %v6257_v31 = vmax.f32 %v5751_v60, 0.0  ;;  %11699 = vmatmul.mubr.msk.bf16.gmra.mrb[244].mxu1 %vm1961_vm3, %v11970_v63 }
 0x3fa   : > { %v5752_v5 = vadd.f32 %v14530_v0, %v5241_v2  ;;  %11194 = vmatprep.mubr.msk.bf16.mxu0 %vm11996_vm2, %v11994_v1 }
 0x3fb   : > { %v10121_v6 = vpack.c.bf16 %v6003_v4, %v6003_v4  ;;  %v6004_v7 = vmax.f32 %v5498_v32, 0.0  ;;  %v10375_v8 = vpack.c.bf16 %v6257_v31, %v6257_v31 }
 0x3fc   : > { %v6258_v9 = vmax.f32 %v5752_v5, 0.0  ;;  %v3554_v10 = vpop.f32.mrb[140].mxu0  ;;  %v4570_v15 = vpop.f32.mrb[140].mxu1 }
 0x3fd   : > { %8534 = vst.msk [vmem:[%s12290_s29 + $0x310] sm:$0xf] %vm8337_vm4, %v10121_v6  ;;  %v10122_v11 = vpack.c.bf16 %v6004_v7, %v6004_v7  ;;  %v4988_v12 = vmul.f32 %v14517_v56, %v3554_v10  ;;  %v11088_v13 = vpop.f32.mrb[141].mxu0  ;;  %8788 = vst.msk [vmem:[%s12290_s29 + $0x708] sm:$0xf] %vm8337_vm4, %v10375_v8  ;;  %v5242_v1 = vmul.f32 %v14517_v56, %v4570_v15  ;;  %v11596_v18 = vpop.f32.mrb[141].mxu1 }
 0x3fe   : > { %v10376_v16 = vpack.c.bf16 %v6258_v9, %v6258_v9  ;;  %v3557_v17 = vpop.f32.mrb[142].mxu0  ;;  %v4573_v21 = vpop.f32.mrb[142].mxu1 }
 0x3ff   : > { %8535 = vst.msk [vmem:[%s12290_s29 + $0x314] sm:$0xf] %vm8337_vm4, %v10122_v11  ;;  %v5499_v19 = vadd.f32 %v14530_v0, %v4988_v12  ;;  %v4989_v49 = vmul.f32 %v14517_v56, %v3557_v17  ;;  %v11089_v61 = vpop.f32.mrb[143].mxu0  ;;  %v5753_v22 = vadd.f32 %v14530_v0, %v5242_v1  ;;  %v5243_v23 = vmul.f32 %v14517_v56, %v4573_v21  ;;  %v11597_v24 = vpop.f32.mrb[143].mxu1 }
 0x400   : > { %8789 = vst.msk [vmem:[%s12290_s29 + $0x70c] sm:$0xf] %vm8337_vm4, %v10376_v16 }
 0x401   : > { %v6005_v54 = vmax.f32 %v5499_v19, 0.0  ;;  %v5500_v25 = vadd.f32 %v14530_v0, %v4989_v49  ;;  %11195 = vmatmul.mubr.msk.bf16.gmra.mrb[248].mxu0 %vm1961_vm3, %v11971_v14  ;;  %v6259_v26 = vmax.f32 %v5753_v22, 0.0  ;;  %v5754_v28 = vadd.f32 %v14530_v0, %v5243_v23 }
 0x403   : > { %v10123_v29 = vpack.c.bf16 %v6005_v54, %v6005_v54  ;;  %v6006_v30 = vmax.f32 %v5500_v25, 0.0  ;;  %v10377_v62 = vpack.c.bf16 %v6259_v26, %v6259_v26  ;;  %v6260_v33 = vmax.f32 %v5754_v28, 0.0 }
 0x404   : > { %v3562_v34 = vpop.f32.mrb[144].mxu0  ;;  %v4578_v38 = vpop.f32.mrb[144].mxu1 }
 0x405   : > { %8536 = vst.msk [vmem:[%s12290_s29 + $0x318] sm:$0xf] %vm8337_vm4, %v10123_v29  ;;  %v10124_v35 = vpack.c.bf16 %v6006_v30, %v6006_v30  ;;  %v4990_v36 = vmul.f32 %v14517_v56, %v3562_v34  ;;  %v11092_v37 = vpop.f32.mrb[145].mxu0  ;;  %8790 = vst.msk [vmem:[%s12290_s29 + $0x710] sm:$0xf] %vm8337_vm4, %v10377_v62  ;;  %v10378_v39 = vpack.c.bf16 %v6260_v33, %v6260_v33  ;;  %v11600_v42 = vpop.f32.mrb[145].mxu1 }
 0x406   : > { %v3565_v40 = vpop.f32.mrb[146].mxu0  ;;  %v5244_v41 = vmul.f32 %v14517_v56, %v4578_v38  ;;  %v4581_v46 = vpop.f32.mrb[146].mxu1 }
 0x407   : > { %8537 = vst.msk [vmem:[%s12290_s29 + $0x31c] sm:$0xf] %vm8337_vm4, %v10124_v35  ;;  %v5501_v43 = vadd.f32 %v14530_v0, %v4990_v36  ;;  %v4991_v44 = vmul.f32 %v14517_v56, %v3565_v40  ;;  %v11093_v45 = vpop.f32.mrb[147].mxu0  ;;  %8791 = vst.msk [vmem:[%s12290_s29 + $0x714] sm:$0xf] %vm8337_vm4, %v10378_v39  ;;  %v5245_v48 = vmul.f32 %v14517_v56, %v4581_v46  ;;  %v11601_v50 = vpop.f32.mrb[147].mxu1 }
 0x408   : > { %v5755_v47 = vadd.f32 %v14530_v0, %v5244_v41 }
 0x409   : > { %v6007_v51 = vmax.f32 %v5501_v43, 0.0  ;;  %v5502_v52 = vadd.f32 %v14530_v0, %v4991_v44  ;;  %v5756_v20 = vadd.f32 %v14530_v0, %v5245_v48 }
 0x40a   : > { %v6261_v53 = vmax.f32 %v5755_v47, 0.0 }
 0x40b   : > { %v10125_v57 = vpack.c.bf16 %v6007_v51, %v6007_v51  ;;  %v6008_v63 = vmax.f32 %v5502_v52, 0.0  ;;  %v6262_v55 = vmax.f32 %v5756_v20, 0.0 }
 0x40c   : > { %v10379_v27 = vpack.c.bf16 %v6261_v53, %v6261_v53  ;;  %v3570_v58 = vpop.f32.mrb[148].mxu0  ;;  %v4586_v3 = vpop.f32.mrb[148].mxu1 }
 0x40d   : > { %8538 = vst.msk [vmem:[%s12290_s29 + $0x320] sm:$0xf] %vm8337_vm4, %v10125_v57  ;;  %v10126_v59 = vpack.c.bf16 %v6008_v63, %v6008_v63  ;;  %v4992_v60 = vmul.f32 %v14517_v56, %v3570_v58  ;;  %v11096_v2 = vpop.f32.mrb[149].mxu0  ;;  %v10380_v4 = vpack.c.bf16 %v6262_v55, %v6262_v55  ;;  %v5246_v31 = vmul.f32 %v14517_v56, %v4586_v3  ;;  %v11604_v5 = vpop.f32.mrb[149].mxu1 }
 0x40e   : > { %8792 = vst.msk [vmem:[%s12290_s29 + $0x718] sm:$0xf] %vm8337_vm4, %v10379_v27  ;;  %v3573_v32 = vpop.f32.mrb[150].mxu0  ;;  %v4589_v9 = vpop.f32.mrb[150].mxu1 }
 0x40f   : > { %8539 = vst.msk [vmem:[%s12290_s29 + $0x324] sm:$0xf] %vm8337_vm4, %v10126_v59  ;;  %v5503_v6 = vadd.f32 %v14530_v0, %v4992_v60  ;;  %v4993_v7 = vmul.f32 %v14517_v56, %v3573_v32  ;;  %v11097_v8 = vpop.f32.mrb[151].mxu0  ;;  %8793 = vst.msk [vmem:[%s12290_s29 + $0x71c] sm:$0xf] %vm8337_vm4, %v10380_v4  ;;  %v5757_v10 = vadd.f32 %v14530_v0, %v5246_v31  ;;  %v11605_v12 = vpop.f32.mrb[151].mxu1 }
 0x410   : > { %v5247_v11 = vmul.f32 %v14517_v56, %v4589_v9 }
 0x411   : > { %v6009_v13 = vmax.f32 %v5503_v6, 0.0  ;;  %v5504_v14 = vadd.f32 %v14530_v0, %v4993_v7  ;;  %v6263_v15 = vmax.f32 %v5757_v10, 0.0 }
 0x412   : > { %v5758_v16 = vadd.f32 %v14530_v0, %v5247_v11 }
 0x413   : > { %v10127_v17 = vpack.c.bf16 %v6009_v13, %v6009_v13  ;;  %v6010_v1 = vmax.f32 %v5504_v14, 0.0  ;;  %v10381_v18 = vpack.c.bf16 %v6263_v15, %v6263_v15 }
 0x414   : > { %v6264_v19 = vmax.f32 %v5758_v16, 0.0  ;;  %v3578_v49 = vpop.f32.mrb[152].mxu0  ;;  %v4594_v23 = vpop.f32.mrb[152].mxu1 }
 0x415   : > { %8540 = vst.msk [vmem:[%s12290_s29 + $0x328] sm:$0xf] %vm8337_vm4, %v10127_v17  ;;  %v10128_v61 = vpack.c.bf16 %v6010_v1, %v6010_v1  ;;  %v4994_v21 = vmul.f32 %v14517_v56, %v3578_v49  ;;  %v11100_v22 = vpop.f32.mrb[153].mxu0  ;;  %8794 = vst.msk [vmem:[%s12290_s29 + $0x720] sm:$0xf] %vm8337_vm4, %v10381_v18  ;;  %v5248_v25 = vmul.f32 %v14517_v56, %v4594_v23  ;;  %v11608_v26 = vpop.f32.mrb[153].mxu1 }
 0x416   : > { %v10382_v24 = vpack.c.bf16 %v6264_v19, %v6264_v19  ;;  %v3581_v54 = vpop.f32.mrb[154].mxu0  ;;  %v4597_v62 = vpop.f32.mrb[154].mxu1 }
 0x417   : > { %8541 = vst.msk [vmem:[%s12290_s29 + $0x32c] sm:$0xf] %vm8337_vm4, %v10128_v61  ;;  %v5505_v28 = vadd.f32 %v14530_v0, %v4994_v21  ;;  %v4995_v29 = vmul.f32 %v14517_v56, %v3581_v54  ;;  %v11101_v30 = vpop.f32.mrb[155].mxu0  ;;  %v5759_v33 = vadd.f32 %v14530_v0, %v5248_v25  ;;  %v5249_v34 = vmul.f32 %v14517_v56, %v4597_v62  ;;  %v11609_v35 = vpop.f32.mrb[155].mxu1 }
 0x418   : > { %8795 = vst.msk [vmem:[%s12290_s29 + $0x724] sm:$0xf] %vm8337_vm4, %v10382_v24 }
 0x419   : > { %v6011_v36 = vmax.f32 %v5505_v28, 0.0  ;;  %v5506_v37 = vadd.f32 %v14530_v0, %v4995_v29  ;;  %v6265_v38 = vmax.f32 %v5759_v33, 0.0  ;;  %v5760_v39 = vadd.f32 %v14530_v0, %v5249_v34 }
 0x41b   : > { %v10129_v40 = vpack.c.bf16 %v6011_v36, %v6011_v36  ;;  %v6012_v41 = vmax.f32 %v5506_v37, 0.0  ;;  %v10383_v42 = vpack.c.bf16 %v6265_v38, %v6265_v38  ;;  %v6266_v43 = vmax.f32 %v5760_v39, 0.0 }
 0x41c   : > { %v3586_v44 = vpop.f32.mrb[156].mxu0  ;;  %v4602_v48 = vpop.f32.mrb[156].mxu1 }
 0x41d   : > { %8542 = vst.msk [vmem:[%s12290_s29 + $0x330] sm:$0xf] %vm8337_vm4, %v10129_v40  ;;  %v10130_v45 = vpack.c.bf16 %v6012_v41, %v6012_v41  ;;  %v4996_v46 = vmul.f32 %v14517_v56, %v3586_v44  ;;  %v11104_v47 = vpop.f32.mrb[157].mxu0  ;;  %8796 = vst.msk [vmem:[%s12290_s29 + $0x728] sm:$0xf] %vm8337_vm4, %v10383_v42  ;;  %v10384_v50 = vpack.c.bf16 %v6266_v43, %v6266_v43  ;;  %v11612_v53 = vpop.f32.mrb[157].mxu1 }
 0x41e   : > { %v3589_v51 = vpop.f32.mrb[158].mxu0  ;;  %v5250_v52 = vmul.f32 %v14517_v56, %v4602_v48  ;;  %v4605_v27 = vpop.f32.mrb[158].mxu1 }
 0x41f   : > { %8543 = vst.msk [vmem:[%s12290_s29 + $0x334] sm:$0xf] %vm8337_vm4, %v10130_v45  ;;  %v5507_v20 = vadd.f32 %v14530_v0, %v4996_v46  ;;  %v4997_v57 = vmul.f32 %v14517_v56, %v3589_v51  ;;  %v11105_v63 = vpop.f32.mrb[159].mxu0  ;;  %8797 = vst.msk [vmem:[%s12290_s29 + $0x72c] sm:$0xf] %vm8337_vm4, %v10384_v50  ;;  %v5251_v58 = vmul.f32 %v14517_v56, %v4605_v27  ;;  %v11613_v59 = vpop.f32.mrb[159].mxu1 }
 0x420   : > { %v5761_v55 = vadd.f32 %v14530_v0, %v5250_v52 }
 0x421   : > { %v6013_v60 = vmax.f32 %v5507_v20, 0.0  ;;  %v5508_v2 = vadd.f32 %v14530_v0, %v4997_v57  ;;  %v5762_v4 = vadd.f32 %v14530_v0, %v5251_v58 }
 0x422   : > { %v6267_v3 = vmax.f32 %v5761_v55, 0.0 }
 0x423   : > { %v10131_v32 = vpack.c.bf16 %v6013_v60, %v6013_v60  ;;  %v6014_v31 = vmax.f32 %v5508_v2, 0.0  ;;  %v6268_v6 = vmax.f32 %v5762_v4, 0.0 }
 0x424   : > { %v10385_v5 = vpack.c.bf16 %v6267_v3, %v6267_v3  ;;  %v3594_v7 = vpop.f32.mrb[160].mxu0  ;;  %v4610_v11 = vpop.f32.mrb[160].mxu1 }
 0x425   : > { %8544 = vst.msk [vmem:[%s12290_s29 + $0x338] sm:$0xf] %vm8337_vm4, %v10131_v32  ;;  %v10132_v8 = vpack.c.bf16 %v6014_v31, %v6014_v31  ;;  %v4998_v9 = vmul.f32 %v14517_v56, %v3594_v7  ;;  %v11108_v10 = vpop.f32.mrb[161].mxu0  ;;  %v10386_v12 = vpack.c.bf16 %v6268_v6, %v6268_v6  ;;  %v5252_v14 = vmul.f32 %v14517_v56, %v4610_v11  ;;  %v11616_v15 = vpop.f32.mrb[161].mxu1 }
 0x426   : > { %8798 = vst.msk [vmem:[%s12290_s29 + $0x730] sm:$0xf] %vm8337_vm4, %v10385_v5  ;;  %v3597_v13 = vpop.f32.mrb[162].mxu0  ;;  %v4613_v18 = vpop.f32.mrb[162].mxu1 }
 0x427   : > { %8545 = vst.msk [vmem:[%s12290_s29 + $0x33c] sm:$0xf] %vm8337_vm4, %v10132_v8  ;;  %v5509_v16 = vadd.f32 %v14530_v0, %v4998_v9  ;;  %v4999_v17 = vmul.f32 %v14517_v56, %v3597_v13  ;;  %v11109_v1 = vpop.f32.mrb[163].mxu0  ;;  %8799 = vst.msk [vmem:[%s12290_s29 + $0x734] sm:$0xf] %vm8337_vm4, %v10386_v12  ;;  %v5763_v19 = vadd.f32 %v14530_v0, %v5252_v14  ;;  %v11617_v61 = vpop.f32.mrb[163].mxu1 }
 0x428   : > { %v5253_v49 = vmul.f32 %v14517_v56, %v4613_v18 }
 0x429   : > { %v6015_v21 = vmax.f32 %v5509_v16, 0.0  ;;  %v5510_v22 = vadd.f32 %v14530_v0, %v4999_v17  ;;  %v6269_v23 = vmax.f32 %v5763_v19, 0.0 }
 0x42a   : > { %v5764_v24 = vadd.f32 %v14530_v0, %v5253_v49 }
 0x42b   : > { %v10133_v54 = vpack.c.bf16 %v6015_v21, %v6015_v21  ;;  %v6016_v25 = vmax.f32 %v5510_v22, 0.0  ;;  %v10387_v26 = vpack.c.bf16 %v6269_v23, %v6269_v23 }
 0x42c   : > { %v6270_v28 = vmax.f32 %v5764_v24, 0.0  ;;  %v3602_v29 = vpop.f32.mrb[164].mxu0  ;;  %v4618_v34 = vpop.f32.mrb[164].mxu1 }
 0x42d   : > { %8546 = vst.msk [vmem:[%s12290_s29 + $0x340] sm:$0xf] %vm8337_vm4, %v10133_v54  ;;  %v10134_v30 = vpack.c.bf16 %v6016_v25, %v6016_v25  ;;  %v5000_v62 = vmul.f32 %v14517_v56, %v3602_v29  ;;  %v11112_v33 = vpop.f32.mrb[165].mxu0  ;;  %8800 = vst.msk [vmem:[%s12290_s29 + $0x738] sm:$0xf] %vm8337_vm4, %v10387_v26  ;;  %v5254_v37 = vmul.f32 %v14517_v56, %v4618_v34  ;;  %v11620_v38 = vpop.f32.mrb[165].mxu1 }
 0x42e   : > { %v10388_v35 = vpack.c.bf16 %v6270_v28, %v6270_v28  ;;  %v3605_v36 = vpop.f32.mrb[166].mxu0  ;;  %v4621_v42 = vpop.f32.mrb[166].mxu1 }
 0x42f   : > { %8547 = vst.msk [vmem:[%s12290_s29 + $0x344] sm:$0xf] %vm8337_vm4, %v10134_v30  ;;  %v5511_v39 = vadd.f32 %v14530_v0, %v5000_v62  ;;  %v5001_v40 = vmul.f32 %v14517_v56, %v3605_v36  ;;  %v11113_v41 = vpop.f32.mrb[167].mxu0  ;;  %v5765_v43 = vadd.f32 %v14530_v0, %v5254_v37  ;;  %v5255_v44 = vmul.f32 %v14517_v56, %v4621_v42  ;;  %v11621_v45 = vpop.f32.mrb[167].mxu1 }
 0x430   : > { %8801 = vst.msk [vmem:[%s12290_s29 + $0x73c] sm:$0xf] %vm8337_vm4, %v10388_v35 }
 0x431   : > { %v6017_v46 = vmax.f32 %v5511_v39, 0.0  ;;  %v5512_v47 = vadd.f32 %v14530_v0, %v5001_v40  ;;  %v6271_v48 = vmax.f32 %v5765_v43, 0.0  ;;  %v5766_v50 = vadd.f32 %v14530_v0, %v5255_v44 }
 0x433   : > { %v10135_v51 = vpack.c.bf16 %v6017_v46, %v6017_v46  ;;  %v6018_v52 = vmax.f32 %v5512_v47, 0.0  ;;  %v10389_v53 = vpack.c.bf16 %v6271_v48, %v6271_v48  ;;  %v6272_v20 = vmax.f32 %v5766_v50, 0.0  ;;  %v14870_v48 = vld [vmem:[%s15173_s2 + $0x1] ss:$0 sm:$0xff] }
 0x434   : > { %v3610_v57 = vpop.f32.mrb[168].mxu0  ;;  %v4626_v58 = vpop.f32.mrb[168].mxu1 }
 0x435   : > { %8548 = vst.msk [vmem:[%s12290_s29 + $0x348] sm:$0xf] %vm8337_vm4, %v10135_v51  ;;  %v10136_v63 = vpack.c.bf16 %v6018_v52, %v6018_v52  ;;  %v5002_v27 = vmul.f32 %v14517_v56, %v3610_v57  ;;  %v11116_v55 = vpop.f32.mrb[169].mxu0  ;;  %8802 = vst.msk [vmem:[%s12290_s29 + $0x740] sm:$0xf] %vm8337_vm4, %v10389_v53  ;;  %v10390_v59 = vpack.c.bf16 %v6272_v20, %v6272_v20  ;;  %v11624_v3 = vpop.f32.mrb[169].mxu1 }
 0x436   : > { %v3613_v60 = vpop.f32.mrb[170].mxu0  ;;  %v5256_v2 = vmul.f32 %v14517_v56, %v4626_v58  ;;  %v4629_v5 = vpop.f32.mrb[170].mxu1 }
 0x437   : > { %8549 = vst.msk [vmem:[%s12290_s29 + $0x34c] sm:$0xf] %vm8337_vm4, %v10136_v63  ;;  %v5513_v4 = vadd.f32 %v14530_v0, %v5002_v27  ;;  %v5003_v32 = vmul.f32 %v14517_v56, %v3613_v60  ;;  %v11117_v31 = vpop.f32.mrb[171].mxu0  ;;  %8803 = vst.msk [vmem:[%s12290_s29 + $0x744] sm:$0xf] %vm8337_vm4, %v10390_v59  ;;  %v5257_v7 = vmul.f32 %v14517_v56, %v4629_v5  ;;  %v11625_v8 = vpop.f32.mrb[171].mxu1 }
 0x438   : > { %v5767_v6 = vadd.f32 %v14530_v0, %v5256_v2 }
 0x439   : > { %v6019_v9 = vmax.f32 %v5513_v4, 0.0  ;;  %v5514_v10 = vadd.f32 %v14530_v0, %v5003_v32  ;;  %v5768_v12 = vadd.f32 %v14530_v0, %v5257_v7 }
 0x43a   : > { %v6273_v11 = vmax.f32 %v5767_v6, 0.0 }
 0x43b   : > { %v10137_v13 = vpack.c.bf16 %v6019_v9, %v6019_v9  ;;  %v6020_v14 = vmax.f32 %v5514_v10, 0.0  ;;  %v6274_v16 = vmax.f32 %v5768_v12, 0.0 }
 0x43c   : > { %v10391_v15 = vpack.c.bf16 %v6273_v11, %v6273_v11  ;;  %v3618_v17 = vpop.f32.mrb[172].mxu0  ;;  %v4634_v49 = vpop.f32.mrb[172].mxu1 }
 0x43d   : > { %8550 = vst.msk [vmem:[%s12290_s29 + $0x350] sm:$0xf] %vm8337_vm4, %v10137_v13  ;;  %v10138_v1 = vpack.c.bf16 %v6020_v14, %v6020_v14  ;;  %v5004_v18 = vmul.f32 %v14517_v56, %v3618_v17  ;;  %v11120_v19 = vpop.f32.mrb[173].mxu0  ;;  %v10392_v61 = vpack.c.bf16 %v6274_v16, %v6274_v16  ;;  %v5258_v22 = vmul.f32 %v14517_v56, %v4634_v49  ;;  %v11628_v23 = vpop.f32.mrb[173].mxu1 }
 0x43e   : > { %8804 = vst.msk [vmem:[%s12290_s29 + $0x748] sm:$0xf] %vm8337_vm4, %v10391_v15  ;;  %v3621_v21 = vpop.f32.mrb[174].mxu0  ;;  %v4637_v26 = vpop.f32.mrb[174].mxu1 }
 0x43f   : > { %8551 = vst.msk [vmem:[%s12290_s29 + $0x354] sm:$0xf] %vm8337_vm4, %v10138_v1  ;;  %v5515_v24 = vadd.f32 %v14530_v0, %v5004_v18  ;;  %v5005_v54 = vmul.f32 %v14517_v56, %v3621_v21  ;;  %v11121_v25 = vpop.f32.mrb[175].mxu0  ;;  %8805 = vst.msk [vmem:[%s12290_s29 + $0x74c] sm:$0xf] %vm8337_vm4, %v10392_v61  ;;  %v5769_v28 = vadd.f32 %v14530_v0, %v5258_v22  ;;  %v11629_v30 = vpop.f32.mrb[175].mxu1 }
 0x440   : > { %v5259_v29 = vmul.f32 %v14517_v56, %v4637_v26  ;;  %v14859_v56 = vld [vmem:[%s15173_s2] ss:$0 sm:$0xff] }
 0x441   : > { %v6021_v62 = vmax.f32 %v5515_v24, 0.0  ;;  %v5516_v33 = vadd.f32 %v14530_v0, %v5005_v54  ;;  %v6275_v34 = vmax.f32 %v5769_v28, 0.0 }
 0x442   : > { %v5770_v35 = vadd.f32 %v14530_v0, %v5259_v29 }
 0x443   : > { %v10139_v36 = vpack.c.bf16 %v6021_v62, %v6021_v62  ;;  %v6022_v37 = vmax.f32 %v5516_v33, 0.0  ;;  %v10393_v38 = vpack.c.bf16 %v6275_v34, %v6275_v34 }
 0x444   : > { %v6276_v39 = vmax.f32 %v5770_v35, 0.0  ;;  %v3626_v40 = vpop.f32.mrb[176].mxu0  ;;  %v4642_v44 = vpop.f32.mrb[176].mxu1 }
 0x445   : > { %8552 = vst.msk [vmem:[%s12290_s29 + $0x358] sm:$0xf] %vm8337_vm4, %v10139_v36  ;;  %v10140_v41 = vpack.c.bf16 %v6022_v37, %v6022_v37  ;;  %v5006_v42 = vmul.f32 %v14859_v56, %v3626_v40  ;;  %v11124_v43 = vpop.f32.mrb[177].mxu0  ;;  %8806 = vst.msk [vmem:[%s12290_s29 + $0x750] sm:$0xf] %vm8337_vm4, %v10393_v38  ;;  %v5260_v46 = vmul.f32 %v14859_v56, %v4642_v44  ;;  %v11632_v47 = vpop.f32.mrb[177].mxu1 }
 0x446   : > { %v10394_v0 = vpack.c.bf16 %v6276_v39, %v6276_v39  ;;  %v3629_v45 = vpop.f32.mrb[178].mxu0  ;;  %v4645_v53 = vpop.f32.mrb[178].mxu1 }
 0x447   : > { %8553 = vst.msk [vmem:[%s12290_s29 + $0x35c] sm:$0xf] %vm8337_vm4, %v10140_v41  ;;  %v5517_v50 = vadd.f32 %v14870_v48, %v5006_v42  ;;  %v5007_v51 = vmul.f32 %v14859_v56, %v3629_v45  ;;  %v11125_v52 = vpop.f32.mrb[179].mxu0  ;;  %v5771_v20 = vadd.f32 %v14870_v48, %v5260_v46  ;;  %v5261_v57 = vmul.f32 %v14859_v56, %v4645_v53  ;;  %v11633_v63 = vpop.f32.mrb[179].mxu1 }
 0x448   : > { %8807 = vst.msk [vmem:[%s12290_s29 + $0x754] sm:$0xf] %vm8337_vm4, %v10394_v0 }
 0x449   : > { %v6023_v27 = vmax.f32 %v5517_v50, 0.0  ;;  %v5518_v55 = vadd.f32 %v14870_v48, %v5007_v51  ;;  %v6277_v58 = vmax.f32 %v5771_v20, 0.0  ;;  %v5772_v59 = vadd.f32 %v14870_v48, %v5261_v57 }
 0x44b   : > { %v10141_v60 = vpack.c.bf16 %v6023_v27, %v6023_v27  ;;  %v6024_v2 = vmax.f32 %v5518_v55, 0.0  ;;  %v10395_v3 = vpack.c.bf16 %v6277_v58, %v6277_v58  ;;  %v6278_v4 = vmax.f32 %v5772_v59, 0.0 }
 0x44c   : > { %v3634_v32 = vpop.f32.mrb[180].mxu0  ;;  %v4650_v7 = vpop.f32.mrb[180].mxu1 }
 0x44d   : > { %8554 = vst.msk [vmem:[%s12290_s29 + $0x360] sm:$0xf] %vm8337_vm4, %v10141_v60  ;;  %v10142_v31 = vpack.c.bf16 %v6024_v2, %v6024_v2  ;;  %v5008_v5 = vmul.f32 %v14859_v56, %v3634_v32  ;;  %v11128_v6 = vpop.f32.mrb[181].mxu0  ;;  %8808 = vst.msk [vmem:[%s12290_s29 + $0x758] sm:$0xf] %vm8337_vm4, %v10395_v3  ;;  %v10396_v8 = vpack.c.bf16 %v6278_v4, %v6278_v4  ;;  %v11636_v11 = vpop.f32.mrb[181].mxu1 }
 0x44e   : > { %v3637_v9 = vpop.f32.mrb[182].mxu0  ;;  %v5262_v10 = vmul.f32 %v14859_v56, %v4650_v7  ;;  %v4653_v15 = vpop.f32.mrb[182].mxu1 }
 0x44f   : > { %8555 = vst.msk [vmem:[%s12290_s29 + $0x364] sm:$0xf] %vm8337_vm4, %v10142_v31  ;;  %v5519_v12 = vadd.f32 %v14870_v48, %v5008_v5  ;;  %v5009_v13 = vmul.f32 %v14859_v56, %v3637_v9  ;;  %v11129_v14 = vpop.f32.mrb[183].mxu0  ;;  %8809 = vst.msk [vmem:[%s12290_s29 + $0x75c] sm:$0xf] %vm8337_vm4, %v10396_v8  ;;  %v5263_v17 = vmul.f32 %v14859_v56, %v4653_v15  ;;  %v11637_v1 = vpop.f32.mrb[183].mxu1 }
 0x450   : > { %v5773_v16 = vadd.f32 %v14870_v48, %v5262_v10 }
 0x451   : > { %v6025_v18 = vmax.f32 %v5519_v12, 0.0  ;;  %v5520_v19 = vadd.f32 %v14870_v48, %v5009_v13  ;;  %v5774_v61 = vadd.f32 %v14870_v48, %v5263_v17 }
 0x452   : > { %v6279_v49 = vmax.f32 %v5773_v16, 0.0 }
 0x453   : > { %v10143_v21 = vpack.c.bf16 %v6025_v18, %v6025_v18  ;;  %v6026_v22 = vmax.f32 %v5520_v19, 0.0  ;;  %v6280_v24 = vmax.f32 %v5774_v61, 0.0 }
 0x454   : > { %v10397_v23 = vpack.c.bf16 %v6279_v49, %v6279_v49  ;;  %v3642_v54 = vpop.f32.mrb[184].mxu0  ;;  %v4658_v29 = vpop.f32.mrb[184].mxu1 }
 0x455   : > { %8556 = vst.msk [vmem:[%s12290_s29 + $0x368] sm:$0xf] %vm8337_vm4, %v10143_v21  ;;  %v10144_v25 = vpack.c.bf16 %v6026_v22, %v6026_v22  ;;  %v5010_v26 = vmul.f32 %v14859_v56, %v3642_v54  ;;  %v11132_v28 = vpop.f32.mrb[185].mxu0  ;;  %v10398_v30 = vpack.c.bf16 %v6280_v24, %v6280_v24  ;;  %v5264_v33 = vmul.f32 %v14859_v56, %v4658_v29  ;;  %v11640_v34 = vpop.f32.mrb[185].mxu1 }
 0x456   : > { %8810 = vst.msk [vmem:[%s12290_s29 + $0x760] sm:$0xf] %vm8337_vm4, %v10397_v23  ;;  %v3645_v62 = vpop.f32.mrb[186].mxu0  ;;  %v4661_v38 = vpop.f32.mrb[186].mxu1 }
 0x457   : > { %8557 = vst.msk [vmem:[%s12290_s29 + $0x36c] sm:$0xf] %vm8337_vm4, %v10144_v25  ;;  %v5521_v35 = vadd.f32 %v14870_v48, %v5010_v26  ;;  %v5011_v36 = vmul.f32 %v14859_v56, %v3645_v62  ;;  %v11133_v37 = vpop.f32.mrb[187].mxu0  ;;  %8811 = vst.msk [vmem:[%s12290_s29 + $0x764] sm:$0xf] %vm8337_vm4, %v10398_v30  ;;  %v5775_v39 = vadd.f32 %v14870_v48, %v5264_v33  ;;  %v11641_v41 = vpop.f32.mrb[187].mxu1 }
 0x458   : > { %v5265_v40 = vmul.f32 %v14859_v56, %v4661_v38 }
 0x459   : > { %v6027_v42 = vmax.f32 %v5521_v35, 0.0  ;;  %v5522_v43 = vadd.f32 %v14870_v48, %v5011_v36  ;;  %v6281_v44 = vmax.f32 %v5775_v39, 0.0 }
 0x45a   : > { %v5776_v0 = vadd.f32 %v14870_v48, %v5265_v40 }
 0x45b   : > { %v10145_v45 = vpack.c.bf16 %v6027_v42, %v6027_v42  ;;  %v6028_v46 = vmax.f32 %v5522_v43, 0.0  ;;  %v10399_v47 = vpack.c.bf16 %v6281_v44, %v6281_v44 }
 0x45c   : > { %v6282_v50 = vmax.f32 %v5776_v0, 0.0  ;;  %v3650_v51 = vpop.f32.mrb[188].mxu0  ;;  %v4666_v57 = vpop.f32.mrb[188].mxu1 }
 0x45d   : > { %8558 = vst.msk [vmem:[%s12290_s29 + $0x370] sm:$0xf] %vm8337_vm4, %v10145_v45  ;;  %v10146_v52 = vpack.c.bf16 %v6028_v46, %v6028_v46  ;;  %v5012_v53 = vmul.f32 %v14859_v56, %v3650_v51  ;;  %v11136_v20 = vpop.f32.mrb[189].mxu0  ;;  %8812 = vst.msk [vmem:[%s12290_s29 + $0x768] sm:$0xf] %vm8337_vm4, %v10399_v47  ;;  %v5266_v55 = vmul.f32 %v14859_v56, %v4666_v57  ;;  %v11644_v58 = vpop.f32.mrb[189].mxu1 }
 0x45e   : > { %v10400_v63 = vpack.c.bf16 %v6282_v50, %v6282_v50  ;;  %v3653_v27 = vpop.f32.mrb[190].mxu0  ;;  %v4669_v3 = vpop.f32.mrb[190].mxu1 }
 0x45f   : > { %8559 = vst.msk [vmem:[%s12290_s29 + $0x374] sm:$0xf] %vm8337_vm4, %v10146_v52  ;;  %v5523_v59 = vadd.f32 %v14870_v48, %v5012_v53  ;;  %v5013_v60 = vmul.f32 %v14859_v56, %v3653_v27  ;;  %v11137_v2 = vpop.f32.mrb[191].mxu0  ;;  %v5777_v4 = vadd.f32 %v14870_v48, %v5266_v55  ;;  %v5267_v32 = vmul.f32 %v14859_v56, %v4669_v3  ;;  %v11645_v31 = vpop.f32.mrb[191].mxu1 }
 0x460   : > { %8813 = vst.msk [vmem:[%s12290_s29 + $0x76c] sm:$0xf] %vm8337_vm4, %v10400_v63 }
 0x461   : > { %v6029_v5 = vmax.f32 %v5523_v59, 0.0  ;;  %v5524_v6 = vadd.f32 %v14870_v48, %v5013_v60  ;;  %v6283_v7 = vmax.f32 %v5777_v4, 0.0  ;;  %v5778_v8 = vadd.f32 %v14870_v48, %v5267_v32 }
 0x463   : > { %v10147_v9 = vpack.c.bf16 %v6029_v5, %v6029_v5  ;;  %v6030_v10 = vmax.f32 %v5524_v6, 0.0  ;;  %v10401_v11 = vpack.c.bf16 %v6283_v7, %v6283_v7  ;;  %v6284_v12 = vmax.f32 %v5778_v8, 0.0 }
 0x464   : > { %v3658_v13 = vpop.f32.mrb[192].mxu0  ;;  %v4674_v17 = vpop.f32.mrb[192].mxu1 }
 0x465   : > { %8560 = vst.msk [vmem:[%s12290_s29 + $0x378] sm:$0xf] %vm8337_vm4, %v10147_v9  ;;  %v10148_v14 = vpack.c.bf16 %v6030_v10, %v6030_v10  ;;  %v5014_v15 = vmul.f32 %v14859_v56, %v3658_v13  ;;  %v11140_v16 = vpop.f32.mrb[193].mxu0  ;;  %8814 = vst.msk [vmem:[%s12290_s29 + $0x770] sm:$0xf] %vm8337_vm4, %v10401_v11  ;;  %v10402_v1 = vpack.c.bf16 %v6284_v12, %v6284_v12  ;;  %v11648_v49 = vpop.f32.mrb[193].mxu1 }
 0x466   : > { %v3661_v18 = vpop.f32.mrb[194].mxu0  ;;  %v5268_v19 = vmul.f32 %v14859_v56, %v4674_v17  ;;  %v4677_v23 = vpop.f32.mrb[194].mxu1 }
 0x467   : > { %8561 = vst.msk [vmem:[%s12290_s29 + $0x37c] sm:$0xf] %vm8337_vm4, %v10148_v14  ;;  %v5525_v61 = vadd.f32 %v14870_v48, %v5014_v15  ;;  %v5015_v21 = vmul.f32 %v14859_v56, %v3661_v18  ;;  %v11141_v22 = vpop.f32.mrb[195].mxu0  ;;  %8815 = vst.msk [vmem:[%s12290_s29 + $0x774] sm:$0xf] %vm8337_vm4, %v10402_v1  ;;  %v5269_v54 = vmul.f32 %v14859_v56, %v4677_v23  ;;  %v11649_v25 = vpop.f32.mrb[195].mxu1 }
 0x468   : > { %v5779_v24 = vadd.f32 %v14870_v48, %v5268_v19 }
 0x469   : > { %v6031_v26 = vmax.f32 %v5525_v61, 0.0  ;;  %v5526_v28 = vadd.f32 %v14870_v48, %v5015_v21  ;;  %v5780_v30 = vadd.f32 %v14870_v48, %v5269_v54 }
 0x46a   : > { %v6285_v29 = vmax.f32 %v5779_v24, 0.0 }
 0x46b   : > { %v10149_v62 = vpack.c.bf16 %v6031_v26, %v6031_v26  ;;  %v6032_v33 = vmax.f32 %v5526_v28, 0.0  ;;  %v6286_v35 = vmax.f32 %v5780_v30, 0.0 }
 0x46c   : > { %v10403_v34 = vpack.c.bf16 %v6285_v29, %v6285_v29  ;;  %v3666_v36 = vpop.f32.mrb[196].mxu0  ;;  %v4682_v40 = vpop.f32.mrb[196].mxu1 }
 0x46d   : > { %8562 = vst.msk [vmem:[%s12290_s29 + $0x380] sm:$0xf] %vm8337_vm4, %v10149_v62  ;;  %v10150_v37 = vpack.c.bf16 %v6032_v33, %v6032_v33  ;;  %v5016_v38 = vmul.f32 %v14859_v56, %v3666_v36  ;;  %v11144_v39 = vpop.f32.mrb[197].mxu0  ;;  %v10404_v41 = vpack.c.bf16 %v6286_v35, %v6286_v35  ;;  %v5270_v43 = vmul.f32 %v14859_v56, %v4682_v40  ;;  %v11652_v44 = vpop.f32.mrb[197].mxu1 }
 0x46e   : > { %8816 = vst.msk [vmem:[%s12290_s29 + $0x778] sm:$0xf] %vm8337_vm4, %v10403_v34  ;;  %v3669_v42 = vpop.f32.mrb[198].mxu0  ;;  %v4685_v47 = vpop.f32.mrb[198].mxu1 }
 0x46f   : > { %8563 = vst.msk [vmem:[%s12290_s29 + $0x384] sm:$0xf] %vm8337_vm4, %v10150_v37  ;;  %v5527_v0 = vadd.f32 %v14870_v48, %v5016_v38  ;;  %v5017_v45 = vmul.f32 %v14859_v56, %v3669_v42  ;;  %v11145_v46 = vpop.f32.mrb[199].mxu0  ;;  %8817 = vst.msk [vmem:[%s12290_s29 + $0x77c] sm:$0xf] %vm8337_vm4, %v10404_v41  ;;  %v5781_v50 = vadd.f32 %v14870_v48, %v5270_v43  ;;  %v11653_v52 = vpop.f32.mrb[199].mxu1 }
 0x470   : > { %v5271_v51 = vmul.f32 %v14859_v56, %v4685_v47 }
 0x471   : > { %v6033_v53 = vmax.f32 %v5527_v0, 0.0  ;;  %v5528_v20 = vadd.f32 %v14870_v48, %v5017_v45  ;;  %v6287_v57 = vmax.f32 %v5781_v50, 0.0 }
 0x472   : > { %v5782_v63 = vadd.f32 %v14870_v48, %v5271_v51 }
 0x473   : > { %v10151_v27 = vpack.c.bf16 %v6033_v53, %v6033_v53  ;;  %v6034_v55 = vmax.f32 %v5528_v20, 0.0  ;;  %v10405_v58 = vpack.c.bf16 %v6287_v57, %v6287_v57 }
 0x474   : > { %v6288_v59 = vmax.f32 %v5782_v63, 0.0  ;;  %v3674_v60 = vpop.f32.mrb[200].mxu0  ;;  %v4690_v32 = vpop.f32.mrb[200].mxu1 }
 0x475   : > { %8564 = vst.msk [vmem:[%s12290_s29 + $0x388] sm:$0xf] %vm8337_vm4, %v10151_v27  ;;  %v10152_v2 = vpack.c.bf16 %v6034_v55, %v6034_v55  ;;  %v5018_v3 = vmul.f32 %v14859_v56, %v3674_v60  ;;  %v11148_v4 = vpop.f32.mrb[201].mxu0  ;;  %8818 = vst.msk [vmem:[%s12290_s29 + $0x780] sm:$0xf] %vm8337_vm4, %v10405_v58  ;;  %v5272_v6 = vmul.f32 %v14859_v56, %v4690_v32  ;;  %v11656_v7 = vpop.f32.mrb[201].mxu1 }
 0x476   : > { %v10406_v31 = vpack.c.bf16 %v6288_v59, %v6288_v59  ;;  %v3677_v5 = vpop.f32.mrb[202].mxu0  ;;  %v4693_v11 = vpop.f32.mrb[202].mxu1 }
 0x477   : > { %8565 = vst.msk [vmem:[%s12290_s29 + $0x38c] sm:$0xf] %vm8337_vm4, %v10152_v2  ;;  %v5529_v8 = vadd.f32 %v14870_v48, %v5018_v3  ;;  %v5019_v9 = vmul.f32 %v14859_v56, %v3677_v5  ;;  %v11149_v10 = vpop.f32.mrb[203].mxu0  ;;  %v5783_v12 = vadd.f32 %v14870_v48, %v5272_v6  ;;  %v5273_v13 = vmul.f32 %v14859_v56, %v4693_v11  ;;  %v11657_v14 = vpop.f32.mrb[203].mxu1 }
 0x478   : > { %8819 = vst.msk [vmem:[%s12290_s29 + $0x784] sm:$0xf] %vm8337_vm4, %v10406_v31 }
 0x479   : > { %v6035_v15 = vmax.f32 %v5529_v8, 0.0  ;;  %v5530_v16 = vadd.f32 %v14870_v48, %v5019_v9  ;;  %v6289_v17 = vmax.f32 %v5783_v12, 0.0  ;;  %v5784_v1 = vadd.f32 %v14870_v48, %v5273_v13 }
 0x47b   : > { %v10153_v18 = vpack.c.bf16 %v6035_v15, %v6035_v15  ;;  %v6036_v19 = vmax.f32 %v5530_v16, 0.0  ;;  %v10407_v49 = vpack.c.bf16 %v6289_v17, %v6289_v17  ;;  %v6290_v61 = vmax.f32 %v5784_v1, 0.0 }
 0x47c   : > { %v3682_v21 = vpop.f32.mrb[204].mxu0  ;;  %v4698_v54 = vpop.f32.mrb[204].mxu1 }
 0x47d   : > { %8566 = vst.msk [vmem:[%s12290_s29 + $0x390] sm:$0xf] %vm8337_vm4, %v10153_v18  ;;  %v10154_v22 = vpack.c.bf16 %v6036_v19, %v6036_v19  ;;  %v5020_v23 = vmul.f32 %v14859_v56, %v3682_v21  ;;  %v11152_v24 = vpop.f32.mrb[205].mxu0  ;;  %8820 = vst.msk [vmem:[%s12290_s29 + $0x788] sm:$0xf] %vm8337_vm4, %v10407_v49  ;;  %v10408_v25 = vpack.c.bf16 %v6290_v61, %v6290_v61  ;;  %v11660_v29 = vpop.f32.mrb[205].mxu1 }
 0x47e   : > { %v3685_v26 = vpop.f32.mrb[206].mxu0  ;;  %v5274_v28 = vmul.f32 %v14859_v56, %v4698_v54  ;;  %v4701_v34 = vpop.f32.mrb[206].mxu1 }
 0x47f   : > { %8567 = vst.msk [vmem:[%s12290_s29 + $0x394] sm:$0xf] %vm8337_vm4, %v10154_v22  ;;  %v5531_v30 = vadd.f32 %v14870_v48, %v5020_v23  ;;  %v5021_v62 = vmul.f32 %v14859_v56, %v3685_v26  ;;  %v11153_v33 = vpop.f32.mrb[207].mxu0  ;;  %8821 = vst.msk [vmem:[%s12290_s29 + $0x78c] sm:$0xf] %vm8337_vm4, %v10408_v25  ;;  %v5275_v36 = vmul.f32 %v14859_v56, %v4701_v34  ;;  %v11661_v37 = vpop.f32.mrb[207].mxu1 }
 0x480   : > { %v5785_v35 = vadd.f32 %v14870_v48, %v5274_v28 }
 0x481   : > { %v6037_v38 = vmax.f32 %v5531_v30, 0.0  ;;  %v5532_v39 = vadd.f32 %v14870_v48, %v5021_v62  ;;  %v5786_v41 = vadd.f32 %v14870_v48, %v5275_v36 }
 0x482   : > { %v6291_v40 = vmax.f32 %v5785_v35, 0.0 }
 0x483   : > { %v10155_v42 = vpack.c.bf16 %v6037_v38, %v6037_v38  ;;  %v6038_v43 = vmax.f32 %v5532_v39, 0.0  ;;  %v6292_v0 = vmax.f32 %v5786_v41, 0.0 }
 0x484   : > { %v10409_v44 = vpack.c.bf16 %v6291_v40, %v6291_v40  ;;  %v3690_v45 = vpop.f32.mrb[208].mxu0  ;;  %v4706_v51 = vpop.f32.mrb[208].mxu1 }
 0x485   : > { %8568 = vst.msk [vmem:[%s12290_s29 + $0x398] sm:$0xf] %vm8337_vm4, %v10155_v42  ;;  %v10156_v46 = vpack.c.bf16 %v6038_v43, %v6038_v43  ;;  %v5022_v47 = vmul.f32 %v14859_v56, %v3690_v45  ;;  %v11156_v50 = vpop.f32.mrb[209].mxu0  ;;  %v10410_v52 = vpack.c.bf16 %v6292_v0, %v6292_v0  ;;  %v5276_v20 = vmul.f32 %v14859_v56, %v4706_v51  ;;  %v11664_v57 = vpop.f32.mrb[209].mxu1 }
 0x486   : > { %8822 = vst.msk [vmem:[%s12290_s29 + $0x790] sm:$0xf] %vm8337_vm4, %v10409_v44  ;;  %v3693_v53 = vpop.f32.mrb[210].mxu0  ;;  %v4709_v58 = vpop.f32.mrb[210].mxu1 }
 0x487   : > { %8569 = vst.msk [vmem:[%s12290_s29 + $0x39c] sm:$0xf] %vm8337_vm4, %v10156_v46  ;;  %v5533_v63 = vadd.f32 %v14870_v48, %v5022_v47  ;;  %v5023_v27 = vmul.f32 %v14859_v56, %v3693_v53  ;;  %v11157_v55 = vpop.f32.mrb[211].mxu0  ;;  %8823 = vst.msk [vmem:[%s12290_s29 + $0x794] sm:$0xf] %vm8337_vm4, %v10410_v52  ;;  %v5787_v59 = vadd.f32 %v14870_v48, %v5276_v20  ;;  %v11665_v2 = vpop.f32.mrb[211].mxu1 }
 0x488   : > { %v5277_v60 = vmul.f32 %v14859_v56, %v4709_v58 }
 0x489   : > { %v6039_v3 = vmax.f32 %v5533_v63, 0.0  ;;  %v5534_v4 = vadd.f32 %v14870_v48, %v5023_v27  ;;  %v6293_v32 = vmax.f32 %v5787_v59, 0.0 }
 0x48a   : > { %v5788_v31 = vadd.f32 %v14870_v48, %v5277_v60 }
 0x48b   : > { %v10157_v5 = vpack.c.bf16 %v6039_v3, %v6039_v3  ;;  %v6040_v6 = vmax.f32 %v5534_v4, 0.0  ;;  %v10411_v7 = vpack.c.bf16 %v6293_v32, %v6293_v32 }
 0x48c   : > { %v6294_v8 = vmax.f32 %v5788_v31, 0.0  ;;  %v3698_v9 = vpop.f32.mrb[212].mxu0  ;;  %v4714_v13 = vpop.f32.mrb[212].mxu1 }
 0x48d   : > { %8570 = vst.msk [vmem:[%s12290_s29 + $0x3a0] sm:$0xf] %vm8337_vm4, %v10157_v5  ;;  %v10158_v10 = vpack.c.bf16 %v6040_v6, %v6040_v6  ;;  %v5024_v11 = vmul.f32 %v14859_v56, %v3698_v9  ;;  %v11160_v12 = vpop.f32.mrb[213].mxu0  ;;  %8824 = vst.msk [vmem:[%s12290_s29 + $0x798] sm:$0xf] %vm8337_vm4, %v10411_v7  ;;  %v5278_v16 = vmul.f32 %v14859_v56, %v4714_v13  ;;  %v11668_v17 = vpop.f32.mrb[213].mxu1 }
 0x48e   : > { %v10412_v14 = vpack.c.bf16 %v6294_v8, %v6294_v8  ;;  %v3701_v15 = vpop.f32.mrb[214].mxu0  ;;  %v4717_v49 = vpop.f32.mrb[214].mxu1 }
 0x48f   : > { %8571 = vst.msk [vmem:[%s12290_s29 + $0x3a4] sm:$0xf] %vm8337_vm4, %v10158_v10  ;;  %v5535_v1 = vadd.f32 %v14870_v48, %v5024_v11  ;;  %v5025_v18 = vmul.f32 %v14859_v56, %v3701_v15  ;;  %v11161_v19 = vpop.f32.mrb[215].mxu0  ;;  %v5789_v61 = vadd.f32 %v14870_v48, %v5278_v16  ;;  %v5279_v21 = vmul.f32 %v14859_v56, %v4717_v49  ;;  %v11669_v22 = vpop.f32.mrb[215].mxu1 }
 0x490   : > { %8825 = vst.msk [vmem:[%s12290_s29 + $0x79c] sm:$0xf] %vm8337_vm4, %v10412_v14 }
 0x491   : > { %v6041_v23 = vmax.f32 %v5535_v1, 0.0  ;;  %v5536_v24 = vadd.f32 %v14870_v48, %v5025_v18  ;;  %v6295_v54 = vmax.f32 %v5789_v61, 0.0  ;;  %v5790_v25 = vadd.f32 %v14870_v48, %v5279_v21 }
 0x493   : > { %v10159_v26 = vpack.c.bf16 %v6041_v23, %v6041_v23  ;;  %v6042_v28 = vmax.f32 %v5536_v24, 0.0  ;;  %v10413_v29 = vpack.c.bf16 %v6295_v54, %v6295_v54  ;;  %v6296_v30 = vmax.f32 %v5790_v25, 0.0 }
 0x494   : > { %v3706_v62 = vpop.f32.mrb[216].mxu0  ;;  %v4722_v36 = vpop.f32.mrb[216].mxu1 }
 0x495   : > { %8572 = vst.msk [vmem:[%s12290_s29 + $0x3a8] sm:$0xf] %vm8337_vm4, %v10159_v26  ;;  %v10160_v33 = vpack.c.bf16 %v6042_v28, %v6042_v28  ;;  %v5026_v34 = vmul.f32 %v14859_v56, %v3706_v62  ;;  %v11164_v35 = vpop.f32.mrb[217].mxu0  ;;  %8826 = vst.msk [vmem:[%s12290_s29 + $0x7a0] sm:$0xf] %vm8337_vm4, %v10413_v29  ;;  %v10414_v37 = vpack.c.bf16 %v6296_v30, %v6296_v30  ;;  %v11672_v40 = vpop.f32.mrb[217].mxu1 }
 0x496   : > { %v3709_v38 = vpop.f32.mrb[218].mxu0  ;;  %v5280_v39 = vmul.f32 %v14859_v56, %v4722_v36  ;;  %v4725_v44 = vpop.f32.mrb[218].mxu1 }
 0x497   : > { %8573 = vst.msk [vmem:[%s12290_s29 + $0x3ac] sm:$0xf] %vm8337_vm4, %v10160_v33  ;;  %v5537_v41 = vadd.f32 %v14870_v48, %v5026_v34  ;;  %v5027_v42 = vmul.f32 %v14859_v56, %v3709_v38  ;;  %v11165_v43 = vpop.f32.mrb[219].mxu0  ;;  %8827 = vst.msk [vmem:[%s12290_s29 + $0x7a4] sm:$0xf] %vm8337_vm4, %v10414_v37  ;;  %v5281_v45 = vmul.f32 %v14859_v56, %v4725_v44  ;;  %v11673_v46 = vpop.f32.mrb[219].mxu1 }
 0x498   : > { %v5791_v0 = vadd.f32 %v14870_v48, %v5280_v39 }
 0x499   : > { %v6043_v47 = vmax.f32 %v5537_v41, 0.0  ;;  %v5538_v50 = vadd.f32 %v14870_v48, %v5027_v42  ;;  %v5792_v52 = vadd.f32 %v14870_v48, %v5281_v45 }
 0x49a   : > { %v6297_v51 = vmax.f32 %v5791_v0, 0.0 }
 0x49b   : > { %v10161_v53 = vpack.c.bf16 %v6043_v47, %v6043_v47  ;;  %v6044_v20 = vmax.f32 %v5538_v50, 0.0  ;;  %v6298_v63 = vmax.f32 %v5792_v52, 0.0 }
 0x49c   : > { %v10415_v57 = vpack.c.bf16 %v6297_v51, %v6297_v51  ;;  %v3714_v27 = vpop.f32.mrb[220].mxu0  ;;  %v4730_v60 = vpop.f32.mrb[220].mxu1 }
 0x49d   : > { %8574 = vst.msk [vmem:[%s12290_s29 + $0x3b0] sm:$0xf] %vm8337_vm4, %v10161_v53  ;;  %v10162_v55 = vpack.c.bf16 %v6044_v20, %v6044_v20  ;;  %v5028_v58 = vmul.f32 %v14859_v56, %v3714_v27  ;;  %v11168_v59 = vpop.f32.mrb[221].mxu0  ;;  %v10416_v2 = vpack.c.bf16 %v6298_v63, %v6298_v63  ;;  %v5282_v4 = vmul.f32 %v14859_v56, %v4730_v60  ;;  %v11676_v32 = vpop.f32.mrb[221].mxu1 }
 0x49e   : > { %8828 = vst.msk [vmem:[%s12290_s29 + $0x7a8] sm:$0xf] %vm8337_vm4, %v10415_v57  ;;  %v3717_v3 = vpop.f32.mrb[222].mxu0  ;;  %v4733_v7 = vpop.f32.mrb[222].mxu1 }
 0x49f   : > { %8575 = vst.msk [vmem:[%s12290_s29 + $0x3b4] sm:$0xf] %vm8337_vm4, %v10162_v55  ;;  %v5539_v31 = vadd.f32 %v14870_v48, %v5028_v58  ;;  %v5029_v5 = vmul.f32 %v14859_v56, %v3717_v3  ;;  %v11169_v6 = vpop.f32.mrb[223].mxu0  ;;  %8829 = vst.msk [vmem:[%s12290_s29 + $0x7ac] sm:$0xf] %vm8337_vm4, %v10416_v2  ;;  %v5793_v8 = vadd.f32 %v14870_v48, %v5282_v4  ;;  %v11677_v10 = vpop.f32.mrb[223].mxu1 }
 0x4a0   : > { %v5283_v9 = vmul.f32 %v14859_v56, %v4733_v7 }
 0x4a1   : > { %v6045_v11 = vmax.f32 %v5539_v31, 0.0  ;;  %v5540_v12 = vadd.f32 %v14870_v48, %v5029_v5  ;;  %v6299_v13 = vmax.f32 %v5793_v8, 0.0 }
 0x4a2   : > { %v5794_v14 = vadd.f32 %v14870_v48, %v5283_v9 }
 0x4a3   : > { %v10163_v15 = vpack.c.bf16 %v6045_v11, %v6045_v11  ;;  %v6046_v16 = vmax.f32 %v5540_v12, 0.0  ;;  %v10417_v17 = vpack.c.bf16 %v6299_v13, %v6299_v13 }
 0x4a4   : > { %v6300_v1 = vmax.f32 %v5794_v14, 0.0  ;;  %v3722_v18 = vpop.f32.mrb[224].mxu0  ;;  %v4738_v21 = vpop.f32.mrb[224].mxu1 }
 0x4a5   : > { %8576 = vst.msk [vmem:[%s12290_s29 + $0x3b8] sm:$0xf] %vm8337_vm4, %v10163_v15  ;;  %v10164_v19 = vpack.c.bf16 %v6046_v16, %v6046_v16  ;;  %v5030_v49 = vmul.f32 %v14859_v56, %v3722_v18  ;;  %v11172_v61 = vpop.f32.mrb[225].mxu0  ;;  %8830 = vst.msk [vmem:[%s12290_s29 + $0x7b0] sm:$0xf] %vm8337_vm4, %v10417_v17  ;;  %v5284_v24 = vmul.f32 %v14859_v56, %v4738_v21  ;;  %v11680_v54 = vpop.f32.mrb[225].mxu1 }
 0x4a6   : > { %v10418_v22 = vpack.c.bf16 %v6300_v1, %v6300_v1  ;;  %v3725_v23 = vpop.f32.mrb[226].mxu0  ;;  %v4741_v29 = vpop.f32.mrb[226].mxu1 }
 0x4a7   : > { %8577 = vst.msk [vmem:[%s12290_s29 + $0x3bc] sm:$0xf] %vm8337_vm4, %v10164_v19  ;;  %v5541_v25 = vadd.f32 %v14870_v48, %v5030_v49  ;;  %v5031_v26 = vmul.f32 %v14859_v56, %v3725_v23  ;;  %v11173_v28 = vpop.f32.mrb[227].mxu0  ;;  %v5795_v30 = vadd.f32 %v14870_v48, %v5284_v24  ;;  %v5285_v62 = vmul.f32 %v14859_v56, %v4741_v29  ;;  %v11681_v33 = vpop.f32.mrb[227].mxu1 }
 0x4a8   : > { %8831 = vst.msk [vmem:[%s12290_s29 + $0x7b4] sm:$0xf] %vm8337_vm4, %v10418_v22 }
 0x4a9   : > { %v6047_v34 = vmax.f32 %v5541_v25, 0.0  ;;  %v5542_v35 = vadd.f32 %v14870_v48, %v5031_v26  ;;  %v6301_v36 = vmax.f32 %v5795_v30, 0.0  ;;  %v5796_v37 = vadd.f32 %v14870_v48, %v5285_v62 }
 0x4ab   : > { %v10165_v38 = vpack.c.bf16 %v6047_v34, %v6047_v34  ;;  %v6048_v39 = vmax.f32 %v5542_v35, 0.0  ;;  %v10419_v40 = vpack.c.bf16 %v6301_v36, %v6301_v36  ;;  %v6302_v41 = vmax.f32 %v5796_v37, 0.0 }
 0x4ac   : > { %v3730_v42 = vpop.f32.mrb[228].mxu0  ;;  %v4746_v45 = vpop.f32.mrb[228].mxu1 }
 0x4ad   : > { %8578 = vst.msk [vmem:[%s12290_s29 + $0x3c0] sm:$0xf] %vm8337_vm4, %v10165_v38  ;;  %v10166_v43 = vpack.c.bf16 %v6048_v39, %v6048_v39  ;;  %v5032_v44 = vmul.f32 %v14859_v56, %v3730_v42  ;;  %v11176_v0 = vpop.f32.mrb[229].mxu0  ;;  %8832 = vst.msk [vmem:[%s12290_s29 + $0x7b8] sm:$0xf] %vm8337_vm4, %v10419_v40  ;;  %v10420_v46 = vpack.c.bf16 %v6302_v41, %v6302_v41  ;;  %v11684_v51 = vpop.f32.mrb[229].mxu1 }
 0x4ae   : > { %v3733_v47 = vpop.f32.mrb[230].mxu0  ;;  %v5286_v50 = vmul.f32 %v14859_v56, %v4746_v45  ;;  %v4749_v57 = vpop.f32.mrb[230].mxu1 }
 0x4af   : > { %8579 = vst.msk [vmem:[%s12290_s29 + $0x3c4] sm:$0xf] %vm8337_vm4, %v10166_v43  ;;  %v5543_v52 = vadd.f32 %v14870_v48, %v5032_v44  ;;  %v5033_v53 = vmul.f32 %v14859_v56, %v3733_v47  ;;  %v11177_v20 = vpop.f32.mrb[231].mxu0  ;;  %8833 = vst.msk [vmem:[%s12290_s29 + $0x7bc] sm:$0xf] %vm8337_vm4, %v10420_v46  ;;  %v5287_v27 = vmul.f32 %v14859_v56, %v4749_v57  ;;  %v11685_v55 = vpop.f32.mrb[231].mxu1 }
 0x4b0   : > { %v5797_v63 = vadd.f32 %v14870_v48, %v5286_v50 }
 0x4b1   : > { %v6049_v58 = vmax.f32 %v5543_v52, 0.0  ;;  %v5544_v59 = vadd.f32 %v14870_v48, %v5033_v53  ;;  %v5798_v2 = vadd.f32 %v14870_v48, %v5287_v27 }
 0x4b2   : > { %v6303_v60 = vmax.f32 %v5797_v63, 0.0 }
 0x4b3   : > { %v10167_v3 = vpack.c.bf16 %v6049_v58, %v6049_v58  ;;  %v6050_v4 = vmax.f32 %v5544_v59, 0.0  ;;  %v6304_v31 = vmax.f32 %v5798_v2, 0.0 }
 0x4b4   : > { %v10421_v32 = vpack.c.bf16 %v6303_v60, %v6303_v60  ;;  %v3738_v5 = vpop.f32.mrb[232].mxu0  ;;  %v4754_v9 = vpop.f32.mrb[232].mxu1 }
 0x4b5   : > { %8580 = vst.msk [vmem:[%s12290_s29 + $0x3c8] sm:$0xf] %vm8337_vm4, %v10167_v3  ;;  %v10168_v6 = vpack.c.bf16 %v6050_v4, %v6050_v4  ;;  %v5034_v7 = vmul.f32 %v14859_v56, %v3738_v5  ;;  %v11180_v8 = vpop.f32.mrb[233].mxu0  ;;  %v10422_v10 = vpack.c.bf16 %v6304_v31, %v6304_v31  ;;  %v5288_v12 = vmul.f32 %v14859_v56, %v4754_v9  ;;  %v11688_v13 = vpop.f32.mrb[233].mxu1 }
 0x4b6   : > { %8834 = vst.msk [vmem:[%s12290_s29 + $0x7c0] sm:$0xf] %vm8337_vm4, %v10421_v32  ;;  %v3741_v11 = vpop.f32.mrb[234].mxu0  ;;  %v4757_v17 = vpop.f32.mrb[234].mxu1 }
 0x4b7   : > { %8581 = vst.msk [vmem:[%s12290_s29 + $0x3cc] sm:$0xf] %vm8337_vm4, %v10168_v6  ;;  %v5545_v14 = vadd.f32 %v14870_v48, %v5034_v7  ;;  %v5035_v15 = vmul.f32 %v14859_v56, %v3741_v11  ;;  %v11181_v16 = vpop.f32.mrb[235].mxu0  ;;  %8835 = vst.msk [vmem:[%s12290_s29 + $0x7c4] sm:$0xf] %vm8337_vm4, %v10422_v10  ;;  %v5799_v1 = vadd.f32 %v14870_v48, %v5288_v12  ;;  %v11689_v19 = vpop.f32.mrb[235].mxu1 }
 0x4b8   : > { %v5289_v18 = vmul.f32 %v14859_v56, %v4757_v17 }
 0x4b9   : > { %v6051_v49 = vmax.f32 %v5545_v14, 0.0  ;;  %v5546_v61 = vadd.f32 %v14870_v48, %v5035_v15  ;;  %v6305_v21 = vmax.f32 %v5799_v1, 0.0 }
 0x4ba   : > { %v5800_v22 = vadd.f32 %v14870_v48, %v5289_v18 }
 0x4bb   : > { %v10169_v23 = vpack.c.bf16 %v6051_v49, %v6051_v49  ;;  %v6052_v24 = vmax.f32 %v5546_v61, 0.0  ;;  %v10423_v54 = vpack.c.bf16 %v6305_v21, %v6305_v21 }
 0x4bc   : > { %v6306_v25 = vmax.f32 %v5800_v22, 0.0  ;;  %v3746_v26 = vpop.f32.mrb[236].mxu0  ;;  %v4762_v62 = vpop.f32.mrb[236].mxu1 }
 0x4bd   : > { %8582 = vst.msk [vmem:[%s12290_s29 + $0x3d0] sm:$0xf] %vm8337_vm4, %v10169_v23  ;;  %v10170_v28 = vpack.c.bf16 %v6052_v24, %v6052_v24  ;;  %v5036_v29 = vmul.f32 %v14859_v56, %v3746_v26  ;;  %v11184_v30 = vpop.f32.mrb[237].mxu0  ;;  %8836 = vst.msk [vmem:[%s12290_s29 + $0x7c8] sm:$0xf] %vm8337_vm4, %v10423_v54  ;;  %v5290_v35 = vmul.f32 %v14859_v56, %v4762_v62  ;;  %v11692_v36 = vpop.f32.mrb[237].mxu1 }
 0x4be   : > { %v10424_v33 = vpack.c.bf16 %v6306_v25, %v6306_v25  ;;  %v3749_v34 = vpop.f32.mrb[238].mxu0  ;;  %v4765_v40 = vpop.f32.mrb[238].mxu1 }
 0x4bf   : > { %8583 = vst.msk [vmem:[%s12290_s29 + $0x3d4] sm:$0xf] %vm8337_vm4, %v10170_v28  ;;  %v5547_v37 = vadd.f32 %v14870_v48, %v5036_v29  ;;  %v5037_v38 = vmul.f32 %v14859_v56, %v3749_v34  ;;  %v11185_v39 = vpop.f32.mrb[239].mxu0  ;;  %v5801_v41 = vadd.f32 %v14870_v48, %v5290_v35  ;;  %v5291_v42 = vmul.f32 %v14859_v56, %v4765_v40  ;;  %v11693_v43 = vpop.f32.mrb[239].mxu1 }
 0x4c0   : > { %8837 = vst.msk [vmem:[%s12290_s29 + $0x7cc] sm:$0xf] %vm8337_vm4, %v10424_v33 }
 0x4c1   : > { %v6053_v44 = vmax.f32 %v5547_v37, 0.0  ;;  %v5548_v0 = vadd.f32 %v14870_v48, %v5037_v38  ;;  %v6307_v45 = vmax.f32 %v5801_v41, 0.0  ;;  %v5802_v46 = vadd.f32 %v14870_v48, %v5291_v42 }
 0x4c3   : > { %v10171_v47 = vpack.c.bf16 %v6053_v44, %v6053_v44  ;;  %v6054_v50 = vmax.f32 %v5548_v0, 0.0  ;;  %v10425_v51 = vpack.c.bf16 %v6307_v45, %v6307_v45  ;;  %v6308_v52 = vmax.f32 %v5802_v46, 0.0 }
 0x4c4   : > { %v3754_v53 = vpop.f32.mrb[240].mxu0  ;;  %v4770_v27 = vpop.f32.mrb[240].mxu1 }
 0x4c5   : > { %8584 = vst.msk [vmem:[%s12290_s29 + $0x3d8] sm:$0xf] %vm8337_vm4, %v10171_v47  ;;  %v10172_v20 = vpack.c.bf16 %v6054_v50, %v6054_v50  ;;  %v5038_v57 = vmul.f32 %v14859_v56, %v3754_v53  ;;  %v11188_v63 = vpop.f32.mrb[241].mxu0  ;;  %8838 = vst.msk [vmem:[%s12290_s29 + $0x7d0] sm:$0xf] %vm8337_vm4, %v10425_v51  ;;  %v10426_v55 = vpack.c.bf16 %v6308_v52, %v6308_v52  ;;  %v11696_v60 = vpop.f32.mrb[241].mxu1 }
 0x4c6   : > { %v3757_v58 = vpop.f32.mrb[242].mxu0  ;;  %v5292_v59 = vmul.f32 %v14859_v56, %v4770_v27  ;;  %v4773_v32 = vpop.f32.mrb[242].mxu1 }
 0x4c7   : > { %8585 = vst.msk [vmem:[%s12290_s29 + $0x3dc] sm:$0xf] %vm8337_vm4, %v10172_v20  ;;  %v5549_v2 = vadd.f32 %v14870_v48, %v5038_v57  ;;  %v5039_v3 = vmul.f32 %v14859_v56, %v3757_v58  ;;  %v11189_v4 = vpop.f32.mrb[243].mxu0  ;;  %8839 = vst.msk [vmem:[%s12290_s29 + $0x7d4] sm:$0xf] %vm8337_vm4, %v10426_v55  ;;  %v5293_v5 = vmul.f32 %v14859_v56, %v4773_v32  ;;  %v11697_v6 = vpop.f32.mrb[243].mxu1 }
 0x4c8   : > { %v5803_v31 = vadd.f32 %v14870_v48, %v5292_v59 }
 0x4c9   : > { %v6055_v7 = vmax.f32 %v5549_v2, 0.0  ;;  %v5550_v8 = vadd.f32 %v14870_v48, %v5039_v3  ;;  %v5804_v10 = vadd.f32 %v14870_v48, %v5293_v5 }
 0x4ca   : > { %v6309_v9 = vmax.f32 %v5803_v31, 0.0 }
 0x4cb   : > { %v10173_v11 = vpack.c.bf16 %v6055_v7, %v6055_v7  ;;  %v6056_v12 = vmax.f32 %v5550_v8, 0.0  ;;  %v6310_v14 = vmax.f32 %v5804_v10, 0.0 }
 0x4cc   : > { %v10427_v13 = vpack.c.bf16 %v6309_v9, %v6309_v9  ;;  %v3762_v15 = vpop.f32.mrb[244].mxu0  ;;  %v4778_v18 = vpop.f32.mrb[244].mxu1 }
 0x4cd   : > { %8586 = vst.msk [vmem:[%s12290_s29 + $0x3e0] sm:$0xf] %vm8337_vm4, %v10173_v11  ;;  %v10174_v16 = vpack.c.bf16 %v6056_v12, %v6056_v12  ;;  %v5040_v17 = vmul.f32 %v14859_v56, %v3762_v15  ;;  %v11192_v1 = vpop.f32.mrb[245].mxu0  ;;  %v10428_v19 = vpack.c.bf16 %v6310_v14, %v6310_v14  ;;  %v5294_v61 = vmul.f32 %v14859_v56, %v4778_v18  ;;  %v11700_v21 = vpop.f32.mrb[245].mxu1 }
 0x4ce   : > { %8840 = vst.msk [vmem:[%s12290_s29 + $0x7d8] sm:$0xf] %vm8337_vm4, %v10427_v13  ;;  %v3765_v49 = vpop.f32.mrb[246].mxu0  ;;  %v4781_v54 = vpop.f32.mrb[246].mxu1 }
 0x4cf   : > { %8587 = vst.msk [vmem:[%s12290_s29 + $0x3e4] sm:$0xf] %vm8337_vm4, %v10174_v16  ;;  %v5551_v22 = vadd.f32 %v14870_v48, %v5040_v17  ;;  %v5041_v23 = vmul.f32 %v14859_v56, %v3765_v49  ;;  %v11193_v24 = vpop.f32.mrb[247].mxu0  ;;  %8841 = vst.msk [vmem:[%s12290_s29 + $0x7dc] sm:$0xf] %vm8337_vm4, %v10428_v19  ;;  %v5805_v25 = vadd.f32 %v14870_v48, %v5294_v61  ;;  %v11701_v28 = vpop.f32.mrb[247].mxu1 }
 0x4d0   : > { %v5295_v26 = vmul.f32 %v14859_v56, %v4781_v54 }
 0x4d1   : > { %v6057_v29 = vmax.f32 %v5551_v22, 0.0  ;;  %v5552_v30 = vadd.f32 %v14870_v48, %v5041_v23  ;;  %v6311_v62 = vmax.f32 %v5805_v25, 0.0 }
 0x4d2   : > { %v5806_v33 = vadd.f32 %v14870_v48, %v5295_v26 }
 0x4d3   : > { %v10175_v34 = vpack.c.bf16 %v6057_v29, %v6057_v29  ;;  %v6058_v35 = vmax.f32 %v5552_v30, 0.0  ;;  %v10429_v36 = vpack.c.bf16 %v6311_v62, %v6311_v62 }
 0x4d4   : > { %v6312_v37 = vmax.f32 %v5806_v33, 0.0  ;;  %v3770_v38 = vpop.f32.mrb[248].mxu0 }
 0x4d5   : > { %8588 = vst.msk [vmem:[%s12290_s29 + $0x3e8] sm:$0xf] %vm8337_vm4, %v10175_v34  ;;  %v10176_v39 = vpack.c.bf16 %v6058_v35, %v6058_v35  ;;  %v5042_v40 = vmul.f32 %v14859_v56, %v3770_v38  ;;  %v11196_v41 = vpop.f32.mrb[249].mxu0  ;;  %8842 = vst.msk [vmem:[%s12290_s29 + $0x7e0] sm:$0xf] %vm8337_vm4, %v10429_v36 }
 0x4d6   : > { %v10430_v42 = vpack.c.bf16 %v6312_v37, %v6312_v37  ;;  %v3773_v43 = vpop.f32.mrb[250].mxu0 }
 0x4d7   : > { %8589 = vst.msk [vmem:[%s12290_s29 + $0x3ec] sm:$0xf] %vm8337_vm4, %v10176_v39  ;;  %v5553_v44 = vadd.f32 %v14870_v48, %v5042_v40  ;;  %v5043_v0 = vmul.f32 %v14859_v56, %v3773_v43  ;;  %v11197_v45 = vpop.f32.mrb[251].mxu0 }
 0x4d8   : > { %8843 = vst.msk [vmem:[%s12290_s29 + $0x7e4] sm:$0xf] %vm8337_vm4, %v10430_v42 }
 0x4d9   : > { %v6059_v46 = vmax.f32 %v5553_v44, 0.0  ;;  %v5554_v47 = vadd.f32 %v14870_v48, %v5043_v0 }
 0x4db   : > { %v10177_v50 = vpack.c.bf16 %v6059_v46, %v6059_v46  ;;  %v6060_v51 = vmax.f32 %v5554_v47, 0.0 }
 0x4dd   : > { %8590 = vst.msk [vmem:[%s12290_s29 + $0x3f0] sm:$0xf] %vm8337_vm4, %v10177_v50  ;;  %v10178_v52 = vpack.c.bf16 %v6060_v51, %v6060_v51 }
 0x4df   : > { %8591 = vst.msk [vmem:[%s12290_s29 + $0x3f4] sm:$0xf] %vm8337_vm4, %v10178_v52 }
 0x4e0 PF: > { %s13_s12 = sadd.s32 1, %s11992_s12  }
 0x4e1   : > { %p10_p4 = scmp.ge.s32.totalorder %s13_s12, 13  }
 0x4e3   :  { %12 = sbr.rel (!%p10_p4) target bundleno = 1 (0x1), region = 62 }

</bundles_post_ra>
